<compile_context>
chip_gen: v6e
topology: v6e:2x2x1
jax: 0.10.0
libtpu: 0.0.40
codegen_flags: <defaults>
</compile_context>

<pallas_src>
import functools

import numpy as np
import jax
import jax.numpy as jnp
from jax import lax
from jax.experimental import pallas as pl

# ----------------------- model hyper-parameters (small) ----------------------
IMG = 32
IN_CH = 3
PATCH = 4
EMBED = 16
DEPTHS = (2, 2)
HEADS = (2, 4)
WINDOW = 4
MLP_RATIO = 2.0
EPS = 1e-5


# ===================== static (numpy) index / mask helpers ====================
def relative_position_index(ws):
    coords = np.stack(np.meshgrid(np.arange(ws), np.arange(ws), indexing="ij"))
    flat = coords.reshape(2, -1)
    rel = (flat[:, :, None] - flat[:, None, :]).transpose(1, 2, 0).astype(np.int64)
    rel[:, :, 0] += ws - 1
    rel[:, :, 1] += ws - 1
    rel[:, :, 0] *= 2 * ws - 1
    return rel.sum(-1)                                   # (T, T) numpy int


REL_INDEX = relative_position_index(WINDOW)


def make_attn_mask(H, W, ws, sh, sw):
    # torchvision-style shifted-window mask, values in {0, -100}; (nwin, T, T)
    mask = np.zeros((H, W), np.float32)
    cnt = 0
    for hs in [(0, H - ws), (H - ws, H - sh), (H - sh, H)]:
        for wsl in [(0, W - ws), (W - ws, W - sw), (W - sw, W)]:
            mask[hs[0]:hs[1], wsl[0]:wsl[1]] = cnt
            cnt += 1
    mask = mask.reshape(H // ws, ws, W // ws, ws).transpose(0, 2, 1, 3).reshape(-1, ws * ws)
    diff = mask[:, None, :] - mask[:, :, None]
    return np.where(diff != 0, -100.0, 0.0).astype(np.float32)


def _win_order_indices(B, H, W, ws, sh, sw):
    """Row-major token index for each position in (b, h_win, w_win, h_in, w_in)
    window order AFTER a cyclic roll by (-sh, -sw)."""
    nH, nW = H // ws, W // ws
    idx = np.empty(B * H * W, np.int32)
    p = 0
    for b in range(B):
        for hw in range(nH):
            for ww in range(nW):
                for hi in range(ws):
                    for wi in range(ws):
                        h = (hw * ws + hi + sh) % H
                        w = (ww * ws + wi + sw) % W
                        idx[p] = (b * H + h) * W + w
                        p += 1
    return idx


def _merge_gather_indices(B, H, W):
    # quadrant order matches torchvision PatchMerging cat([x0, x1, x2, x3], -1)
    offs = ((0, 0), (1, 0), (0, 1), (1, 1))
    Hh, Wh = H // 2, W // 2
    idx = np.empty(4 * B * Hh * Wh, np.int32)
    p = 0
    for dh, dw in offs:
        for b in range(B):
            for h in range(Hh):
                for w in range(Wh):
                    idx[p] = (b * H + 2 * h + dh) * W + 2 * w + dw
                    p += 1
    return idx


def _inv_perm(p):
    inv = np.empty_like(p)
    inv[p] = np.arange(p.size, dtype=p.dtype)
    return inv


def _perm_matrix(dst_src, n_in):
    m = np.zeros((dst_src.size, n_in), np.float32)
    m[np.arange(dst_src.size), dst_src] = 1.0
    return m


# ============================= in-kernel helpers ==============================
def _ln_f32(x, g, b):
    x = x.astype(jnp.float32)
    mu = jnp.mean(x, axis=-1, keepdims=True)
    var = jnp.mean((x - mu) * (x - mu), axis=-1, keepdims=True)
    return (x - mu) * lax.rsqrt(var + EPS) * g + b


def _swin_block(x, bp, *, heads, BW, T):
    """One full Swin block.  x: (BW*T, C) f32 tokens already in window order."""
    M, C = x.shape
    D = C // heads
    scale = float(D) ** -0.5

    # ---- LN1 + fused QKV: one wide (M, C) x (C, 3C) matmul ----
    h = _ln_f32(x, bp["n1g"][...], bp["n1b"][...]).astype(jnp.bfloat16)
    qkv = jnp.dot(h, bp["qkvw"][...],
                  preferred_element_type=jnp.float32) + bp["qkvb"][...]    # (M, 3C)

    bias = bp["bias"][...]                       # (heads, BW or 1, T, T), mask pre-added
    head_out = []
    for hh in range(heads):                      # static unroll (2 or 4 heads)
        qh = (qkv[:, hh * D:(hh + 1) * D] * scale).reshape(BW, T, D).astype(jnp.bfloat16)
        kh = qkv[:, C + hh * D:C + (hh + 1) * D].reshape(BW, T, D).astype(jnp.bfloat16)
        vh = qkv[:, 2 * C + hh * D:2 * C + (hh + 1) * D].reshape(BW, T, D).astype(jnp.bfloat16)

        s = lax.dot_general(qh, kh, (((2,), (2,)), ((0,), (0,))),
                            preferred_element_type=jnp.float32)           # (BW, T, T)
        s = s + bias[hh]
        s = s - jnp.max(s, axis=-1, keepdims=True)
        p = jnp.exp(s)
        p = p * pl.reciprocal(jnp.sum(p, axis=-1, keepdims=True), approx=True)

        oh = lax.dot_general(p.astype(jnp.bfloat16), vh,
                             (((2,), (1,)), ((0,), (0,))),
                             preferred_element_type=jnp.float32)           # (BW, T, D)
        head_out.append(oh.reshape(M, D))

    # ---- concatenated heads -> single (M, C) x (C, C) output projection ----
    attn = jnp.concatenate(head_out, axis=-1).astype(jnp.bfloat16)
    attn = jnp.dot(attn, bp["projw"][...],
                   preferred_element_type=jnp.float32) + bp["projb"][...]
    x = x + attn

    # ---- LN2 + MLP + residual ----
    h = _ln_f32(x, bp["n2g"][...], bp["n2b"][...]).astype(jnp.bfloat16)
    h = jnp.dot(h, bp["w1"][...], preferred_element_type=jnp.float32) + bp["b1"][...]
    # TODO(synk): torch nn.GELU defaults to the exact erf GELU; tanh approximation used here.
    h = jax.nn.gelu(h, approximate=True).astype(jnp.bfloat16)
    h = jnp.dot(h, bp["w2"][...], preferred_element_type=jnp.float32) + bp["b2"][...]
    return x + h


# ========================= whole-backbone Pallas kernel =======================
def _backbone_kernel(patches_ref, *refs, treedef, batch):
    out_ref = refs[-1]
    kp = jax.tree_util.tree_unflatten(treedef, refs[:-1])

    T = WINDOW * WINDOW
    Hp = Wp = IMG // PATCH
    BW0 = batch * (Hp // WINDOW) * (Wp // WINDOW)
    BW1 = batch * ((Hp // 2) // WINDOW) * ((Wp // 2) // WINDOW)   # == batch here
    hw_final = (Hp // 2) * (Wp // 2)

    # ---- patch embed: conv(k=4,s=4)-as-matmul + LN (rows already in stage-0
    #      window order -- folded into the host-side im2col) ----
    pe = kp["pe"]
    x = jnp.dot(patches_ref[...].astype(jnp.bfloat16), pe["w"][...],
                preferred_element_type=jnp.float32) + pe["b"][...]
    x = _ln_f32(x, pe["ng"][...], pe["nb"][...])                   # (B*Hp*Wp, EMBED)

    # ---- stage 0 (two blocks: regular / shifted windows) ----
    b0, b1 = kp["stage0"]
    x = _swin_block(x, b0, heads=HEADS[0], BW=BW0, T=T)
    # regular-window order -> shifted-window order (cyclic roll + re-partition)
    # as one precomputed permutation matmul
    x = jnp.dot(kp["p_shift"][...], x, preferred_element_type=jnp.float32)
    x = _swin_block(x, b1, heads=HEADS[0], BW=BW0, T=T)

    # ---- patch merging: un-partition + un-roll + 2x2 gather fused into one
    #      permutation matmul, then LN(4C) + reduction Linear(4C -> 2C) ----
    m = jnp.dot(kp["p_merge"][...], x, preferred_element_type=jnp.float32)  # (4*Bm, C)
    Bm = m.shape[0] // 4
    xc = jnp.concatenate([m[0:Bm], m[Bm:2 * Bm], m[2 * Bm:3 * Bm], m[3 * Bm:4 * Bm]],
                         axis=-1)                                           # (Bm, 4C)
    mg = kp["merge"]
    xc = _ln_f32(xc, mg["g"][...], mg["b"][...]).astype(jnp.bfloat16)
    x = jnp.dot(xc, mg["w"][...], preferred_element_type=jnp.float32)       # (Bm, 2C)

    # ---- stage 1 (window == feature map: single window, never shifted) ----
    c0, c1 = kp["stage1"]
    x = _swin_block(x, c0, heads=HEADS[1], BW=BW1, T=T)
    x = _swin_block(x, c1, heads=HEADS[1], BW=BW1, T=T)

    # ---- final LN + global average pool (flatten) ----
    fn = kp["final"]
    h = _ln_f32(x, fn["g"][...], fn["b"][...])
    C = h.shape[-1]
    out_ref[...] = jnp.mean(h.reshape(batch, hw_final, C), axis=1).astype(out_ref.dtype)


# ================================ forward wrapper =============================
def swin_forward(x_nchw, prepared):
    B, Cin, Himg, Wimg = x_nchw.shape
    Hp, Wp = Himg // PATCH, Wimg // PATCH

    # im2col for the 4x4 / stride-4 conv; rows pre-permuted into stage-0 window
    # order so the kernel never re-partitions for the first block.  (one-time
    # XLA prologue on the tiny input -- everything else is one pallas_call)
    patches = x_nchw.reshape(B, Cin, Hp, PATCH, Wp, PATCH).transpose(0, 2, 4, 1, 3, 5)
    patches = patches.reshape(B * Hp * Wp, Cin * PATCH * PATCH)
    patches = jnp.take(patches, prepared["win0_rows"], axis=0)

    kp = prepared["kp"]
    leaves, treedef = jax.tree_util.tree_flatten(kp)
    kernel = functools.partial(_backbone_kernel, treedef=treedef, batch=B)
    out_dim = EMBED * (2 ** (len(DEPTHS) - 1))

    # Gridless pallas_call: every operand is a full-array VMEM block, the whole
    # backbone runs in one kernel invocation (no grid splits by design).
    return pl.pallas_call(
        kernel,
        out_shape=jax.ShapeDtypeStruct((B, out_dim), jnp.float32),
    )(patches, *leaves)


# =============================== parameter init ===============================
def init_params(key):
    keys = iter(jax.random.split(key, 256))

    def nrm(shape):
        return jax.random.normal(next(keys), shape, jnp.float32) * 0.02

    params = {
        "patch_embed": dict(
            w=nrm((EMBED, IN_CH, PATCH, PATCH)),
            b=jnp.zeros((EMBED,), jnp.float32),
            norm_g=jnp.ones((EMBED,), jnp.float32),
            norm_b=jnp.zeros((EMBED,), jnp.float32),
        )
    }
    stages = []
    C = EMBED
    for si in range(len(DEPTHS)):
        heads = HEADS[si]
        hidden = int(C * MLP_RATIO)
        blocks = []
        for _ in range(DEPTHS[si]):
            blocks.append(dict(
                norm1_g=jnp.ones((C,), jnp.float32), norm1_b=jnp.zeros((C,), jnp.float32),
                qkv_w=nrm((C, 3 * C)), qkv_b=jnp.zeros((3 * C,), jnp.float32),
                rel_table=nrm(((2 * WINDOW - 1) ** 2, heads)),
                proj_w=nrm((C, C)), proj_b=jnp.zeros((C,), jnp.float32),
                norm2_g=jnp.ones((C,), jnp.float32), norm2_b=jnp.zeros((C,), jnp.float32),
                mlp_w1=nrm((C, hidden)), mlp_b1=jnp.zeros((hidden,), jnp.float32),
                mlp_w2=nrm((hidden, C)), mlp_b2=jnp.zeros((C,), jnp.float32),
            ))
        merge = None
        if si < len(DEPTHS) - 1:
            merge = dict(
                norm_g=jnp.ones((4 * C,), jnp.float32),
                norm_b=jnp.zeros((4 * C,), jnp.float32),
                red_w=nrm((4 * C, 2 * C)),
            )
        stages.append(dict(blocks=blocks, merge=merge))
        if si < len(DEPTHS) - 1:
            C = 2 * C
    params["stages"] = stages
    params["final_norm"] = dict(g=jnp.ones((C,), jnp.float32), b=jnp.zeros((C,), jnp.float32))
    return params


def prepare_params(params, batch):
    """One-time re-layout for the fused kernel: bf16 matmul weights, 2-D norm
    params, pre-combined (rel-pos bias + shift mask) per block, and the window
    partition / roll / patch-merge gather as one-hot permutation matrices."""
    assert DEPTHS == (2, 2) and len(HEADS) == 2, "fused kernel specialized to this config"
    Hp = Wp = IMG // PATCH
    assert Hp % WINDOW == 0 and (Hp // 2) == WINDOW

    def bf16(a):
        return a.astype(jnp.bfloat16)

    pe = params["patch_embed"]
    kp = {"pe": dict(w=bf16(pe["w"].reshape(EMBED, -1).T),          # (Cin*P*P, EMBED)
                     b=pe["b"].reshape(1, -1),
                     ng=pe["norm_g"].reshape(1, -1),
                     nb=pe["norm_b"].reshape(1, -1))}

    # ---- stage-0 spatial plumbing as permutation matrices (static, numpy) ----
    H0 = W0 = Hp
    sh = 0 if WINDOW >= H0 else WINDOW // 2
    n_tok0 = batch * H0 * W0
    idx_w0 = _win_order_indices(batch, H0, W0, WINDOW, 0, 0)        # regular windows
    idx_ws = _win_order_indices(batch, H0, W0, WINDOW, sh, sh)      # rolled + windows
    inv_w0, inv_ws = _inv_perm(idx_w0), _inv_perm(idx_ws)
    kp["p_shift"] = jnp.asarray(_perm_matrix(inv_w0[idx_ws], n_tok0))
    idx_m = _merge_gather_indices(batch, H0, W0)
    kp["p_merge"] = jnp.asarray(_perm_matrix(inv_ws[idx_m], n_tok0))

    def block_prep(blk, heads, extra_mask):
        C = blk["qkv_w"].shape[0]
        bias = jnp.transpose(blk["rel_table"][REL_INDEX], (2, 0, 1))  # (heads, T, T)
        bias = bias[:, None, :, :]                                    # (heads, 1, T, T)
        if extra_mask is not None:
            bias = bias + extra_mask[None, :, :, :]                   # (heads, BW, T, T)
        return dict(
            n1g=blk["norm1_g"].reshape(1, C), n1b=blk["norm1_b"].reshape(1, C),
            qkvw=bf16(blk["qkv_w"]), qkvb=blk["qkv_b"].reshape(1, -1),
            bias=bias,
            projw=bf16(blk["proj_w"]), projb=blk["proj_b"].reshape(1, C),
            n2g=blk["norm2_g"].reshape(1, C), n2b=blk["norm2_b"].reshape(1, C),
            w1=bf16(blk["mlp_w1"]), b1=blk["mlp_b1"].reshape(1, -1),
            w2=bf16(blk["mlp_w2"]), b2=blk["mlp_b2"].reshape(1, C),
        )

    # stage 0: blocks alternate regular / shifted windows
    shift_mask = None
    if sh > 0:
        shift_mask = np.tile(make_attn_mask(H0, W0, WINDOW, sh, sh), (batch, 1, 1))
    s0 = params["stages"][0]["blocks"]
    kp["stage0"] = [block_prep(s0[0], HEADS[0], None),
                    block_prep(s0[1], HEADS[0], shift_mask)]

    mg = params["stages"][0]["merge"]
    kp["merge"] = dict(g=mg["norm_g"].reshape(1, -1),
                       b=mg["norm_b"].reshape(1, -1),
                       w=bf16(mg["red_w"]))

    # stage 1: window covers the whole feature map -> never shifted
    s1 = params["stages"][1]["blocks"]
    kp["stage1"] = [block_prep(s1[0], HEADS[1], None),
                    block_prep(s1[1], HEADS[1], None)]

    fn = params["final_norm"]
    kp["final"] = dict(g=fn["g"].reshape(1, -1), b=fn["b"].reshape(1, -1))

    return dict(kp=kp, win0_rows=jnp.asarray(idx_w0))


# ==================================== main ====================================
if __name__ == "__main__":
    key = jax.random.PRNGKey(0)
    pkey, xkey = jax.random.split(key)
    params = init_params(pkey)
    x = jax.random.normal(xkey, (2, IN_CH, IMG, IMG), jnp.float32)   # NCHW, like PyTorch
    prepared = prepare_params(params, batch=x.shape[0])

    fwd = jax.jit(swin_forward)
    out = jax.block_until_ready(fwd(x, prepared))

    in_features = EMBED * (2 ** (len(DEPTHS) - 1))
    assert out.shape == (2, in_features), out.shape
    assert bool(jnp.all(jnp.isfinite(out)))
    print("KERNEL_OK")
</pallas_src>

<mosaic_0001>
module attributes {stable_mosaic.version = 11 : i64} {
  func.func @_backbone_kernel(%arg0: memref<128x48xf32, #tpu.memory_space<vmem>>, %arg1: memref<1x32xf32, #tpu.memory_space<vmem>>, %arg2: memref<1x32xf32, #tpu.memory_space<vmem>>, %arg3: memref<1x64xf32, #tpu.memory_space<vmem>>, %arg4: memref<1x64xf32, #tpu.memory_space<vmem>>, %arg5: memref<64x32xbf16, #tpu.memory_space<vmem>>, %arg6: memref<128x128xf32, #tpu.memory_space<vmem>>, %arg7: memref<128x128xf32, #tpu.memory_space<vmem>>, %arg8: memref<1x16xf32, #tpu.memory_space<vmem>>, %arg9: memref<1x16xf32, #tpu.memory_space<vmem>>, %arg10: memref<1x16xf32, #tpu.memory_space<vmem>>, %arg11: memref<48x16xbf16, #tpu.memory_space<vmem>>, %arg12: memref<1x32xf32, #tpu.memory_space<vmem>>, %arg13: memref<1x16xf32, #tpu.memory_space<vmem>>, %arg14: memref<2x1x16x16xf32, #tpu.memory_space<vmem>>, %arg15: memref<1x16xf32, #tpu.memory_space<vmem>>, %arg16: memref<1x16xf32, #tpu.memory_space<vmem>>, %arg17: memref<1x16xf32, #tpu.memory_space<vmem>>, %arg18: memref<1x16xf32, #tpu.memory_space<vmem>>, %arg19: memref<1x16xf32, #tpu.memory_space<vmem>>, %arg20: memref<16x16xbf16, #tpu.memory_space<vmem>>, %arg21: memref<1x48xf32, #tpu.memory_space<vmem>>, %arg22: memref<16x48xbf16, #tpu.memory_space<vmem>>, %arg23: memref<16x32xbf16, #tpu.memory_space<vmem>>, %arg24: memref<32x16xbf16, #tpu.memory_space<vmem>>, %arg25: memref<1x32xf32, #tpu.memory_space<vmem>>, %arg26: memref<1x16xf32, #tpu.memory_space<vmem>>, %arg27: memref<2x8x16x16xf32, #tpu.memory_space<vmem>>, %arg28: memref<1x16xf32, #tpu.memory_space<vmem>>, %arg29: memref<1x16xf32, #tpu.memory_space<vmem>>, %arg30: memref<1x16xf32, #tpu.memory_space<vmem>>, %arg31: memref<1x16xf32, #tpu.memory_space<vmem>>, %arg32: memref<1x16xf32, #tpu.memory_space<vmem>>, %arg33: memref<16x16xbf16, #tpu.memory_space<vmem>>, %arg34: memref<1x48xf32, #tpu.memory_space<vmem>>, %arg35: memref<16x48xbf16, #tpu.memory_space<vmem>>, %arg36: memref<16x32xbf16, #tpu.memory_space<vmem>>, %arg37: memref<32x16xbf16, #tpu.memory_space<vmem>>, %arg38: memref<1x64xf32, #tpu.memory_space<vmem>>, %arg39: memref<1x32xf32, #tpu.memory_space<vmem>>, %arg40: memref<4x1x16x16xf32, #tpu.memory_space<vmem>>, %arg41: memref<1x32xf32, #tpu.memory_space<vmem>>, %arg42: memref<1x32xf32, #tpu.memory_space<vmem>>, %arg43: memref<1x32xf32, #tpu.memory_space<vmem>>, %arg44: memref<1x32xf32, #tpu.memory_space<vmem>>, %arg45: memref<1x32xf32, #tpu.memory_space<vmem>>, %arg46: memref<32x32xbf16, #tpu.memory_space<vmem>>, %arg47: memref<1x96xf32, #tpu.memory_space<vmem>>, %arg48: memref<32x96xbf16, #tpu.memory_space<vmem>>, %arg49: memref<32x64xbf16, #tpu.memory_space<vmem>>, %arg50: memref<64x32xbf16, #tpu.memory_space<vmem>>, %arg51: memref<1x64xf32, #tpu.memory_space<vmem>>, %arg52: memref<1x32xf32, #tpu.memory_space<vmem>>, %arg53: memref<4x1x16x16xf32, #tpu.memory_space<vmem>>, %arg54: memref<1x32xf32, #tpu.memory_space<vmem>>, %arg55: memref<1x32xf32, #tpu.memory_space<vmem>>, %arg56: memref<1x32xf32, #tpu.memory_space<vmem>>, %arg57: memref<1x32xf32, #tpu.memory_space<vmem>>, %arg58: memref<1x32xf32, #tpu.memory_space<vmem>>, %arg59: memref<32x32xbf16, #tpu.memory_space<vmem>>, %arg60: memref<1x96xf32, #tpu.memory_space<vmem>>, %arg61: memref<32x96xbf16, #tpu.memory_space<vmem>>, %arg62: memref<32x64xbf16, #tpu.memory_space<vmem>>, %arg63: memref<64x32xbf16, #tpu.memory_space<vmem>>, %arg64: memref<2x32xf32, #tpu.memory_space<vmem>>) attributes {dimension_semantics = [], scalar_prefetch = 0 : i64, scratch_operands = 0 : i64, tpu.core_type = #tpu.core_type<tc>} {
    %c0 = arith.constant 0 : index
    %c0_0 = arith.constant 0 : index
    %0 = vector.load %arg0[%c0, %c0_0] : memref<128x48xf32, #tpu.memory_space<vmem>>, vector<128x48xf32>
    %1 = arith.truncf %0 : vector<128x48xf32> to vector<128x48xbf16>
    %c0_1 = arith.constant 0 : index
    %c0_2 = arith.constant 0 : index
    %2 = vector.load %arg11[%c0_1, %c0_2] : memref<48x16xbf16, #tpu.memory_space<vmem>>, vector<48x16xbf16>
    %cst = arith.constant dense<0.000000e+00> : vector<128x16xf32>
    %3 = tpu.matmul %1, %2, %cst {dimension_numbers = #tpu.dot_dimension_numbers<[1], [0], [0], [1], [0, 0, 1, 1], [], []>} : vector<128x48xbf16>, vector<48x16xbf16>, vector<128x16xf32> -> vector<128x16xf32>
    %c0_3 = arith.constant 0 : index
    %c0_4 = arith.constant 0 : index
    %4 = vector.load %arg8[%c0_3, %c0_4] : memref<1x16xf32, #tpu.memory_space<vmem>>, vector<1x16xf32>
    %5 = vector.broadcast %4 : vector<1x16xf32> to vector<128x16xf32>
    %6 = arith.addf %3, %5 : vector<128x16xf32>
    %c0_5 = arith.constant 0 : index
    %c0_6 = arith.constant 0 : index
    %7 = vector.load %arg10[%c0_5, %c0_6] : memref<1x16xf32, #tpu.memory_space<vmem>>, vector<1x16xf32>
    %c0_7 = arith.constant 0 : index
    %c0_8 = arith.constant 0 : index
    %8 = vector.load %arg9[%c0_7, %c0_8] : memref<1x16xf32, #tpu.memory_space<vmem>>, vector<1x16xf32>
    %cst_9 = arith.constant dense<0.000000e+00> : vector<128xf32>
    %9 = vector.multi_reduction <add>, %6, %cst_9 [1] : vector<128x16xf32> to vector<128xf32>
    %10 = vector.shape_cast %9 : vector<128xf32> to vector<128x1xf32>
    %cst_10 = arith.constant 1.600000e+01 : f32
    %11 = vector.broadcast %cst_10 : f32 to vector<128x1xf32>
    %12 = arith.divf %10, %11 : vector<128x1xf32>
    %13 = vector.broadcast %12 : vector<128x1xf32> to vector<128x16xf32>
    %14 = arith.subf %6, %13 : vector<128x16xf32>
    %15 = vector.broadcast %12 : vector<128x1xf32> to vector<128x16xf32>
    %16 = arith.subf %6, %15 : vector<128x16xf32>
    %17 = arith.mulf %14, %16 : vector<128x16xf32>
    %cst_11 = arith.constant dense<0.000000e+00> : vector<128xf32>
    %18 = vector.multi_reduction <add>, %17, %cst_11 [1] : vector<128x16xf32> to vector<128xf32>
    %19 = vector.shape_cast %18 : vector<128xf32> to vector<128x1xf32>
    %cst_12 = arith.constant 1.600000e+01 : f32
    %20 = vector.broadcast %cst_12 : f32 to vector<128x1xf32>
    %21 = arith.divf %19, %20 : vector<128x1xf32>
    %22 = vector.broadcast %12 : vector<128x1xf32> to vector<128x16xf32>
    %23 = arith.subf %6, %22 : vector<128x16xf32>
    %cst_13 = arith.constant 9.99999974E-6 : f32
    %24 = vector.broadcast %cst_13 : f32 to vector<128x1xf32>
    %25 = arith.addf %21, %24 : vector<128x1xf32>
    %26 = math.rsqrt %25 : vector<128x1xf32>
    %27 = vector.broadcast %26 : vector<128x1xf32> to vector<128x16xf32>
    %28 = arith.mulf %23, %27 : vector<128x16xf32>
    %29 = vector.broadcast %7 : vector<1x16xf32> to vector<128x16xf32>
    %30 = arith.mulf %28, %29 : vector<128x16xf32>
    %31 = vector.broadcast %8 : vector<1x16xf32> to vector<128x16xf32>
    %32 = arith.addf %30, %31 : vector<128x16xf32>
    %c0_14 = arith.constant 0 : index
    %c0_15 = arith.constant 0 : index
    %33 = vector.load %arg16[%c0_14, %c0_15] : memref<1x16xf32, #tpu.memory_space<vmem>>, vector<1x16xf32>
    %c0_16 = arith.constant 0 : index
    %c0_17 = arith.constant 0 : index
    %34 = vector.load %arg15[%c0_16, %c0_17] : memref<1x16xf32, #tpu.memory_space<vmem>>, vector<1x16xf32>
    %cst_18 = arith.constant dense<0.000000e+00> : vector<128xf32>
    %35 = vector.multi_reduction <add>, %32, %cst_18 [1] : vector<128x16xf32> to vector<128xf32>
    %36 = vector.shape_cast %35 : vector<128xf32> to vector<128x1xf32>
    %cst_19 = arith.constant 1.600000e+01 : f32
    %37 = vector.broadcast %cst_19 : f32 to vector<128x1xf32>
    %38 = arith.divf %36, %37 : vector<128x1xf32>
    %39 = vector.broadcast %38 : vector<128x1xf32> to vector<128x16xf32>
    %40 = arith.subf %32, %39 : vector<128x16xf32>
    %41 = vector.broadcast %38 : vector<128x1xf32> to vector<128x16xf32>
    %42 = arith.subf %32, %41 : vector<128x16xf32>
    %43 = arith.mulf %40, %42 : vector<128x16xf32>
    %cst_20 = arith.constant dense<0.000000e+00> : vector<128xf32>
    %44 = vector.multi_reduction <add>, %43, %cst_20 [1] : vector<128x16xf32> to vector<128xf32>
    %45 = vector.shape_cast %44 : vector<128xf32> to vector<128x1xf32>
    %cst_21 = arith.constant 1.600000e+01 : f32
    %46 = vector.broadcast %cst_21 : f32 to vector<128x1xf32>
    %47 = arith.divf %45, %46 : vector<128x1xf32>
    %48 = vector.broadcast %38 : vector<128x1xf32> to vector<128x16xf32>
    %49 = arith.subf %32, %48 : vector<128x16xf32>
    %cst_22 = arith.constant 9.99999974E-6 : f32
    %50 = vector.broadcast %cst_22 : f32 to vector<128x1xf32>
    %51 = arith.addf %47, %50 : vector<128x1xf32>
    %52 = math.rsqrt %51 : vector<128x1xf32>
    %53 = vector.broadcast %52 : vector<128x1xf32> to vector<128x16xf32>
    %54 = arith.mulf %49, %53 : vector<128x16xf32>
    %55 = vector.broadcast %33 : vector<1x16xf32> to vector<128x16xf32>
    %56 = arith.mulf %54, %55 : vector<128x16xf32>
    %57 = vector.broadcast %34 : vector<1x16xf32> to vector<128x16xf32>
    %58 = arith.addf %56, %57 : vector<128x16xf32>
    %59 = arith.truncf %58 : vector<128x16xf32> to vector<128x16xbf16>
    %c0_23 = arith.constant 0 : index
    %c0_24 = arith.constant 0 : index
    %60 = vector.load %arg22[%c0_23, %c0_24] : memref<16x48xbf16, #tpu.memory_space<vmem>>, vector<16x48xbf16>
    %cst_25 = arith.constant dense<0.000000e+00> : vector<128x48xf32>
    %61 = tpu.matmul %59, %60, %cst_25 {dimension_numbers = #tpu.dot_dimension_numbers<[1], [0], [0], [1], [0, 0, 1, 1], [], []>} : vector<128x16xbf16>, vector<16x48xbf16>, vector<128x48xf32> -> vector<128x48xf32>
    %c0_26 = arith.constant 0 : index
    %c0_27 = arith.constant 0 : index
    %62 = vector.load %arg21[%c0_26, %c0_27] : memref<1x48xf32, #tpu.memory_space<vmem>>, vector<1x48xf32>
    %63 = vector.broadcast %62 : vector<1x48xf32> to vector<128x48xf32>
    %64 = arith.addf %61, %63 : vector<128x48xf32>
    %c0_28 = arith.constant 0 : index
    %c0_29 = arith.constant 0 : index
    %c0_30 = arith.constant 0 : index
    %c0_31 = arith.constant 0 : index
    %65 = vector.load %arg14[%c0_28, %c0_29, %c0_30, %c0_31] : memref<2x1x16x16xf32, #tpu.memory_space<vmem>>, vector<2x1x16x16xf32>
    %66 = vector.extract_strided_slice %64 {offsets = [0, 0], sizes = [128, 8], strides = [1, 1]} : vector<128x48xf32> to vector<128x8xf32>
    %cst_32 = arith.constant 0.353553385 : f32
    %67 = vector.broadcast %cst_32 : f32 to vector<128x8xf32>
    %68 = arith.mulf %66, %67 : vector<128x8xf32>
    %69 = vector.shape_cast %68 : vector<128x8xf32> to vector<8x16x8xf32>
    %70 = arith.truncf %69 : vector<8x16x8xf32> to vector<8x16x8xbf16>
    %71 = vector.extract_strided_slice %64 {offsets = [0, 16], sizes = [128, 8], strides = [1, 1]} : vector<128x48xf32> to vector<128x8xf32>
    %72 = vector.shape_cast %71 : vector<128x8xf32> to vector<8x16x8xf32>
    %73 = arith.truncf %72 : vector<8x16x8xf32> to vector<8x16x8xbf16>
    %74 = vector.extract_strided_slice %64 {offsets = [0, 32], sizes = [128, 8], strides = [1, 1]} : vector<128x48xf32> to vector<128x8xf32>
    %75 = vector.shape_cast %74 : vector<128x8xf32> to vector<8x16x8xf32>
    %76 = arith.truncf %75 : vector<8x16x8xf32> to vector<8x16x8xbf16>
    %cst_33 = arith.constant dense<0.000000e+00> : vector<8x16x16xf32>
    %77 = tpu.matmul %70, %73, %cst_33 {dimension_numbers = #tpu.dot_dimension_numbers<[2], [2], [1], [1], [0, 0, 0, 1, 1, 1], [0], [0]>} : vector<8x16x8xbf16>, vector<8x16x8xbf16>, vector<8x16x16xf32> -> vector<8x16x16xf32>
    %78 = vector.extract_strided_slice %65 {offsets = [0, 0, 0, 0], sizes = [1, 1, 16, 16], strides = [1, 1, 1, 1]} : vector<2x1x16x16xf32> to vector<1x1x16x16xf32>
    %79 = vector.shape_cast %78 : vector<1x1x16x16xf32> to vector<1x16x16xf32>
    %80 = vector.broadcast %79 : vector<1x16x16xf32> to vector<8x16x16xf32>
    %81 = arith.addf %77, %80 : vector<8x16x16xf32>
    %cst_34 = arith.constant dense<0xFF800000> : vector<8x16xf32>
    %82 = vector.multi_reduction <maximumf>, %81, %cst_34 [2] : vector<8x16x16xf32> to vector<8x16xf32>
    %83 = vector.shape_cast %82 : vector<8x16xf32> to vector<8x16x1xf32>
    %84 = vector.broadcast %83 : vector<8x16x1xf32> to vector<8x16x16xf32>
    %85 = arith.subf %81, %84 : vector<8x16x16xf32>
    %86 = math.exp %85 : vector<8x16x16xf32>
    %cst_35 = arith.constant dense<0.000000e+00> : vector<8x16xf32>
    %87 = vector.multi_reduction <add>, %86, %cst_35 [2] : vector<8x16x16xf32> to vector<8x16xf32>
    %88 = vector.shape_cast %87 : vector<8x16xf32> to vector<8x16x1xf32>
    %89 = tpu.reciprocal %88 {approx = true} : vector<8x16x1xf32> -> vector<8x16x1xf32>
    %90 = vector.broadcast %89 : vector<8x16x1xf32> to vector<8x16x16xf32>
    %91 = arith.mulf %86, %90 : vector<8x16x16xf32>
    %92 = arith.truncf %91 : vector<8x16x16xf32> to vector<8x16x16xbf16>
    %cst_36 = arith.constant dense<0.000000e+00> : vector<8x16x8xf32>
    %93 = tpu.matmul %92, %76, %cst_36 {dimension_numbers = #tpu.dot_dimension_numbers<[2], [1], [1], [2], [0, 0, 0, 1, 1, 2], [0], [0]>} : vector<8x16x16xbf16>, vector<8x16x8xbf16>, vector<8x16x8xf32> -> vector<8x16x8xf32>
    %94 = vector.shape_cast %93 : vector<8x16x8xf32> to vector<128x8xf32>
    %95 = vector.extract_strided_slice %64 {offsets = [0, 8], sizes = [128, 8], strides = [1, 1]} : vector<128x48xf32> to vector<128x8xf32>
    %cst_37 = arith.constant 0.353553385 : f32
    %96 = vector.broadcast %cst_37 : f32 to vector<128x8xf32>
    %97 = arith.mulf %95, %96 : vector<128x8xf32>
    %98 = vector.shape_cast %97 : vector<128x8xf32> to vector<8x16x8xf32>
    %99 = arith.truncf %98 : vector<8x16x8xf32> to vector<8x16x8xbf16>
    %100 = vector.extract_strided_slice %64 {offsets = [0, 24], sizes = [128, 8], strides = [1, 1]} : vector<128x48xf32> to vector<128x8xf32>
    %101 = vector.shape_cast %100 : vector<128x8xf32> to vector<8x16x8xf32>
    %102 = arith.truncf %101 : vector<8x16x8xf32> to vector<8x16x8xbf16>
    %103 = vector.extract_strided_slice %64 {offsets = [0, 40], sizes = [128, 8], strides = [1, 1]} : vector<128x48xf32> to vector<128x8xf32>
    %104 = vector.shape_cast %103 : vector<128x8xf32> to vector<8x16x8xf32>
    %105 = arith.truncf %104 : vector<8x16x8xf32> to vector<8x16x8xbf16>
    %cst_38 = arith.constant dense<0.000000e+00> : vector<8x16x16xf32>
    %106 = tpu.matmul %99, %102, %cst_38 {dimension_numbers = #tpu.dot_dimension_numbers<[2], [2], [1], [1], [0, 0, 0, 1, 1, 1], [0], [0]>} : vector<8x16x8xbf16>, vector<8x16x8xbf16>, vector<8x16x16xf32> -> vector<8x16x16xf32>
    %107 = vector.extract_strided_slice %65 {offsets = [1, 0, 0, 0], sizes = [1, 1, 16, 16], strides = [1, 1, 1, 1]} : vector<2x1x16x16xf32> to vector<1x1x16x16xf32>
    %108 = vector.shape_cast %107 : vector<1x1x16x16xf32> to vector<1x16x16xf32>
    %109 = vector.broadcast %108 : vector<1x16x16xf32> to vector<8x16x16xf32>
    %110 = arith.addf %106, %109 : vector<8x16x16xf32>
    %cst_39 = arith.constant dense<0xFF800000> : vector<8x16xf32>
    %111 = vector.multi_reduction <maximumf>, %110, %cst_39 [2] : vector<8x16x16xf32> to vector<8x16xf32>
    %112 = vector.shape_cast %111 : vector<8x16xf32> to vector<8x16x1xf32>
    %113 = vector.broadcast %112 : vector<8x16x1xf32> to vector<8x16x16xf32>
    %114 = arith.subf %110, %113 : vector<8x16x16xf32>
    %115 = math.exp %114 : vector<8x16x16xf32>
    %cst_40 = arith.constant dense<0.000000e+00> : vector<8x16xf32>
    %116 = vector.multi_reduction <add>, %115, %cst_40 [2] : vector<8x16x16xf32> to vector<8x16xf32>
    %117 = vector.shape_cast %116 : vector<8x16xf32> to vector<8x16x1xf32>
    %118 = tpu.reciprocal %117 {approx = true} : vector<8x16x1xf32> -> vector<8x16x1xf32>
    %119 = vector.broadcast %118 : vector<8x16x1xf32> to vector<8x16x16xf32>
    %120 = arith.mulf %115, %119 : vector<8x16x16xf32>
    %121 = arith.truncf %120 : vector<8x16x16xf32> to vector<8x16x16xbf16>
    %cst_41 = arith.constant dense<0.000000e+00> : vector<8x16x8xf32>
    %122 = tpu.matmul %121, %105, %cst_41 {dimension_numbers = #tpu.dot_dimension_numbers<[2], [1], [1], [2], [0, 0, 0, 1, 1, 2], [0], [0]>} : vector<8x16x16xbf16>, vector<8x16x8xbf16>, vector<8x16x8xf32> -> vector<8x16x8xf32>
    %123 = vector.shape_cast %122 : vector<8x16x8xf32> to vector<128x8xf32>
    %124 = tpu.concatenate %94, %123 in 1 : vector<128x8xf32>, vector<128x8xf32> -> vector<128x16xf32>
    %125 = arith.truncf %124 : vector<128x16xf32> to vector<128x16xbf16>
    %c0_42 = arith.constant 0 : index
    %c0_43 = arith.constant 0 : index
    %126 = vector.load %arg20[%c0_42, %c0_43] : memref<16x16xbf16, #tpu.memory_space<vmem>>, vector<16x16xbf16>
    %cst_44 = arith.constant dense<0.000000e+00> : vector<128x16xf32>
    %127 = tpu.matmul %125, %126, %cst_44 {dimension_numbers = #tpu.dot_dimension_numbers<[1], [0], [0], [1], [0, 0, 1, 1], [], []>} : vector<128x16xbf16>, vector<16x16xbf16>, vector<128x16xf32> -> vector<128x16xf32>
    %c0_45 = arith.constant 0 : index
    %c0_46 = arith.constant 0 : index
    %128 = vector.load %arg19[%c0_45, %c0_46] : memref<1x16xf32, #tpu.memory_space<vmem>>, vector<1x16xf32>
    %129 = vector.broadcast %128 : vector<1x16xf32> to vector<128x16xf32>
    %130 = arith.addf %127, %129 : vector<128x16xf32>
    %131 = arith.addf %32, %130 : vector<128x16xf32>
    %c0_47 = arith.constant 0 : index
    %c0_48 = arith.constant 0 : index
    %132 = vector.load %arg18[%c0_47, %c0_48] : memref<1x16xf32, #tpu.memory_space<vmem>>, vector<1x16xf32>
    %c0_49 = arith.constant 0 : index
    %c0_50 = arith.constant 0 : index
    %133 = vector.load %arg17[%c0_49, %c0_50] : memref<1x16xf32, #tpu.memory_space<vmem>>, vector<1x16xf32>
    %cst_51 = arith.constant dense<0.000000e+00> : vector<128xf32>
    %134 = vector.multi_reduction <add>, %131, %cst_51 [1] : vector<128x16xf32> to vector<128xf32>
    %135 = vector.shape_cast %134 : vector<128xf32> to vector<128x1xf32>
    %cst_52 = arith.constant 1.600000e+01 : f32
    %136 = vector.broadcast %cst_52 : f32 to vector<128x1xf32>
    %137 = arith.divf %135, %136 : vector<128x1xf32>
    %138 = vector.broadcast %137 : vector<128x1xf32> to vector<128x16xf32>
    %139 = arith.subf %131, %138 : vector<128x16xf32>
    %140 = vector.broadcast %137 : vector<128x1xf32> to vector<128x16xf32>
    %141 = arith.subf %131, %140 : vector<128x16xf32>
    %142 = arith.mulf %139, %141 : vector<128x16xf32>
    %cst_53 = arith.constant dense<0.000000e+00> : vector<128xf32>
    %143 = vector.multi_reduction <add>, %142, %cst_53 [1] : vector<128x16xf32> to vector<128xf32>
    %144 = vector.shape_cast %143 : vector<128xf32> to vector<128x1xf32>
    %cst_54 = arith.constant 1.600000e+01 : f32
    %145 = vector.broadcast %cst_54 : f32 to vector<128x1xf32>
    %146 = arith.divf %144, %145 : vector<128x1xf32>
    %147 = vector.broadcast %137 : vector<128x1xf32> to vector<128x16xf32>
    %148 = arith.subf %131, %147 : vector<128x16xf32>
    %cst_55 = arith.constant 9.99999974E-6 : f32
    %149 = vector.broadcast %cst_55 : f32 to vector<128x1xf32>
    %150 = arith.addf %146, %149 : vector<128x1xf32>
    %151 = math.rsqrt %150 : vector<128x1xf32>
    %152 = vector.broadcast %151 : vector<128x1xf32> to vector<128x16xf32>
    %153 = arith.mulf %148, %152 : vector<128x16xf32>
    %154 = vector.broadcast %132 : vector<1x16xf32> to vector<128x16xf32>
    %155 = arith.mulf %153, %154 : vector<128x16xf32>
    %156 = vector.broadcast %133 : vector<1x16xf32> to vector<128x16xf32>
    %157 = arith.addf %155, %156 : vector<128x16xf32>
    %158 = arith.truncf %157 : vector<128x16xf32> to vector<128x16xbf16>
    %c0_56 = arith.constant 0 : index
    %c0_57 = arith.constant 0 : index
    %159 = vector.load %arg23[%c0_56, %c0_57] : memref<16x32xbf16, #tpu.memory_space<vmem>>, vector<16x32xbf16>
    %cst_58 = arith.constant dense<0.000000e+00> : vector<128x32xf32>
    %160 = tpu.matmul %158, %159, %cst_58 {dimension_numbers = #tpu.dot_dimension_numbers<[1], [0], [0], [1], [0, 0, 1, 1], [], []>} : vector<128x16xbf16>, vector<16x32xbf16>, vector<128x32xf32> -> vector<128x32xf32>
    %c0_59 = arith.constant 0 : index
    %c0_60 = arith.constant 0 : index
    %161 = vector.load %arg12[%c0_59, %c0_60] : memref<1x32xf32, #tpu.memory_space<vmem>>, vector<1x32xf32>
    %162 = vector.broadcast %161 : vector<1x32xf32> to vector<128x32xf32>
    %163 = arith.addf %160, %162 : vector<128x32xf32>
    %164 = arith.mulf %163, %163 : vector<128x32xf32>
    %165 = arith.mulf %163, %164 : vector<128x32xf32>
    %cst_61 = arith.constant 4.471500e-02 : f32
    %166 = vector.broadcast %cst_61 : f32 to vector<128x32xf32>
    %167 = arith.mulf %166, %165 : vector<128x32xf32>
    %168 = arith.addf %163, %167 : vector<128x32xf32>
    %cst_62 = arith.constant 0.797884583 : f32
    %169 = vector.broadcast %cst_62 : f32 to vector<128x32xf32>
    %170 = arith.mulf %169, %168 : vector<128x32xf32>
    %171 = math.tanh %170 : vector<128x32xf32>
    %cst_63 = arith.constant 1.000000e+00 : f32
    %172 = vector.broadcast %cst_63 : f32 to vector<128x32xf32>
    %173 = arith.addf %172, %171 : vector<128x32xf32>
    %cst_64 = arith.constant 5.000000e-01 : f32
    %174 = vector.broadcast %cst_64 : f32 to vector<128x32xf32>
    %175 = arith.mulf %174, %173 : vector<128x32xf32>
    %176 = arith.mulf %163, %175 : vector<128x32xf32>
    %177 = arith.truncf %176 : vector<128x32xf32> to vector<128x32xbf16>
    %c0_65 = arith.constant 0 : index
    %c0_66 = arith.constant 0 : index
    %178 = vector.load %arg24[%c0_65, %c0_66] : memref<32x16xbf16, #tpu.memory_space<vmem>>, vector<32x16xbf16>
    %cst_67 = arith.constant dense<0.000000e+00> : vector<128x16xf32>
    %179 = tpu.matmul %177, %178, %cst_67 {dimension_numbers = #tpu.dot_dimension_numbers<[1], [0], [0], [1], [0, 0, 1, 1], [], []>} : vector<128x32xbf16>, vector<32x16xbf16>, vector<128x16xf32> -> vector<128x16xf32>
    %c0_68 = arith.constant 0 : index
    %c0_69 = arith.constant 0 : index
    %180 = vector.load %arg13[%c0_68, %c0_69] : memref<1x16xf32, #tpu.memory_space<vmem>>, vector<1x16xf32>
    %181 = vector.broadcast %180 : vector<1x16xf32> to vector<128x16xf32>
    %182 = arith.addf %179, %181 : vector<128x16xf32>
    %183 = arith.addf %131, %182 : vector<128x16xf32>
    %c0_70 = arith.constant 0 : index
    %c0_71 = arith.constant 0 : index
    %184 = vector.load %arg7[%c0_70, %c0_71] : memref<128x128xf32, #tpu.memory_space<vmem>>, vector<128x128xf32>
    %cst_72 = arith.constant dense<0.000000e+00> : vector<128x16xf32>
    %185 = tpu.matmul %184, %183, %cst_72 {dimension_numbers = #tpu.dot_dimension_numbers<[1], [0], [0], [1], [0, 0, 1, 1], [], []>} : vector<128x128xf32>, vector<128x16xf32>, vector<128x16xf32> -> vector<128x16xf32>
    %c0_73 = arith.constant 0 : index
    %c0_74 = arith.constant 0 : index
    %186 = vector.load %arg29[%c0_73, %c0_74] : memref<1x16xf32, #tpu.memory_space<vmem>>, vector<1x16xf32>
    %c0_75 = arith.constant 0 : index
    %c0_76 = arith.constant 0 : index
    %187 = vector.load %arg28[%c0_75, %c0_76] : memref<1x16xf32, #tpu.memory_space<vmem>>, vector<1x16xf32>
    %cst_77 = arith.constant dense<0.000000e+00> : vector<128xf32>
    %188 = vector.multi_reduction <add>, %185, %cst_77 [1] : vector<128x16xf32> to vector<128xf32>
    %189 = vector.shape_cast %188 : vector<128xf32> to vector<128x1xf32>
    %cst_78 = arith.constant 1.600000e+01 : f32
    %190 = vector.broadcast %cst_78 : f32 to vector<128x1xf32>
    %191 = arith.divf %189, %190 : vector<128x1xf32>
    %192 = vector.broadcast %191 : vector<128x1xf32> to vector<128x16xf32>
    %193 = arith.subf %185, %192 : vector<128x16xf32>
    %194 = vector.broadcast %191 : vector<128x1xf32> to vector<128x16xf32>
    %195 = arith.subf %185, %194 : vector<128x16xf32>
    %196 = arith.mulf %193, %195 : vector<128x16xf32>
    %cst_79 = arith.constant dense<0.000000e+00> : vector<128xf32>
    %197 = vector.multi_reduction <add>, %196, %cst_79 [1] : vector<128x16xf32> to vector<128xf32>
    %198 = vector.shape_cast %197 : vector<128xf32> to vector<128x1xf32>
    %cst_80 = arith.constant 1.600000e+01 : f32
    %199 = vector.broadcast %cst_80 : f32 to vector<128x1xf32>
    %200 = arith.divf %198, %199 : vector<128x1xf32>
    %201 = vector.broadcast %191 : vector<128x1xf32> to vector<128x16xf32>
    %202 = arith.subf %185, %201 : vector<128x16xf32>
    %cst_81 = arith.constant 9.99999974E-6 : f32
    %203 = vector.broadcast %cst_81 : f32 to vector<128x1xf32>
    %204 = arith.addf %200, %203 : vector<128x1xf32>
    %205 = math.rsqrt %204 : vector<128x1xf32>
    %206 = vector.broadcast %205 : vector<128x1xf32> to vector<128x16xf32>
    %207 = arith.mulf %202, %206 : vector<128x16xf32>
    %208 = vector.broadcast %186 : vector<1x16xf32> to vector<128x16xf32>
    %209 = arith.mulf %207, %208 : vector<128x16xf32>
    %210 = vector.broadcast %187 : vector<1x16xf32> to vector<128x16xf32>
    %211 = arith.addf %209, %210 : vector<128x16xf32>
    %212 = arith.truncf %211 : vector<128x16xf32> to vector<128x16xbf16>
    %c0_82 = arith.constant 0 : index
    %c0_83 = arith.constant 0 : index
    %213 = vector.load %arg35[%c0_82, %c0_83] : memref<16x48xbf16, #tpu.memory_space<vmem>>, vector<16x48xbf16>
    %cst_84 = arith.constant dense<0.000000e+00> : vector<128x48xf32>
    %214 = tpu.matmul %212, %213, %cst_84 {dimension_numbers = #tpu.dot_dimension_numbers<[1], [0], [0], [1], [0, 0, 1, 1], [], []>} : vector<128x16xbf16>, vector<16x48xbf16>, vector<128x48xf32> -> vector<128x48xf32>
    %c0_85 = arith.constant 0 : index
    %c0_86 = arith.constant 0 : index
    %215 = vector.load %arg34[%c0_85, %c0_86] : memref<1x48xf32, #tpu.memory_space<vmem>>, vector<1x48xf32>
    %216 = vector.broadcast %215 : vector<1x48xf32> to vector<128x48xf32>
    %217 = arith.addf %214, %216 : vector<128x48xf32>
    %c0_87 = arith.constant 0 : index
    %c0_88 = arith.constant 0 : index
    %c0_89 = arith.constant 0 : index
    %c0_90 = arith.constant 0 : index
    %218 = vector.load %arg27[%c0_87, %c0_88, %c0_89, %c0_90] : memref<2x8x16x16xf32, #tpu.memory_space<vmem>>, vector<2x8x16x16xf32>
    %219 = vector.extract_strided_slice %217 {offsets = [0, 0], sizes = [128, 8], strides = [1, 1]} : vector<128x48xf32> to vector<128x8xf32>
    %cst_91 = arith.constant 0.353553385 : f32
    %220 = vector.broadcast %cst_91 : f32 to vector<128x8xf32>
    %221 = arith.mulf %219, %220 : vector<128x8xf32>
    %222 = vector.shape_cast %221 : vector<128x8xf32> to vector<8x16x8xf32>
    %223 = arith.truncf %222 : vector<8x16x8xf32> to vector<8x16x8xbf16>
    %224 = vector.extract_strided_slice %217 {offsets = [0, 16], sizes = [128, 8], strides = [1, 1]} : vector<128x48xf32> to vector<128x8xf32>
    %225 = vector.shape_cast %224 : vector<128x8xf32> to vector<8x16x8xf32>
    %226 = arith.truncf %225 : vector<8x16x8xf32> to vector<8x16x8xbf16>
    %227 = vector.extract_strided_slice %217 {offsets = [0, 32], sizes = [128, 8], strides = [1, 1]} : vector<128x48xf32> to vector<128x8xf32>
    %228 = vector.shape_cast %227 : vector<128x8xf32> to vector<8x16x8xf32>
    %229 = arith.truncf %228 : vector<8x16x8xf32> to vector<8x16x8xbf16>
    %cst_92 = arith.constant dense<0.000000e+00> : vector<8x16x16xf32>
    %230 = tpu.matmul %223, %226, %cst_92 {dimension_numbers = #tpu.dot_dimension_numbers<[2], [2], [1], [1], [0, 0, 0, 1, 1, 1], [0], [0]>} : vector<8x16x8xbf16>, vector<8x16x8xbf16>, vector<8x16x16xf32> -> vector<8x16x16xf32>
    %231 = vector.extract_strided_slice %218 {offsets = [0, 0, 0, 0], sizes = [1, 8, 16, 16], strides = [1, 1, 1, 1]} : vector<2x8x16x16xf32> to vector<1x8x16x16xf32>
    %232 = vector.shape_cast %231 : vector<1x8x16x16xf32> to vector<8x16x16xf32>
    %233 = arith.addf %230, %232 : vector<8x16x16xf32>
    %cst_93 = arith.constant dense<0xFF800000> : vector<8x16xf32>
    %234 = vector.multi_reduction <maximumf>, %233, %cst_93 [2] : vector<8x16x16xf32> to vector<8x16xf32>
    %235 = vector.shape_cast %234 : vector<8x16xf32> to vector<8x16x1xf32>
    %236 = vector.broadcast %235 : vector<8x16x1xf32> to vector<8x16x16xf32>
    %237 = arith.subf %233, %236 : vector<8x16x16xf32>
    %238 = math.exp %237 : vector<8x16x16xf32>
    %cst_94 = arith.constant dense<0.000000e+00> : vector<8x16xf32>
    %239 = vector.multi_reduction <add>, %238, %cst_94 [2] : vector<8x16x16xf32> to vector<8x16xf32>
    %240 = vector.shape_cast %239 : vector<8x16xf32> to vector<8x16x1xf32>
    %241 = tpu.reciprocal %240 {approx = true} : vector<8x16x1xf32> -> vector<8x16x1xf32>
    %242 = vector.broadcast %241 : vector<8x16x1xf32> to vector<8x16x16xf32>
    %243 = arith.mulf %238, %242 : vector<8x16x16xf32>
    %244 = arith.truncf %243 : vector<8x16x16xf32> to vector<8x16x16xbf16>
    %cst_95 = arith.constant dense<0.000000e+00> : vector<8x16x8xf32>
    %245 = tpu.matmul %244, %229, %cst_95 {dimension_numbers = #tpu.dot_dimension_numbers<[2], [1], [1], [2], [0, 0, 0, 1, 1, 2], [0], [0]>} : vector<8x16x16xbf16>, vector<8x16x8xbf16>, vector<8x16x8xf32> -> vector<8x16x8xf32>
    %246 = vector.shape_cast %245 : vector<8x16x8xf32> to vector<128x8xf32>
    %247 = vector.extract_strided_slice %217 {offsets = [0, 8], sizes = [128, 8], strides = [1, 1]} : vector<128x48xf32> to vector<128x8xf32>
    %cst_96 = arith.constant 0.353553385 : f32
    %248 = vector.broadcast %cst_96 : f32 to vector<128x8xf32>
    %249 = arith.mulf %247, %248 : vector<128x8xf32>
    %250 = vector.shape_cast %249 : vector<128x8xf32> to vector<8x16x8xf32>
    %251 = arith.truncf %250 : vector<8x16x8xf32> to vector<8x16x8xbf16>
    %252 = vector.extract_strided_slice %217 {offsets = [0, 24], sizes = [128, 8], strides = [1, 1]} : vector<128x48xf32> to vector<128x8xf32>
    %253 = vector.shape_cast %252 : vector<128x8xf32> to vector<8x16x8xf32>
    %254 = arith.truncf %253 : vector<8x16x8xf32> to vector<8x16x8xbf16>
    %255 = vector.extract_strided_slice %217 {offsets = [0, 40], sizes = [128, 8], strides = [1, 1]} : vector<128x48xf32> to vector<128x8xf32>
    %256 = vector.shape_cast %255 : vector<128x8xf32> to vector<8x16x8xf32>
    %257 = arith.truncf %256 : vector<8x16x8xf32> to vector<8x16x8xbf16>
    %cst_97 = arith.constant dense<0.000000e+00> : vector<8x16x16xf32>
    %258 = tpu.matmul %251, %254, %cst_97 {dimension_numbers = #tpu.dot_dimension_numbers<[2], [2], [1], [1], [0, 0, 0, 1, 1, 1], [0], [0]>} : vector<8x16x8xbf16>, vector<8x16x8xbf16>, vector<8x16x16xf32> -> vector<8x16x16xf32>
    %259 = vector.extract_strided_slice %218 {offsets = [1, 0, 0, 0], sizes = [1, 8, 16, 16], strides = [1, 1, 1, 1]} : vector<2x8x16x16xf32> to vector<1x8x16x16xf32>
    %260 = vector.shape_cast %259 : vector<1x8x16x16xf32> to vector<8x16x16xf32>
    %261 = arith.addf %258, %260 : vector<8x16x16xf32>
    %cst_98 = arith.constant dense<0xFF800000> : vector<8x16xf32>
    %262 = vector.multi_reduction <maximumf>, %261, %cst_98 [2] : vector<8x16x16xf32> to vector<8x16xf32>
    %263 = vector.shape_cast %262 : vector<8x16xf32> to vector<8x16x1xf32>
    %264 = vector.broadcast %263 : vector<8x16x1xf32> to vector<8x16x16xf32>
    %265 = arith.subf %261, %264 : vector<8x16x16xf32>
    %266 = math.exp %265 : vector<8x16x16xf32>
    %cst_99 = arith.constant dense<0.000000e+00> : vector<8x16xf32>
    %267 = vector.multi_reduction <add>, %266, %cst_99 [2] : vector<8x16x16xf32> to vector<8x16xf32>
    %268 = vector.shape_cast %267 : vector<8x16xf32> to vector<8x16x1xf32>
    %269 = tpu.reciprocal %268 {approx = true} : vector<8x16x1xf32> -> vector<8x16x1xf32>
    %270 = vector.broadcast %269 : vector<8x16x1xf32> to vector<8x16x16xf32>
    %271 = arith.mulf %266, %270 : vector<8x16x16xf32>
    %272 = arith.truncf %271 : vector<8x16x16xf32> to vector<8x16x16xbf16>
    %cst_100 = arith.constant dense<0.000000e+00> : vector<8x16x8xf32>
    %273 = tpu.matmul %272, %257, %cst_100 {dimension_numbers = #tpu.dot_dimension_numbers<[2], [1], [1], [2], [0, 0, 0, 1, 1, 2], [0], [0]>} : vector<8x16x16xbf16>, vector<8x16x8xbf16>, vector<8x16x8xf32> -> vector<8x16x8xf32>
    %274 = vector.shape_cast %273 : vector<8x16x8xf32> to vector<128x8xf32>
    %275 = tpu.concatenate %246, %274 in 1 : vector<128x8xf32>, vector<128x8xf32> -> vector<128x16xf32>
    %276 = arith.truncf %275 : vector<128x16xf32> to vector<128x16xbf16>
    %c0_101 = arith.constant 0 : index
    %c0_102 = arith.constant 0 : index
    %277 = vector.load %arg33[%c0_101, %c0_102] : memref<16x16xbf16, #tpu.memory_space<vmem>>, vector<16x16xbf16>
    %cst_103 = arith.constant dense<0.000000e+00> : vector<128x16xf32>
    %278 = tpu.matmul %276, %277, %cst_103 {dimension_numbers = #tpu.dot_dimension_numbers<[1], [0], [0], [1], [0, 0, 1, 1], [], []>} : vector<128x16xbf16>, vector<16x16xbf16>, vector<128x16xf32> -> vector<128x16xf32>
    %c0_104 = arith.constant 0 : index
    %c0_105 = arith.constant 0 : index
    %279 = vector.load %arg32[%c0_104, %c0_105] : memref<1x16xf32, #tpu.memory_space<vmem>>, vector<1x16xf32>
    %280 = vector.broadcast %279 : vector<1x16xf32> to vector<128x16xf32>
    %281 = arith.addf %278, %280 : vector<128x16xf32>
    %282 = arith.addf %185, %281 : vector<128x16xf32>
    %c0_106 = arith.constant 0 : index
    %c0_107 = arith.constant 0 : index
    %283 = vector.load %arg31[%c0_106, %c0_107] : memref<1x16xf32, #tpu.memory_space<vmem>>, vector<1x16xf32>
    %c0_108 = arith.constant 0 : index
    %c0_109 = arith.constant 0 : index
    %284 = vector.load %arg30[%c0_108, %c0_109] : memref<1x16xf32, #tpu.memory_space<vmem>>, vector<1x16xf32>
    %cst_110 = arith.constant dense<0.000000e+00> : vector<128xf32>
    %285 = vector.multi_reduction <add>, %282, %cst_110 [1] : vector<128x16xf32> to vector<128xf32>
    %286 = vector.shape_cast %285 : vector<128xf32> to vector<128x1xf32>
    %cst_111 = arith.constant 1.600000e+01 : f32
    %287 = vector.broadcast %cst_111 : f32 to vector<128x1xf32>
    %288 = arith.divf %286, %287 : vector<128x1xf32>
    %289 = vector.broadcast %288 : vector<128x1xf32> to vector<128x16xf32>
    %290 = arith.subf %282, %289 : vector<128x16xf32>
    %291 = vector.broadcast %288 : vector<128x1xf32> to vector<128x16xf32>
    %292 = arith.subf %282, %291 : vector<128x16xf32>
    %293 = arith.mulf %290, %292 : vector<128x16xf32>
    %cst_112 = arith.constant dense<0.000000e+00> : vector<128xf32>
    %294 = vector.multi_reduction <add>, %293, %cst_112 [1] : vector<128x16xf32> to vector<128xf32>
    %295 = vector.shape_cast %294 : vector<128xf32> to vector<128x1xf32>
    %cst_113 = arith.constant 1.600000e+01 : f32
    %296 = vector.broadcast %cst_113 : f32 to vector<128x1xf32>
    %297 = arith.divf %295, %296 : vector<128x1xf32>
    %298 = vector.broadcast %288 : vector<128x1xf32> to vector<128x16xf32>
    %299 = arith.subf %282, %298 : vector<128x16xf32>
    %cst_114 = arith.constant 9.99999974E-6 : f32
    %300 = vector.broadcast %cst_114 : f32 to vector<128x1xf32>
    %301 = arith.addf %297, %300 : vector<128x1xf32>
    %302 = math.rsqrt %301 : vector<128x1xf32>
    %303 = vector.broadcast %302 : vector<128x1xf32> to vector<128x16xf32>
    %304 = arith.mulf %299, %303 : vector<128x16xf32>
    %305 = vector.broadcast %283 : vector<1x16xf32> to vector<128x16xf32>
    %306 = arith.mulf %304, %305 : vector<128x16xf32>
    %307 = vector.broadcast %284 : vector<1x16xf32> to vector<128x16xf32>
    %308 = arith.addf %306, %307 : vector<128x16xf32>
    %309 = arith.truncf %308 : vector<128x16xf32> to vector<128x16xbf16>
    %c0_115 = arith.constant 0 : index
    %c0_116 = arith.constant 0 : index
    %310 = vector.load %arg36[%c0_115, %c0_116] : memref<16x32xbf16, #tpu.memory_space<vmem>>, vector<16x32xbf16>
    %cst_117 = arith.constant dense<0.000000e+00> : vector<128x32xf32>
    %311 = tpu.matmul %309, %310, %cst_117 {dimension_numbers = #tpu.dot_dimension_numbers<[1], [0], [0], [1], [0, 0, 1, 1], [], []>} : vector<128x16xbf16>, vector<16x32xbf16>, vector<128x32xf32> -> vector<128x32xf32>
    %c0_118 = arith.constant 0 : index
    %c0_119 = arith.constant 0 : index
    %312 = vector.load %arg25[%c0_118, %c0_119] : memref<1x32xf32, #tpu.memory_space<vmem>>, vector<1x32xf32>
    %313 = vector.broadcast %312 : vector<1x32xf32> to vector<128x32xf32>
    %314 = arith.addf %311, %313 : vector<128x32xf32>
    %315 = arith.mulf %314, %314 : vector<128x32xf32>
    %316 = arith.mulf %314, %315 : vector<128x32xf32>
    %cst_120 = arith.constant 4.471500e-02 : f32
    %317 = vector.broadcast %cst_120 : f32 to vector<128x32xf32>
    %318 = arith.mulf %317, %316 : vector<128x32xf32>
    %319 = arith.addf %314, %318 : vector<128x32xf32>
    %cst_121 = arith.constant 0.797884583 : f32
    %320 = vector.broadcast %cst_121 : f32 to vector<128x32xf32>
    %321 = arith.mulf %320, %319 : vector<128x32xf32>
    %322 = math.tanh %321 : vector<128x32xf32>
    %cst_122 = arith.constant 1.000000e+00 : f32
    %323 = vector.broadcast %cst_122 : f32 to vector<128x32xf32>
    %324 = arith.addf %323, %322 : vector<128x32xf32>
    %cst_123 = arith.constant 5.000000e-01 : f32
    %325 = vector.broadcast %cst_123 : f32 to vector<128x32xf32>
    %326 = arith.mulf %325, %324 : vector<128x32xf32>
    %327 = arith.mulf %314, %326 : vector<128x32xf32>
    %328 = arith.truncf %327 : vector<128x32xf32> to vector<128x32xbf16>
    %c0_124 = arith.constant 0 : index
    %c0_125 = arith.constant 0 : index
    %329 = vector.load %arg37[%c0_124, %c0_125] : memref<32x16xbf16, #tpu.memory_space<vmem>>, vector<32x16xbf16>
    %cst_126 = arith.constant dense<0.000000e+00> : vector<128x16xf32>
    %330 = tpu.matmul %328, %329, %cst_126 {dimension_numbers = #tpu.dot_dimension_numbers<[1], [0], [0], [1], [0, 0, 1, 1], [], []>} : vector<128x32xbf16>, vector<32x16xbf16>, vector<128x16xf32> -> vector<128x16xf32>
    %c0_127 = arith.constant 0 : index
    %c0_128 = arith.constant 0 : index
    %331 = vector.load %arg26[%c0_127, %c0_128] : memref<1x16xf32, #tpu.memory_space<vmem>>, vector<1x16xf32>
    %332 = vector.broadcast %331 : vector<1x16xf32> to vector<128x16xf32>
    %333 = arith.addf %330, %332 : vector<128x16xf32>
    %334 = arith.addf %282, %333 : vector<128x16xf32>
    %c0_129 = arith.constant 0 : index
    %c0_130 = arith.constant 0 : index
    %335 = vector.load %arg6[%c0_129, %c0_130] : memref<128x128xf32, #tpu.memory_space<vmem>>, vector<128x128xf32>
    %cst_131 = arith.constant dense<0.000000e+00> : vector<128x16xf32>
    %336 = tpu.matmul %335, %334, %cst_131 {dimension_numbers = #tpu.dot_dimension_numbers<[1], [0], [0], [1], [0, 0, 1, 1], [], []>} : vector<128x128xf32>, vector<128x16xf32>, vector<128x16xf32> -> vector<128x16xf32>
    %337 = vector.extract_strided_slice %336 {offsets = [0, 0], sizes = [32, 16], strides = [1, 1]} : vector<128x16xf32> to vector<32x16xf32>
    %338 = vector.extract_strided_slice %336 {offsets = [32, 0], sizes = [32, 16], strides = [1, 1]} : vector<128x16xf32> to vector<32x16xf32>
    %339 = vector.extract_strided_slice %336 {offsets = [64, 0], sizes = [32, 16], strides = [1, 1]} : vector<128x16xf32> to vector<32x16xf32>
    %340 = vector.extract_strided_slice %336 {offsets = [96, 0], sizes = [32, 16], strides = [1, 1]} : vector<128x16xf32> to vector<32x16xf32>
    %341 = tpu.concatenate %337, %338, %339, %340 in 1 : vector<32x16xf32>, vector<32x16xf32>, vector<32x16xf32>, vector<32x16xf32> -> vector<32x64xf32>
    %c0_132 = arith.constant 0 : index
    %c0_133 = arith.constant 0 : index
    %342 = vector.load %arg4[%c0_132, %c0_133] : memref<1x64xf32, #tpu.memory_space<vmem>>, vector<1x64xf32>
    %c0_134 = arith.constant 0 : index
    %c0_135 = arith.constant 0 : index
    %343 = vector.load %arg3[%c0_134, %c0_135] : memref<1x64xf32, #tpu.memory_space<vmem>>, vector<1x64xf32>
    %cst_136 = arith.constant dense<0.000000e+00> : vector<32xf32>
    %344 = vector.multi_reduction <add>, %341, %cst_136 [1] : vector<32x64xf32> to vector<32xf32>
    %345 = vector.shape_cast %344 : vector<32xf32> to vector<32x1xf32>
    %cst_137 = arith.constant 6.400000e+01 : f32
    %346 = vector.broadcast %cst_137 : f32 to vector<32x1xf32>
    %347 = arith.divf %345, %346 : vector<32x1xf32>
    %348 = vector.broadcast %347 : vector<32x1xf32> to vector<32x64xf32>
    %349 = arith.subf %341, %348 : vector<32x64xf32>
    %350 = vector.broadcast %347 : vector<32x1xf32> to vector<32x64xf32>
    %351 = arith.subf %341, %350 : vector<32x64xf32>
    %352 = arith.mulf %349, %351 : vector<32x64xf32>
    %cst_138 = arith.constant dense<0.000000e+00> : vector<32xf32>
    %353 = vector.multi_reduction <add>, %352, %cst_138 [1] : vector<32x64xf32> to vector<32xf32>
    %354 = vector.shape_cast %353 : vector<32xf32> to vector<32x1xf32>
    %cst_139 = arith.constant 6.400000e+01 : f32
    %355 = vector.broadcast %cst_139 : f32 to vector<32x1xf32>
    %356 = arith.divf %354, %355 : vector<32x1xf32>
    %357 = vector.broadcast %347 : vector<32x1xf32> to vector<32x64xf32>
    %358 = arith.subf %341, %357 : vector<32x64xf32>
    %cst_140 = arith.constant 9.99999974E-6 : f32
    %359 = vector.broadcast %cst_140 : f32 to vector<32x1xf32>
    %360 = arith.addf %356, %359 : vector<32x1xf32>
    %361 = math.rsqrt %360 : vector<32x1xf32>
    %362 = vector.broadcast %361 : vector<32x1xf32> to vector<32x64xf32>
    %363 = arith.mulf %358, %362 : vector<32x64xf32>
    %364 = vector.broadcast %342 : vector<1x64xf32> to vector<32x64xf32>
    %365 = arith.mulf %363, %364 : vector<32x64xf32>
    %366 = vector.broadcast %343 : vector<1x64xf32> to vector<32x64xf32>
    %367 = arith.addf %365, %366 : vector<32x64xf32>
    %368 = arith.truncf %367 : vector<32x64xf32> to vector<32x64xbf16>
    %c0_141 = arith.constant 0 : index
    %c0_142 = arith.constant 0 : index
    %369 = vector.load %arg5[%c0_141, %c0_142] : memref<64x32xbf16, #tpu.memory_space<vmem>>, vector<64x32xbf16>
    %cst_143 = arith.constant dense<0.000000e+00> : vector<32x32xf32>
    %370 = tpu.matmul %368, %369, %cst_143 {dimension_numbers = #tpu.dot_dimension_numbers<[1], [0], [0], [1], [0, 0, 1, 1], [], []>} : vector<32x64xbf16>, vector<64x32xbf16>, vector<32x32xf32> -> vector<32x32xf32>
    %c0_144 = arith.constant 0 : index
    %c0_145 = arith.constant 0 : index
    %371 = vector.load %arg42[%c0_144, %c0_145] : memref<1x32xf32, #tpu.memory_space<vmem>>, vector<1x32xf32>
    %c0_146 = arith.constant 0 : index
    %c0_147 = arith.constant 0 : index
    %372 = vector.load %arg41[%c0_146, %c0_147] : memref<1x32xf32, #tpu.memory_space<vmem>>, vector<1x32xf32>
    %cst_148 = arith.constant dense<0.000000e+00> : vector<32xf32>
    %373 = vector.multi_reduction <add>, %370, %cst_148 [1] : vector<32x32xf32> to vector<32xf32>
    %374 = vector.shape_cast %373 : vector<32xf32> to vector<32x1xf32>
    %cst_149 = arith.constant 3.200000e+01 : f32
    %375 = vector.broadcast %cst_149 : f32 to vector<32x1xf32>
    %376 = arith.divf %374, %375 : vector<32x1xf32>
    %377 = vector.broadcast %376 : vector<32x1xf32> to vector<32x32xf32>
    %378 = arith.subf %370, %377 : vector<32x32xf32>
    %379 = vector.broadcast %376 : vector<32x1xf32> to vector<32x32xf32>
    %380 = arith.subf %370, %379 : vector<32x32xf32>
    %381 = arith.mulf %378, %380 : vector<32x32xf32>
    %cst_150 = arith.constant dense<0.000000e+00> : vector<32xf32>
    %382 = vector.multi_reduction <add>, %381, %cst_150 [1] : vector<32x32xf32> to vector<32xf32>
    %383 = vector.shape_cast %382 : vector<32xf32> to vector<32x1xf32>
    %cst_151 = arith.constant 3.200000e+01 : f32
    %384 = vector.broadcast %cst_151 : f32 to vector<32x1xf32>
    %385 = arith.divf %383, %384 : vector<32x1xf32>
    %386 = vector.broadcast %376 : vector<32x1xf32> to vector<32x32xf32>
    %387 = arith.subf %370, %386 : vector<32x32xf32>
    %cst_152 = arith.constant 9.99999974E-6 : f32
    %388 = vector.broadcast %cst_152 : f32 to vector<32x1xf32>
    %389 = arith.addf %385, %388 : vector<32x1xf32>
    %390 = math.rsqrt %389 : vector<32x1xf32>
    %391 = vector.broadcast %390 : vector<32x1xf32> to vector<32x32xf32>
    %392 = arith.mulf %387, %391 : vector<32x32xf32>
    %393 = vector.broadcast %371 : vector<1x32xf32> to vector<32x32xf32>
    %394 = arith.mulf %392, %393 : vector<32x32xf32>
    %395 = vector.broadcast %372 : vector<1x32xf32> to vector<32x32xf32>
    %396 = arith.addf %394, %395 : vector<32x32xf32>
    %397 = arith.truncf %396 : vector<32x32xf32> to vector<32x32xbf16>
    %c0_153 = arith.constant 0 : index
    %c0_154 = arith.constant 0 : index
    %398 = vector.load %arg48[%c0_153, %c0_154] : memref<32x96xbf16, #tpu.memory_space<vmem>>, vector<32x96xbf16>
    %cst_155 = arith.constant dense<0.000000e+00> : vector<32x96xf32>
    %399 = tpu.matmul %397, %398, %cst_155 {dimension_numbers = #tpu.dot_dimension_numbers<[1], [0], [0], [1], [0, 0, 1, 1], [], []>} : vector<32x32xbf16>, vector<32x96xbf16>, vector<32x96xf32> -> vector<32x96xf32>
    %c0_156 = arith.constant 0 : index
    %c0_157 = arith.constant 0 : index
    %400 = vector.load %arg47[%c0_156, %c0_157] : memref<1x96xf32, #tpu.memory_space<vmem>>, vector<1x96xf32>
    %401 = vector.broadcast %400 : vector<1x96xf32> to vector<32x96xf32>
    %402 = arith.addf %399, %401 : vector<32x96xf32>
    %c0_158 = arith.constant 0 : index
    %c0_159 = arith.constant 0 : index
    %c0_160 = arith.constant 0 : index
    %c0_161 = arith.constant 0 : index
    %403 = vector.load %arg40[%c0_158, %c0_159, %c0_160, %c0_161] : memref<4x1x16x16xf32, #tpu.memory_space<vmem>>, vector<4x1x16x16xf32>
    %404 = vector.extract_strided_slice %402 {offsets = [0, 0], sizes = [32, 8], strides = [1, 1]} : vector<32x96xf32> to vector<32x8xf32>
    %cst_162 = arith.constant 0.353553385 : f32
    %405 = vector.broadcast %cst_162 : f32 to vector<32x8xf32>
    %406 = arith.mulf %404, %405 : vector<32x8xf32>
    %407 = vector.shape_cast %406 : vector<32x8xf32> to vector<2x16x8xf32>
    %408 = arith.truncf %407 : vector<2x16x8xf32> to vector<2x16x8xbf16>
    %409 = vector.extract_strided_slice %402 {offsets = [0, 32], sizes = [32, 8], strides = [1, 1]} : vector<32x96xf32> to vector<32x8xf32>
    %410 = vector.shape_cast %409 : vector<32x8xf32> to vector<2x16x8xf32>
    %411 = arith.truncf %410 : vector<2x16x8xf32> to vector<2x16x8xbf16>
    %412 = vector.extract_strided_slice %402 {offsets = [0, 64], sizes = [32, 8], strides = [1, 1]} : vector<32x96xf32> to vector<32x8xf32>
    %413 = vector.shape_cast %412 : vector<32x8xf32> to vector<2x16x8xf32>
    %414 = arith.truncf %413 : vector<2x16x8xf32> to vector<2x16x8xbf16>
    %cst_163 = arith.constant dense<0.000000e+00> : vector<2x16x16xf32>
    %415 = tpu.matmul %408, %411, %cst_163 {dimension_numbers = #tpu.dot_dimension_numbers<[2], [2], [1], [1], [0, 0, 0, 1, 1, 1], [0], [0]>} : vector<2x16x8xbf16>, vector<2x16x8xbf16>, vector<2x16x16xf32> -> vector<2x16x16xf32>
    %416 = vector.extract_strided_slice %403 {offsets = [0, 0, 0, 0], sizes = [1, 1, 16, 16], strides = [1, 1, 1, 1]} : vector<4x1x16x16xf32> to vector<1x1x16x16xf32>
    %417 = vector.shape_cast %416 : vector<1x1x16x16xf32> to vector<1x16x16xf32>
    %418 = vector.broadcast %417 : vector<1x16x16xf32> to vector<2x16x16xf32>
    %419 = arith.addf %415, %418 : vector<2x16x16xf32>
    %cst_164 = arith.constant dense<0xFF800000> : vector<2x16xf32>
    %420 = vector.multi_reduction <maximumf>, %419, %cst_164 [2] : vector<2x16x16xf32> to vector<2x16xf32>
    %421 = vector.shape_cast %420 : vector<2x16xf32> to vector<2x16x1xf32>
    %422 = vector.broadcast %421 : vector<2x16x1xf32> to vector<2x16x16xf32>
    %423 = arith.subf %419, %422 : vector<2x16x16xf32>
    %424 = math.exp %423 : vector<2x16x16xf32>
    %cst_165 = arith.constant dense<0.000000e+00> : vector<2x16xf32>
    %425 = vector.multi_reduction <add>, %424, %cst_165 [2] : vector<2x16x16xf32> to vector<2x16xf32>
    %426 = vector.shape_cast %425 : vector<2x16xf32> to vector<2x16x1xf32>
    %427 = tpu.reciprocal %426 {approx = true} : vector<2x16x1xf32> -> vector<2x16x1xf32>
    %428 = vector.broadcast %427 : vector<2x16x1xf32> to vector<2x16x16xf32>
    %429 = arith.mulf %424, %428 : vector<2x16x16xf32>
    %430 = arith.truncf %429 : vector<2x16x16xf32> to vector<2x16x16xbf16>
    %cst_166 = arith.constant dense<0.000000e+00> : vector<2x16x8xf32>
    %431 = tpu.matmul %430, %414, %cst_166 {dimension_numbers = #tpu.dot_dimension_numbers<[2], [1], [1], [2], [0, 0, 0, 1, 1, 2], [0], [0]>} : vector<2x16x16xbf16>, vector<2x16x8xbf16>, vector<2x16x8xf32> -> vector<2x16x8xf32>
    %432 = vector.shape_cast %431 : vector<2x16x8xf32> to vector<32x8xf32>
    %433 = vector.extract_strided_slice %402 {offsets = [0, 8], sizes = [32, 8], strides = [1, 1]} : vector<32x96xf32> to vector<32x8xf32>
    %cst_167 = arith.constant 0.353553385 : f32
    %434 = vector.broadcast %cst_167 : f32 to vector<32x8xf32>
    %435 = arith.mulf %433, %434 : vector<32x8xf32>
    %436 = vector.shape_cast %435 : vector<32x8xf32> to vector<2x16x8xf32>
    %437 = arith.truncf %436 : vector<2x16x8xf32> to vector<2x16x8xbf16>
    %438 = vector.extract_strided_slice %402 {offsets = [0, 40], sizes = [32, 8], strides = [1, 1]} : vector<32x96xf32> to vector<32x8xf32>
    %439 = vector.shape_cast %438 : vector<32x8xf32> to vector<2x16x8xf32>
    %440 = arith.truncf %439 : vector<2x16x8xf32> to vector<2x16x8xbf16>
    %441 = vector.extract_strided_slice %402 {offsets = [0, 72], sizes = [32, 8], strides = [1, 1]} : vector<32x96xf32> to vector<32x8xf32>
    %442 = vector.shape_cast %441 : vector<32x8xf32> to vector<2x16x8xf32>
    %443 = arith.truncf %442 : vector<2x16x8xf32> to vector<2x16x8xbf16>
    %cst_168 = arith.constant dense<0.000000e+00> : vector<2x16x16xf32>
    %444 = tpu.matmul %437, %440, %cst_168 {dimension_numbers = #tpu.dot_dimension_numbers<[2], [2], [1], [1], [0, 0, 0, 1, 1, 1], [0], [0]>} : vector<2x16x8xbf16>, vector<2x16x8xbf16>, vector<2x16x16xf32> -> vector<2x16x16xf32>
    %445 = vector.extract_strided_slice %403 {offsets = [1, 0, 0, 0], sizes = [1, 1, 16, 16], strides = [1, 1, 1, 1]} : vector<4x1x16x16xf32> to vector<1x1x16x16xf32>
    %446 = vector.shape_cast %445 : vector<1x1x16x16xf32> to vector<1x16x16xf32>
    %447 = vector.broadcast %446 : vector<1x16x16xf32> to vector<2x16x16xf32>
    %448 = arith.addf %444, %447 : vector<2x16x16xf32>
    %cst_169 = arith.constant dense<0xFF800000> : vector<2x16xf32>
    %449 = vector.multi_reduction <maximumf>, %448, %cst_169 [2] : vector<2x16x16xf32> to vector<2x16xf32>
    %450 = vector.shape_cast %449 : vector<2x16xf32> to vector<2x16x1xf32>
    %451 = vector.broadcast %450 : vector<2x16x1xf32> to vector<2x16x16xf32>
    %452 = arith.subf %448, %451 : vector<2x16x16xf32>
    %453 = math.exp %452 : vector<2x16x16xf32>
    %cst_170 = arith.constant dense<0.000000e+00> : vector<2x16xf32>
    %454 = vector.multi_reduction <add>, %453, %cst_170 [2] : vector<2x16x16xf32> to vector<2x16xf32>
    %455 = vector.shape_cast %454 : vector<2x16xf32> to vector<2x16x1xf32>
    %456 = tpu.reciprocal %455 {approx = true} : vector<2x16x1xf32> -> vector<2x16x1xf32>
    %457 = vector.broadcast %456 : vector<2x16x1xf32> to vector<2x16x16xf32>
    %458 = arith.mulf %453, %457 : vector<2x16x16xf32>
    %459 = arith.truncf %458 : vector<2x16x16xf32> to vector<2x16x16xbf16>
    %cst_171 = arith.constant dense<0.000000e+00> : vector<2x16x8xf32>
    %460 = tpu.matmul %459, %443, %cst_171 {dimension_numbers = #tpu.dot_dimension_numbers<[2], [1], [1], [2], [0, 0, 0, 1, 1, 2], [0], [0]>} : vector<2x16x16xbf16>, vector<2x16x8xbf16>, vector<2x16x8xf32> -> vector<2x16x8xf32>
    %461 = vector.shape_cast %460 : vector<2x16x8xf32> to vector<32x8xf32>
    %462 = vector.extract_strided_slice %402 {offsets = [0, 16], sizes = [32, 8], strides = [1, 1]} : vector<32x96xf32> to vector<32x8xf32>
    %cst_172 = arith.constant 0.353553385 : f32
    %463 = vector.broadcast %cst_172 : f32 to vector<32x8xf32>
    %464 = arith.mulf %462, %463 : vector<32x8xf32>
    %465 = vector.shape_cast %464 : vector<32x8xf32> to vector<2x16x8xf32>
    %466 = arith.truncf %465 : vector<2x16x8xf32> to vector<2x16x8xbf16>
    %467 = vector.extract_strided_slice %402 {offsets = [0, 48], sizes = [32, 8], strides = [1, 1]} : vector<32x96xf32> to vector<32x8xf32>
    %468 = vector.shape_cast %467 : vector<32x8xf32> to vector<2x16x8xf32>
    %469 = arith.truncf %468 : vector<2x16x8xf32> to vector<2x16x8xbf16>
    %470 = vector.extract_strided_slice %402 {offsets = [0, 80], sizes = [32, 8], strides = [1, 1]} : vector<32x96xf32> to vector<32x8xf32>
    %471 = vector.shape_cast %470 : vector<32x8xf32> to vector<2x16x8xf32>
    %472 = arith.truncf %471 : vector<2x16x8xf32> to vector<2x16x8xbf16>
    %cst_173 = arith.constant dense<0.000000e+00> : vector<2x16x16xf32>
    %473 = tpu.matmul %466, %469, %cst_173 {dimension_numbers = #tpu.dot_dimension_numbers<[2], [2], [1], [1], [0, 0, 0, 1, 1, 1], [0], [0]>} : vector<2x16x8xbf16>, vector<2x16x8xbf16>, vector<2x16x16xf32> -> vector<2x16x16xf32>
    %474 = vector.extract_strided_slice %403 {offsets = [2, 0, 0, 0], sizes = [1, 1, 16, 16], strides = [1, 1, 1, 1]} : vector<4x1x16x16xf32> to vector<1x1x16x16xf32>
    %475 = vector.shape_cast %474 : vector<1x1x16x16xf32> to vector<1x16x16xf32>
    %476 = vector.broadcast %475 : vector<1x16x16xf32> to vector<2x16x16xf32>
    %477 = arith.addf %473, %476 : vector<2x16x16xf32>
    %cst_174 = arith.constant dense<0xFF800000> : vector<2x16xf32>
    %478 = vector.multi_reduction <maximumf>, %477, %cst_174 [2] : vector<2x16x16xf32> to vector<2x16xf32>
    %479 = vector.shape_cast %478 : vector<2x16xf32> to vector<2x16x1xf32>
    %480 = vector.broadcast %479 : vector<2x16x1xf32> to vector<2x16x16xf32>
    %481 = arith.subf %477, %480 : vector<2x16x16xf32>
    %482 = math.exp %481 : vector<2x16x16xf32>
    %cst_175 = arith.constant dense<0.000000e+00> : vector<2x16xf32>
    %483 = vector.multi_reduction <add>, %482, %cst_175 [2] : vector<2x16x16xf32> to vector<2x16xf32>
    %484 = vector.shape_cast %483 : vector<2x16xf32> to vector<2x16x1xf32>
    %485 = tpu.reciprocal %484 {approx = true} : vector<2x16x1xf32> -> vector<2x16x1xf32>
    %486 = vector.broadcast %485 : vector<2x16x1xf32> to vector<2x16x16xf32>
    %487 = arith.mulf %482, %486 : vector<2x16x16xf32>
    %488 = arith.truncf %487 : vector<2x16x16xf32> to vector<2x16x16xbf16>
    %cst_176 = arith.constant dense<0.000000e+00> : vector<2x16x8xf32>
    %489 = tpu.matmul %488, %472, %cst_176 {dimension_numbers = #tpu.dot_dimension_numbers<[2], [1], [1], [2], [0, 0, 0, 1, 1, 2], [0], [0]>} : vector<2x16x16xbf16>, vector<2x16x8xbf16>, vector<2x16x8xf32> -> vector<2x16x8xf32>
    %490 = vector.shape_cast %489 : vector<2x16x8xf32> to vector<32x8xf32>
    %491 = vector.extract_strided_slice %402 {offsets = [0, 24], sizes = [32, 8], strides = [1, 1]} : vector<32x96xf32> to vector<32x8xf32>
    %cst_177 = arith.constant 0.353553385 : f32
    %492 = vector.broadcast %cst_177 : f32 to vector<32x8xf32>
    %493 = arith.mulf %491, %492 : vector<32x8xf32>
    %494 = vector.shape_cast %493 : vector<32x8xf32> to vector<2x16x8xf32>
    %495 = arith.truncf %494 : vector<2x16x8xf32> to vector<2x16x8xbf16>
    %496 = vector.extract_strided_slice %402 {offsets = [0, 56], sizes = [32, 8], strides = [1, 1]} : vector<32x96xf32> to vector<32x8xf32>
    %497 = vector.shape_cast %496 : vector<32x8xf32> to vector<2x16x8xf32>
    %498 = arith.truncf %497 : vector<2x16x8xf32> to vector<2x16x8xbf16>
    %499 = vector.extract_strided_slice %402 {offsets = [0, 88], sizes = [32, 8], strides = [1, 1]} : vector<32x96xf32> to vector<32x8xf32>
    %500 = vector.shape_cast %499 : vector<32x8xf32> to vector<2x16x8xf32>
    %501 = arith.truncf %500 : vector<2x16x8xf32> to vector<2x16x8xbf16>
    %cst_178 = arith.constant dense<0.000000e+00> : vector<2x16x16xf32>
    %502 = tpu.matmul %495, %498, %cst_178 {dimension_numbers = #tpu.dot_dimension_numbers<[2], [2], [1], [1], [0, 0, 0, 1, 1, 1], [0], [0]>} : vector<2x16x8xbf16>, vector<2x16x8xbf16>, vector<2x16x16xf32> -> vector<2x16x16xf32>
    %503 = vector.extract_strided_slice %403 {offsets = [3, 0, 0, 0], sizes = [1, 1, 16, 16], strides = [1, 1, 1, 1]} : vector<4x1x16x16xf32> to vector<1x1x16x16xf32>
    %504 = vector.shape_cast %503 : vector<1x1x16x16xf32> to vector<1x16x16xf32>
    %505 = vector.broadcast %504 : vector<1x16x16xf32> to vector<2x16x16xf32>
    %506 = arith.addf %502, %505 : vector<2x16x16xf32>
    %cst_179 = arith.constant dense<0xFF800000> : vector<2x16xf32>
    %507 = vector.multi_reduction <maximumf>, %506, %cst_179 [2] : vector<2x16x16xf32> to vector<2x16xf32>
    %508 = vector.shape_cast %507 : vector<2x16xf32> to vector<2x16x1xf32>
    %509 = vector.broadcast %508 : vector<2x16x1xf32> to vector<2x16x16xf32>
    %510 = arith.subf %506, %509 : vector<2x16x16xf32>
    %511 = math.exp %510 : vector<2x16x16xf32>
    %cst_180 = arith.constant dense<0.000000e+00> : vector<2x16xf32>
    %512 = vector.multi_reduction <add>, %511, %cst_180 [2] : vector<2x16x16xf32> to vector<2x16xf32>
    %513 = vector.shape_cast %512 : vector<2x16xf32> to vector<2x16x1xf32>
    %514 = tpu.reciprocal %513 {approx = true} : vector<2x16x1xf32> -> vector<2x16x1xf32>
    %515 = vector.broadcast %514 : vector<2x16x1xf32> to vector<2x16x16xf32>
    %516 = arith.mulf %511, %515 : vector<2x16x16xf32>
    %517 = arith.truncf %516 : vector<2x16x16xf32> to vector<2x16x16xbf16>
    %cst_181 = arith.constant dense<0.000000e+00> : vector<2x16x8xf32>
    %518 = tpu.matmul %517, %501, %cst_181 {dimension_numbers = #tpu.dot_dimension_numbers<[2], [1], [1], [2], [0, 0, 0, 1, 1, 2], [0], [0]>} : vector<2x16x16xbf16>, vector<2x16x8xbf16>, vector<2x16x8xf32> -> vector<2x16x8xf32>
    %519 = vector.shape_cast %518 : vector<2x16x8xf32> to vector<32x8xf32>
    %520 = tpu.concatenate %432, %461, %490, %519 in 1 : vector<32x8xf32>, vector<32x8xf32>, vector<32x8xf32>, vector<32x8xf32> -> vector<32x32xf32>
    %521 = arith.truncf %520 : vector<32x32xf32> to vector<32x32xbf16>
    %c0_182 = arith.constant 0 : index
    %c0_183 = arith.constant 0 : index
    %522 = vector.load %arg46[%c0_182, %c0_183] : memref<32x32xbf16, #tpu.memory_space<vmem>>, vector<32x32xbf16>
    %cst_184 = arith.constant dense<0.000000e+00> : vector<32x32xf32>
    %523 = tpu.matmul %521, %522, %cst_184 {dimension_numbers = #tpu.dot_dimension_numbers<[1], [0], [0], [1], [0, 0, 1, 1], [], []>} : vector<32x32xbf16>, vector<32x32xbf16>, vector<32x32xf32> -> vector<32x32xf32>
    %c0_185 = arith.constant 0 : index
    %c0_186 = arith.constant 0 : index
    %524 = vector.load %arg45[%c0_185, %c0_186] : memref<1x32xf32, #tpu.memory_space<vmem>>, vector<1x32xf32>
    %525 = vector.broadcast %524 : vector<1x32xf32> to vector<32x32xf32>
    %526 = arith.addf %523, %525 : vector<32x32xf32>
    %527 = arith.addf %370, %526 : vector<32x32xf32>
    %c0_187 = arith.constant 0 : index
    %c0_188 = arith.constant 0 : index
    %528 = vector.load %arg44[%c0_187, %c0_188] : memref<1x32xf32, #tpu.memory_space<vmem>>, vector<1x32xf32>
    %c0_189 = arith.constant 0 : index
    %c0_190 = arith.constant 0 : index
    %529 = vector.load %arg43[%c0_189, %c0_190] : memref<1x32xf32, #tpu.memory_space<vmem>>, vector<1x32xf32>
    %cst_191 = arith.constant dense<0.000000e+00> : vector<32xf32>
    %530 = vector.multi_reduction <add>, %527, %cst_191 [1] : vector<32x32xf32> to vector<32xf32>
    %531 = vector.shape_cast %530 : vector<32xf32> to vector<32x1xf32>
    %cst_192 = arith.constant 3.200000e+01 : f32
    %532 = vector.broadcast %cst_192 : f32 to vector<32x1xf32>
    %533 = arith.divf %531, %532 : vector<32x1xf32>
    %534 = vector.broadcast %533 : vector<32x1xf32> to vector<32x32xf32>
    %535 = arith.subf %527, %534 : vector<32x32xf32>
    %536 = vector.broadcast %533 : vector<32x1xf32> to vector<32x32xf32>
    %537 = arith.subf %527, %536 : vector<32x32xf32>
    %538 = arith.mulf %535, %537 : vector<32x32xf32>
    %cst_193 = arith.constant dense<0.000000e+00> : vector<32xf32>
    %539 = vector.multi_reduction <add>, %538, %cst_193 [1] : vector<32x32xf32> to vector<32xf32>
    %540 = vector.shape_cast %539 : vector<32xf32> to vector<32x1xf32>
    %cst_194 = arith.constant 3.200000e+01 : f32
    %541 = vector.broadcast %cst_194 : f32 to vector<32x1xf32>
    %542 = arith.divf %540, %541 : vector<32x1xf32>
    %543 = vector.broadcast %533 : vector<32x1xf32> to vector<32x32xf32>
    %544 = arith.subf %527, %543 : vector<32x32xf32>
    %cst_195 = arith.constant 9.99999974E-6 : f32
    %545 = vector.broadcast %cst_195 : f32 to vector<32x1xf32>
    %546 = arith.addf %542, %545 : vector<32x1xf32>
    %547 = math.rsqrt %546 : vector<32x1xf32>
    %548 = vector.broadcast %547 : vector<32x1xf32> to vector<32x32xf32>
    %549 = arith.mulf %544, %548 : vector<32x32xf32>
    %550 = vector.broadcast %528 : vector<1x32xf32> to vector<32x32xf32>
    %551 = arith.mulf %549, %550 : vector<32x32xf32>
    %552 = vector.broadcast %529 : vector<1x32xf32> to vector<32x32xf32>
    %553 = arith.addf %551, %552 : vector<32x32xf32>
    %554 = arith.truncf %553 : vector<32x32xf32> to vector<32x32xbf16>
    %c0_196 = arith.constant 0 : index
    %c0_197 = arith.constant 0 : index
    %555 = vector.load %arg49[%c0_196, %c0_197] : memref<32x64xbf16, #tpu.memory_space<vmem>>, vector<32x64xbf16>
    %cst_198 = arith.constant dense<0.000000e+00> : vector<32x64xf32>
    %556 = tpu.matmul %554, %555, %cst_198 {dimension_numbers = #tpu.dot_dimension_numbers<[1], [0], [0], [1], [0, 0, 1, 1], [], []>} : vector<32x32xbf16>, vector<32x64xbf16>, vector<32x64xf32> -> vector<32x64xf32>
    %c0_199 = arith.constant 0 : index
    %c0_200 = arith.constant 0 : index
    %557 = vector.load %arg38[%c0_199, %c0_200] : memref<1x64xf32, #tpu.memory_space<vmem>>, vector<1x64xf32>
    %558 = vector.broadcast %557 : vector<1x64xf32> to vector<32x64xf32>
    %559 = arith.addf %556, %558 : vector<32x64xf32>
    %560 = arith.mulf %559, %559 : vector<32x64xf32>
    %561 = arith.mulf %559, %560 : vector<32x64xf32>
    %cst_201 = arith.constant 4.471500e-02 : f32
    %562 = vector.broadcast %cst_201 : f32 to vector<32x64xf32>
    %563 = arith.mulf %562, %561 : vector<32x64xf32>
    %564 = arith.addf %559, %563 : vector<32x64xf32>
    %cst_202 = arith.constant 0.797884583 : f32
    %565 = vector.broadcast %cst_202 : f32 to vector<32x64xf32>
    %566 = arith.mulf %565, %564 : vector<32x64xf32>
    %567 = math.tanh %566 : vector<32x64xf32>
    %cst_203 = arith.constant 1.000000e+00 : f32
    %568 = vector.broadcast %cst_203 : f32 to vector<32x64xf32>
    %569 = arith.addf %568, %567 : vector<32x64xf32>
    %cst_204 = arith.constant 5.000000e-01 : f32
    %570 = vector.broadcast %cst_204 : f32 to vector<32x64xf32>
    %571 = arith.mulf %570, %569 : vector<32x64xf32>
    %572 = arith.mulf %559, %571 : vector<32x64xf32>
    %573 = arith.truncf %572 : vector<32x64xf32> to vector<32x64xbf16>
    %c0_205 = arith.constant 0 : index
    %c0_206 = arith.constant 0 : index
    %574 = vector.load %arg50[%c0_205, %c0_206] : memref<64x32xbf16, #tpu.memory_space<vmem>>, vector<64x32xbf16>
    %cst_207 = arith.constant dense<0.000000e+00> : vector<32x32xf32>
    %575 = tpu.matmul %573, %574, %cst_207 {dimension_numbers = #tpu.dot_dimension_numbers<[1], [0], [0], [1], [0, 0, 1, 1], [], []>} : vector<32x64xbf16>, vector<64x32xbf16>, vector<32x32xf32> -> vector<32x32xf32>
    %c0_208 = arith.constant 0 : index
    %c0_209 = arith.constant 0 : index
    %576 = vector.load %arg39[%c0_208, %c0_209] : memref<1x32xf32, #tpu.memory_space<vmem>>, vector<1x32xf32>
    %577 = vector.broadcast %576 : vector<1x32xf32> to vector<32x32xf32>
    %578 = arith.addf %575, %577 : vector<32x32xf32>
    %579 = arith.addf %527, %578 : vector<32x32xf32>
    %c0_210 = arith.constant 0 : index
    %c0_211 = arith.constant 0 : index
    %580 = vector.load %arg55[%c0_210, %c0_211] : memref<1x32xf32, #tpu.memory_space<vmem>>, vector<1x32xf32>
    %c0_212 = arith.constant 0 : index
    %c0_213 = arith.constant 0 : index
    %581 = vector.load %arg54[%c0_212, %c0_213] : memref<1x32xf32, #tpu.memory_space<vmem>>, vector<1x32xf32>
    %cst_214 = arith.constant dense<0.000000e+00> : vector<32xf32>
    %582 = vector.multi_reduction <add>, %579, %cst_214 [1] : vector<32x32xf32> to vector<32xf32>
    %583 = vector.shape_cast %582 : vector<32xf32> to vector<32x1xf32>
    %cst_215 = arith.constant 3.200000e+01 : f32
    %584 = vector.broadcast %cst_215 : f32 to vector<32x1xf32>
    %585 = arith.divf %583, %584 : vector<32x1xf32>
    %586 = vector.broadcast %585 : vector<32x1xf32> to vector<32x32xf32>
    %587 = arith.subf %579, %586 : vector<32x32xf32>
    %588 = vector.broadcast %585 : vector<32x1xf32> to vector<32x32xf32>
    %589 = arith.subf %579, %588 : vector<32x32xf32>
    %590 = arith.mulf %587, %589 : vector<32x32xf32>
    %cst_216 = arith.constant dense<0.000000e+00> : vector<32xf32>
    %591 = vector.multi_reduction <add>, %590, %cst_216 [1] : vector<32x32xf32> to vector<32xf32>
    %592 = vector.shape_cast %591 : vector<32xf32> to vector<32x1xf32>
    %cst_217 = arith.constant 3.200000e+01 : f32
    %593 = vector.broadcast %cst_217 : f32 to vector<32x1xf32>
    %594 = arith.divf %592, %593 : vector<32x1xf32>
    %595 = vector.broadcast %585 : vector<32x1xf32> to vector<32x32xf32>
    %596 = arith.subf %579, %595 : vector<32x32xf32>
    %cst_218 = arith.constant 9.99999974E-6 : f32
    %597 = vector.broadcast %cst_218 : f32 to vector<32x1xf32>
    %598 = arith.addf %594, %597 : vector<32x1xf32>
    %599 = math.rsqrt %598 : vector<32x1xf32>
    %600 = vector.broadcast %599 : vector<32x1xf32> to vector<32x32xf32>
    %601 = arith.mulf %596, %600 : vector<32x32xf32>
    %602 = vector.broadcast %580 : vector<1x32xf32> to vector<32x32xf32>
    %603 = arith.mulf %601, %602 : vector<32x32xf32>
    %604 = vector.broadcast %581 : vector<1x32xf32> to vector<32x32xf32>
    %605 = arith.addf %603, %604 : vector<32x32xf32>
    %606 = arith.truncf %605 : vector<32x32xf32> to vector<32x32xbf16>
    %c0_219 = arith.constant 0 : index
    %c0_220 = arith.constant 0 : index
    %607 = vector.load %arg61[%c0_219, %c0_220] : memref<32x96xbf16, #tpu.memory_space<vmem>>, vector<32x96xbf16>
    %cst_221 = arith.constant dense<0.000000e+00> : vector<32x96xf32>
    %608 = tpu.matmul %606, %607, %cst_221 {dimension_numbers = #tpu.dot_dimension_numbers<[1], [0], [0], [1], [0, 0, 1, 1], [], []>} : vector<32x32xbf16>, vector<32x96xbf16>, vector<32x96xf32> -> vector<32x96xf32>
    %c0_222 = arith.constant 0 : index
    %c0_223 = arith.constant 0 : index
    %609 = vector.load %arg60[%c0_222, %c0_223] : memref<1x96xf32, #tpu.memory_space<vmem>>, vector<1x96xf32>
    %610 = vector.broadcast %609 : vector<1x96xf32> to vector<32x96xf32>
    %611 = arith.addf %608, %610 : vector<32x96xf32>
    %c0_224 = arith.constant 0 : index
    %c0_225 = arith.constant 0 : index
    %c0_226 = arith.constant 0 : index
    %c0_227 = arith.constant 0 : index
    %612 = vector.load %arg53[%c0_224, %c0_225, %c0_226, %c0_227] : memref<4x1x16x16xf32, #tpu.memory_space<vmem>>, vector<4x1x16x16xf32>
    %613 = vector.extract_strided_slice %611 {offsets = [0, 0], sizes = [32, 8], strides = [1, 1]} : vector<32x96xf32> to vector<32x8xf32>
    %cst_228 = arith.constant 0.353553385 : f32
    %614 = vector.broadcast %cst_228 : f32 to vector<32x8xf32>
    %615 = arith.mulf %613, %614 : vector<32x8xf32>
    %616 = vector.shape_cast %615 : vector<32x8xf32> to vector<2x16x8xf32>
    %617 = arith.truncf %616 : vector<2x16x8xf32> to vector<2x16x8xbf16>
    %618 = vector.extract_strided_slice %611 {offsets = [0, 32], sizes = [32, 8], strides = [1, 1]} : vector<32x96xf32> to vector<32x8xf32>
    %619 = vector.shape_cast %618 : vector<32x8xf32> to vector<2x16x8xf32>
    %620 = arith.truncf %619 : vector<2x16x8xf32> to vector<2x16x8xbf16>
    %621 = vector.extract_strided_slice %611 {offsets = [0, 64], sizes = [32, 8], strides = [1, 1]} : vector<32x96xf32> to vector<32x8xf32>
    %622 = vector.shape_cast %621 : vector<32x8xf32> to vector<2x16x8xf32>
    %623 = arith.truncf %622 : vector<2x16x8xf32> to vector<2x16x8xbf16>
    %cst_229 = arith.constant dense<0.000000e+00> : vector<2x16x16xf32>
    %624 = tpu.matmul %617, %620, %cst_229 {dimension_numbers = #tpu.dot_dimension_numbers<[2], [2], [1], [1], [0, 0, 0, 1, 1, 1], [0], [0]>} : vector<2x16x8xbf16>, vector<2x16x8xbf16>, vector<2x16x16xf32> -> vector<2x16x16xf32>
    %625 = vector.extract_strided_slice %612 {offsets = [0, 0, 0, 0], sizes = [1, 1, 16, 16], strides = [1, 1, 1, 1]} : vector<4x1x16x16xf32> to vector<1x1x16x16xf32>
    %626 = vector.shape_cast %625 : vector<1x1x16x16xf32> to vector<1x16x16xf32>
    %627 = vector.broadcast %626 : vector<1x16x16xf32> to vector<2x16x16xf32>
    %628 = arith.addf %624, %627 : vector<2x16x16xf32>
    %cst_230 = arith.constant dense<0xFF800000> : vector<2x16xf32>
    %629 = vector.multi_reduction <maximumf>, %628, %cst_230 [2] : vector<2x16x16xf32> to vector<2x16xf32>
    %630 = vector.shape_cast %629 : vector<2x16xf32> to vector<2x16x1xf32>
    %631 = vector.broadcast %630 : vector<2x16x1xf32> to vector<2x16x16xf32>
    %632 = arith.subf %628, %631 : vector<2x16x16xf32>
    %633 = math.exp %632 : vector<2x16x16xf32>
    %cst_231 = arith.constant dense<0.000000e+00> : vector<2x16xf32>
    %634 = vector.multi_reduction <add>, %633, %cst_231 [2] : vector<2x16x16xf32> to vector<2x16xf32>
    %635 = vector.shape_cast %634 : vector<2x16xf32> to vector<2x16x1xf32>
    %636 = tpu.reciprocal %635 {approx = true} : vector<2x16x1xf32> -> vector<2x16x1xf32>
    %637 = vector.broadcast %636 : vector<2x16x1xf32> to vector<2x16x16xf32>
    %638 = arith.mulf %633, %637 : vector<2x16x16xf32>
    %639 = arith.truncf %638 : vector<2x16x16xf32> to vector<2x16x16xbf16>
    %cst_232 = arith.constant dense<0.000000e+00> : vector<2x16x8xf32>
    %640 = tpu.matmul %639, %623, %cst_232 {dimension_numbers = #tpu.dot_dimension_numbers<[2], [1], [1], [2], [0, 0, 0, 1, 1, 2], [0], [0]>} : vector<2x16x16xbf16>, vector<2x16x8xbf16>, vector<2x16x8xf32> -> vector<2x16x8xf32>
    %641 = vector.shape_cast %640 : vector<2x16x8xf32> to vector<32x8xf32>
    %642 = vector.extract_strided_slice %611 {offsets = [0, 8], sizes = [32, 8], strides = [1, 1]} : vector<32x96xf32> to vector<32x8xf32>
    %cst_233 = arith.constant 0.353553385 : f32
    %643 = vector.broadcast %cst_233 : f32 to vector<32x8xf32>
    %644 = arith.mulf %642, %643 : vector<32x8xf32>
    %645 = vector.shape_cast %644 : vector<32x8xf32> to vector<2x16x8xf32>
    %646 = arith.truncf %645 : vector<2x16x8xf32> to vector<2x16x8xbf16>
    %647 = vector.extract_strided_slice %611 {offsets = [0, 40], sizes = [32, 8], strides = [1, 1]} : vector<32x96xf32> to vector<32x8xf32>
    %648 = vector.shape_cast %647 : vector<32x8xf32> to vector<2x16x8xf32>
    %649 = arith.truncf %648 : vector<2x16x8xf32> to vector<2x16x8xbf16>
    %650 = vector.extract_strided_slice %611 {offsets = [0, 72], sizes = [32, 8], strides = [1, 1]} : vector<32x96xf32> to vector<32x8xf32>
    %651 = vector.shape_cast %650 : vector<32x8xf32> to vector<2x16x8xf32>
    %652 = arith.truncf %651 : vector<2x16x8xf32> to vector<2x16x8xbf16>
    %cst_234 = arith.constant dense<0.000000e+00> : vector<2x16x16xf32>
    %653 = tpu.matmul %646, %649, %cst_234 {dimension_numbers = #tpu.dot_dimension_numbers<[2], [2], [1], [1], [0, 0, 0, 1, 1, 1], [0], [0]>} : vector<2x16x8xbf16>, vector<2x16x8xbf16>, vector<2x16x16xf32> -> vector<2x16x16xf32>
    %654 = vector.extract_strided_slice %612 {offsets = [1, 0, 0, 0], sizes = [1, 1, 16, 16], strides = [1, 1, 1, 1]} : vector<4x1x16x16xf32> to vector<1x1x16x16xf32>
    %655 = vector.shape_cast %654 : vector<1x1x16x16xf32> to vector<1x16x16xf32>
    %656 = vector.broadcast %655 : vector<1x16x16xf32> to vector<2x16x16xf32>
    %657 = arith.addf %653, %656 : vector<2x16x16xf32>
    %cst_235 = arith.constant dense<0xFF800000> : vector<2x16xf32>
    %658 = vector.multi_reduction <maximumf>, %657, %cst_235 [2] : vector<2x16x16xf32> to vector<2x16xf32>
    %659 = vector.shape_cast %658 : vector<2x16xf32> to vector<2x16x1xf32>
    %660 = vector.broadcast %659 : vector<2x16x1xf32> to vector<2x16x16xf32>
    %661 = arith.subf %657, %660 : vector<2x16x16xf32>
    %662 = math.exp %661 : vector<2x16x16xf32>
    %cst_236 = arith.constant dense<0.000000e+00> : vector<2x16xf32>
    %663 = vector.multi_reduction <add>, %662, %cst_236 [2] : vector<2x16x16xf32> to vector<2x16xf32>
    %664 = vector.shape_cast %663 : vector<2x16xf32> to vector<2x16x1xf32>
    %665 = tpu.reciprocal %664 {approx = true} : vector<2x16x1xf32> -> vector<2x16x1xf32>
    %666 = vector.broadcast %665 : vector<2x16x1xf32> to vector<2x16x16xf32>
    %667 = arith.mulf %662, %666 : vector<2x16x16xf32>
    %668 = arith.truncf %667 : vector<2x16x16xf32> to vector<2x16x16xbf16>
    %cst_237 = arith.constant dense<0.000000e+00> : vector<2x16x8xf32>
    %669 = tpu.matmul %668, %652, %cst_237 {dimension_numbers = #tpu.dot_dimension_numbers<[2], [1], [1], [2], [0, 0, 0, 1, 1, 2], [0], [0]>} : vector<2x16x16xbf16>, vector<2x16x8xbf16>, vector<2x16x8xf32> -> vector<2x16x8xf32>
    %670 = vector.shape_cast %669 : vector<2x16x8xf32> to vector<32x8xf32>
    %671 = vector.extract_strided_slice %611 {offsets = [0, 16], sizes = [32, 8], strides = [1, 1]} : vector<32x96xf32> to vector<32x8xf32>
    %cst_238 = arith.constant 0.353553385 : f32
    %672 = vector.broadcast %cst_238 : f32 to vector<32x8xf32>
    %673 = arith.mulf %671, %672 : vector<32x8xf32>
    %674 = vector.shape_cast %673 : vector<32x8xf32> to vector<2x16x8xf32>
    %675 = arith.truncf %674 : vector<2x16x8xf32> to vector<2x16x8xbf16>
    %676 = vector.extract_strided_slice %611 {offsets = [0, 48], sizes = [32, 8], strides = [1, 1]} : vector<32x96xf32> to vector<32x8xf32>
    %677 = vector.shape_cast %676 : vector<32x8xf32> to vector<2x16x8xf32>
    %678 = arith.truncf %677 : vector<2x16x8xf32> to vector<2x16x8xbf16>
    %679 = vector.extract_strided_slice %611 {offsets = [0, 80], sizes = [32, 8], strides = [1, 1]} : vector<32x96xf32> to vector<32x8xf32>
    %680 = vector.shape_cast %679 : vector<32x8xf32> to vector<2x16x8xf32>
    %681 = arith.truncf %680 : vector<2x16x8xf32> to vector<2x16x8xbf16>
    %cst_239 = arith.constant dense<0.000000e+00> : vector<2x16x16xf32>
    %682 = tpu.matmul %675, %678, %cst_239 {dimension_numbers = #tpu.dot_dimension_numbers<[2], [2], [1], [1], [0, 0, 0, 1, 1, 1], [0], [0]>} : vector<2x16x8xbf16>, vector<2x16x8xbf16>, vector<2x16x16xf32> -> vector<2x16x16xf32>
    %683 = vector.extract_strided_slice %612 {offsets = [2, 0, 0, 0], sizes = [1, 1, 16, 16], strides = [1, 1, 1, 1]} : vector<4x1x16x16xf32> to vector<1x1x16x16xf32>
    %684 = vector.shape_cast %683 : vector<1x1x16x16xf32> to vector<1x16x16xf32>
    %685 = vector.broadcast %684 : vector<1x16x16xf32> to vector<2x16x16xf32>
    %686 = arith.addf %682, %685 : vector<2x16x16xf32>
    %cst_240 = arith.constant dense<0xFF800000> : vector<2x16xf32>
    %687 = vector.multi_reduction <maximumf>, %686, %cst_240 [2] : vector<2x16x16xf32> to vector<2x16xf32>
    %688 = vector.shape_cast %687 : vector<2x16xf32> to vector<2x16x1xf32>
    %689 = vector.broadcast %688 : vector<2x16x1xf32> to vector<2x16x16xf32>
    %690 = arith.subf %686, %689 : vector<2x16x16xf32>
    %691 = math.exp %690 : vector<2x16x16xf32>
    %cst_241 = arith.constant dense<0.000000e+00> : vector<2x16xf32>
    %692 = vector.multi_reduction <add>, %691, %cst_241 [2] : vector<2x16x16xf32> to vector<2x16xf32>
    %693 = vector.shape_cast %692 : vector<2x16xf32> to vector<2x16x1xf32>
    %694 = tpu.reciprocal %693 {approx = true} : vector<2x16x1xf32> -> vector<2x16x1xf32>
    %695 = vector.broadcast %694 : vector<2x16x1xf32> to vector<2x16x16xf32>
    %696 = arith.mulf %691, %695 : vector<2x16x16xf32>
    %697 = arith.truncf %696 : vector<2x16x16xf32> to vector<2x16x16xbf16>
    %cst_242 = arith.constant dense<0.000000e+00> : vector<2x16x8xf32>
    %698 = tpu.matmul %697, %681, %cst_242 {dimension_numbers = #tpu.dot_dimension_numbers<[2], [1], [1], [2], [0, 0, 0, 1, 1, 2], [0], [0]>} : vector<2x16x16xbf16>, vector<2x16x8xbf16>, vector<2x16x8xf32> -> vector<2x16x8xf32>
    %699 = vector.shape_cast %698 : vector<2x16x8xf32> to vector<32x8xf32>
    %700 = vector.extract_strided_slice %611 {offsets = [0, 24], sizes = [32, 8], strides = [1, 1]} : vector<32x96xf32> to vector<32x8xf32>
    %cst_243 = arith.constant 0.353553385 : f32
    %701 = vector.broadcast %cst_243 : f32 to vector<32x8xf32>
    %702 = arith.mulf %700, %701 : vector<32x8xf32>
    %703 = vector.shape_cast %702 : vector<32x8xf32> to vector<2x16x8xf32>
    %704 = arith.truncf %703 : vector<2x16x8xf32> to vector<2x16x8xbf16>
    %705 = vector.extract_strided_slice %611 {offsets = [0, 56], sizes = [32, 8], strides = [1, 1]} : vector<32x96xf32> to vector<32x8xf32>
    %706 = vector.shape_cast %705 : vector<32x8xf32> to vector<2x16x8xf32>
    %707 = arith.truncf %706 : vector<2x16x8xf32> to vector<2x16x8xbf16>
    %708 = vector.extract_strided_slice %611 {offsets = [0, 88], sizes = [32, 8], strides = [1, 1]} : vector<32x96xf32> to vector<32x8xf32>
    %709 = vector.shape_cast %708 : vector<32x8xf32> to vector<2x16x8xf32>
    %710 = arith.truncf %709 : vector<2x16x8xf32> to vector<2x16x8xbf16>
    %cst_244 = arith.constant dense<0.000000e+00> : vector<2x16x16xf32>
    %711 = tpu.matmul %704, %707, %cst_244 {dimension_numbers = #tpu.dot_dimension_numbers<[2], [2], [1], [1], [0, 0, 0, 1, 1, 1], [0], [0]>} : vector<2x16x8xbf16>, vector<2x16x8xbf16>, vector<2x16x16xf32> -> vector<2x16x16xf32>
    %712 = vector.extract_strided_slice %612 {offsets = [3, 0, 0, 0], sizes = [1, 1, 16, 16], strides = [1, 1, 1, 1]} : vector<4x1x16x16xf32> to vector<1x1x16x16xf32>
    %713 = vector.shape_cast %712 : vector<1x1x16x16xf32> to vector<1x16x16xf32>
    %714 = vector.broadcast %713 : vector<1x16x16xf32> to vector<2x16x16xf32>
    %715 = arith.addf %711, %714 : vector<2x16x16xf32>
    %cst_245 = arith.constant dense<0xFF800000> : vector<2x16xf32>
    %716 = vector.multi_reduction <maximumf>, %715, %cst_245 [2] : vector<2x16x16xf32> to vector<2x16xf32>
    %717 = vector.shape_cast %716 : vector<2x16xf32> to vector<2x16x1xf32>
    %718 = vector.broadcast %717 : vector<2x16x1xf32> to vector<2x16x16xf32>
    %719 = arith.subf %715, %718 : vector<2x16x16xf32>
    %720 = math.exp %719 : vector<2x16x16xf32>
    %cst_246 = arith.constant dense<0.000000e+00> : vector<2x16xf32>
    %721 = vector.multi_reduction <add>, %720, %cst_246 [2] : vector<2x16x16xf32> to vector<2x16xf32>
    %722 = vector.shape_cast %721 : vector<2x16xf32> to vector<2x16x1xf32>
    %723 = tpu.reciprocal %722 {approx = true} : vector<2x16x1xf32> -> vector<2x16x1xf32>
    %724 = vector.broadcast %723 : vector<2x16x1xf32> to vector<2x16x16xf32>
    %725 = arith.mulf %720, %724 : vector<2x16x16xf32>
    %726 = arith.truncf %725 : vector<2x16x16xf32> to vector<2x16x16xbf16>
    %cst_247 = arith.constant dense<0.000000e+00> : vector<2x16x8xf32>
    %727 = tpu.matmul %726, %710, %cst_247 {dimension_numbers = #tpu.dot_dimension_numbers<[2], [1], [1], [2], [0, 0, 0, 1, 1, 2], [0], [0]>} : vector<2x16x16xbf16>, vector<2x16x8xbf16>, vector<2x16x8xf32> -> vector<2x16x8xf32>
    %728 = vector.shape_cast %727 : vector<2x16x8xf32> to vector<32x8xf32>
    %729 = tpu.concatenate %641, %670, %699, %728 in 1 : vector<32x8xf32>, vector<32x8xf32>, vector<32x8xf32>, vector<32x8xf32> -> vector<32x32xf32>
    %730 = arith.truncf %729 : vector<32x32xf32> to vector<32x32xbf16>
    %c0_248 = arith.constant 0 : index
    %c0_249 = arith.constant 0 : index
    %731 = vector.load %arg59[%c0_248, %c0_249] : memref<32x32xbf16, #tpu.memory_space<vmem>>, vector<32x32xbf16>
    %cst_250 = arith.constant dense<0.000000e+00> : vector<32x32xf32>
    %732 = tpu.matmul %730, %731, %cst_250 {dimension_numbers = #tpu.dot_dimension_numbers<[1], [0], [0], [1], [0, 0, 1, 1], [], []>} : vector<32x32xbf16>, vector<32x32xbf16>, vector<32x32xf32> -> vector<32x32xf32>
    %c0_251 = arith.constant 0 : index
    %c0_252 = arith.constant 0 : index
    %733 = vector.load %arg58[%c0_251, %c0_252] : memref<1x32xf32, #tpu.memory_space<vmem>>, vector<1x32xf32>
    %734 = vector.broadcast %733 : vector<1x32xf32> to vector<32x32xf32>
    %735 = arith.addf %732, %734 : vector<32x32xf32>
    %736 = arith.addf %579, %735 : vector<32x32xf32>
    %c0_253 = arith.constant 0 : index
    %c0_254 = arith.constant 0 : index
    %737 = vector.load %arg57[%c0_253, %c0_254] : memref<1x32xf32, #tpu.memory_space<vmem>>, vector<1x32xf32>
    %c0_255 = arith.constant 0 : index
    %c0_256 = arith.constant 0 : index
    %738 = vector.load %arg56[%c0_255, %c0_256] : memref<1x32xf32, #tpu.memory_space<vmem>>, vector<1x32xf32>
    %cst_257 = arith.constant dense<0.000000e+00> : vector<32xf32>
    %739 = vector.multi_reduction <add>, %736, %cst_257 [1] : vector<32x32xf32> to vector<32xf32>
    %740 = vector.shape_cast %739 : vector<32xf32> to vector<32x1xf32>
    %cst_258 = arith.constant 3.200000e+01 : f32
    %741 = vector.broadcast %cst_258 : f32 to vector<32x1xf32>
    %742 = arith.divf %740, %741 : vector<32x1xf32>
    %743 = vector.broadcast %742 : vector<32x1xf32> to vector<32x32xf32>
    %744 = arith.subf %736, %743 : vector<32x32xf32>
    %745 = vector.broadcast %742 : vector<32x1xf32> to vector<32x32xf32>
    %746 = arith.subf %736, %745 : vector<32x32xf32>
    %747 = arith.mulf %744, %746 : vector<32x32xf32>
    %cst_259 = arith.constant dense<0.000000e+00> : vector<32xf32>
    %748 = vector.multi_reduction <add>, %747, %cst_259 [1] : vector<32x32xf32> to vector<32xf32>
    %749 = vector.shape_cast %748 : vector<32xf32> to vector<32x1xf32>
    %cst_260 = arith.constant 3.200000e+01 : f32
    %750 = vector.broadcast %cst_260 : f32 to vector<32x1xf32>
    %751 = arith.divf %749, %750 : vector<32x1xf32>
    %752 = vector.broadcast %742 : vector<32x1xf32> to vector<32x32xf32>
    %753 = arith.subf %736, %752 : vector<32x32xf32>
    %cst_261 = arith.constant 9.99999974E-6 : f32
    %754 = vector.broadcast %cst_261 : f32 to vector<32x1xf32>
    %755 = arith.addf %751, %754 : vector<32x1xf32>
    %756 = math.rsqrt %755 : vector<32x1xf32>
    %757 = vector.broadcast %756 : vector<32x1xf32> to vector<32x32xf32>
    %758 = arith.mulf %753, %757 : vector<32x32xf32>
    %759 = vector.broadcast %737 : vector<1x32xf32> to vector<32x32xf32>
    %760 = arith.mulf %758, %759 : vector<32x32xf32>
    %761 = vector.broadcast %738 : vector<1x32xf32> to vector<32x32xf32>
    %762 = arith.addf %760, %761 : vector<32x32xf32>
    %763 = arith.truncf %762 : vector<32x32xf32> to vector<32x32xbf16>
    %c0_262 = arith.constant 0 : index
    %c0_263 = arith.constant 0 : index
    %764 = vector.load %arg62[%c0_262, %c0_263] : memref<32x64xbf16, #tpu.memory_space<vmem>>, vector<32x64xbf16>
    %cst_264 = arith.constant dense<0.000000e+00> : vector<32x64xf32>
    %765 = tpu.matmul %763, %764, %cst_264 {dimension_numbers = #tpu.dot_dimension_numbers<[1], [0], [0], [1], [0, 0, 1, 1], [], []>} : vector<32x32xbf16>, vector<32x64xbf16>, vector<32x64xf32> -> vector<32x64xf32>
    %c0_265 = arith.constant 0 : index
    %c0_266 = arith.constant 0 : index
    %766 = vector.load %arg51[%c0_265, %c0_266] : memref<1x64xf32, #tpu.memory_space<vmem>>, vector<1x64xf32>
    %767 = vector.broadcast %766 : vector<1x64xf32> to vector<32x64xf32>
    %768 = arith.addf %765, %767 : vector<32x64xf32>
    %769 = arith.mulf %768, %768 : vector<32x64xf32>
    %770 = arith.mulf %768, %769 : vector<32x64xf32>
    %cst_267 = arith.constant 4.471500e-02 : f32
    %771 = vector.broadcast %cst_267 : f32 to vector<32x64xf32>
    %772 = arith.mulf %771, %770 : vector<32x64xf32>
    %773 = arith.addf %768, %772 : vector<32x64xf32>
    %cst_268 = arith.constant 0.797884583 : f32
    %774 = vector.broadcast %cst_268 : f32 to vector<32x64xf32>
    %775 = arith.mulf %774, %773 : vector<32x64xf32>
    %776 = math.tanh %775 : vector<32x64xf32>
    %cst_269 = arith.constant 1.000000e+00 : f32
    %777 = vector.broadcast %cst_269 : f32 to vector<32x64xf32>
    %778 = arith.addf %777, %776 : vector<32x64xf32>
    %cst_270 = arith.constant 5.000000e-01 : f32
    %779 = vector.broadcast %cst_270 : f32 to vector<32x64xf32>
    %780 = arith.mulf %779, %778 : vector<32x64xf32>
    %781 = arith.mulf %768, %780 : vector<32x64xf32>
    %782 = arith.truncf %781 : vector<32x64xf32> to vector<32x64xbf16>
    %c0_271 = arith.constant 0 : index
    %c0_272 = arith.constant 0 : index
    %783 = vector.load %arg63[%c0_271, %c0_272] : memref<64x32xbf16, #tpu.memory_space<vmem>>, vector<64x32xbf16>
    %cst_273 = arith.constant dense<0.000000e+00> : vector<32x32xf32>
    %784 = tpu.matmul %782, %783, %cst_273 {dimension_numbers = #tpu.dot_dimension_numbers<[1], [0], [0], [1], [0, 0, 1, 1], [], []>} : vector<32x64xbf16>, vector<64x32xbf16>, vector<32x32xf32> -> vector<32x32xf32>
    %c0_274 = arith.constant 0 : index
    %c0_275 = arith.constant 0 : index
    %785 = vector.load %arg52[%c0_274, %c0_275] : memref<1x32xf32, #tpu.memory_space<vmem>>, vector<1x32xf32>
    %786 = vector.broadcast %785 : vector<1x32xf32> to vector<32x32xf32>
    %787 = arith.addf %784, %786 : vector<32x32xf32>
    %788 = arith.addf %736, %787 : vector<32x32xf32>
    %c0_276 = arith.constant 0 : index
    %c0_277 = arith.constant 0 : index
    %789 = vector.load %arg2[%c0_276, %c0_277] : memref<1x32xf32, #tpu.memory_space<vmem>>, vector<1x32xf32>
    %c0_278 = arith.constant 0 : index
    %c0_279 = arith.constant 0 : index
    %790 = vector.load %arg1[%c0_278, %c0_279] : memref<1x32xf32, #tpu.memory_space<vmem>>, vector<1x32xf32>
    %cst_280 = arith.constant dense<0.000000e+00> : vector<32xf32>
    %791 = vector.multi_reduction <add>, %788, %cst_280 [1] : vector<32x32xf32> to vector<32xf32>
    %792 = vector.shape_cast %791 : vector<32xf32> to vector<32x1xf32>
    %cst_281 = arith.constant 3.200000e+01 : f32
    %793 = vector.broadcast %cst_281 : f32 to vector<32x1xf32>
    %794 = arith.divf %792, %793 : vector<32x1xf32>
    %795 = vector.broadcast %794 : vector<32x1xf32> to vector<32x32xf32>
    %796 = arith.subf %788, %795 : vector<32x32xf32>
    %797 = vector.broadcast %794 : vector<32x1xf32> to vector<32x32xf32>
    %798 = arith.subf %788, %797 : vector<32x32xf32>
    %799 = arith.mulf %796, %798 : vector<32x32xf32>
    %cst_282 = arith.constant dense<0.000000e+00> : vector<32xf32>
    %800 = vector.multi_reduction <add>, %799, %cst_282 [1] : vector<32x32xf32> to vector<32xf32>
    %801 = vector.shape_cast %800 : vector<32xf32> to vector<32x1xf32>
    %cst_283 = arith.constant 3.200000e+01 : f32
    %802 = vector.broadcast %cst_283 : f32 to vector<32x1xf32>
    %803 = arith.divf %801, %802 : vector<32x1xf32>
    %804 = vector.broadcast %794 : vector<32x1xf32> to vector<32x32xf32>
    %805 = arith.subf %788, %804 : vector<32x32xf32>
    %cst_284 = arith.constant 9.99999974E-6 : f32
    %806 = vector.broadcast %cst_284 : f32 to vector<32x1xf32>
    %807 = arith.addf %803, %806 : vector<32x1xf32>
    %808 = math.rsqrt %807 : vector<32x1xf32>
    %809 = vector.broadcast %808 : vector<32x1xf32> to vector<32x32xf32>
    %810 = arith.mulf %805, %809 : vector<32x32xf32>
    %811 = vector.broadcast %789 : vector<1x32xf32> to vector<32x32xf32>
    %812 = arith.mulf %810, %811 : vector<32x32xf32>
    %813 = vector.broadcast %790 : vector<1x32xf32> to vector<32x32xf32>
    %814 = arith.addf %812, %813 : vector<32x32xf32>
    %815 = vector.shape_cast %814 : vector<32x32xf32> to vector<2x16x32xf32>
    %cst_285 = arith.constant dense<0.000000e+00> : vector<2x32xf32>
    %816 = vector.multi_reduction <add>, %815, %cst_285 [1] : vector<2x16x32xf32> to vector<2x32xf32>
    %cst_286 = arith.constant 1.600000e+01 : f32
    %817 = vector.broadcast %cst_286 : f32 to vector<2x32xf32>
    %818 = arith.divf %816, %817 : vector<2x32xf32>
    %c0_287 = arith.constant 0 : index
    %c0_288 = arith.constant 0 : index
    %819 = vector.load %arg64[%c0_287, %c0_288] : memref<2x32xf32, #tpu.memory_space<vmem>>, vector<2x32xf32>
    tpu.vector_store %arg64[%c0_287, %c0_288], %818 {strides = array<i32>} : memref<2x32xf32, #tpu.memory_space<vmem>>, vector<2x32xf32>,
    return
  }
}

</mosaic_0001>

<bundles_post_ra>
// kernel: swin_forward.1
= control target key start
LH: loop header
LB: loop body
LE: loop exit
PB: predicated region body
PF: predicated region fallthrough
CT: control target
= control target key end

     0   :  { %s14563_s6 = smov 1   ;;  %s14564_s10 = smov 2   ;;  %s18619_s0 = inlined_call_operand.smem [shape: u32[65], index: -1, kind: input, shape index: {}] }
   0x1   :  { %s14676_s5 = sld [smem:[%s18619_s0]]   ;;  %s14565_s14 = smov 3  }
   0x2   :  { %s14681_s9 = sld [smem:[%s18619_s0 + %s14563_s6]]   ;;  %s14566_s18 = smov 4  }
   0x3   :  { %s14686_s13 = sld [smem:[%s18619_s0 + %s14564_s10]]   ;;  %s14567_s22 = smov 5  }
   0x4   :  { %s14691_s17 = sld [smem:[%s18619_s0 + %s14565_s14]]   ;;  %s14568_s26 = smov 6  }
   0x5   :  { %s14696_s21 = sld [smem:[%s18619_s0 + %s14566_s18]]   ;;  %s14569_s30 = smov 7  }
   0x6   :  { %s14701_s25 = sld [smem:[%s18619_s0 + %s14567_s22]]   ;;  %s14570_s4 = smov 8  }
   0x7   :  { %18645 = sst [smem:[#allocation52_spill]] %s14676_s5  ;;  %s14571_s10 = smov 9  }
   0x8   :  { %18646 = sst [smem:[#allocation53_spill]] %s14681_s9  ;;  %s14572_s15 = smov 10  }
   0x9   :  { %18647 = sst [smem:[#allocation54_spill]] %s14686_s13  ;;  %s14573_s20 = smov 11  }
   0xa   :  { %18648 = sst [smem:[#allocation55_spill]] %s14691_s17  ;;  %s14575_s1 = smov 13  }
   0xb   :  { %18649 = sst [smem:[#allocation56_spill]] %s14696_s21  ;;  %s14576_s7 = smov 14  }
   0xc   :  { %18650 = sst [smem:[#allocation57_spill]] %s14701_s25  ;;  %s14578_s22 = smov 16  }
   0xd   :  { %s14706_s29 = sld [smem:[%s18619_s0 + %s14568_s26]]   ;;  %s14574_s26 = smov 12  }
   0xe   :  { %s14711_s3 = sld [smem:[%s18619_s0 + %s14569_s30]]   ;;  %s14579_s28 = smov 17  }
   0xf   :  { %s14716_s8 = sld [smem:[%s18619_s0 + %s14570_s4]]  }
  0x10   :  { %s14721_s14 = sld [smem:[%s18619_s0 + %s14571_s10]]  }
  0x11   :  { %s14726_s19 = sld [smem:[%s18619_s0 + %s14572_s15]]   ;;  %s14577_s15 = smov 15  }
  0x12   :  { %s14731_s24 = sld [smem:[%s18619_s0 + %s14573_s20]]  }
  0x13   :  { %18651 = sst [smem:[#allocation58_spill]] %s14706_s29 }
  0x14   :  { %18652 = sst [smem:[#allocation59_spill]] %s14711_s3 }
  0x15   :  { %18653 = sst [smem:[#allocation60_spill]] %s14716_s8 }
  0x16   :  { %18654 = sst [smem:[#allocation61_spill]] %s14721_s14 }
  0x17   :  { %18655 = sst [smem:[#allocation62_spill]] %s14726_s19 }
  0x18   :  { %18656 = sst [smem:[#allocation63_spill]] %s14731_s24 }
  0x19   :  { %s14736_s30 = sld [smem:[%s18619_s0 + %s14574_s26]]  }
  0x1a   :  { %s14741_s6 = sld [smem:[%s18619_s0 + %s14575_s1]]  }
  0x1b   :  { %s14746_s12 = sld [smem:[%s18619_s0 + %s14576_s7]]   ;;  %s14580_s7 = smov 18  }
  0x1c   :  { %s14751_s20 = sld [smem:[%s18619_s0 + %s14577_s15]]   ;;  %s14581_s15 = smov 19  }
  0x1d   :  { %s14756_s27 = sld [smem:[%s18619_s0 + %s14578_s22]]   ;;  %s14582_s22 = smov 20  }
  0x1e   :  { %s14761_s4 = sld [smem:[%s18619_s0 + %s14579_s28]]   ;;  %s14583_s28 = smov 21  }
  0x1f   :  { %18657 = sst [smem:[#allocation64_spill]] %s14736_s30 }
  0x20   :  { %18658 = sst [smem:[#allocation65_spill]] %s14741_s6 }
  0x21   :  { %18659 = sst [smem:[#allocation66_spill]] %s14746_s12 }
  0x22   :  { %18660 = sst [smem:[#allocation67_spill]] %s14751_s20 }
  0x23   :  { %18661 = sst [smem:[#allocation68_spill]] %s14756_s27 }
  0x24   :  { %18662 = sst [smem:[#allocation69_spill]] %s14761_s4 }
  0x25   :  { %s14766_s9 = sld [smem:[%s18619_s0 + %s14580_s7]]   ;;  %s14584_s7 = smov 22  }
  0x26   :  { %s14771_s13 = sld [smem:[%s18619_s0 + %s14581_s15]]   ;;  %s14585_s15 = smov 23  }
  0x27   :  { %s14776_s17 = sld [smem:[%s18619_s0 + %s14582_s22]]   ;;  %s14586_s22 = smov 24  }
  0x28   :  { %s14781_s21 = sld [smem:[%s18619_s0 + %s14583_s28]]   ;;  %s14587_s28 = smov 25  }
  0x29   :  { %s14786_s25 = sld [smem:[%s18619_s0 + %s14584_s7]]   ;;  %s14588_s7 = smov 26  }
  0x2a   :  { %s14791_s29 = sld [smem:[%s18619_s0 + %s14585_s15]]   ;;  %s14589_s15 = smov 27  }
  0x2b   :  { %18663 = sst [smem:[#allocation70_spill]] %s14766_s9 }
  0x2c   :  { %18664 = sst [smem:[#allocation71_spill]] %s14771_s13 }
  0x2d   :  { %18665 = sst [smem:[#allocation72_spill]] %s14776_s17 }
  0x2e   :  { %18666 = sst [smem:[#allocation73_spill]] %s14781_s21 }
  0x2f   :  { %18667 = sst [smem:[#allocation74_spill]] %s14786_s25 }
  0x30   :  { %18668 = sst [smem:[#allocation75_spill]] %s14791_s29 }
  0x31   :  { %s14796_s6 = sld [smem:[%s18619_s0 + %s14586_s22]]   ;;  %s14590_s22 = smov 28  }
  0x32   :  { %s14801_s3 = sld [smem:[%s18619_s0 + %s14587_s28]]   ;;  %s14591_s28 = smov 29  }
  0x33   :  { %s14806_s30 = sld [smem:[%s18619_s0 + %s14588_s7]]   ;;  %s14592_s7 = smov 30  }
  0x34   :  { %s14811_s4 = sld [smem:[%s18619_s0 + %s14589_s15]]   ;;  %s14593_s15 = smov 31  }
  0x35   :  { %s14826_s9 = sld [smem:[%s18619_s0 + %s14592_s7]]   ;;  %s14596_s7 = smov 34  }
  0x36   :  { %s14846_s17 = sld [smem:[%s18619_s0 + %s14596_s7]]   ;;  %s14600_s7 = smov 38  }
  0x37   :  { %18669 = sst [smem:[#allocation76_spill]] %s14796_s6 }
  0x38   :  { %18670 = sst [smem:[#allocation77_spill]] %s14801_s3 }
  0x39   :  { %s14816_s6 = sld [smem:[%s18619_s0 + %s14590_s22]]   ;;  %s14594_s22 = smov 32  }
  0x3a   :  { %18671 = sst [smem:[#allocation78_spill]] %s14811_s4 }
  0x3b   :  { %s14821_s3 = sld [smem:[%s18619_s0 + %s14591_s28]]   ;;  %s14595_s28 = smov 33  }
  0x3c   :  { %s14831_s4 = sld [smem:[%s18619_s0 + %s14593_s15]]   ;;  %s14597_s15 = smov 35  }
  0x3d   :  { %s14836_s29 = sld [smem:[%s18619_s0 + %s14594_s22]]   ;;  %s14598_s22 = smov 36  }
  0x3e   :  { %s14841_s13 = sld [smem:[%s18619_s0 + %s14595_s28]]   ;;  %s14599_s28 = smov 37  }
  0x3f   :  { %18673 = sst [smem:[#allocation80_spill]] %s14846_s17 }
  0x40   :  { %s14851_s12 = sld [smem:[%s18619_s0 + %s14597_s15]]   ;;  %s14601_s15 = smov 39  }
  0x41   :  { %s14856_s21 = sld [smem:[%s18619_s0 + %s14598_s22]]   ;;  %s14602_s22 = smov 40  }
  0x42   :  { %s14866_s20 = sld [smem:[%s18619_s0 + %s14600_s7]]   ;;  %s14604_s7 = smov 42  }
  0x43   :  { %s14886_s27 = sld [smem:[%s18619_s0 + %s14604_s7]]   ;;  %s14608_s7 = smov 46  }
  0x44   :  { %18672 = sst [smem:[#allocation79_spill]] %s14841_s13 }
  0x45   :  { %s14861_s13 = sld [smem:[%s18619_s0 + %s14599_s28]]   ;;  %s14603_s28 = smov 41  }
  0x46   :  { %18674 = sst [smem:[#allocation81_spill]] %s14851_s12 }
  0x47   :  { %18675 = sst [smem:[#allocation82_spill]] %s14856_s21 }
  0x48   :  { %s14871_s12 = sld [smem:[%s18619_s0 + %s14601_s15]]   ;;  %s14605_s15 = smov 43  }
  0x49   :  { %s14876_s21 = sld [smem:[%s18619_s0 + %s14602_s22]]   ;;  %s14606_s22 = smov 44  }
  0x4a   :  { %18679 = sst [smem:[#allocation86_spill]] %s14886_s27 }
  0x4b   :  { %18676 = sst [smem:[#allocation83_spill]] %s14861_s13 }
  0x4c   :  { %s14881_s13 = sld [smem:[%s18619_s0 + %s14603_s28]]   ;;  %s14607_s28 = smov 45  }
  0x4d   :  { %s14891_s25 = sld [smem:[%s18619_s0 + %s14605_s15]]   ;;  %s14609_s15 = smov 47  }
  0x4e   :  { %18677 = sst [smem:[#allocation84_spill]] %s14871_s12 }
  0x4f   :  { %18678 = sst [smem:[#allocation85_spill]] %s14876_s21 }
  0x50   :  { %s14896_s21 = sld [smem:[%s18619_s0 + %s14606_s22]]   ;;  %s14610_s22 = smov 48  }
  0x51   :  { %s14901_s14 = sld [smem:[%s18619_s0 + %s14607_s28]]   ;;  %s14611_s28 = smov 49  }
  0x52   :  { %s14906_s19 = sld [smem:[%s18619_s0 + %s14608_s7]]   ;;  %s14612_s7 = smov 50  }
  0x53   :  { %s14911_s8 = sld [smem:[%s18619_s0 + %s14609_s15]]   ;;  %s14613_s15 = smov 51  }
  0x54   :  { %s14916_s5 = sld [smem:[%s18619_s0 + %s14610_s22]]   ;;  %s14614_s22 = smov 52  }
  0x55   :  { %s14921_s24 = sld [smem:[%s18619_s0 + %s14611_s28]]   ;;  %s14615_s28 = smov 53  }
  0x56   :  { %18680 = sst [smem:[#allocation87_spill]] %s14896_s21 }
  0x58   :  { %18681 = sst [smem:[#allocation88_spill]] %s14906_s19 }
  0x59   :  { %18682 = sst [smem:[#allocation89_spill]] %s14911_s8 }
  0x5a   :  { %18683 = sst [smem:[#allocation90_spill]] %s14916_s5 }
  0x5b   :  { %18684 = sst [smem:[#allocation91_spill]] %s14921_s24 }
  0x5c   :  { %s14926_s19 = sld [smem:[%s18619_s0 + %s14612_s7]]   ;;  %s14616_s7 = smov 54  }
  0x5d   :  { %s14931_s8 = sld [smem:[%s18619_s0 + %s14613_s15]]   ;;  %s14617_s15 = smov 55  }
  0x5e   :  { %s14936_s5 = sld [smem:[%s18619_s0 + %s14614_s22]]   ;;  %s14618_s22 = smov 56  }
  0x5f   :  { %s14941_s24 = sld [smem:[%s18619_s0 + %s14615_s28]]   ;;  %s14619_s28 = smov 57  }
  0x60   :  { %s14951_s21 = sld [smem:[%s18619_s0 + %s14617_s15]]   ;;  %s14621_s15 = smov 59  }
  0x62   :  { %18685 = sst [smem:[#allocation92_spill]] %s14926_s19 }
  0x63   :  { %s14946_s19 = sld [smem:[%s18619_s0 + %s14616_s7]]   ;;  %s14620_s7 = smov 58  }
  0x64   :  { %18686 = sst [smem:[#allocation93_spill]] %s14936_s5 }
  0x65   :  { %18687 = sst [smem:[#allocation94_spill]] %s14941_s24 }
  0x66   :  { %18688 = sst [smem:[#allocation95_spill]] %s14951_s21 }
  0x67   :  { %s14956_s5 = sld [smem:[%s18619_s0 + %s14618_s22]]   ;;  %s14622_s22 = smov 60  }
  0x68   :  { %s14961_s24 = sld [smem:[%s18619_s0 + %s14619_s28]]   ;;  %s14623_s28 = smov 61  }
  0x69   :  { %s14966_s27 = sld [smem:[%s18619_s0 + %s14620_s7]]   ;;  %s14624_s7 = smov 62  }
  0x6a   :  { %s14971_s21 = sld [smem:[%s18619_s0 + %s14621_s15]]   ;;  %s14625_s15 = smov 63  }
  0x6b   :  { %s14976_s12 = sld [smem:[%s18619_s0 + %s14622_s22]]   ;;  %s14626_s22 = smov 64  }
  0x6c   :  { %s14986_s17 = sld [smem:[%s18619_s0 + %s14624_s7]]  }
  0x6e   :  { %18689 = sst [smem:[#allocation96_spill]] %s14961_s24 }
  0x6f   :  { %s14981_s24 = sld [smem:[%s18619_s0 + %s14623_s28]]  }
  0x70   :  { %18690 = sst [smem:[#allocation97_spill]] %s14971_s21 }
  0x71   :  { %18691 = sst [smem:[#allocation98_spill]] %s14976_s12 }
  0x72   :  { %s14991_s21 = sld [smem:[%s18619_s0 + %s14625_s15]]  }
  0x73   :  { %s14996_s12 = sld [smem:[%s18619_s0 + %s14626_s22]]  }
  0x74   :  { %134 = vsyncpa [#allocation3], 0 }
  0x75   :  { %135 = vsyncpa [#allocation6], 0 }
  0x76   :  { %136 = vsyncpa [#allocation9], 0 }
  0x77   :  { %137 = vsyncpa [#allocation12], 0 }
  0x78   :  { %138 = vsyncpa [#allocation15], 0 }
  0x79   :  { %139 = vsyncpa [#allocation18], 0 }
  0x7a   :  { %140 = vsyncpa [#allocation21], 0 }
  0x7b   :  { %141 = vsyncpa [#allocation24], 0 }
  0x7c   :  { %142 = vsyncpa [#allocation27], 0 }
  0x7d   :  { %143 = vsyncpa [#allocation30], 0 }
  0x7e   :  { %144 = vsyncpa [#allocation33], 0 }
  0x7f   :  { %145 = vsyncpa [#allocation36], 0 }
  0x80   :  { %146 = vsyncpa [#allocation4], 0  ;;  %s14627_s28 = smov [#allocation5]   ;;  %s14628_s2 = smov [#allocation8]  }
  0x81   :  { %s217_s1 = sshll.u32 %s14627_s28, 4  ;;  %s237_s7 = sshll.u32 %s14628_s2, 4  ;;  %s218_s1 = int_to_ptr.vmem [resolvable:$true] %s217_s1  ;;  %s238_s7 = int_to_ptr.vmem [resolvable:$true] %s237_s7 }
  0x82   :  { %s14065_s0 = scalar_lea.vmem %s218_s1, 16  ;;  %s14069_s10 = scalar_lea.vmem %s218_s1, 32 }
  0x83   :  { %p14066_p0 = scmp.ne.s32.totalorder %s218_s1, %s14065_s0  ;;  %p14070_p1 = scmp.lt.s32.totalorder %s218_s1, %s218_s1 }
  0x84   :  { %p14071_p2 = scmp.lt.s32.totalorder %s14069_s10, %s14065_s0 }
  0x86   :  { %p14072_p3 = por %p14071_p2, %p14070_p1 }
  0x88   :  { %p14073_p4 = pnand %p14072_p3, %p14066_p0 }
  0x8a   :  { %14076 = shalt.err (!%p14073_p4)
}
  0x8b   :  { %220 = dma.hbm_to_vmem [thread:$0]  %s14816_s6, 16, %s218_s1, [#allocation6]  }
  0x8c   :  { %s14085_s11 = scalar_lea.vmem %s238_s7, 16  ;;  %s14089_s15 = scalar_lea.vmem %s238_s7, 32 }
  0x8d   :  { %p14086_p5 = scmp.ne.s32.totalorder %s238_s7, %s14085_s11  ;;  %p14090_p6 = scmp.lt.s32.totalorder %s238_s7, %s238_s7 }
  0x8e   :  { %p14091_p7 = scmp.lt.s32.totalorder %s14089_s15, %s14085_s11 }
  0x90   :  { %p14092_p8 = por %p14091_p7, %p14090_p6 }
  0x92   :  { %p14093_p9 = pnand %p14092_p8, %p14086_p5 }
  0x94   :  { %14096 = shalt.err (!%p14093_p9)
}
  0x95   :  { %240 = dma.hbm_to_vmem [thread:$0]  %s14826_s9, 16, %s238_s7, [#allocation9]  }
  0x96   :  { %s14629_s16 = smov [#allocation11]   ;;  %s14630_s22 = smov [#allocation14]  }
  0x97   :  { %s257_s18 = sshll.u32 %s14629_s16, 4  ;;  %s285_s23 = sshll.u32 %s14630_s22, 4  ;;  %s258_s18 = int_to_ptr.vmem [resolvable:$true] %s257_s18  ;;  %s286_s23 = int_to_ptr.vmem [resolvable:$true] %s285_s23 }
  0x98   :  { %s14105_s26 = scalar_lea.vmem %s258_s18, 16  ;;  %s14109_s28 = scalar_lea.vmem %s258_s18, 32 }
  0x99   :  { %p14106_p10 = scmp.ne.s32.totalorder %s258_s18, %s14105_s26  ;;  %p14110_p11 = scmp.lt.s32.totalorder %s258_s18, %s258_s18 }
  0x9a   :  { %p14111_p12 = scmp.lt.s32.totalorder %s14109_s28, %s14105_s26 }
  0x9c   :  { %p14112_p13 = por %p14111_p12, %p14110_p11 }
  0x9e   :  { %p14113_p0 = pnand %p14112_p13, %p14106_p10 }
  0xa0   :  { %14116 = shalt.err (!%p14113_p0)
}
  0xa1   :  { %260 = dma.hbm_to_vmem [thread:$0]  %s14836_s29, 16, %s258_s18, [#allocation12]  }
  0xa2   :  { %s14125_s6 = scalar_lea.vmem %s286_s23, 16  ;;  %s14129_s1 = scalar_lea.vmem %s286_s23, 32 }
  0xa3   :  { %p14126_p1 = scmp.ne.s32.totalorder %s286_s23, %s14125_s6  ;;  %p14130_p2 = scmp.lt.s32.totalorder %s286_s23, %s286_s23 }
  0xa4   :  { %p14131_p3 = scmp.lt.s32.totalorder %s14129_s1, %s14125_s6 }
  0xa6   :  { %p14132_p4 = por %p14131_p3, %p14130_p2 }
  0xa8   :  { %p14133_p5 = pnand %p14132_p4, %p14126_p1 }
  0xaa   :  { %14136 = shalt.err (!%p14133_p5)
}
  0xab   :  { %288 = dma.hbm_to_vmem [thread:$0]  %s14866_s20, 16, %s286_s23, [#allocation15]  }
  0xac   :  { %s14631_s9 = smov [#allocation17]   ;;  %s14632_s7 = smov [#allocation20]  }
  0xad   :  { %s307_s2 = sshll.u32 %s14631_s9, 4  ;;  %s327_s0 = sshll.u32 %s14632_s7, 4  ;;  %s308_s2 = int_to_ptr.vmem [resolvable:$true] %s307_s2  ;;  %s328_s0 = int_to_ptr.vmem [resolvable:$true] %s327_s0 }
  0xae   :  { %s14145_s10 = scalar_lea.vmem %s308_s2, 16  ;;  %s14149_s11 = scalar_lea.vmem %s308_s2, 32 }
  0xaf   :  { %p14146_p6 = scmp.ne.s32.totalorder %s308_s2, %s14145_s10  ;;  %p14150_p7 = scmp.lt.s32.totalorder %s308_s2, %s308_s2 }
  0xb0   :  { %p14151_p8 = scmp.lt.s32.totalorder %s14149_s11, %s14145_s10 }
  0xb2   :  { %p14152_p9 = por %p14151_p8, %p14150_p7 }
  0xb4   :  { %p14153_p10 = pnand %p14152_p9, %p14146_p6 }
  0xb6   :  { %14156 = shalt.err (!%p14153_p10)
}
  0xb7   :  { %310 = dma.hbm_to_vmem [thread:$0]  %s14881_s13, 16, %s308_s2, [#allocation18]  }
  0xb8   :  { %s14165_s29 = scalar_lea.vmem %s328_s0, 16  ;;  %s14169_s15 = scalar_lea.vmem %s328_s0, 32 }
  0xb9   :  { %p14166_p11 = scmp.ne.s32.totalorder %s328_s0, %s14165_s29  ;;  %p14170_p12 = scmp.lt.s32.totalorder %s328_s0, %s328_s0 }
  0xba   :  { %p14171_p13 = scmp.lt.s32.totalorder %s14169_s15, %s14165_s29 }
  0xbc   :  { %p14172_p0 = por %p14171_p13, %p14170_p12 }
  0xbe   :  { %p14173_p1 = pnand %p14172_p0, %p14166_p11 }
  0xc0   :  { %14176 = shalt.err (!%p14173_p1)
}
  0xc1   :  { %330 = dma.hbm_to_vmem [thread:$0]  %s14891_s25, 16, %s328_s0, [#allocation21]  }
  0xc2   :  { %s14633_s20 = smov [#allocation23]   ;;  %s14634_s18 = smov [#allocation26]  }
  0xc3   :  { %s347_s16 = sshll.u32 %s14633_s20, 4  ;;  %s375_s22 = sshll.u32 %s14634_s18, 4  ;;  %s348_s16 = int_to_ptr.vmem [resolvable:$true] %s347_s16  ;;  %s376_s22 = int_to_ptr.vmem [resolvable:$true] %s375_s22 }
  0xc4   :  { %s14185_s23 = scalar_lea.vmem %s348_s16, 16  ;;  %s14189_s26 = scalar_lea.vmem %s348_s16, 32 }
  0xc5   :  { %p14186_p2 = scmp.ne.s32.totalorder %s348_s16, %s14185_s23  ;;  %p14190_p3 = scmp.lt.s32.totalorder %s348_s16, %s348_s16 }
  0xc6   :  { %p14191_p4 = scmp.lt.s32.totalorder %s14189_s26, %s14185_s23 }
  0xc8   :  { %p14192_p5 = por %p14191_p4, %p14190_p3 }
  0xca   :  { %p14193_p6 = pnand %p14192_p5, %p14186_p2 }
  0xcc   :  { %14196 = shalt.err (!%p14193_p6)
}
  0xcd   :  { %350 = dma.hbm_to_vmem [thread:$0]  %s14901_s14, 16, %s348_s16, [#allocation24]  }
  0xce   :  { %s14205_s13 = scalar_lea.vmem %s376_s22, 16  ;;  %s14209_s28 = scalar_lea.vmem %s376_s22, 32 }
  0xcf   :  { %p14206_p7 = scmp.ne.s32.totalorder %s376_s22, %s14205_s13  ;;  %p14210_p8 = scmp.lt.s32.totalorder %s376_s22, %s376_s22 }
  0xd0   :  { %p14211_p9 = scmp.lt.s32.totalorder %s14209_s28, %s14205_s13 }
  0xd2   :  { %p14212_p10 = por %p14211_p9, %p14210_p8 }
  0xd4   :  { %p14213_p11 = pnand %p14212_p10, %p14206_p7 }
  0xd6   :  { %14216 = shalt.err (!%p14213_p11)
}
  0xd7   :  { %378 = dma.hbm_to_vmem [thread:$0]  %s14931_s8, 16, %s376_s22, [#allocation27]  }
  0xd8   :  { %s14635_s25 = smov [#allocation29]   ;;  %s14636_s1 = smov [#allocation32]  }
  0xd9   :  { %s397_s6 = sshll.u32 %s14635_s25, 4  ;;  %s417_s9 = sshll.u32 %s14636_s1, 4  ;;  %s398_s6 = int_to_ptr.vmem [resolvable:$true] %s397_s6  ;;  %s418_s9 = int_to_ptr.vmem [resolvable:$true] %s417_s9 }
  0xda   :  { %s14225_s2 = scalar_lea.vmem %s398_s6, 16  ;;  %s14229_s7 = scalar_lea.vmem %s398_s6, 32 }
  0xdb   :  { %p14226_p12 = scmp.ne.s32.totalorder %s398_s6, %s14225_s2  ;;  %p14230_p13 = scmp.lt.s32.totalorder %s398_s6, %s398_s6 }
  0xdc   :  { %p14231_p0 = scmp.lt.s32.totalorder %s14229_s7, %s14225_s2 }
  0xde   :  { %p14232_p1 = por %p14231_p0, %p14230_p13 }
  0xe0   :  { %p14233_p2 = pnand %p14232_p1, %p14226_p12 }
  0xe2   :  { %14236 = shalt.err (!%p14233_p2)
}
  0xe3   :  { %400 = dma.hbm_to_vmem [thread:$0]  %s14946_s19, 16, %s398_s6, [#allocation30]  }
  0xe4   :  { %s14245_s14 = scalar_lea.vmem %s418_s9, 16  ;;  %s14249_s0 = scalar_lea.vmem %s418_s9, 32 }
  0xe5   :  { %p14246_p3 = scmp.ne.s32.totalorder %s418_s9, %s14245_s14  ;;  %p14250_p4 = scmp.lt.s32.totalorder %s418_s9, %s418_s9 }
  0xe6   :  { %p14251_p5 = scmp.lt.s32.totalorder %s14249_s0, %s14245_s14 }
  0xe8   :  { %p14252_p6 = por %p14251_p5, %p14250_p4 }
  0xea   :  { %p14253_p7 = pnand %p14252_p6, %p14246_p3 }
  0xec   :  { %14256 = shalt.err (!%p14253_p7)
}
  0xed   :  { %420 = dma.hbm_to_vmem [thread:$0]  %s14956_s5, 16, %s418_s9, [#allocation33]  }
  0xee   :  { %s14637_s8 = smov [#allocation35]   ;;  %s14638_s11 = smov [#allocation2]  }
  0xef   :  { %s437_s10 = sshll.u32 %s14637_s8, 4  ;;  %s205_s29 = sshll.u32 %s14638_s11, 4  ;;  %s438_s10 = int_to_ptr.vmem [resolvable:$true] %s437_s10  ;;  %s206_s29 = int_to_ptr.vmem [resolvable:$true] %s205_s29 }
  0xf0   :  { %s14265_s15 = scalar_lea.vmem %s438_s10, 16  ;;  %s14269_s20 = scalar_lea.vmem %s438_s10, 32 }
  0xf1   :  { %p14266_p8 = scmp.ne.s32.totalorder %s438_s10, %s14265_s15  ;;  %p14270_p9 = scmp.lt.s32.totalorder %s438_s10, %s438_s10 }
  0xf2   :  { %p14271_p10 = scmp.lt.s32.totalorder %s14269_s20, %s14265_s15 }
  0xf4   :  { %p14272_p11 = por %p14271_p10, %p14270_p9 }
  0xf6   :  { %p14273_p12 = pnand %p14272_p11, %p14266_p8 }
  0xf8   :  { %14276 = shalt.err (!%p14273_p12)
}
  0xf9   :  { %440 = dma.hbm_to_vmem [thread:$0]  %s14966_s27, 16, %s438_s10, [#allocation36]  }
  0xfa   :  { %s14285_s19 = scalar_lea.vmem %s206_s29, 16  ;;  %s14289_s16 = scalar_lea.vmem %s206_s29, 32 }
  0xfb   :  { %p14286_p13 = scmp.ne.s32.totalorder %s206_s29, %s14285_s19  ;;  %p14290_p0 = scmp.lt.s32.totalorder %s206_s29, %s206_s29 }
  0xfc   :  { %p14291_p1 = scmp.lt.s32.totalorder %s14289_s16, %s14285_s19 }
  0xfe   :  { %p14292_p2 = por %p14291_p1, %p14290_p0 }
 0x100   :  { %p14293_p3 = pnand %p14292_p2, %p14286_p13 }
 0x102   :  { %14296 = shalt.err (!%p14293_p3)
}
 0x103   :  { %208 = dma.hbm_to_vmem [thread:$0]  %s14806_s30, 16, %s206_s29, [#allocation3]  }
 0x104   :  { %s14639_s5 = smov [#allocation7]   ;;  %s14640_s22 = smov [#allocation10]  }
 0x105   :  { %s227_s18 = sshll.u32 %s14639_s5, 4  ;;  %s247_s23 = sshll.u32 %s14640_s22, 4  ;;  %s228_s18 = int_to_ptr.vmem [resolvable:$true] %s227_s18  ;;  %s248_s23 = int_to_ptr.vmem [resolvable:$true] %s247_s23 }
 0x106   :  { %s14305_s26 = scalar_lea.vmem %s228_s18, 16  ;;  %s14309_s13 = scalar_lea.vmem %s228_s18, 32 }
 0x107   :  { %p14306_p4 = scmp.ne.s32.totalorder %s228_s18, %s14305_s26  ;;  %p14310_p5 = scmp.lt.s32.totalorder %s228_s18, %s228_s18 }
 0x108   :  { %p14311_p6 = scmp.lt.s32.totalorder %s14309_s13, %s14305_s26 }
 0x10a   :  { %p14312_p7 = por %p14311_p6, %p14310_p5 }
 0x10c   :  { %p14313_p8 = pnand %p14312_p7, %p14306_p4 }
 0x10e   :  { %14316 = shalt.err (!%p14313_p8)
}
 0x10f   :  { %230 = dma.hbm_to_vmem [thread:$0]  %s14821_s3, 16, %s228_s18, [#allocation6]  }
 0x110   :  { %s14325_s27 = scalar_lea.vmem %s248_s23, 16  ;;  %s14329_s28 = scalar_lea.vmem %s248_s23, 32 }
 0x111   :  { %p14326_p9 = scmp.ne.s32.totalorder %s248_s23, %s14325_s27  ;;  %p14330_p10 = scmp.lt.s32.totalorder %s248_s23, %s248_s23 }
 0x112   :  { %p14331_p11 = scmp.lt.s32.totalorder %s14329_s28, %s14325_s27 }
 0x114   :  { %p14332_p12 = por %p14331_p11, %p14330_p10 }
 0x116   :  { %p14333_p13 = pnand %p14332_p12, %p14326_p9 }
 0x118   :  { %14336 = shalt.err (!%p14333_p13)
}
 0x119   :  { %250 = dma.hbm_to_vmem [thread:$0]  %s14831_s4, 16, %s248_s23, [#allocation9]  }
 0x11a   :  { %s14641_s30 = smov [#allocation13]   ;;  %s14642_s6 = smov [#allocation16]  }
 0x11b   :  { %s269_s25 = sshll.u32 %s14641_s30, 4  ;;  %s295_s1 = sshll.u32 %s14642_s6, 4  ;;  %s270_s25 = int_to_ptr.vmem [resolvable:$true] %s269_s25  ;;  %s296_s1 = int_to_ptr.vmem [resolvable:$true] %s295_s1 }
 0x11c   :  { %s14345_s9 = scalar_lea.vmem %s270_s25, 16  ;;  %s14349_s2 = scalar_lea.vmem %s270_s25, 32 }
 0x11d   :  { %p14346_p0 = scmp.ne.s32.totalorder %s270_s25, %s14345_s9  ;;  %p14350_p1 = scmp.lt.s32.totalorder %s270_s25, %s270_s25 }
 0x11e   :  { %p14351_p2 = scmp.lt.s32.totalorder %s14349_s2, %s14345_s9 }
 0x120   :  { %p14352_p3 = por %p14351_p2, %p14350_p1 }
 0x122   :  { %p14353_p4 = pnand %p14352_p3, %p14346_p0 }
 0x124   :  { %14356 = shalt.err (!%p14353_p4)
}
 0x125   :  { %s18692_s3 = sld [smem:[#allocation80_spill]]  ;;  %s14365_s7 = scalar_lea.vmem %s296_s1, 16 }
 0x126   :  { %p14366_p5 = scmp.ne.s32.totalorder %s296_s1, %s14365_s7  ;;  %s14369_s14 = scalar_lea.vmem %s296_s1, 32 }
 0x127   :  { %p14370_p6 = scmp.lt.s32.totalorder %s296_s1, %s296_s1  ;;  %p14371_p7 = scmp.lt.s32.totalorder %s14369_s14, %s14365_s7 }
 0x129   :  { %p14372_p8 = por %p14371_p7, %p14370_p6 }
 0x12b   :  { %272 = dma.hbm_to_vmem [thread:$0]  %s18692_s3, 16, %s270_s25, [#allocation12]  }
 0x12c   :  { %p14373_p9 = pnand %p14372_p8, %p14366_p5 }
 0x12e   :  { %14376 = shalt.err (!%p14373_p9)
}
 0x12f   :  { %s18693_s4 = sld [smem:[#allocation84_spill]]  ;;  %s14643_s0 = smov [#allocation19]  }
 0x130   :  { %s317_s8 = sshll.u32 %s14643_s0, 4  ;;  %s14644_s10 = smov [#allocation22]   ;;  %s318_s8 = int_to_ptr.vmem [resolvable:$true] %s317_s8 }
 0x131   :  { %s337_s11 = sshll.u32 %s14644_s10, 4  ;;  %s14385_s29 = scalar_lea.vmem %s318_s8, 16  ;;  %s338_s11 = int_to_ptr.vmem [resolvable:$true] %s337_s11 }
 0x132   :  { %p14386_p10 = scmp.ne.s32.totalorder %s318_s8, %s14385_s29  ;;  %s14389_s15 = scalar_lea.vmem %s318_s8, 32 }
 0x133   :  { %p14390_p11 = scmp.lt.s32.totalorder %s318_s8, %s318_s8  ;;  %p14391_p12 = scmp.lt.s32.totalorder %s14389_s15, %s14385_s29 }
 0x135   :  { %298 = dma.hbm_to_vmem [thread:$0]  %s18693_s4, 16, %s296_s1, [#allocation15]  }
 0x136   :  { %p14392_p13 = por %p14391_p12, %p14390_p11 }
 0x138   :  { %p14393_p0 = pnand %p14392_p13, %p14386_p10 }
 0x13a   :  { %14396 = shalt.err (!%p14393_p0)
}
 0x13b   :  { %s18694_s20 = sld [smem:[#allocation86_spill]]  ;;  %s14405_s19 = scalar_lea.vmem %s338_s11, 16 }
 0x13c   :  { %p14406_p1 = scmp.ne.s32.totalorder %s338_s11, %s14405_s19  ;;  %s14409_s16 = scalar_lea.vmem %s338_s11, 32 }
 0x13d   :  { %p14410_p2 = scmp.lt.s32.totalorder %s338_s11, %s338_s11  ;;  %p14411_p3 = scmp.lt.s32.totalorder %s14409_s16, %s14405_s19 }
 0x13f   :  { %p14412_p4 = por %p14411_p3, %p14410_p2 }
 0x141   :  { %320 = dma.hbm_to_vmem [thread:$0]  %s18694_s20, 16, %s318_s8, [#allocation18]  }
 0x142   :  { %p14413_p5 = pnand %p14412_p4, %p14406_p1 }
 0x144   :  { %14416 = shalt.err (!%p14413_p5)
}
 0x145   :  { %s18695_s5 = sld [smem:[#allocation87_spill]]  ;;  %s14645_s18 = smov [#allocation25]  }
 0x146   :  { %s359_s22 = sshll.u32 %s14645_s18, 4  ;;  %s14646_s23 = smov [#allocation28]   ;;  %s360_s22 = int_to_ptr.vmem [resolvable:$true] %s359_s22 }
 0x147   :  { %s385_s26 = sshll.u32 %s14646_s23, 4  ;;  %s14425_s13 = scalar_lea.vmem %s360_s22, 16  ;;  %s386_s26 = int_to_ptr.vmem [resolvable:$true] %s385_s26 }
 0x148   :  { %p14426_p6 = scmp.ne.s32.totalorder %s360_s22, %s14425_s13  ;;  %s14429_s27 = scalar_lea.vmem %s360_s22, 32 }
 0x149   :  { %p14430_p7 = scmp.lt.s32.totalorder %s360_s22, %s360_s22  ;;  %p14431_p8 = scmp.lt.s32.totalorder %s14429_s27, %s14425_s13 }
 0x14b   :  { %340 = dma.hbm_to_vmem [thread:$0]  %s18695_s5, 16, %s338_s11, [#allocation21]  }
 0x14c   :  { %p14432_p9 = por %p14431_p8, %p14430_p7 }
 0x14e   :  { %p14433_p10 = pnand %p14432_p9, %p14426_p6 }
 0x150   :  { %14436 = shalt.err (!%p14433_p10)
}
 0x151   :  { %s18696_s28 = sld [smem:[#allocation89_spill]]  ;;  %s14445_s30 = scalar_lea.vmem %s386_s26, 16 }
 0x152   :  { %p14446_p11 = scmp.ne.s32.totalorder %s386_s26, %s14445_s30  ;;  %s14449_s25 = scalar_lea.vmem %s386_s26, 32 }
 0x153   :  { %p14450_p12 = scmp.lt.s32.totalorder %s386_s26, %s386_s26  ;;  %p14451_p13 = scmp.lt.s32.totalorder %s14449_s25, %s14445_s30 }
 0x155   :  { %p14452_p0 = por %p14451_p13, %p14450_p12 }
 0x157   :  { %362 = dma.hbm_to_vmem [thread:$0]  %s18696_s28, 16, %s360_s22, [#allocation24]  }
 0x158   :  { %p14453_p1 = pnand %p14452_p0, %p14446_p11 }
 0x15a   :  { %14456 = shalt.err (!%p14453_p1)
}
 0x15b   :  { %s18697_s6 = sld [smem:[#allocation93_spill]]  ;;  %s14647_s1 = smov [#allocation31]  }
 0x15c   :  { %s407_s9 = sshll.u32 %s14647_s1, 4  ;;  %s14648_s2 = smov [#allocation34]   ;;  %s408_s9 = int_to_ptr.vmem [resolvable:$true] %s407_s9 }
 0x15d   :  { %s427_s3 = sshll.u32 %s14648_s2, 4  ;;  %s14465_s7 = scalar_lea.vmem %s408_s9, 16  ;;  %s428_s3 = int_to_ptr.vmem [resolvable:$true] %s427_s3 }
 0x15e   :  { %p14466_p2 = scmp.ne.s32.totalorder %s408_s9, %s14465_s7  ;;  %s14469_s14 = scalar_lea.vmem %s408_s9, 32 }
 0x15f   :  { %p14470_p3 = scmp.lt.s32.totalorder %s408_s9, %s408_s9  ;;  %p14471_p4 = scmp.lt.s32.totalorder %s14469_s14, %s14465_s7 }
 0x161   :  { %388 = dma.hbm_to_vmem [thread:$0]  %s18697_s6, 16, %s386_s26, [#allocation27]  }
 0x162   :  { %p14472_p5 = por %p14471_p4, %p14470_p3 }
 0x164   :  { %p14473_p6 = pnand %p14472_p5, %p14466_p2 }
 0x166   :  { %14476 = shalt.err (!%p14473_p6)
}
 0x167   :  { %s18698_s4 = sld [smem:[#allocation95_spill]]  ;;  %s14485_s0 = scalar_lea.vmem %s428_s3, 16 }
 0x168   :  { %p14486_p7 = scmp.ne.s32.totalorder %s428_s3, %s14485_s0  ;;  %s14489_s8 = scalar_lea.vmem %s428_s3, 32 }
 0x169   :  { %p14490_p8 = scmp.lt.s32.totalorder %s428_s3, %s428_s3  ;;  %p14491_p9 = scmp.lt.s32.totalorder %s14489_s8, %s14485_s0 }
 0x16b   :  { %p14492_p10 = por %p14491_p9, %p14490_p8 }
 0x16d   :  { %410 = dma.hbm_to_vmem [thread:$0]  %s18698_s4, 16, %s408_s9, [#allocation30]  }
 0x16e   :  { %p14493_p11 = pnand %p14492_p10, %p14486_p7 }
 0x170   :  { %14496 = shalt.err (!%p14493_p11)
}
 0x171   :  { %s18699_s10 = sld [smem:[#allocation96_spill]]  ;;  %s14649_s11 = smov [#allocation37]  }
 0x172   :  { %s449_s29 = sshll.u32 %s14649_s11, 4  ;;  %s450_s29 = int_to_ptr.vmem [resolvable:$true] %s449_s29 }
 0x173   :  { %s14505_s15 = scalar_lea.vmem %s450_s29, 16  ;;  %s14509_s20 = scalar_lea.vmem %s450_s29, 32 }
 0x174   :  { %p14506_p12 = scmp.ne.s32.totalorder %s450_s29, %s14505_s15  ;;  %p14510_p13 = scmp.lt.s32.totalorder %s450_s29, %s450_s29 }
 0x175   :  { %p14511_p0 = scmp.lt.s32.totalorder %s14509_s20, %s14505_s15 }
 0x177   :  { %430 = dma.hbm_to_vmem [thread:$0]  %s18699_s10, 16, %s428_s3, [#allocation33]  }
 0x178   :  { %p14512_p1 = por %p14511_p0, %p14510_p13 }
 0x17a   :  { %p14513_p2 = pnand %p14512_p1, %p14506_p12 }
 0x17c   :  { %14516 = shalt.err (!%p14513_p2)
}
 0x17d   :  { %s18700_s19 = sld [smem:[#allocation98_spill]] }
 0x183   :  { %452 = dma.hbm_to_vmem [thread:$0]  %s18700_s19, 16, %s450_s29, [#allocation36]  }
 0x184   :  { %14537 = dma.done.wait [#allocation3], 16  }
 0x185   :  { %14538 = vsyncadd [#allocation3], 4294967280 }
 0x186   :  { %14539 = dma.done.wait [#allocation6], 32  }
 0x187   :  { %14540 = vsyncadd [#allocation6], 4294967264 }
 0x188   :  { %14541 = dma.done.wait [#allocation9], 32  }
 0x189   :  { %14542 = vsyncadd [#allocation9], 4294967264 }
 0x18a   :  { %14543 = dma.done.wait [#allocation12], 32  }
 0x18b   :  { %14544 = vsyncadd [#allocation12], 4294967264 }
 0x18c   :  { %14545 = dma.done.wait [#allocation15], 32  }
 0x18d   :  { %14546 = vsyncadd [#allocation15], 4294967264 }
 0x18e   :  { %14547 = dma.done.wait [#allocation18], 32  }
 0x18f   :  { %14548 = vsyncadd [#allocation18], 4294967264 }
 0x190   :  { %14549 = dma.done.wait [#allocation21], 32  }
 0x191   :  { %14550 = vsyncadd [#allocation21], 4294967264 }
 0x192   :  { %14551 = dma.done.wait [#allocation24], 32  }
 0x193   :  { %14552 = vsyncadd [#allocation24], 4294967264 }
 0x194   :  { %14553 = dma.done.wait [#allocation27], 32  }
 0x195   :  { %14554 = vsyncadd [#allocation27], 4294967264 }
 0x196   :  { %14555 = dma.done.wait [#allocation30], 32  }
 0x197   :  { %14556 = vsyncadd [#allocation30], 4294967264 }
 0x198   :  { %14557 = dma.done.wait [#allocation33], 32  }
 0x199   :  { %14558 = vsyncadd [#allocation33], 4294967264 }
 0x19a   :  { %14559 = dma.done.wait [#allocation36], 32  }
 0x19b   :  { %14560 = vsyncadd [#allocation36], 4294967264  ;;  %s18701_s16 = sld [smem:[#allocation63_spill]]  ;;  %vm584_vm0 = vcmask 392192   ;;  %vm708_vm1 = vcmask 130048   ;;  %vm14651_vm2 = vmmov 0  }
 0x19c   :  { %s18702_s5 = sld [smem:[#allocation52_spill]]  ;;  %s14652_s30 = smov 112   ;;  %vm1399_vm3 = vcmask 64512   ;;  %vm4146_vm4 = vcmask 261120   ;;  %vm8016_vm5 = vcmask 523264   ;;  %vm9374_vm6 = vcmask 195584  }
 0x19d   :  { %s18703_s18 = sld [smem:[#allocation60_spill]]  ;;  %s14653_s25 = smov 96   ;;  %vm11421_vm7 = vcmask 1041409   ;;  %vm11424_vm8 = vcmask 254976  }
 0x19e   :  { %s18704_s22 = sld [smem:[#allocation62_spill]]  ;;  %s14654_s1 = smov 104  }
 0x19f   :  { %s18705_s23 = sld [smem:[#allocation61_spill]]  ;;  %s14655_s9 = smov 120  }
 0x1a0   :  { %s18709_s26 = sld [smem:[#allocation74_spill]]  ;;  %s14656_s2 = smov 88  }
 0x1a1   :  { %v13348_v0 = vld [vmem:[%s18701_s16 + $0x10] sm:$0xff]   ;;  %v13349_v1 = vld [vmem:[%s18701_s16 + $0x8] sm:$0xff]   ;;  %v13350_v4 = vld [vmem:[%s18701_s16] sm:$0xff]   ;;  %s18710_s13 = sld [smem:[#allocation68_spill]]  ;;  %s14657_s7 = smov 8  }
 0x1a2   :  { %12161 = vmatprep.subr.bf16.mxu0 %v13348_v0  ;;  %v529_v2 = vld [vmem:[%s18702_s5] sm:$0xff]  ;;  %v530_v3 = vld [vmem:[%s18702_s5 + $0x8] sm:$0xff]  ;;  %v531_v6 = vld [vmem:[%s18702_s5 + $0x10] sm:$0xff]  ;;  %s18711_s27 = sld [smem:[#allocation67_spill]] }
 0x1a3   :  { %12162 = vmatpush3.bf16.msra.mxu0 %v13348_v0  ;;  %v545_v5 = vpack.c.bf16 %v530_v3, %v529_v2  ;;  %v532_v7 = vld [vmem:[%s18702_s5 + $0x18] sm:$0xff]  ;;  %v533_v8 = vld [vmem:[%s18702_s5 + $0x20] sm:$0xff]  ;;  %v534_v9 = vld [vmem:[%s18702_s5 + $0x28] sm:$0xff]  ;;  %s18712_s28 = sld [smem:[#allocation73_spill]] }
 0x1a4   :  { %12163 = vmatprep.subr.bf16.mxu0 %v13349_v1  ;;  %v546_v10 = vpack.c.bf16 %v532_v7, %v531_v6  ;;  %v547_v11 = vpack.c.bf16 %v534_v9, %v533_v8  ;;  %v535_v12 = vld [vmem:[%s18702_s5 + $0x30] sm:$0xff]  ;;  %v536_v13 = vld [vmem:[%s18702_s5 + $0x38] sm:$0xff]  ;;  %v537_v14 = vld [vmem:[%s18702_s5 + $0x40] sm:$0xff]  ;;  %s18713_s6 = sld [smem:[#allocation66_spill]] }
 0x1a5   :  { %12167 = vmatprep.mubr.msk.bf16.mxu0 %vm584_vm0, %v545_v5  ;;  %v538_v15 = vld [vmem:[%s18702_s5 + $0x48] sm:$0xff]  ;;  %v548_v16 = vpack.c.bf16 %v536_v13, %v535_v12  ;;  %v539_v18 = vld [vmem:[%s18702_s5 + $0x50] sm:$0xff]  ;;  %v540_v19 = vld [vmem:[%s18702_s5 + $0x58] sm:$0xff]  ;;  %s18715_s3 = sld [smem:[#allocation72_spill]] }
 0x1a6   :  { %v549_v17 = vpack.c.bf16 %v538_v15, %v537_v14  ;;  %v541_v20 = vld [vmem:[%s18702_s5 + $0x60] sm:$0xff]  ;;  %v542_v21 = vld [vmem:[%s18702_s5 + $0x68] sm:$0xff]  ;;  %v550_v22 = vpack.c.bf16 %v540_v19, %v539_v18  ;;  %v543_v24 = vld [vmem:[%s18702_s5 + $0x70] sm:$0xff]  ;;  %s18716_s14 = sld [smem:[#allocation71_spill]] }
 0x1a7   :  { %12164 = vmatpush3.bf16.msra.mxu0 %v13349_v1  ;;  %v551_v23 = vpack.c.bf16 %v542_v21, %v541_v20  ;;  %v544_v25 = vld [vmem:[%s18702_s5 + $0x78] sm:$0xff]  ;;  %v11516_v27 = vld [vmem:[%s18703_s18] ss:$0 sm:$0xff]  ;;  %s18720_s4 = sld [smem:[#allocation75_spill]] }
 0x1a8   :  { %12165 = vmatprep.subr.bf16.mxu0 %v13350_v4  ;;  %v552_v26 = vpack.c.bf16 %v544_v25, %v543_v24  ;;  %s18721_s0 = sld [smem:[#allocation70_spill]] }
 0x1a9   :  { %s18722_s8 = sld [smem:[#allocation69_spill]] }
 0x1aa   :  { %s18723_s10 = sld [smem:[#allocation76_spill]] }
 0x1ab   :  { %12166 = vmatpush3.bf16.msra.mxu0 %v13350_v4  ;;  %s18724_s11 = sld [smem:[#allocation64_spill]] }
 0x1ac   :  { %s18725_s29 = sld [smem:[#allocation59_spill]] }
 0x1ad   :  { %s18726_s15 = sld [smem:[#allocation65_spill]] }
 0x1ae   :  { %12168 = vmatmul.mubr.msk.bf16.vlgmr.msra.gmra.mxu0 %vm584_vm0, %v546_v10  ;;  %s18731_s20 = sld [smem:[#allocation81_spill]] }
 0x1af   :  { %12171 = vmatprep.mubr.msk.bf16.mxu0 %vm584_vm0, %v547_v11  ;;  %s18732_s19 = sld [smem:[#allocation78_spill]] }
 0x1b0   :  { %s18733_s16 = sld [smem:[#allocation79_spill]] }
 0x1b1   :  { %s18738_s5 = sld [smem:[#allocation82_spill]] }
 0x1b2   :  { %s18739_s18 = sld [smem:[#allocation83_spill]] }
 0x1b6   :  { %12172 = vmatmul.mubr.msk.bf16.gmra.mxu0 %vm584_vm0, %v548_v16 }
 0x1b7   :  { %12175 = vmatprep.mubr.msk.bf16.mxu0 %vm584_vm0, %v549_v17 }
 0x1be   :  { %12176 = vmatmul.mubr.msk.bf16.gmra.mxu0 %vm584_vm0, %v550_v22 }
 0x1bf   :  { %12179 = vmatprep.mubr.msk.bf16.mxu0 %vm584_vm0, %v551_v23 }
 0x1c6   :  { %12180 = vmatmul.mubr.msk.bf16.gmra.mxu0 %vm584_vm0, %v552_v26 }
 0x26e   :  { %v12169_v28 = vpop.f32.mrf.mxu0 }
 0x26f   :  { %v15049_v29 = vadd.f32 %v12169_v28, %v11516_v27 }
 0x270   :  { %v643_v30 = vpop.f32.mrf.mxu0 }
 0x271   :  { %v15051_v31 = vadd.f32 %v11516_v27, %v643_v30  ;;  %v715_v32 = vsel %vm708_vm1, %v15049_v29, 0.0 }
 0x272   :  { %716 = vadd.xlane.f32.xlu1 %v715_v32  ;;  %v12170_v33 = vpop.f32.mrf.mxu0 }
 0x273   :  { %v15055_v34 = vadd.f32 %v12170_v33, %v11516_v27  ;;  %v709_v35 = vsel %vm708_vm1, %v15051_v31, 0.0 }
 0x274   :  { %v646_v36 = vpop.f32.mrf.mxu0  ;;  %710 = vadd.xlane.f32.xlu0 %v709_v35 }
 0x275   :  { %v15059_v37 = vadd.f32 %v11516_v27, %v646_v36  ;;  %v718_v38 = vsel %vm708_vm1, %v15055_v34, 0.0 }
 0x276   :  { %719 = vadd.xlane.f32.xlu1 %v718_v38  ;;  %v12173_v39 = vpop.f32.mrf.mxu0 }
 0x277   :  { %v712_v40 = vsel %vm708_vm1, %v15059_v37, 0.0  ;;  %v15067_v44 = vadd.f32 %v12173_v39, %v11516_v27 }
 0x278   :  { %v659_v41 = vpop.f32.mrf.mxu0  ;;  %713 = vadd.xlane.f32.xlu0 %v712_v40 }
 0x279   :  { %v15065_v42 = vadd.f32 %v11516_v27, %v659_v41  ;;  %v727_v51 = vsel %vm708_vm1, %v15067_v44, 0.0 }
 0x27a   :  { %v12174_v43 = vpop.f32.mrf.mxu0 }
 0x27b   :  { %v721_v45 = vsel %vm708_vm1, %v15065_v42, 0.0  ;;  %v15073_v49 = vadd.f32 %v12174_v43, %v11516_v27 }
 0x27c   :  { %v662_v46 = vpop.f32.mrf.mxu0  ;;  %722 = vadd.xlane.f32.xlu0 %v721_v45 }
 0x27d   :  { %v15071_v47 = vadd.f32 %v11516_v27, %v662_v46  ;;  %v730_v56 = vsel %vm708_vm1, %v15073_v49, 0.0 }
 0x27e   :  { %v12177_v48 = vpop.f32.mrf.mxu0 }
 0x27f   :  { %v724_v50 = vsel %vm708_vm1, %v15071_v47, 0.0  ;;  %v15079_v53 = vadd.f32 %v12177_v48, %v11516_v27 }
 0x280   :  { %v675_v52 = vpop.f32.mrf.mxu0  ;;  %725 = vadd.xlane.f32.xlu1 %v724_v50  ;;  %728 = vadd.xlane.f32.xlu0 %v727_v51 }
 0x281   :  { %v15081_v54 = vadd.f32 %v11516_v27, %v675_v52  ;;  %v739_v60 = vsel %vm708_vm1, %v15079_v53, 0.0 }
 0x282   :  { %v12178_v55 = vpop.f32.mrf.mxu0 }
 0x283   :  { %v733_v57 = vsel %vm708_vm1, %v15081_v54, 0.0  ;;  %v15091_v62 = vadd.f32 %v12178_v55, %v11516_v27 }
 0x284   :  { %v678_v58 = vpop.f32.mrf.mxu0  ;;  %731 = vadd.xlane.f32.xlu1 %v730_v56  ;;  %734 = vadd.xlane.f32.xlu0 %v733_v57 }
 0x285   :  { %v15087_v59 = vadd.f32 %v11516_v27, %v678_v58  ;;  %v742_v4 = vsel %vm708_vm1, %v15091_v62, 0.0 }
 0x286   :  { %v12181_v61 = vpop.f32.mrf.mxu0 }
 0x287   :  { %v736_v63 = vsel %vm708_vm1, %v15087_v59, 0.0  ;;  %v15095_v1 = vadd.f32 %v12181_v61, %v11516_v27 }
 0x288   :  { %v691_v0 = vpop.f32.mrf.mxu0  ;;  %737 = vadd.xlane.f32.xlu1 %v736_v63  ;;  %740 = vadd.xlane.f32.xlu0 %v739_v60 }
 0x289   :  { %v15097_v2 = vadd.f32 %v11516_v27, %v691_v0  ;;  %v751_v9 = vsel %vm708_vm1, %v15095_v1, 0.0 }
 0x28a   :  { %v12182_v3 = vpop.f32.mrf.mxu0 }
 0x28b   :  { %v745_v5 = vsel %vm708_vm1, %v15097_v2, 0.0  ;;  %v15103_v7 = vadd.f32 %v12182_v3, %v11516_v27 }
 0x28c   :  { %v694_v6 = vpop.f32.mrf.mxu0  ;;  %743 = vadd.xlane.f32.xlu1 %v742_v4  ;;  %746 = vadd.xlane.f32.xlu0 %v745_v5 }
 0x28d   :  { %v15105_v8 = vadd.f32 %v11516_v27, %v694_v6  ;;  %v754_v11 = vsel %vm708_vm1, %v15103_v7, 0.0 }
 0x28f   :  { %v748_v10 = vsel %vm708_vm1, %v15105_v8, 0.0 }
 0x290   :  { %749 = vadd.xlane.f32.xlu1 %v748_v10  ;;  %752 = vadd.xlane.f32.xlu0 %v751_v9 }
 0x294   :  { %755 = vadd.xlane.f32.xlu1 %v754_v11 }
 0x2fb   :  { %v717_v12 = vpop.xlane.xlu1 %716 }
 0x2fc   :  { %v760_v13 = vmul.f32 0.0625, %v717_v12 }
 0x2fd   :  { %v711_v14 = vpop.xlane.xlu0 %710 }
 0x2fe   :  { %v758_v15 = vmul.f32 0.0625, %v711_v14  ;;  %v15114_v17 = vsub.f32 %v15049_v29, %v760_v13 }
 0x2ff   :  { %v720_v16 = vpop.xlane.xlu1 %719 }
 0x300   :  { %v15117_v18 = vsub.f32 %v15051_v31, %v758_v15  ;;  %v761_v19 = vmul.f32 0.0625, %v720_v16  ;;  %v792_v26 = vmul.f32 %v15114_v17, %v15114_v17 }
 0x301   :  { %v714_v20 = vpop.xlane.xlu0 %713 }
 0x302   :  { %v759_v21 = vmul.f32 0.0625, %v714_v20  ;;  %v790_v22 = vmul.f32 %v15117_v18, %v15117_v18  ;;  %v15122_v23 = vsub.f32 %v15055_v34, %v761_v19  ;;  %v812_v31 = vsel %vm708_vm1, %v792_v26, 0.0 }
 0x304   :  { %v15125_v24 = vsub.f32 %v15059_v37, %v759_v21  ;;  %v806_v25 = vsel %vm708_vm1, %v790_v22, 0.0  ;;  %v793_v33 = vmul.f32 %v15122_v23, %v15122_v23 }
 0x305   :  { %807 = vadd.xlane.f32.xlu0 %v806_v25  ;;  %v723_v27 = vpop.xlane.xlu0 %722 }
 0x306   :  { %v762_v28 = vmul.f32 0.0625, %v723_v27  ;;  %v791_v29 = vmul.f32 %v15125_v24, %v15125_v24  ;;  %v815_v41 = vsel %vm708_vm1, %v793_v33, 0.0 }
 0x308   :  { %v15133_v30 = vsub.f32 %v15065_v42, %v762_v28  ;;  %v809_v32 = vsel %vm708_vm1, %v791_v29, 0.0 }
 0x309   :  { %v726_v34 = vpop.xlane.xlu1 %725  ;;  %813 = vadd.xlane.f32.xlu0 %v812_v31  ;;  %810 = vadd.xlane.f32.xlu1 %v809_v32  ;;  %v729_v35 = vpop.xlane.xlu0 %728 }
 0x30a   :  { %v763_v36 = vmul.f32 0.0625, %v726_v34  ;;  %v764_v37 = vmul.f32 0.0625, %v729_v35  ;;  %v794_v38 = vmul.f32 %v15133_v30, %v15133_v30 }
 0x30c   :  { %v15142_v39 = vsub.f32 %v15071_v47, %v763_v36  ;;  %v15145_v40 = vsub.f32 %v15067_v44, %v764_v37  ;;  %v818_v42 = vsel %vm708_vm1, %v794_v38, 0.0 }
 0x30d   :  { %v732_v43 = vpop.xlane.xlu1 %731  ;;  %816 = vadd.xlane.f32.xlu1 %v815_v41  ;;  %819 = vadd.xlane.f32.xlu0 %v818_v42  ;;  %v735_v45 = vpop.xlane.xlu0 %734 }
 0x30e   :  { %v765_v46 = vmul.f32 0.0625, %v732_v43  ;;  %v766_v48 = vmul.f32 0.0625, %v735_v45  ;;  %v795_v50 = vmul.f32 %v15142_v39, %v15142_v39  ;;  %v796_v47 = vmul.f32 %v15145_v40, %v15145_v40 }
 0x310   :  { %v15154_v51 = vsub.f32 %v15073_v49, %v765_v46  ;;  %v15157_v44 = vsub.f32 %v15081_v54, %v766_v48  ;;  %v821_v52 = vsel %vm708_vm1, %v795_v50, 0.0  ;;  %v824_v55 = vsel %vm708_vm1, %v796_v47, 0.0 }
 0x311   :  { %v738_v56 = vpop.xlane.xlu1 %737  ;;  %822 = vadd.xlane.f32.xlu1 %v821_v52  ;;  %825 = vadd.xlane.f32.xlu0 %v824_v55  ;;  %v741_v57 = vpop.xlane.xlu0 %740 }
 0x312   :  { %v767_v58 = vmul.f32 0.0625, %v738_v56  ;;  %v768_v60 = vmul.f32 0.0625, %v741_v57  ;;  %v797_v61 = vmul.f32 %v15154_v51, %v15154_v51  ;;  %v798_v49 = vmul.f32 %v15157_v44, %v15157_v44 }
 0x314   :  { %v15166_v63 = vsub.f32 %v15087_v59, %v767_v58  ;;  %v15169_v54 = vsub.f32 %v15079_v53, %v768_v60  ;;  %v827_v0 = vsel %vm708_vm1, %v797_v61, 0.0  ;;  %v830_v3 = vsel %vm708_vm1, %v798_v49, 0.0 }
 0x315   :  { %v744_v4 = vpop.xlane.xlu1 %743  ;;  %828 = vadd.xlane.f32.xlu1 %v827_v0  ;;  %831 = vadd.xlane.f32.xlu0 %v830_v3  ;;  %v747_v5 = vpop.xlane.xlu0 %746 }
 0x316   :  { %v769_v6 = vmul.f32 0.0625, %v744_v4  ;;  %v770_v9 = vmul.f32 0.0625, %v747_v5  ;;  %v799_v10 = vmul.f32 %v15166_v63, %v15166_v63  ;;  %v800_v59 = vmul.f32 %v15169_v54, %v15169_v54 }
 0x318   :  { %v15178_v11 = vsub.f32 %v15091_v62, %v769_v6  ;;  %v15181_v53 = vsub.f32 %v15097_v2, %v770_v9  ;;  %v833_v12 = vsel %vm708_vm1, %v799_v10, 0.0  ;;  %v836_v13 = vsel %vm708_vm1, %v800_v59, 0.0  ;;  %v15210_v6 = vld [vmem:[%s18704_s22] ss:$0 sm:$0xff]  ;;  %s18740_s22 = sld [smem:[#allocation77_spill]] }
 0x319   :  { %v750_v14 = vpop.xlane.xlu1 %749  ;;  %834 = vadd.xlane.f32.xlu1 %v833_v12  ;;  %837 = vadd.xlane.f32.xlu0 %v836_v13  ;;  %v753_v15 = vpop.xlane.xlu0 %752 }
 0x31a   :  { %v771_v16 = vmul.f32 0.0625, %v750_v14  ;;  %v772_v19 = vmul.f32 0.0625, %v753_v15  ;;  %v801_v20 = vmul.f32 %v15178_v11, %v15178_v11  ;;  %v802_v62 = vmul.f32 %v15181_v53, %v15181_v53  ;;  %v15214_v14 = vld [vmem:[%s18705_s23] ss:$0 sm:$0xff]  ;;  %s18741_s23 = sld [smem:[#allocation58_spill]] }
 0x31c   :  { %v15190_v21 = vsub.f32 %v15105_v8, %v771_v16  ;;  %v15193_v2 = vsub.f32 %v15095_v1, %v772_v19  ;;  %v839_v22 = vsel %vm708_vm1, %v801_v20, 0.0  ;;  %v842_v25 = vsel %vm708_vm1, %v802_v62, 0.0 }
 0x31d   :  { %v756_v26 = vpop.xlane.xlu1 %755  ;;  %840 = vadd.xlane.f32.xlu1 %v839_v22  ;;  %843 = vadd.xlane.f32.xlu0 %v842_v25 }
 0x31e   :  { %v773_v27 = vmul.f32 0.0625, %v756_v26  ;;  %v803_v28 = vmul.f32 %v15190_v21, %v15190_v21  ;;  %v804_v29 = vmul.f32 %v15193_v2, %v15193_v2 }
 0x320   :  { %v15202_v8 = vsub.f32 %v15103_v7, %v773_v27  ;;  %v845_v1 = vsel %vm708_vm1, %v803_v28, 0.0  ;;  %v848_v31 = vsel %vm708_vm1, %v804_v29, 0.0 }
 0x321   :  { %846 = vadd.xlane.f32.xlu1 %v845_v1  ;;  %849 = vadd.xlane.f32.xlu0 %v848_v31 }
 0x322   :  { %v805_v32 = vmul.f32 %v15202_v8, %v15202_v8 }
 0x324   :  { %v851_v33 = vsel %vm708_vm1, %v805_v32, 0.0 }
 0x325   :  { %852 = vadd.xlane.f32.xlu1 %v851_v33 }
 0x38e   :  { %v808_v34 = vpop.xlane.xlu0 %807 }
 0x38f   :  { %v854_v35 = vmul.f32 0.0625, %v808_v34 }
 0x391   :  { %v870_v36 = vadd.f32 1e-05, %v854_v35 }
 0x392   :  { %v811_v37 = vpop.xlane.xlu1 %810  ;;  %v814_v38 = vpop.xlane.xlu0 %813 }
 0x393   :  { %13385 = vrsqrt.f32 %v870_v36  ;;  %v855_v7 = vmul.f32 0.0625, %v811_v37  ;;  %v856_v41 = vmul.f32 0.0625, %v814_v38 }
 0x395   :  { %v871_v42 = vadd.f32 1e-05, %v855_v7  ;;  %v872_v43 = vadd.f32 1e-05, %v856_v41 }
 0x396   :  { %v817_v45 = vpop.xlane.xlu1 %816  ;;  %v820_v46 = vpop.xlane.xlu0 %819 }
 0x397   :  { %13387 = vrsqrt.f32 %v871_v42  ;;  %v857_v48 = vmul.f32 0.0625, %v817_v45  ;;  %v858_v50 = vmul.f32 0.0625, %v820_v46 }
 0x398   :  { %13389 = vrsqrt.f32 %v872_v43 }
 0x399   :  { %v873_v47 = vadd.f32 1e-05, %v857_v48  ;;  %v874_v52 = vadd.f32 1e-05, %v858_v50 }
 0x39a   :  { %v823_v55 = vpop.xlane.xlu1 %822  ;;  %v826_v56 = vpop.xlane.xlu0 %825 }
 0x39b   :  { %13391 = vrsqrt.f32 %v873_v47  ;;  %v859_v57 = vmul.f32 0.0625, %v823_v55  ;;  %v860_v58 = vmul.f32 0.0625, %v826_v56 }
 0x39c   :  { %13393 = vrsqrt.f32 %v874_v52 }
 0x39d   :  { %v875_v60 = vadd.f32 1e-05, %v859_v57  ;;  %v876_v61 = vadd.f32 1e-05, %v860_v58 }
 0x39e   :  { %v829_v49 = vpop.xlane.xlu1 %828  ;;  %v832_v0 = vpop.xlane.xlu0 %831 }
 0x39f   :  { %13395 = vrsqrt.f32 %v875_v60  ;;  %v861_v3 = vmul.f32 0.0625, %v829_v49  ;;  %v862_v4 = vmul.f32 0.0625, %v832_v0 }
 0x3a0   :  { %v13386_v5 = vpop.eup %13385  ;;  %13397 = vrsqrt.f32 %v876_v61 }
 0x3a1   :  { %v877_v9 = vadd.f32 1e-05, %v861_v3  ;;  %v878_v10 = vadd.f32 1e-05, %v862_v4  ;;  %v902_v59 = vmul.f32 %v13386_v5, %v15117_v18 }
 0x3a2   :  { %v835_v12 = vpop.xlane.xlu1 %834  ;;  %v838_v13 = vpop.xlane.xlu0 %837 }
 0x3a3   :  { %13399 = vrsqrt.f32 %v877_v9  ;;  %v863_v15 = vmul.f32 0.0625, %v835_v12  ;;  %v864_v16 = vmul.f32 0.0625, %v838_v13  ;;  %v924_v19 = vmul.f32 %v15210_v6, %v902_v59 }
 0x3a4   :  { %v13388_v20 = vpop.eup %13387  ;;  %13401 = vrsqrt.f32 %v878_v10 }
 0x3a5   :  { %v13390_v62 = vpop.eup %13389  ;;  %v879_v22 = vadd.f32 1e-05, %v863_v15  ;;  %v880_v25 = vadd.f32 1e-05, %v864_v16  ;;  %v15218_v26 = vadd.f32 %v15214_v14, %v924_v19  ;;  %v903_v27 = vmul.f32 %v13388_v20, %v15125_v24 }
 0x3a6   :  { %v841_v18 = vpop.xlane.xlu1 %840  ;;  %v844_v28 = vpop.xlane.xlu0 %843  ;;  %v904_v29 = vmul.f32 %v13390_v62, %v15114_v17 }
 0x3a7   :  { %13403 = vrsqrt.f32 %v879_v22  ;;  %v865_v1 = vmul.f32 0.0625, %v841_v18  ;;  %v866_v31 = vmul.f32 0.0625, %v844_v28  ;;  %v964_v32 = vsel %vm708_vm1, %v15218_v26, 0.0 }
 0x3a8   :  { %v13392_v33 = vpop.eup %13391  ;;  %13405 = vrsqrt.f32 %v880_v25  ;;  %965 = vadd.xlane.f32.xlu0 %v964_v32  ;;  %v925_v34 = vmul.f32 %v15210_v6, %v903_v27  ;;  %v926_v35 = vmul.f32 %v15210_v6, %v904_v29 }
 0x3a9   :  { %v13394_v36 = vpop.eup %13393  ;;  %v881_v37 = vadd.f32 1e-05, %v865_v1  ;;  %v882_v24 = vadd.f32 1e-05, %v866_v31  ;;  %v905_v38 = vmul.f32 %v13392_v33, %v15122_v23 }
 0x3aa   :  { %v847_v7 = vpop.xlane.xlu1 %846  ;;  %v850_v17 = vpop.xlane.xlu0 %849  ;;  %v15228_v41 = vadd.f32 %v15214_v14, %v925_v34  ;;  %v15231_v42 = vadd.f32 %v15214_v14, %v926_v35  ;;  %v906_v43 = vmul.f32 %v13394_v36, %v15133_v30 }
 0x3ab   :  { %13407 = vrsqrt.f32 %v881_v37  ;;  %v867_v45 = vmul.f32 0.0625, %v847_v7  ;;  %v868_v46 = vmul.f32 0.0625, %v850_v17  ;;  %v927_v48 = vmul.f32 %v15210_v6, %v905_v38 }
 0x3ac   :  { %v13396_v50 = vpop.eup %13395  ;;  %13409 = vrsqrt.f32 %v882_v24  ;;  %v967_v23 = vsel %vm708_vm1, %v15228_v41, 0.0  ;;  %v970_v47 = vsel %vm708_vm1, %v15231_v42, 0.0  ;;  %v928_v52 = vmul.f32 %v15210_v6, %v906_v43 }
 0x3ad   :  { %v13398_v55 = vpop.eup %13397  ;;  %v883_v56 = vadd.f32 1e-05, %v867_v45  ;;  %v884_v57 = vadd.f32 1e-05, %v868_v46  ;;  %968 = vadd.xlane.f32.xlu1 %v967_v23  ;;  %971 = vadd.xlane.f32.xlu0 %v970_v47  ;;  %v15241_v30 = vadd.f32 %v15214_v14, %v927_v48  ;;  %v907_v58 = vmul.f32 %v13396_v50, %v15142_v39 }
 0x3ae   :  { %v853_v60 = vpop.xlane.xlu1 %852  ;;  %v15245_v61 = vadd.f32 %v15214_v14, %v928_v52  ;;  %v908_v49 = vmul.f32 %v13398_v55, %v15145_v40 }
 0x3af   :  { %13411 = vrsqrt.f32 %v883_v56  ;;  %v869_v0 = vmul.f32 0.0625, %v853_v60  ;;  %v973_v3 = vsel %vm708_vm1, %v15241_v30, 0.0  ;;  %v929_v4 = vmul.f32 %v15210_v6, %v907_v58 }
 0x3b0   :  { %v13400_v5 = vpop.eup %13399  ;;  %13413 = vrsqrt.f32 %v884_v57  ;;  %v976_v9 = vsel %vm708_vm1, %v15245_v61, 0.0  ;;  %v930_v39 = vmul.f32 %v15210_v6, %v908_v49 }
 0x3b1   :  { %v13402_v10 = vpop.eup %13401  ;;  %v885_v59 = vadd.f32 1e-05, %v869_v0  ;;  %974 = vadd.xlane.f32.xlu1 %v973_v3  ;;  %977 = vadd.xlane.f32.xlu0 %v976_v9  ;;  %v15255_v40 = vadd.f32 %v15214_v14, %v929_v4  ;;  %v909_v12 = vmul.f32 %v13400_v5, %v15154_v51 }
 0x3b2   :  { %v15259_v13 = vadd.f32 %v15214_v14, %v930_v39  ;;  %v910_v15 = vmul.f32 %v13402_v10, %v15157_v44 }
 0x3b3   :  { %13415 = vrsqrt.f32 %v885_v59  ;;  %v979_v16 = vsel %vm708_vm1, %v15255_v40, 0.0  ;;  %v931_v19 = vmul.f32 %v15210_v6, %v909_v12 }
 0x3b4   :  { %v13404_v20 = vpop.eup %13403  ;;  %v982_v62 = vsel %vm708_vm1, %v15259_v13, 0.0  ;;  %v932_v22 = vmul.f32 %v15210_v6, %v910_v15 }
 0x3b5   :  { %v13406_v25 = vpop.eup %13405  ;;  %980 = vadd.xlane.f32.xlu1 %v979_v16  ;;  %983 = vadd.xlane.f32.xlu0 %v982_v62  ;;  %v15269_v51 = vadd.f32 %v15214_v14, %v931_v19  ;;  %v911_v44 = vmul.f32 %v13404_v20, %v15166_v63 }
 0x3b6   :  { %v15273_v27 = vadd.f32 %v15214_v14, %v932_v22  ;;  %v912_v18 = vmul.f32 %v13406_v25, %v15169_v54 }
 0x3b7   :  { %v985_v28 = vsel %vm708_vm1, %v15269_v51, 0.0  ;;  %v933_v29 = vmul.f32 %v15210_v6, %v911_v44 }
 0x3b8   :  { %v13408_v1 = vpop.eup %13407  ;;  %v988_v31 = vsel %vm708_vm1, %v15273_v27, 0.0  ;;  %v934_v32 = vmul.f32 %v15210_v6, %v912_v18 }
 0x3b9   :  { %v13410_v33 = vpop.eup %13409  ;;  %986 = vadd.xlane.f32.xlu1 %v985_v28  ;;  %989 = vadd.xlane.f32.xlu0 %v988_v31  ;;  %v15283_v63 = vadd.f32 %v15214_v14, %v933_v29  ;;  %v913_v34 = vmul.f32 %v13408_v1, %v15178_v11 }
 0x3ba   :  { %v15287_v54 = vadd.f32 %v15214_v14, %v934_v32  ;;  %v914_v35 = vmul.f32 %v13410_v33, %v15181_v53 }
 0x3bb   :  { %v991_v36 = vsel %vm708_vm1, %v15283_v63, 0.0  ;;  %v935_v37 = vmul.f32 %v15210_v6, %v913_v34 }
 0x3bc   :  { %v13412_v24 = vpop.eup %13411  ;;  %v994_v38 = vsel %vm708_vm1, %v15287_v54, 0.0  ;;  %v936_v7 = vmul.f32 %v15210_v6, %v914_v35 }
 0x3bd   :  { %v13414_v17 = vpop.eup %13413  ;;  %992 = vadd.xlane.f32.xlu1 %v991_v36  ;;  %995 = vadd.xlane.f32.xlu0 %v994_v38  ;;  %v15297_v11 = vadd.f32 %v15214_v14, %v935_v37  ;;  %v915_v43 = vmul.f32 %v13412_v24, %v15190_v21 }
 0x3be   :  { %v15301_v53 = vadd.f32 %v15214_v14, %v936_v7  ;;  %v916_v45 = vmul.f32 %v13414_v17, %v15193_v2 }
 0x3bf   :  { %v997_v46 = vsel %vm708_vm1, %v15297_v11, 0.0  ;;  %v937_v48 = vmul.f32 %v15210_v6, %v915_v43 }
 0x3c0   :  { %v13416_v50 = vpop.eup %13415  ;;  %v1000_v23 = vsel %vm708_vm1, %v15301_v53, 0.0  ;;  %v938_v47 = vmul.f32 %v15210_v6, %v916_v45 }
 0x3c1   :  { %998 = vadd.xlane.f32.xlu1 %v997_v46  ;;  %1001 = vadd.xlane.f32.xlu0 %v1000_v23  ;;  %v15311_v21 = vadd.f32 %v15214_v14, %v937_v48  ;;  %v917_v52 = vmul.f32 %v13416_v50, %v15202_v8 }
 0x3c2   :  { %v15315_v2 = vadd.f32 %v15214_v14, %v938_v47 }
 0x3c3   :  { %18706 = vst [vmem:[#allocation99_spill] sm:$0xff] %v15311_v21  ;;  %v1003_v55 = vsel %vm708_vm1, %v15311_v21, 0.0  ;;  %v939_v56 = vmul.f32 %v15210_v6, %v917_v52 }
 0x3c4   :  { %18707 = vst [vmem:[#allocation100_spill] sm:$0xff] %v15315_v2  ;;  %v1006_v57 = vsel %vm708_vm1, %v15315_v2, 0.0 }
 0x3c5   :  { %1004 = vadd.xlane.f32.xlu1 %v1003_v55  ;;  %1007 = vadd.xlane.f32.xlu0 %v1006_v57  ;;  %v15323_v58 = vadd.f32 %v15214_v14, %v939_v56 }
 0x3c7   :  { %18708 = vst [vmem:[#allocation101_spill] sm:$0xff] %v15323_v58  ;;  %v1009_v60 = vsel %vm708_vm1, %v15323_v58, 0.0 }
 0x3c9   :  { %1010 = vadd.xlane.f32.xlu1 %v1009_v60 }
 0x431   :  { %v966_v8 = vpop.xlane.xlu0 %965 }
 0x432   :  { %v1012_v49 = vmul.f32 0.0625, %v966_v8 }
 0x434   :  { %v15328_v0 = vsub.f32 %v15218_v26, %v1012_v49 }
 0x436   :  { %v969_v3 = vpop.xlane.xlu1 %968  ;;  %v972_v4 = vpop.xlane.xlu0 %971  ;;  %v1044_v6 = vmul.f32 %v15328_v0, %v15328_v0 }
 0x437   :  { %v1013_v5 = vmul.f32 0.0625, %v969_v3  ;;  %v1014_v9 = vmul.f32 0.0625, %v972_v4 }
 0x438   :  { %v1060_v39 = vsel %vm708_vm1, %v1044_v6, 0.0 }
 0x439   :  { %v15334_v14 = vsub.f32 %v15228_v41, %v1013_v5  ;;  %v15337_v10 = vsub.f32 %v15231_v42, %v1014_v9  ;;  %1061 = vadd.xlane.f32.xlu0 %v1060_v39 }
 0x43a   :  { %v975_v59 = vpop.xlane.xlu1 %974  ;;  %v978_v12 = vpop.xlane.xlu0 %977 }
 0x43b   :  { %v1015_v15 = vmul.f32 0.0625, %v975_v59  ;;  %v1016_v16 = vmul.f32 0.0625, %v978_v12  ;;  %v1045_v19 = vmul.f32 %v15334_v14, %v15334_v14  ;;  %v1046_v20 = vmul.f32 %v15337_v10, %v15337_v10 }
 0x43d   :  { %v15344_v62 = vsub.f32 %v15241_v30, %v1015_v15  ;;  %v15347_v22 = vsub.f32 %v15245_v61, %v1016_v16  ;;  %v1063_v25 = vsel %vm708_vm1, %v1045_v19, 0.0  ;;  %v1066_v44 = vsel %vm708_vm1, %v1046_v20, 0.0 }
 0x43e   :  { %1064 = vadd.xlane.f32.xlu1 %v1063_v25  ;;  %v981_v18 = vpop.xlane.xlu1 %980  ;;  %1067 = vadd.xlane.f32.xlu0 %v1066_v44  ;;  %v984_v28 = vpop.xlane.xlu0 %983 }
 0x43f   :  { %v1017_v29 = vmul.f32 0.0625, %v981_v18  ;;  %v1018_v1 = vmul.f32 0.0625, %v984_v28  ;;  %v1047_v31 = vmul.f32 %v15344_v62, %v15344_v62  ;;  %v1048_v32 = vmul.f32 %v15347_v22, %v15347_v22 }
 0x441   :  { %v15356_v33 = vsub.f32 %v15255_v40, %v1017_v29  ;;  %v15359_v34 = vsub.f32 %v15259_v13, %v1018_v1  ;;  %v1069_v35 = vsel %vm708_vm1, %v1047_v31, 0.0  ;;  %v1072_v36 = vsel %vm708_vm1, %v1048_v32, 0.0 }
 0x442   :  { %1070 = vadd.xlane.f32.xlu1 %v1069_v35  ;;  %v987_v37 = vpop.xlane.xlu1 %986  ;;  %1073 = vadd.xlane.f32.xlu0 %v1072_v36  ;;  %v990_v24 = vpop.xlane.xlu0 %989 }
 0x443   :  { %v1019_v38 = vmul.f32 0.0625, %v987_v37  ;;  %v1020_v7 = vmul.f32 0.0625, %v990_v24  ;;  %v1049_v17 = vmul.f32 %v15356_v33, %v15356_v33  ;;  %v1050_v43 = vmul.f32 %v15359_v34, %v15359_v34 }
 0x445   :  { %v15368_v45 = vsub.f32 %v15269_v51, %v1019_v38  ;;  %v15371_v46 = vsub.f32 %v15273_v27, %v1020_v7  ;;  %v1075_v48 = vsel %vm708_vm1, %v1049_v17, 0.0  ;;  %v1078_v50 = vsel %vm708_vm1, %v1050_v43, 0.0 }
 0x446   :  { %1076 = vadd.xlane.f32.xlu1 %v1075_v48  ;;  %v993_v23 = vpop.xlane.xlu1 %992  ;;  %1079 = vadd.xlane.f32.xlu0 %v1078_v50  ;;  %v996_v47 = vpop.xlane.xlu0 %995 }
 0x447   :  { %v1021_v52 = vmul.f32 0.0625, %v993_v23  ;;  %v1022_v55 = vmul.f32 0.0625, %v996_v47  ;;  %v1051_v56 = vmul.f32 %v15368_v45, %v15368_v45  ;;  %v1052_v57 = vmul.f32 %v15371_v46, %v15371_v46  ;;  %v13351_v23 = vld [vmem:[%s18709_s26] sm:$0xff]   ;;  %s14658_s26 = smov 16  }
 0x448   :  { %12183 = vmatprep.subr.bf16.mxu1 %v13351_v23 }
 0x449   :  { %v15380_v60 = vsub.f32 %v15283_v63, %v1021_v52  ;;  %v15383_v8 = vsub.f32 %v15287_v54, %v1022_v55  ;;  %v1081_v49 = vsel %vm708_vm1, %v1051_v56, 0.0  ;;  %v1084_v3 = vsel %vm708_vm1, %v1052_v57, 0.0  ;;  %12184 = vmatpush3.bf16.msra.mxu1 %v13351_v23 }
 0x44a   :  { %1082 = vadd.xlane.f32.xlu1 %v1081_v49  ;;  %v999_v4 = vpop.xlane.xlu1 %998  ;;  %1085 = vadd.xlane.f32.xlu0 %v1084_v3  ;;  %v1002_v6 = vpop.xlane.xlu0 %1001 }
 0x44b   :  { %v1023_v5 = vmul.f32 0.0625, %v999_v4  ;;  %v1024_v9 = vmul.f32 0.0625, %v1002_v6  ;;  %v1053_v39 = vmul.f32 %v15380_v60, %v15380_v60  ;;  %v1054_v59 = vmul.f32 %v15383_v8, %v15383_v8 }
 0x44d   :  { %v15392_v12 = vsub.f32 %v15297_v11, %v1023_v5  ;;  %v15395_v15 = vsub.f32 %v15301_v53, %v1024_v9  ;;  %v1087_v16 = vsel %vm708_vm1, %v1053_v39, 0.0  ;;  %v1090_v19 = vsel %vm708_vm1, %v1054_v59, 0.0 }
 0x44e   :  { %1088 = vadd.xlane.f32.xlu1 %v1087_v16  ;;  %v1005_v20 = vpop.xlane.xlu1 %1004  ;;  %1091 = vadd.xlane.f32.xlu0 %v1090_v19  ;;  %v1008_v25 = vpop.xlane.xlu0 %1007 }
 0x44f   :  { %v1025_v44 = vmul.f32 0.0625, %v1005_v20  ;;  %v1026_v18 = vmul.f32 0.0625, %v1008_v25  ;;  %v1055_v28 = vmul.f32 %v15392_v12, %v15392_v12  ;;  %v1056_v29 = vmul.f32 %v15395_v15, %v15395_v15 }
 0x451   :  { %v15404_v1 = vsub.f32 %v15311_v21, %v1025_v44  ;;  %v15407_v31 = vsub.f32 %v15315_v2, %v1026_v18  ;;  %v1093_v32 = vsel %vm708_vm1, %v1055_v28, 0.0  ;;  %v1096_v35 = vsel %vm708_vm1, %v1056_v29, 0.0 }
 0x452   :  { %1094 = vadd.xlane.f32.xlu1 %v1093_v32  ;;  %v1011_v36 = vpop.xlane.xlu1 %1010  ;;  %1097 = vadd.xlane.f32.xlu0 %v1096_v35 }
 0x453   :  { %v1027_v37 = vmul.f32 0.0625, %v1011_v36  ;;  %v1057_v24 = vmul.f32 %v15404_v1, %v15404_v1  ;;  %v1058_v38 = vmul.f32 %v15407_v31, %v15407_v31 }
 0x455   :  { %v15416_v7 = vsub.f32 %v15323_v58, %v1027_v37  ;;  %v1099_v17 = vsel %vm708_vm1, %v1057_v24, 0.0  ;;  %v1102_v43 = vsel %vm708_vm1, %v1058_v38, 0.0 }
 0x456   :  { %1100 = vadd.xlane.f32.xlu1 %v1099_v17  ;;  %1103 = vadd.xlane.f32.xlu0 %v1102_v43 }
 0x457   :  { %v1059_v48 = vmul.f32 %v15416_v7, %v15416_v7 }
 0x459   :  { %v1105_v50 = vsel %vm708_vm1, %v1059_v48, 0.0  ;;  %v15426_v48 = vld [vmem:[%s18710_s13] ss:$0 sm:$0xff]  ;;  %s14659_s13 = smov 32  }
 0x45a   :  { %1106 = vadd.xlane.f32.xlu1 %v1105_v50 }
 0x4c2   :  { %v1062_v47 = vpop.xlane.xlu0 %1061 }
 0x4c3   :  { %v1108_v52 = vmul.f32 0.0625, %v1062_v47 }
 0x4c5   :  { %v1124_v55 = vadd.f32 1e-05, %v1108_v52 }
 0x4c7   :  { %13417 = vrsqrt.f32 %v1124_v55  ;;  %v1065_v56 = vpop.xlane.xlu1 %1064  ;;  %v1068_v57 = vpop.xlane.xlu0 %1067 }
 0x4c8   :  { %v1109_v49 = vmul.f32 0.0625, %v1065_v56  ;;  %v1110_v3 = vmul.f32 0.0625, %v1068_v57 }
 0x4ca   :  { %v1125_v4 = vadd.f32 1e-05, %v1109_v49  ;;  %v1126_v6 = vadd.f32 1e-05, %v1110_v3 }
 0x4cb   :  { %v1071_v5 = vpop.xlane.xlu1 %1070  ;;  %v1074_v9 = vpop.xlane.xlu0 %1073 }
 0x4cc   :  { %13419 = vrsqrt.f32 %v1125_v4  ;;  %v1111_v39 = vmul.f32 0.0625, %v1071_v5  ;;  %v1112_v59 = vmul.f32 0.0625, %v1074_v9  ;;  %v15430_v4 = vld [vmem:[%s18711_s27] ss:$0 sm:$0xff]  ;;  %s14660_s27 = smov 48  }
 0x4cd   :  { %13421 = vrsqrt.f32 %v1126_v6 }
 0x4ce   :  { %v1127_v16 = vadd.f32 1e-05, %v1111_v39  ;;  %v1128_v19 = vadd.f32 1e-05, %v1112_v59 }
 0x4cf   :  { %v1077_v20 = vpop.xlane.xlu1 %1076  ;;  %v1080_v25 = vpop.xlane.xlu0 %1079 }
 0x4d0   :  { %13423 = vrsqrt.f32 %v1127_v16  ;;  %v1113_v44 = vmul.f32 0.0625, %v1077_v20  ;;  %v1114_v18 = vmul.f32 0.0625, %v1080_v25 }
 0x4d1   :  { %13425 = vrsqrt.f32 %v1128_v19 }
 0x4d2   :  { %v1129_v28 = vadd.f32 1e-05, %v1113_v44  ;;  %v1130_v29 = vadd.f32 1e-05, %v1114_v18 }
 0x4d3   :  { %v1083_v32 = vpop.xlane.xlu1 %1082  ;;  %v1086_v35 = vpop.xlane.xlu0 %1085 }
 0x4d4   :  { %v13418_v36 = vpop.eup %13417  ;;  %13427 = vrsqrt.f32 %v1129_v28  ;;  %v1115_v37 = vmul.f32 0.0625, %v1083_v32  ;;  %v1116_v24 = vmul.f32 0.0625, %v1086_v35 }
 0x4d5   :  { %13429 = vrsqrt.f32 %v1130_v29  ;;  %v1156_v38 = vmul.f32 %v13418_v36, %v15328_v0 }
 0x4d6   :  { %v1131_v17 = vadd.f32 1e-05, %v1115_v37  ;;  %v1132_v43 = vadd.f32 1e-05, %v1116_v24 }
 0x4d7   :  { %v1089_v50 = vpop.xlane.xlu1 %1088  ;;  %v1092_v23 = vpop.xlane.xlu0 %1091  ;;  %v1178_v56 = vmul.f32 %v15426_v48, %v1156_v38 }
 0x4d8   :  { %13431 = vrsqrt.f32 %v1131_v17  ;;  %v1117_v47 = vmul.f32 0.0625, %v1089_v50  ;;  %v1118_v52 = vmul.f32 0.0625, %v1092_v23 }
 0x4d9   :  { %v13420_v55 = vpop.eup %13419  ;;  %13433 = vrsqrt.f32 %v1132_v43  ;;  %v1200_v20 = vadd.f32 %v15430_v4, %v1178_v56 }
 0x4da   :  { %v13422_v57 = vpop.eup %13421  ;;  %v1133_v49 = vadd.f32 1e-05, %v1117_v47  ;;  %v1134_v3 = vadd.f32 1e-05, %v1118_v52  ;;  %v1157_v0 = vmul.f32 %v13420_v55, %v15334_v14 }
 0x4db   :  { %v1095_v6 = vpop.xlane.xlu1 %1094  ;;  %v1098_v5 = vpop.xlane.xlu0 %1097  ;;  %v1158_v9 = vmul.f32 %v13422_v57, %v15337_v10 }
 0x4dc   :  { %13435 = vrsqrt.f32 %v1133_v49  ;;  %v1119_v39 = vmul.f32 0.0625, %v1095_v6  ;;  %v1120_v59 = vmul.f32 0.0625, %v1098_v5  ;;  %v1179_v16 = vmul.f32 %v15426_v48, %v1157_v0 }
 0x4dd   :  { %v13424_v19 = vpop.eup %13423  ;;  %13437 = vrsqrt.f32 %v1134_v3  ;;  %v1180_v10 = vmul.f32 %v15426_v48, %v1158_v9 }
 0x4de   :  { %v13426_v25 = vpop.eup %13425  ;;  %v1135_v44 = vadd.f32 1e-05, %v1119_v39  ;;  %v1136_v18 = vadd.f32 1e-05, %v1120_v59  ;;  %v1201_v28 = vadd.f32 %v15430_v4, %v1179_v16  ;;  %v1159_v14 = vmul.f32 %v13424_v19, %v15344_v62 }
 0x4df   :  { %v1101_v29 = vpop.xlane.xlu1 %1100  ;;  %v1104_v32 = vpop.xlane.xlu0 %1103  ;;  %v1160_v35 = vmul.f32 %v13426_v25, %v15347_v22  ;;  %v1202_v22 = vadd.f32 %v15430_v4, %v1180_v10 }
 0x4e0   :  { %13439 = vrsqrt.f32 %v1135_v44  ;;  %v1121_v36 = vmul.f32 0.0625, %v1101_v29  ;;  %v1122_v37 = vmul.f32 0.0625, %v1104_v32  ;;  %v1216_v24 = vpack.c.bf16 %v1201_v28, %v1200_v20 }
 0x4e1   :  { %v13428_v38 = vpop.eup %13427  ;;  %13441 = vrsqrt.f32 %v1136_v18  ;;  %v1181_v17 = vmul.f32 %v15426_v48, %v1159_v14  ;;  %v1182_v43 = vmul.f32 %v15426_v48, %v1160_v35 }
 0x4e2   :  { %v13430_v50 = vpop.eup %13429  ;;  %v1137_v23 = vadd.f32 1e-05, %v1121_v36  ;;  %v1138_v47 = vadd.f32 1e-05, %v1122_v37  ;;  %12185 = vmatprep.mubr.msk.bf16.mxu1 %vm708_vm1, %v1216_v24  ;;  %v1161_v62 = vmul.f32 %v13428_v38, %v15356_v33 }
 0x4e3   :  { %v1107_v52 = vpop.xlane.xlu1 %1106  ;;  %v1203_v55 = vadd.f32 %v15430_v4, %v1181_v17  ;;  %v1162_v56 = vmul.f32 %v13430_v50, %v15359_v34  ;;  %v1204_v6 = vadd.f32 %v15430_v4, %v1182_v43 }
 0x4e4   :  { %13443 = vrsqrt.f32 %v1137_v23  ;;  %v1123_v57 = vmul.f32 0.0625, %v1107_v52  ;;  %v1183_v49 = vmul.f32 %v15426_v48, %v1161_v62 }
 0x4e5   :  { %v13432_v3 = vpop.eup %13431  ;;  %13445 = vrsqrt.f32 %v1138_v47  ;;  %v1217_v0 = vpack.c.bf16 %v1203_v55, %v1202_v22  ;;  %v1184_v59 = vmul.f32 %v15426_v48, %v1162_v56 }
 0x4e6   :  { %v13434_v5 = vpop.eup %13433  ;;  %v1139_v9 = vadd.f32 1e-05, %v1123_v57  ;;  %v1205_v33 = vadd.f32 %v15430_v4, %v1183_v49  ;;  %v1163_v39 = vmul.f32 %v13432_v3, %v15368_v45 }
 0x4e7   :  { %12186 = vmatmul.mubr.msk.bf16.vlgmr.msra.gmra.mxu1 %vm708_vm1, %v1217_v0  ;;  %v1164_v34 = vmul.f32 %v13434_v5, %v15371_v46  ;;  %v1206_v44 = vadd.f32 %v15430_v4, %v1184_v59  ;;  %v18636_v5 = vmov 0.0  }
 0x4e8   :  { %13447 = vrsqrt.f32 %v1139_v9  ;;  %v1218_v16 = vpack.c.bf16 %v1205_v33, %v1204_v6  ;;  %v1185_v19 = vmul.f32 %v15426_v48, %v1163_v39  ;;  %12201 = vmatprep.subr.bf16.mxu1 %v18636_v5  ;;  %12219 = vmatprep.subr.bf16.mxu0 %v18636_v5  ;;  %v15489_v9 = vld [vmem:[%s18712_s28] ss:$0 sm:$0xff]  ;;  %s18742_s28 = sld [smem:[#allocation57_spill]] }
 0x4e9   :  { %v13436_v20 = vpop.eup %13435  ;;  %v1186_v28 = vmul.f32 %v15426_v48, %v1164_v34  ;;  %12221 = vmatprep.mubr.msk.bf16.mxu0 %vm14651_vm2, %v18636_v5 }
 0x4ea   :  { %v13438_v25 = vpop.eup %13437  ;;  %12189 = vmatprep.mubr.msk.bf16.mxu1 %vm708_vm1, %v1218_v16  ;;  %v1207_v18 = vadd.f32 %v15430_v4, %v1185_v19  ;;  %v1165_v45 = vmul.f32 %v13436_v20, %v15380_v60 }
 0x4eb   :  { %v1166_v14 = vmul.f32 %v13438_v25, %v15383_v8  ;;  %v1208_v35 = vadd.f32 %v15430_v4, %v1186_v28 }
 0x4ec   :  { %v1219_v29 = vpack.c.bf16 %v1207_v18, %v1206_v44  ;;  %v1187_v46 = vmul.f32 %v15426_v48, %v1165_v45 }
 0x4ed   :  { %v13440_v32 = vpop.eup %13439  ;;  %v1188_v24 = vmul.f32 %v15426_v48, %v1166_v14 }
 0x4ee   :  { %v13442_v10 = vpop.eup %13441  ;;  %v1209_v36 = vadd.f32 %v15430_v4, %v1187_v46  ;;  %v1167_v37 = vmul.f32 %v13440_v32, %v15392_v12 }
 0x4ef   :  { %12190 = vmatmul.mubr.msk.bf16.gmra.mxu1 %vm708_vm1, %v1219_v29  ;;  %v1168_v60 = vmul.f32 %v13442_v10, %v15395_v15  ;;  %v1210_v50 = vadd.f32 %v15430_v4, %v1188_v24 }
 0x4f0   :  { %v1220_v38 = vpack.c.bf16 %v1209_v36, %v1208_v35  ;;  %v1189_v8 = vmul.f32 %v15426_v48, %v1167_v37 }
 0x4f1   :  { %v13444_v17 = vpop.eup %13443  ;;  %v1190_v12 = vmul.f32 %v15426_v48, %v1168_v60 }
 0x4f2   :  { %v13446_v43 = vpop.eup %13445  ;;  %12193 = vmatprep.mubr.msk.bf16.mxu1 %vm708_vm1, %v1220_v38  ;;  %v1211_v23 = vadd.f32 %v15430_v4, %v1189_v8  ;;  %v1169_v47 = vmul.f32 %v13444_v17, %v15404_v1 }
 0x4f3   :  { %v1170_v62 = vmul.f32 %v13446_v43, %v15407_v31  ;;  %v1212_v55 = vadd.f32 %v15430_v4, %v1190_v12 }
 0x4f4   :  { %v1221_v52 = vpack.c.bf16 %v1211_v23, %v1210_v50  ;;  %v1191_v15 = vmul.f32 %v15426_v48, %v1169_v47 }
 0x4f5   :  { %v13448_v22 = vpop.eup %13447  ;;  %v1192_v49 = vmul.f32 %v15426_v48, %v1170_v62 }
 0x4f6   :  { %v1213_v56 = vadd.f32 %v15430_v4, %v1191_v15  ;;  %v1171_v57 = vmul.f32 %v13448_v22, %v15416_v7 }
 0x4f7   :  { %12194 = vmatmul.mubr.msk.bf16.gmra.mxu1 %vm708_vm1, %v1221_v52  ;;  %v1214_v31 = vadd.f32 %v15430_v4, %v1192_v49 }
 0x4f8   :  { %v1222_v1 = vpack.c.bf16 %v1213_v56, %v1212_v55  ;;  %v1193_v3 = vmul.f32 %v15426_v48, %v1171_v57 }
 0x4fa   :  { %12197 = vmatprep.mubr.msk.bf16.mxu1 %vm708_vm1, %v1222_v1  ;;  %v1215_v0 = vadd.f32 %v15430_v4, %v1193_v3 }
 0x4fc   :  { %v1223_v6 = vpack.c.bf16 %v1215_v0, %v1214_v31 }
 0x4ff   :  { %12198 = vmatmul.mubr.msk.bf16.gmra.mxu1 %vm708_vm1, %v1223_v6 }
 0x500   :  { %12203 = vmatprep.mubr.msk.bf16.mxu1 %vm14651_vm2, %v18636_v5 }
 0x5a7   :  { %v12187_v7 = vpop.f32.mrf.mxu1 }
 0x5a8   :  { %v1306_v48 = vadd.f32 %v12187_v7, %v15489_v9 }
 0x5a9   :  { %v1297_v33 = vpop.f32.mrf.mxu1 }
 0x5aa   :  { %v1298_v59 = vadd.f32 %v15489_v9, %v1297_v33  ;;  %v1366_v16 = vmul.f32 0.35355338, %v1306_v48 }
 0x5ab   :  { %v12188_v39 = vpop.f32.mrf.mxu1 }
 0x5ac   :  { %v1309_v34 = vadd.f32 %v12188_v39, %v15489_v9  ;;  %v1364_v18 = vmul.f32 0.35355338, %v1298_v59 }
 0x5ad   :  { %v1300_v4 = vpop.f32.mrf.mxu1 }
 0x5ae   :  { %v1367_v19 = vmul.f32 0.35355338, %v1309_v34  ;;  %v15498_v20 = vpack.c.bf16 %v1309_v34, %v1306_v48  ;;  %v1301_v25 = vadd.f32 %v15489_v9, %v1300_v4 }
 0x5af   :  { %v12191_v44 = vpop.f32.mrf.mxu1 }
 0x5b0   :  { %v15501_v45 = vpack.c.bf16 %v1367_v19, %v1366_v16  ;;  %v1365_v28 = vmul.f32 0.35355338, %v1301_v25  ;;  %v15503_v14 = vpack.c.bf16 %v1301_v25, %v1298_v59  ;;  %1448 = vrot.lane.b32.xlu1 %v15498_v20, %s14652_s30  ;;  %v1322_v32 = vadd.f32 %v12191_v44, %v15489_v9 }
 0x5b1   :  { %v1313_v29 = vpop.f32.mrf.mxu1 }
 0x5b2   :  { %v15507_v46 = vpack.c.bf16 %v1365_v28, %v1364_v18  ;;  %1397 = vrot.lane.b32.xlu0 %v15503_v14, %s14652_s30  ;;  %v1314_v35 = vadd.f32 %v15489_v9, %v1313_v29  ;;  %v1370_v24 = vmul.f32 0.35355338, %v1322_v32 }
 0x5b3   :  { %v12192_v10 = vpop.f32.mrf.mxu1 }
 0x5b4   :  { %v1325_v36 = vadd.f32 %v12192_v10, %v15489_v9  ;;  %v1368_v17 = vmul.f32 0.35355338, %v1314_v35 }
 0x5b5   :  { %v1316_v37 = vpop.f32.mrf.mxu1 }
 0x5b6   :  { %v1371_v60 = vmul.f32 0.35355338, %v1325_v36  ;;  %v1317_v38 = vadd.f32 %v15489_v9, %v1316_v37  ;;  %v15525_v22 = vpack.c.bf16 %v1325_v36, %v1322_v32 }
 0x5b7   :  { %v12195_v8 = vpop.f32.mrf.mxu1 }
 0x5b8   :  { %v15515_v43 = vpack.c.bf16 %v1371_v60, %v1370_v24  ;;  %v1369_v50 = vmul.f32 0.35355338, %v1317_v38  ;;  %v15517_v23 = vpack.c.bf16 %v1317_v38, %v1314_v35  ;;  %v1338_v62 = vadd.f32 %v12195_v8, %v15489_v9 }
 0x5b9   :  { %v1329_v47 = vpop.f32.mrf.mxu1 }
 0x5ba   :  { %v15519_v12 = vpack.c.bf16 %v1369_v50, %v1368_v17  ;;  %1498 = vrot.lane.b32.xlu1 %v15517_v23, %s14652_s30  ;;  %v1330_v52 = vadd.f32 %v15489_v9, %v1329_v47  ;;  %v1374_v57 = vmul.f32 0.35355338, %v1338_v62 }
 0x5bb   :  { %v12196_v15 = vpop.f32.mrf.mxu1 }
 0x5bc   :  { %v1341_v55 = vadd.f32 %v12196_v15, %v15489_v9  ;;  %v1372_v3 = vmul.f32 0.35355338, %v1330_v52 }
 0x5bd   :  { %v1332_v56 = vpop.f32.mrf.mxu1 }
 0x5be   :  { %v1375_v49 = vmul.f32 0.35355338, %v1341_v55  ;;  %v1333_v1 = vadd.f32 %v15489_v9, %v1332_v56  ;;  %1548 = vrot.lane.b32.xlu1 %v15525_v22, %s14652_s30  ;;  %v15533_v6 = vpack.c.bf16 %v1341_v55, %v1338_v62 }
 0x5bf   :  { %v12199_v31 = vpop.f32.mrf.mxu1 }
 0x5c0   :  { %v15531_v0 = vpack.c.bf16 %v1375_v49, %v1374_v57  ;;  %v1373_v7 = vmul.f32 0.35355338, %v1333_v1  ;;  %v15535_v33 = vpack.c.bf16 %v1333_v1, %v1330_v52  ;;  %v1354_v59 = vadd.f32 %v12199_v31, %v15489_v9  ;;  %v15618_v31 = vld [vmem:[%s18713_s6] sm:$0xff] }
 0x5c1   :  { %v1345_v48 = vpop.f32.mrf.mxu1 }
 0x5c2   :  { %v15537_v39 = vpack.c.bf16 %v1373_v7, %v1372_v3  ;;  %1648 = vrot.lane.b32.xlu1 %v15533_v6, %s14652_s30  ;;  %1598 = vrot.lane.b32.xlu0 %v15535_v33, %s14652_s30  ;;  %v1346_v4 = vadd.f32 %v15489_v9, %v1345_v48  ;;  %v1378_v25 = vmul.f32 0.35355338, %v1354_v59 }
 0x5c3   :  { %v12200_v34 = vpop.f32.mrf.mxu1 }
 0x5c4   :  { %v1357_v16 = vadd.f32 %v12200_v34, %v15489_v9  ;;  %v1376_v29 = vmul.f32 0.35355338, %v1346_v4  ;;  %v15624_v34 = vld [vmem:[%s18713_s6 + $0x8] sm:$0xff] }
 0x5c5   :  { %v1348_v19 = vpop.f32.mrf.mxu1 }
 0x5c6   :  { %v1379_v44 = vmul.f32 0.35355338, %v1357_v16  ;;  %v15546_v18 = vpack.c.bf16 %v1357_v16, %v1354_v59  ;;  %v1349_v28 = vadd.f32 %v15489_v9, %v1348_v19 }
 0x5c8   :  { %v15549_v32 = vpack.c.bf16 %v1379_v44, %v1378_v25  ;;  %v1377_v10 = vmul.f32 0.35355338, %v1349_v28  ;;  %v15551_v35 = vpack.c.bf16 %v1349_v28, %v1346_v4  ;;  %1748 = vrot.lane.b32.xlu1 %v15546_v18, %s14652_s30 }
 0x5ca   :  { %v15555_v36 = vpack.c.bf16 %v1377_v10, %v1376_v29  ;;  %1698 = vrot.lane.b32.xlu0 %v15551_v35, %s14652_s30 }
 0x5cc   :  { %2028 = vrot.lane.b32.xlu1 %v15498_v20, %s14653_s25 }
 0x5ce   :  { %1981 = vrot.lane.b32.xlu0 %v15503_v14, %s14653_s25 }
 0x5d0   :  { %2075 = vrot.lane.b32.xlu1 %v15517_v23, %s14653_s25 }
 0x5d4   :  { %2122 = vrot.lane.b32.xlu1 %v15525_v22, %s14653_s25 }
 0x622   :  { %v1449_v24 = vpop.permute.xlu1 %1448 }
 0x623   :  { %v1454_v38 = vsel %vm1399_vm3, %v1449_v24, 0 }
 0x624   :  { %v1398_v9 = vpop.permute.xlu0 %1397 }
 0x625   :  { %v1404_v37 = vsel %vm1399_vm3, %v1398_v9, 0 }
 0x626   :  { %12202 = vmatpush3.bf16.xpose.msra.mxu1 %v1404_v37 }
 0x627   :  { %12207 = vmatprep.subr.bf16.mxu1 %v18636_v5 }
 0x62c   :  { %v1499_v60 = vpop.permute.xlu1 %1498 }
 0x62d   :  { %12204 = vmatmul.mubr.msk.bf16.vlgmr.msra.gmra.mxu1 %vm1399_vm3, %v15507_v46  ;;  %v1504_v50 = vsel %vm1399_vm3, %v1499_v60, 0 }
 0x62e   :  { %12208 = vmatpush3.bf16.xpose.msra.mxu1 %v1454_v38  ;;  %12209 = vmatprep.mubr.msk.bf16.mxu1 %vm14651_vm2, %v18636_v5 }
 0x62f   :  { %12213 = vmatprep.subr.bf16.mxu1 %v18636_v5 }
 0x630   :  { %v1549_v8 = vpop.permute.xlu1 %1548 }
 0x631   :  { %v1554_v17 = vsel %vm1399_vm3, %v1549_v8, 0 }
 0x632   :  { %12220 = vmatpush3.bf16.xpose.msra.mxu0 %v1554_v17 }
 0x633   :  { %12231 = vmatprep.subr.bf16.mxu0 %v18636_v5 }
 0x634   :  { %v1649_v47 = vpop.permute.xlu1 %1648  ;;  %v1599_v52 = vpop.permute.xlu0 %1598 }
 0x635   :  { %12210 = vmatmul.mubr.msk.bf16.vlgmr.msra.gmra.mxu1 %vm1399_vm3, %v15501_v45  ;;  %v1654_v62 = vsel %vm1399_vm3, %v1649_v47, 0  ;;  %v1604_v15 = vsel %vm1399_vm3, %v1599_v52, 0 }
 0x636   :  { %12214 = vmatpush3.bf16.xpose.msra.mxu1 %v1504_v50  ;;  %12215 = vmatprep.mubr.msk.bf16.mxu1 %vm14651_vm2, %v18636_v5 }
 0x637   :  { %12225 = vmatprep.subr.bf16.mxu1 %v18636_v5 }
 0x639   :  { %12222 = vmatmul.mubr.msk.bf16.vlgmr.msra.gmra.mxu0 %vm1399_vm3, %v15515_v43 }
 0x63a   :  { %12232 = vmatpush3.bf16.xpose.msra.mxu0 %v1654_v62  ;;  %12233 = vmatprep.mubr.msk.bf16.mxu0 %vm14651_vm2, %v18636_v5  ;;  %v1749_v55 = vpop.permute.xlu1 %1748 }
 0x63b   :  { %12243 = vmatprep.subr.bf16.mxu0 %v18636_v5  ;;  %v1754_v56 = vsel %vm1399_vm3, %v1749_v55, 0 }
 0x63c   :  { %v1699_v57 = vpop.permute.xlu0 %1698 }
 0x63d   :  { %12216 = vmatmul.mubr.msk.bf16.vlgmr.msra.gmra.mxu1 %vm1399_vm3, %v15519_v12  ;;  %v1704_v49 = vsel %vm1399_vm3, %v1699_v57, 0 }
 0x63e   :  { %12226 = vmatpush3.bf16.xpose.msra.mxu1 %v1604_v15  ;;  %12227 = vmatprep.mubr.msk.bf16.mxu1 %vm14651_vm2, %v18636_v5  ;;  %v2029_v1 = vpop.permute.xlu1 %2028 }
 0x63f   :  { %12237 = vmatprep.subr.bf16.mxu1 %v18636_v5 }
 0x640   :  { %v1982_v3 = vpop.permute.xlu0 %1981 }
 0x641   :  { %12234 = vmatmul.mubr.msk.bf16.vlgmr.msra.gmra.mxu0 %vm1399_vm3, %v15531_v0 }
 0x642   :  { %12244 = vmatpush3.bf16.xpose.msra.mxu0 %v1754_v56  ;;  %12245 = vmatprep.mubr.msk.bf16.mxu0 %vm14651_vm2, %v18636_v5 }
 0x643   :  { %12255 = vmatprep.subr.bf16.mxu0 %v18636_v5 }
 0x645   :  { %12228 = vmatmul.mubr.msk.bf16.vlgmr.msra.gmra.mxu1 %vm1399_vm3, %v15537_v39 }
 0x646   :  { %12238 = vmatpush3.bf16.xpose.msra.mxu1 %v1704_v49  ;;  %12239 = vmatprep.mubr.msk.bf16.mxu1 %vm14651_vm2, %v18636_v5 }
 0x647   :  { %12249 = vmatprep.subr.bf16.mxu1 %v18636_v5 }
 0x649   :  { %12246 = vmatmul.mubr.msk.bf16.vlgmr.msra.gmra.mxu0 %vm1399_vm3, %v15549_v32 }
 0x64a   :  { %12256 = vmatpush3.bf16.msra.mxu0 %v2029_v1  ;;  %12257 = vmatprep.mubr.msk.bf16.mxu0 %vm14651_vm2, %v18636_v5 }
 0x64b   :  { %12267 = vmatprep.subr.bf16.mxu0 %v18636_v5 }
 0x64d   :  { %12240 = vmatmul.mubr.msk.bf16.vlgmr.msra.gmra.mxu1 %vm1399_vm3, %v15555_v36 }
 0x64e   :  { %12250 = vmatpush3.bf16.msra.mxu1 %v1982_v3  ;;  %12251 = vmatprep.mubr.msk.bf16.mxu1 %vm14651_vm2, %v18636_v5 }
 0x64f   :  { %12261 = vmatprep.subr.bf16.mxu1 %v18636_v5 }
 0x6ed   :  { %v1440_v7 = vpop.f32.mrf.mxu1 }
 0x6ee   :  { %v15621_v48 = vadd.f32 %v1440_v7, %v15618_v31 }
 0x6ef   :  { %v12205_v59 = vpop.f32.mrf.mxu1 }
 0x6f0   :  { %v1797_v4 = vsel %vm708_vm1, %v15621_v48, -inf }
 0x6f1   :  { %1798 = vmax.xlane.f32.xlu0 %v1797_v4  ;;  %v1443_v16 = vpop.f32.mrf.mxu1 }
 0x6f2   :  { %v15629_v19 = vadd.f32 %v1443_v16, %v15624_v34 }
 0x6f3   :  { %v12206_v25 = vpop.f32.mrf.mxu1 }
 0x6f4   :  { %v1800_v44 = vsel %vm708_vm1, %v15629_v19, -inf }
 0x6f5   :  { %1801 = vmax.xlane.f32.xlu1 %v1800_v44  ;;  %v1490_v28 = vpop.f32.mrf.mxu1 }
 0x6f6   :  { %v15637_v38 = vadd.f32 %v1490_v28, %v15618_v31 }
 0x6f7   :  { %v12211_v29 = vpop.f32.mrf.mxu1 }
 0x6f8   :  { %v1803_v56 = vsel %vm708_vm1, %v15637_v38, -inf }
 0x6f9   :  { %v1493_v10 = vpop.f32.mrf.mxu1  ;;  %v1590_v9 = vpop.f32.mrf.mxu0 }
 0x6fa   :  { %v15634_v37 = vadd.f32 %v1590_v9, %v15618_v31  ;;  %v15645_v15 = vadd.f32 %v1493_v10, %v15624_v34 }
 0x6fb   :  { %v12212_v24 = vpop.f32.mrf.mxu1  ;;  %v12223_v60 = vpop.f32.mrf.mxu0 }
 0x6fc   :  { %v1815_v8 = vsel %vm708_vm1, %v15634_v37, -inf  ;;  %v1806_v59 = vsel %vm708_vm1, %v15645_v15, -inf }
 0x6fd   :  { %v1593_v17 = vpop.f32.mrf.mxu0  ;;  %1816 = vmax.xlane.f32.xlu0 %v1815_v8  ;;  %v1540_v50 = vpop.f32.mrf.mxu1 }
 0x6fe   :  { %v15642_v47 = vadd.f32 %v1593_v17, %v15624_v34  ;;  %v15660_v29 = vadd.f32 %v1540_v50, %v15618_v31 }
 0x6ff   :  { %v12217_v62 = vpop.f32.mrf.mxu1  ;;  %v12224_v52 = vpop.f32.mrf.mxu0 }
 0x700   :  { %v1818_v55 = vsel %vm708_vm1, %v15642_v47, -inf  ;;  %v1809_v50 = vsel %vm708_vm1, %v15660_v29, -inf }
 0x701   :  { %v1690_v57 = vpop.f32.mrf.mxu0  ;;  %1819 = vmax.xlane.f32.xlu1 %v1818_v55  ;;  %1804 = vmax.xlane.f32.xlu0 %v1803_v56  ;;  %v1543_v49 = vpop.f32.mrf.mxu1 }
 0x702   :  { %v15652_v7 = vadd.f32 %v1690_v57, %v15618_v31  ;;  %v15663_v10 = vadd.f32 %v1543_v49, %v15624_v34 }
 0x703   :  { %v12218_v1 = vpop.f32.mrf.mxu1  ;;  %v12235_v3 = vpop.f32.mrf.mxu0 }
 0x704   :  { %v1827_v24 = vsel %vm708_vm1, %v15652_v7, -inf  ;;  %v1812_v55 = vsel %vm708_vm1, %v15663_v10, -inf }
 0x705   :  { %v1693_v4 = vpop.f32.mrf.mxu0  ;;  %1807 = vmax.xlane.f32.xlu0 %v1806_v59  ;;  %v1640_v16 = vpop.f32.mrf.mxu1 }
 0x706   :  { %v15657_v25 = vadd.f32 %v1693_v4, %v15624_v34  ;;  %v15680_v59 = vadd.f32 %v1640_v16, %v15618_v31 }
 0x707   :  { %v12229_v44 = vpop.f32.mrf.mxu1  ;;  %v12236_v28 = vpop.f32.mrf.mxu0 }
 0x708   :  { %v1830_v9 = vsel %vm708_vm1, %v15657_v25, -inf  ;;  %v1821_v16 = vsel %vm708_vm1, %v15680_v59, -inf }
 0x709   :  { %v1790_v60 = vpop.f32.mrf.mxu0  ;;  %1831 = vmax.xlane.f32.xlu1 %v1830_v9  ;;  %1828 = vmax.xlane.f32.xlu0 %v1827_v24  ;;  %v1643_v8 = vpop.f32.mrf.mxu1 }
 0x70a   :  { %v15670_v52 = vadd.f32 %v1790_v60, %v15618_v31  ;;  %v15683_v4 = vadd.f32 %v1643_v8, %v15624_v34 }
 0x70b   :  { %v12230_v17 = vpop.f32.mrf.mxu1  ;;  %v12247_v62 = vpop.f32.mrf.mxu0 }
 0x70c   :  { %v1839_v44 = vsel %vm708_vm1, %v15670_v52, -inf  ;;  %v1824_v8 = vsel %vm708_vm1, %v15683_v4, -inf }
 0x70d   :  { %v1793_v56 = vpop.f32.mrf.mxu0  ;;  %1810 = vmax.xlane.f32.xlu0 %v1809_v50  ;;  %1813 = vmax.xlane.f32.xlu1 %v1812_v55  ;;  %v1740_v57 = vpop.f32.mrf.mxu1 }
 0x70e   :  { %v15677_v49 = vadd.f32 %v1793_v56, %v15624_v34  ;;  %v15690_v60 = vadd.f32 %v1740_v57, %v15618_v31  ;;  %v15707_v50 = vpop.permute.xlu1 %2075 }
 0x70f   :  { %v12241_v1 = vpop.f32.mrf.mxu1  ;;  %v12248_v3 = vpop.f32.mrf.mxu0 }
 0x710   :  { %v1842_v28 = vsel %vm708_vm1, %v15677_v49, -inf  ;;  %v1833_v17 = vsel %vm708_vm1, %v15690_v60, -inf }
 0x711   :  { %1840 = vmax.xlane.f32.xlu0 %v1839_v44  ;;  %1843 = vmax.xlane.f32.xlu1 %v1842_v28  ;;  %v1743_v9 = vpop.f32.mrf.mxu1 }
 0x712   :  { %v15703_v31 = vadd.f32 %v1743_v9, %v15624_v34  ;;  %v15709_v55 = vpop.permute.xlu1 %2122 }
 0x713   :  { %v12242_v24 = vpop.f32.mrf.mxu1 }
 0x714   :  { %v1836_v62 = vsel %vm708_vm1, %v15703_v31, -inf }
 0x715   :  { %1822 = vmax.xlane.f32.xlu0 %v1821_v16  ;;  %1825 = vmax.xlane.f32.xlu1 %v1824_v8 }
 0x719   :  { %1834 = vmax.xlane.f32.xlu0 %v1833_v17 }
 0x726   :  { %2216 = vrot.lane.b32.xlu1 %v15533_v6, %s14653_s25 }
 0x72f   :  { %2169 = vrot.lane.b32.xlu0 %v15535_v33, %s14653_s25 }
 0x74a   :  { %1837 = vmax.xlane.f32.xlu1 %v1836_v62 }
 0x77a   :  { %v1799_v56 = vpop.xlane.xlu0 %1798 }
 0x77b   :  { %v1845_v57 = vsub.f32 %v15621_v48, %v1799_v56 }
 0x77d   :  { %v1861_v1 = vmul.f32 1.442695, %v1845_v57 }
 0x77e   :  { %v1802_v3 = vpop.xlane.xlu1 %1801 }
 0x77f   :  { %13449 = vpow2.f32 %v1861_v1  ;;  %v1846_v44 = vsub.f32 %v15629_v19, %v1802_v3 }
 0x781   :  { %v1863_v28 = vmul.f32 1.442695, %v1846_v44 }
 0x783   :  { %13451 = vpow2.f32 %v1863_v28 }
 0x786   :  { %v1817_v34 = vpop.xlane.xlu0 %1816 }
 0x787   :  { %v1851_v9 = vsub.f32 %v15634_v37, %v1817_v34 }
 0x789   :  { %v1873_v24 = vmul.f32 1.442695, %v1851_v9 }
 0x78a   :  { %v1820_v16 = vpop.xlane.xlu1 %1819  ;;  %v1805_v8 = vpop.xlane.xlu0 %1804 }
 0x78b   :  { %13453 = vpow2.f32 %v1873_v24  ;;  %v1852_v17 = vsub.f32 %v15642_v47, %v1820_v16  ;;  %v1847_v62 = vsub.f32 %v15637_v38, %v1805_v8 }
 0x78c   :  { %v15716_v5 = vpop.eup %13449 }
 0x78d   :  { %v1875_v48 = vmul.f32 1.442695, %v1852_v17  ;;  %v1865_v56 = vmul.f32 1.442695, %v1847_v62  ;;  %v1893_v19 = vsel %vm708_vm1, %v15716_v5, 0.0 }
 0x78e   :  { %1894 = vadd.xlane.f32.xlu0 %v1893_v19  ;;  %v1808_v57 = vpop.xlane.xlu0 %1807 }
 0x78f   :  { %13455 = vpow2.f32 %v1875_v48  ;;  %v1848_v37 = vsub.f32 %v15645_v15, %v1808_v57 }
 0x790   :  { %v15721_v1 = vpop.eup %13451  ;;  %13457 = vpow2.f32 %v1865_v56 }
 0x791   :  { %v1867_v3 = vmul.f32 1.442695, %v1848_v37  ;;  %v1896_v47 = vsel %vm708_vm1, %v15721_v1, 0.0 }
 0x792   :  { %v1832_v38 = vpop.xlane.xlu1 %1831  ;;  %1897 = vadd.xlane.f32.xlu1 %v1896_v47  ;;  %v1829_v44 = vpop.xlane.xlu0 %1828 }
 0x793   :  { %13459 = vpow2.f32 %v1867_v3  ;;  %v1856_v28 = vsub.f32 %v15657_v25, %v1832_v38  ;;  %v1855_v34 = vsub.f32 %v15652_v7, %v1829_v44 }
 0x795   :  { %v1883_v9 = vmul.f32 1.442695, %v1856_v28  ;;  %v1881_v24 = vmul.f32 1.442695, %v1855_v34 }
 0x796   :  { %v1814_v16 = vpop.xlane.xlu1 %1813  ;;  %v1811_v8 = vpop.xlane.xlu0 %1810 }
 0x797   :  { %13461 = vpow2.f32 %v1883_v9  ;;  %v1850_v15 = vsub.f32 %v15663_v10, %v1814_v16  ;;  %v1849_v17 = vsub.f32 %v15660_v29, %v1811_v8 }
 0x798   :  { %v15729_v62 = vpop.eup %13453  ;;  %13463 = vpow2.f32 %v1881_v24 }
 0x799   :  { %v1871_v48 = vmul.f32 1.442695, %v1850_v15  ;;  %v1869_v56 = vmul.f32 1.442695, %v1849_v17  ;;  %v1911_v19 = vsel %vm708_vm1, %v15729_v62, 0.0 }
 0x79a   :  { %1912 = vadd.xlane.f32.xlu0 %v1911_v19  ;;  %v1841_v25 = vpop.xlane.xlu0 %1840 }
 0x79b   :  { %13465 = vpow2.f32 %v1871_v48  ;;  %v1859_v7 = vsub.f32 %v15670_v52, %v1841_v25 }
 0x79c   :  { %v15734_v57 = vpop.eup %13455  ;;  %13467 = vpow2.f32 %v1869_v56 }
 0x79d   :  { %v15736_v37 = vpop.eup %13457  ;;  %v1889_v10 = vmul.f32 1.442695, %v1859_v7  ;;  %v1914_v29 = vsel %vm708_vm1, %v15734_v57, 0.0  ;;  %v1844_v7 = vpop.xlane.xlu1 %1843 }
 0x79e   :  { %1915 = vadd.xlane.f32.xlu1 %v1914_v29  ;;  %v1899_v3 = vsel %vm708_vm1, %v15736_v37, 0.0  ;;  %v1823_v47 = vpop.xlane.xlu0 %1822 }
 0x79f   :  { %1900 = vadd.xlane.f32.xlu0 %v1899_v3  ;;  %v1853_v38 = vsub.f32 %v15680_v59, %v1823_v47  ;;  %13469 = vpow2.f32 %v1889_v10  ;;  %v1860_v10 = vsub.f32 %v15677_v49, %v1844_v7 }
 0x7a0   :  { %v15743_v44 = vpop.eup %13459 }
 0x7a1   :  { %v1877_v52 = vmul.f32 1.442695, %v1853_v38  ;;  %v1902_v28 = vsel %vm708_vm1, %v15743_v44, 0.0  ;;  %v1826_v29 = vpop.xlane.xlu1 %1825  ;;  %v1891_v3 = vmul.f32 1.442695, %v1860_v10 }
 0x7a2   :  { %1903 = vadd.xlane.f32.xlu1 %v1902_v28  ;;  %v1854_v47 = vsub.f32 %v15683_v4, %v1826_v29  ;;  %v1835_v38 = vpop.xlane.xlu0 %1834 }
 0x7a3   :  { %13471 = vpow2.f32 %v1877_v52  ;;  %v1857_v28 = vsub.f32 %v15690_v60, %v1835_v38 }
 0x7a4   :  { %v15747_v34 = vpop.eup %13461  ;;  %13473 = vpow2.f32 %v1891_v3  ;;  %v1879_v52 = vmul.f32 1.442695, %v1854_v47 }
 0x7a5   :  { %v15749_v9 = vpop.eup %13463  ;;  %v1926_v24 = vsel %vm708_vm1, %v15747_v34, 0.0 }
 0x7a6   :  { %1927 = vadd.xlane.f32.xlu1 %v1926_v24  ;;  %v1923_v59 = vsel %vm708_vm1, %v15749_v9, 0.0  ;;  %13475 = vpow2.f32 %v1879_v52  ;;  %v1885_v24 = vmul.f32 1.442695, %v1857_v28  ;;  %v15807_v29 = vpop.permute.xlu0 %2169 }
 0x7a7   :  { %1924 = vadd.xlane.f32.xlu0 %v1923_v59 }
 0x7a8   :  { %v15755_v16 = vpop.eup %13465  ;;  %13477 = vpow2.f32 %v1885_v24 }
 0x7a9   :  { %v15757_v8 = vpop.eup %13467  ;;  %v1908_v15 = vsel %vm708_vm1, %v15755_v16, 0.0 }
 0x7aa   :  { %1909 = vadd.xlane.f32.xlu1 %v1908_v15  ;;  %v1905_v17 = vsel %vm708_vm1, %v15757_v8, 0.0 }
 0x7ab   :  { %1906 = vadd.xlane.f32.xlu0 %v1905_v17 }
 0x7ac   :  { %v15763_v48 = vpop.eup %13469 }
 0x7ad   :  { %v1935_v56 = vsel %vm708_vm1, %v15763_v48, 0.0 }
 0x7af   :  { %1936 = vadd.xlane.f32.xlu0 %v1935_v56  ;;  %v15792_v56 = vpop.permute.xlu1 %2216 }
 0x7b0   :  { %v15767_v19 = vpop.eup %13471 }
 0x7b1   :  { %v1917_v25 = vsel %vm708_vm1, %v15767_v19, 0.0  ;;  %v15778_v59 = vpop.eup %13473 }
 0x7b2   :  { %v1938_v49 = vsel %vm708_vm1, %v15778_v59, 0.0 }
 0x7b3   :  { %1918 = vadd.xlane.f32.xlu0 %v1917_v25  ;;  %v15782_v15 = vpop.eup %13475 }
 0x7b4   :  { %v1920_v17 = vsel %vm708_vm1, %v15782_v15, 0.0 }
 0x7b5   :  { %v15786_v4 = vpop.eup %13477 }
 0x7b6   :  { %v1929_v60 = vsel %vm708_vm1, %v15786_v4, 0.0 }
 0x7bb   :  { %2310 = vrot.lane.b32.xlu1 %v15546_v18, %s14653_s25 }
 0x7c9   :  { %2263 = vrot.lane.b32.xlu0 %v15551_v35, %s14653_s25 }
 0x7d3   :  { %v1838_v25 = vpop.xlane.xlu1 %1837 }
 0x7d4   :  { %v1858_v7 = vsub.f32 %v15703_v31, %v1838_v25 }
 0x7d6   :  { %v1887_v10 = vmul.f32 1.442695, %v1858_v7 }
 0x7d8   :  { %13479 = vpow2.f32 %v1887_v10 }
 0x7df   :  { %1939 = vadd.xlane.f32.xlu1 %v1938_v49  ;;  %v18714_v49 = vmov 0.0  }
 0x7e3   :  { %1921 = vadd.xlane.f32.xlu1 %v1920_v17 }
 0x7e5   :  { %v15809_v31 = vpop.eup %13479 }
 0x7e8   :  { %1930 = vadd.xlane.f32.xlu0 %v1929_v60 }
 0x7f4   :  { %2412 = vrot.lane.b32.xlu1 %v15498_v20, %s14654_s1 }
 0x7fe   :  { %2360 = vrot.lane.b32.xlu0 %v15503_v14, %s14654_s1 }
 0x802   :  { %2358 = vrot.lane.b32.xlu0 %v15507_v46, %s14655_s9 }
 0x806   :  { %2410 = vrot.lane.b32.xlu0 %v15501_v45, %s14655_s9  ;;  %v1932_v45 = vsel %vm708_vm1, %v15809_v31, 0.0 }
 0x80a   :  { %2462 = vrot.lane.b32.xlu0 %v15519_v12, %s14655_s9 }
 0x80e   :  { %2514 = vrot.lane.b32.xlu0 %v15515_v43, %s14655_s9 }
 0x812   :  { %2566 = vrot.lane.b32.xlu0 %v15537_v39, %s14655_s9 }
 0x816   :  { %2618 = vrot.lane.b32.xlu0 %v15531_v0, %s14655_s9 }
 0x817   :  { %v1895_v46 = vpop.xlane.xlu0 %1894 }
 0x818   :  { %1933 = vadd.xlane.f32.xlu1 %v1932_v45  ;;  %13481 = vrcp.f32 %v1895_v46 }
 0x81a   :  { %2670 = vrot.lane.b32.xlu0 %v15555_v36, %s14655_s9 }
 0x81b   :  { %v1898_v43 = vpop.xlane.xlu1 %1897 }
 0x81c   :  { %13483 = vrcp.f32 %v1898_v43 }
 0x823   :  { %v1913_v12 = vpop.xlane.xlu0 %1912 }
 0x825   :  { %v13482_v39 = vpop.eup %13481 }
 0x826   :  { %v1957_v0 = vmul.f32 %v13482_v39, %v15716_v5 }
 0x827   :  { %v1916_v3 = vpop.xlane.xlu1 %1915 }
 0x828   :  { %v1901_v47 = vpop.xlane.xlu0 %1900 }
 0x829   :  { %v13484_v38 = vpop.eup %13483  ;;  %2464 = vrot.lane.b32.xlu1 %v15517_v23, %s14654_s1  ;;  %13485 = vrcp.f32 %v1901_v47 }
 0x82a   :  { %v1958_v52 = vmul.f32 %v13484_v38, %v15721_v1 }
 0x82b   :  { %v1904_v28 = vpop.xlane.xlu1 %1903 }
 0x82c   :  { %13487 = vrcp.f32 %v1904_v28  ;;  %v1973_v24 = vpack.c.bf16 %v1958_v52, %v1957_v0 }
 0x82d   :  { %2516 = vrot.lane.b32.xlu1 %v15525_v22, %s14654_s1  ;;  %13489 = vrcp.f32 %v1916_v3 }
 0x82e   :  { %12252 = vmatmul.mubr.msk.bf16.vlgmr.msra.gmra.mxu1 %vm708_vm1, %v1973_v24  ;;  %13491 = vrcp.f32 %v1913_v12 }
 0x82f   :  { %12262 = vmatpush3.bf16.msra.mxu1 %v15707_v50  ;;  %v1928_v36 = vpop.xlane.xlu1 %1927  ;;  %12263 = vmatprep.mubr.msk.bf16.mxu1 %vm14651_vm2, %v18714_v49 }
 0x830   :  { %v1925_v17 = vpop.xlane.xlu0 %1924  ;;  %12273 = vmatprep.subr.bf16.mxu1 %v18714_v49 }
 0x831   :  { %2568 = vrot.lane.b32.xlu1 %v15535_v33, %s14654_s1 }
 0x833   :  { %v1910_v5 = vpop.xlane.xlu1 %1909 }
 0x834   :  { %13493 = vrcp.f32 %v1910_v5  ;;  %v1907_v1 = vpop.xlane.xlu0 %1906 }
 0x835   :  { %13495 = vrcp.f32 %v1907_v1  ;;  %2620 = vrot.lane.b32.xlu1 %v15533_v6, %s14654_s1 }
 0x836   :  { %v13486_v50 = vpop.eup %13485  ;;  %13497 = vrcp.f32 %v1928_v36 }
 0x837   :  { %13499 = vrcp.f32 %v1925_v17  ;;  %v1959_v25 = vmul.f32 %v13486_v50, %v15736_v37 }
 0x839   :  { %v13488_v60 = vpop.eup %13487  ;;  %2672 = vrot.lane.b32.xlu1 %v15551_v35, %s14654_s1 }
 0x83a   :  { %v1960_v7 = vmul.f32 %v13488_v60, %v15743_v44  ;;  %v13490_v46 = vpop.eup %13489 }
 0x83b   :  { %v13492_v45 = vpop.eup %13491  ;;  %v1964_v43 = vmul.f32 %v13490_v46, %v15734_v57 }
 0x83c   :  { %v1974_v10 = vpack.c.bf16 %v1960_v7, %v1959_v25  ;;  %v1963_v39 = vmul.f32 %v13492_v45, %v15729_v62 }
 0x83d   :  { %2724 = vrot.lane.b32.xlu1 %v15546_v18, %s14654_s1 }
 0x83e   :  { %12258 = vmatmul.mubr.msk.bf16.vlgmr.msra.gmra.mxu0 %vm708_vm1, %v1974_v10 }
 0x83f   :  { %12268 = vmatpush3.bf16.msra.mxu0 %v15709_v55  ;;  %12269 = vmatprep.mubr.msk.bf16.mxu0 %vm14651_vm2, %v18714_v49  ;;  %v1976_v55 = vpack.c.bf16 %v1964_v43, %v1963_v39 }
 0x840   :  { %12279 = vmatprep.subr.bf16.mxu0 %v18714_v49 }
 0x841   :  { %v13494_v37 = vpop.eup %13493  ;;  %2722 = vrot.lane.b32.xlu1 %v15549_v32, %s14655_s9 }
 0x842   :  { %v13496_v44 = vpop.eup %13495  ;;  %v1962_v12 = vmul.f32 %v13494_v37, %v15755_v16  ;;  %v2311_v16 = vpop.permute.xlu1 %2310 }
 0x843   :  { %v1961_v3 = vmul.f32 %v13496_v44, %v15757_v8  ;;  %v13498_v47 = vpop.eup %13497 }
 0x844   :  { %v13500_v38 = vpop.eup %13499  ;;  %v1968_v62 = vmul.f32 %v13498_v47, %v15747_v34 }
 0x845   :  { %v1975_v0 = vpack.c.bf16 %v1962_v12, %v1961_v3  ;;  %v1967_v32 = vmul.f32 %v13500_v38, %v15749_v9  ;;  %v1937_v9 = vpop.xlane.xlu0 %1936 }
 0x846   :  { %12270 = vmatmul.mubr.msk.bf16.vlgmr.msra.gmra.mxu0 %vm708_vm1, %v1976_v55  ;;  %13501 = vrcp.f32 %v1937_v9 }
 0x847   :  { %12264 = vmatmul.mubr.msk.bf16.vlgmr.msra.gmra.mxu1 %vm708_vm1, %v1975_v0  ;;  %12280 = vmatpush3.bf16.msra.mxu0 %v15792_v56  ;;  %v1978_v57 = vpack.c.bf16 %v1968_v62, %v1967_v32 }
 0x848   :  { %12274 = vmatpush3.bf16.msra.mxu1 %v15807_v29  ;;  %12281 = vmatprep.mubr.msk.bf16.mxu0 %vm14651_vm2, %v18714_v49 }
 0x849   :  { %12291 = vmatprep.subr.bf16.mxu0 %v18714_v49  ;;  %12275 = vmatprep.mubr.msk.bf16.mxu1 %vm14651_vm2, %v18714_v49  ;;  %v1919_v34 = vpop.xlane.xlu0 %1918 }
 0x84a   :  { %12285 = vmatprep.subr.bf16.mxu1 %v18714_v49 }
 0x84d   :  { %v2264_v29 = vpop.permute.xlu0 %2263 }
 0x84e   :  { %12282 = vmatmul.mubr.msk.bf16.vlgmr.msra.gmra.mxu0 %vm708_vm1, %v1978_v57 }
 0x84f   :  { %12292 = vmatpush3.bf16.msra.mxu0 %v2311_v16  ;;  %12293 = vmatprep.mubr.msk.bf16.mxu0 %vm14651_vm2, %v18714_v49 }
 0x850   :  { %12303 = vmatprep.subr.bf16.mxu0 %v18714_v49 }
 0x853   :  { %v13502_v28 = vpop.eup %13501 }
 0x854   :  { %v1971_v17 = vmul.f32 %v13502_v28, %v15763_v48 }
 0x868   :  { %v1940_v8 = vpop.xlane.xlu1 %1939 }
 0x869   :  { %13503 = vrcp.f32 %v1940_v8 }
 0x86a   :  { %13505 = vrcp.f32 %v1919_v34 }
 0x86c   :  { %v1922_v56 = vpop.xlane.xlu1 %1921 }
 0x86d   :  { %13507 = vrcp.f32 %v1922_v56 }
 0x870   :  { %v2413_v50 = vpop.permute.xlu1 %2412 }
 0x871   :  { %v1931_v52 = vpop.xlane.xlu0 %1930  ;;  %v2418_v7 = vsel %vm1399_vm3, %v2413_v50, 0 }
 0x872   :  { %13509 = vrcp.f32 %v1931_v52 }
 0x875   :  { %v2361_v36 = vpop.permute.xlu0 %2360 }
 0x876   :  { %v13504_v24 = vpop.eup %13503  ;;  %v2366_v16 = vsel %vm1399_vm3, %v2361_v36, 0 }
 0x877   :  { %v1972_v5 = vmul.f32 %v13504_v24, %v15778_v59  ;;  %v13506_v1 = vpop.eup %13505 }
 0x878   :  { %v1965_v10 = vmul.f32 %v13506_v1, %v15767_v19 }
 0x879   :  { %v1980_v60 = vpack.c.bf16 %v1972_v5, %v1971_v17  ;;  %v2359_v45 = vpop.permute.xlu0 %2358 }
 0x87a   :  { %v13508_v25 = vpop.eup %13507 }
 0x87b   :  { %12294 = vmatmul.mubr.msk.bf16.vlgmr.msra.gmra.mxu0 %vm708_vm1, %v1980_v60  ;;  %v1966_v46 = vmul.f32 %v13508_v25, %v15782_v15 }
 0x87c   :  { %12304 = vmatpush3.bf16.xpose.msra.mxu0 %v2418_v7  ;;  %12305 = vmatprep.mubr.msk.bf16.mxu0 %vm14651_vm2, %v18714_v49 }
 0x87d   :  { %v1977_v48 = vpack.c.bf16 %v1966_v46, %v1965_v10  ;;  %12315 = vmatprep.subr.bf16.mxu0 %v18714_v49  ;;  %v2411_v59 = vpop.permute.xlu0 %2410 }
 0x87f   :  { %12276 = vmatmul.mubr.msk.bf16.vlgmr.msra.gmra.mxu1 %vm708_vm1, %v1977_v48  ;;  %v13510_v12 = vpop.eup %13509 }
 0x880   :  { %12286 = vmatpush3.bf16.msra.mxu1 %v2264_v29  ;;  %12287 = vmatprep.mubr.msk.bf16.mxu1 %vm14651_vm2, %v18714_v49  ;;  %v1969_v55 = vmul.f32 %v13510_v12, %v15786_v4 }
 0x881   :  { %12297 = vmatprep.subr.bf16.mxu1 %v18714_v49  ;;  %v2463_v43 = vpop.permute.xlu0 %2462 }
 0x883   :  { %12306 = vmatmul.mubr.msk.bf16.vlgmr.msra.gmra.mxu0 %vm1399_vm3, %v2411_v59 }
 0x884   :  { %12317 = vmatprep.mubr.msk.bf16.mxu0 %vm14651_vm2, %v18714_v49 }
 0x885   :  { %v2515_v39 = vpop.permute.xlu0 %2514 }
 0x889   :  { %v2567_v57 = vpop.permute.xlu0 %2566 }
 0x8a1   :  { %v1934_v19 = vpop.xlane.xlu1 %1933 }
 0x8a2   :  { %13511 = vrcp.f32 %v1934_v19 }
 0x8a5   :  { %v2465_v15 = vpop.permute.xlu1 %2464 }
 0x8a6   :  { %v2470_v8 = vsel %vm1399_vm3, %v2465_v15, 0 }
 0x8a9   :  { %v2517_v37 = vpop.permute.xlu1 %2516 }
 0x8aa   :  { %v2522_v44 = vsel %vm1399_vm3, %v2517_v37, 0 }
 0x8ab   :  { %12316 = vmatpush3.bf16.xpose.msra.mxu0 %v2522_v44 }
 0x8ac   :  { %12327 = vmatprep.subr.bf16.mxu0 %v18714_v49 }
 0x8ad   :  { %v2569_v3 = vpop.permute.xlu1 %2568 }
 0x8ae   :  { %v2574_v29 = vsel %vm1399_vm3, %v2569_v3, 0 }
 0x8af   :  { %v13512_v47 = vpop.eup %13511 }
 0x8b0   :  { %v1970_v38 = vmul.f32 %v13512_v47, %v15809_v31  ;;  %v2619_v31 = vpop.permute.xlu0 %2618 }
 0x8b1   :  { %v2621_v0 = vpop.permute.xlu1 %2620 }
 0x8b2   :  { %v2626_v32 = vsel %vm1399_vm3, %v2621_v0, 0  ;;  %12318 = vmatmul.mubr.msk.bf16.vlgmr.msra.gmra.mxu0 %vm1399_vm3, %v2515_v39  ;;  %v1979_v62 = vpack.c.bf16 %v1970_v38, %v1969_v55 }
 0x8b3   :  { %12328 = vmatpush3.bf16.xpose.msra.mxu0 %v2626_v32  ;;  %12329 = vmatprep.mubr.msk.bf16.mxu0 %vm14651_vm2, %v18714_v49 }
 0x8b4   :  { %12288 = vmatmul.mubr.msk.bf16.vlgmr.msra.gmra.mxu1 %vm708_vm1, %v1979_v62  ;;  %12339 = vmatprep.subr.bf16.mxu0 %v18714_v49  ;;  %v2671_v28 = vpop.permute.xlu0 %2670 }
 0x8b5   :  { %12298 = vmatpush3.bf16.xpose.msra.mxu1 %v2366_v16  ;;  %v2673_v4 = vpop.permute.xlu1 %2672  ;;  %12299 = vmatprep.mubr.msk.bf16.mxu1 %vm14651_vm2, %v18714_v49 }
 0x8b6   :  { %12309 = vmatprep.subr.bf16.mxu1 %v18714_v49  ;;  %v2678_v52 = vsel %vm1399_vm3, %v2673_v4, 0 }
 0x8b9   :  { %v2725_v9 = vpop.permute.xlu1 %2724 }
 0x8ba   :  { %v2730_v34 = vsel %vm1399_vm3, %v2725_v9, 0  ;;  %12330 = vmatmul.mubr.msk.bf16.vlgmr.msra.gmra.mxu0 %vm1399_vm3, %v2619_v31 }
 0x8bb   :  { %12340 = vmatpush3.bf16.xpose.msra.mxu0 %v2730_v34  ;;  %12341 = vmatprep.mubr.msk.bf16.mxu0 %vm14651_vm2, %v18714_v49 }
 0x8bc   :  { %12300 = vmatmul.mubr.msk.bf16.vlgmr.msra.gmra.mxu1 %vm1399_vm3, %v2359_v45  ;;  %12351 = vmatprep.subr.bf16.mxu0 %v18714_v49 }
 0x8bd   :  { %12310 = vmatpush3.bf16.xpose.msra.mxu1 %v2470_v8  ;;  %12311 = vmatprep.mubr.msk.bf16.mxu1 %vm14651_vm2, %v18714_v49  ;;  %v2723_v56 = vpop.permute.xlu1 %2722 }
 0x8be   :  { %12321 = vmatprep.subr.bf16.mxu1 %v18714_v49 }
 0x8c2   :  { %12342 = vmatmul.mubr.msk.bf16.vlgmr.msra.gmra.mxu0 %vm1399_vm3, %v2723_v56 }
 0x8c3   :  { %12353 = vmatprep.mubr.msk.bf16.mxu0 %vm14651_vm2, %v18714_v49 }
 0x8c4   :  { %12312 = vmatmul.mubr.msk.bf16.vlgmr.msra.gmra.mxu1 %vm1399_vm3, %v2463_v43 }
 0x8c5   :  { %12322 = vmatpush3.bf16.xpose.msra.mxu1 %v2574_v29  ;;  %12323 = vmatprep.mubr.msk.bf16.mxu1 %vm14651_vm2, %v18714_v49 }
 0x8c6   :  { %12333 = vmatprep.subr.bf16.mxu1 %v18714_v49 }
 0x8cc   :  { %12324 = vmatmul.mubr.msk.bf16.vlgmr.msra.gmra.mxu1 %vm1399_vm3, %v2567_v57 }
 0x8cd   :  { %12334 = vmatpush3.bf16.xpose.msra.mxu1 %v2678_v52  ;;  %12335 = vmatprep.mubr.msk.bf16.mxu1 %vm14651_vm2, %v18714_v49 }
 0x8ce   :  { %12345 = vmatprep.subr.bf16.mxu1 %v18714_v49 }
 0x8d4   :  { %12336 = vmatmul.mubr.msk.bf16.vlgmr.msra.gmra.mxu1 %vm1399_vm3, %v2671_v28 }
 0x8d5   :  { %12347 = vmatprep.mubr.msk.bf16.mxu1 %vm14651_vm2, %v18714_v49 }
 0x8ee   :  { %v15921_v24 = vpop.f32.mrf.mxu1 }
 0x8f0   :  { %v12253_v36 = vpop.f32.mrf.mxu1 }
 0x8f2   :  { %v15923_v17 = vpop.f32.mrf.mxu1 }
 0x8f4   :  { %v12254_v5 = vpop.f32.mrf.mxu1 }
 0x8fe   :  { %v15925_v1 = vpop.f32.mrf.mxu0 }
 0x900   :  { %v12259_v50 = vpop.f32.mrf.mxu0 }
 0x901   :  { %v1362_v50 = vld [vmem:[%s18713_s6 + $0x10] sm:$0xff] }
 0x902   :  { %v15927_v60 = vpop.f32.mrf.mxu0 }
 0x904   :  { %v12260_v25 = vpop.f32.mrf.mxu0 }
 0x906   :  { %v15929_v7 = vpop.f32.mrf.mxu0 }
 0x907   :  { %v15931_v10 = vpop.f32.mrf.mxu1 }
 0x908   :  { %v12271_v46 = vpop.f32.mrf.mxu0 }
 0x909   :  { %v12265_v45 = vpop.f32.mrf.mxu1 }
 0x90a   :  { %v15933_v48 = vpop.f32.mrf.mxu0 }
 0x90b   :  { %v15935_v59 = vpop.f32.mrf.mxu1 }
 0x90c   :  { %v12272_v19 = vpop.f32.mrf.mxu0 }
 0x90d   :  { %v12266_v15 = vpop.f32.mrf.mxu1 }
 0x90e   :  { %v15937_v43 = vpop.f32.mrf.mxu0 }
 0x910   :  { %v12283_v37 = vpop.f32.mrf.mxu0 }
 0x912   :  { %v15939_v44 = vpop.f32.mrf.mxu0 }
 0x914   :  { %v12284_v12 = vpop.f32.mrf.mxu0 }
 0x93b   :  { %v15941_v39 = vpop.f32.mrf.mxu0 }
 0x93d   :  { %v12295_v3 = vpop.f32.mrf.mxu0 }
 0x93e   :  { %v15961_v3 = vld [vmem:[%s18713_s6 + $0x18] sm:$0xff]  ;;  %s18743_s6 = sld [smem:[#allocation56_spill]] }
 0x93f   :  { %v15943_v47 = vpop.f32.mrf.mxu1  ;;  %v15945_v55 = vpop.f32.mrf.mxu0 }
 0x941   :  { %v12277_v38 = vpop.f32.mrf.mxu1  ;;  %v12296_v0 = vpop.f32.mrf.mxu0 }
 0x943   :  { %v15947_v32 = vpop.f32.mrf.mxu1  ;;  %v2454_v62 = vpop.f32.mrf.mxu0 }
 0x944   :  { %v15956_v37 = vadd.f32 %v2454_v62, %v1362_v50 }
 0x945   :  { %v12278_v57 = vpop.f32.mrf.mxu1  ;;  %v12307_v16 = vpop.f32.mrf.mxu0 }
 0x947   :  { %v2457_v4 = vpop.f32.mrf.mxu0 }
 0x949   :  { %v12308_v31 = vpop.f32.mrf.mxu0 }
 0x972   :  { %v2558_v9 = vpop.f32.mrf.mxu0 }
 0x973   :  { %v15980_v58 = vadd.f32 %v2558_v9, %v1362_v50 }
 0x974   :  { %v15949_v34 = vpop.f32.mrf.mxu1  ;;  %v12319_v8 = vpop.f32.mrf.mxu0 }
 0x975   :  { %v15967_v8 = vadd.f32 %v2457_v4, %v15961_v3 }
 0x976   :  { %v12289_v56 = vpop.f32.mrf.mxu1  ;;  %v2561_v29 = vpop.f32.mrf.mxu0 }
 0x977   :  { %v2779_v56 = vsel %vm708_vm1, %v15956_v37, -inf }
 0x978   :  { %v15951_v52 = vpop.f32.mrf.mxu1  ;;  %v12320_v28 = vpop.f32.mrf.mxu0 }
 0x97a   :  { %v12290_v36 = vpop.f32.mrf.mxu1  ;;  %v2662_v5 = vpop.f32.mrf.mxu0 }
 0x97b   :  { %v15998_v21 = vadd.f32 %v2662_v5, %v1362_v50 }
 0x97c   :  { %v2402_v25 = vpop.f32.mrf.mxu1  ;;  %v12331_v46 = vpop.f32.mrf.mxu0 }
 0x97d   :  { %v15954_v45 = vadd.f32 %v2402_v25, %v1362_v50 }
 0x97e   :  { %v12301_v19 = vpop.f32.mrf.mxu1  ;;  %v2665_v15 = vpop.f32.mrf.mxu0 }
 0x97f   :  { %v2773_v12 = vsel %vm708_vm1, %v15954_v45, -inf }
 0x980   :  { %2774 = vmax.xlane.f32.xlu0 %v2773_v12  ;;  %v2405_v38 = vpop.f32.mrf.mxu1  ;;  %v12332_v0 = vpop.f32.mrf.mxu0  ;;  %v2782_v12 = vsel %vm708_vm1, %v15967_v8, -inf }
 0x981   :  { %v15964_v57 = vadd.f32 %v2405_v38, %v15961_v3 }
 0x982   :  { %v12302_v16 = vpop.f32.mrf.mxu1  ;;  %v2766_v31 = vpop.f32.mrf.mxu0 }
 0x983   :  { %v2776_v62 = vsel %vm708_vm1, %v15964_v57, -inf  ;;  %v16013_v2 = vadd.f32 %v2766_v31, %v1362_v50 }
 0x984   :  { %2777 = vmax.xlane.f32.xlu1 %v2776_v62  ;;  %2780 = vmax.xlane.f32.xlu0 %v2779_v56  ;;  %v2506_v28 = vpop.f32.mrf.mxu1  ;;  %v12343_v36 = vpop.f32.mrf.mxu0  ;;  %v15983_v62 = vadd.f32 %v2561_v29, %v15961_v3 }
 0x985   :  { %v15973_v19 = vadd.f32 %v2506_v28, %v1362_v50 }
 0x986   :  { %v12313_v25 = vpop.f32.mrf.mxu1  ;;  %v2769_v46 = vpop.f32.mrf.mxu0  ;;  %v2794_v9 = vsel %vm708_vm1, %v15983_v62, -inf }
 0x987   :  { %v2785_v56 = vsel %vm708_vm1, %v15973_v19, -inf  ;;  %v16033_v31 = vadd.f32 %v2769_v46, %v15961_v3 }
 0x988   :  { %2783 = vmax.xlane.f32.xlu0 %v2782_v12  ;;  %v2509_v4 = vpop.f32.mrf.mxu1  ;;  %v12344_v38 = vpop.f32.mrf.mxu0 }
 0x989   :  { %v15978_v0 = vadd.f32 %v2509_v4, %v15961_v3  ;;  %v2791_v4 = vsel %vm708_vm1, %v15980_v58, -inf }
 0x98a   :  { %v12314_v16 = vpop.f32.mrf.mxu1 }
 0x98b   :  { %v2788_v28 = vsel %vm708_vm1, %v15978_v0, -inf }
 0x98c   :  { %2786 = vmax.xlane.f32.xlu0 %v2785_v56  ;;  %2789 = vmax.xlane.f32.xlu1 %v2788_v28  ;;  %v2610_v36 = vpop.f32.mrf.mxu1  ;;  %v16001_v56 = vadd.f32 %v2665_v15, %v15961_v3 }
 0x98d   :  { %v15989_v12 = vadd.f32 %v2610_v36, %v1362_v50 }
 0x98e   :  { %v12325_v25 = vpop.f32.mrf.mxu1  ;;  %v2806_v5 = vsel %vm708_vm1, %v16001_v56, -inf }
 0x98f   :  { %v2797_v28 = vsel %vm708_vm1, %v15989_v12, -inf }
 0x990   :  { %2792 = vmax.xlane.f32.xlu0 %v2791_v4  ;;  %2795 = vmax.xlane.f32.xlu1 %v2794_v9  ;;  %v2613_v29 = vpop.f32.mrf.mxu1 }
 0x991   :  { %v15996_v38 = vadd.f32 %v2613_v29, %v15961_v3  ;;  %v2803_v29 = vsel %vm708_vm1, %v15998_v21, -inf }
 0x992   :  { %v12326_v16 = vpop.f32.mrf.mxu1 }
 0x993   :  { %v2800_v36 = vsel %vm708_vm1, %v15996_v38, -inf }
 0x994   :  { %2798 = vmax.xlane.f32.xlu0 %v2797_v28  ;;  %2801 = vmax.xlane.f32.xlu1 %v2800_v36  ;;  %v2714_v25 = vpop.f32.mrf.mxu1  ;;  %v2815_v36 = vsel %vm708_vm1, %v16013_v2, -inf }
 0x995   :  { %v16007_v9 = vadd.f32 %v2714_v25, %v1362_v50 }
 0x996   :  { %v12337_v4 = vpop.f32.mrf.mxu1 }
 0x997   :  { %v2809_v28 = vsel %vm708_vm1, %v16007_v9, -inf }
 0x998   :  { %2804 = vmax.xlane.f32.xlu0 %v2803_v29  ;;  %2807 = vmax.xlane.f32.xlu1 %v2806_v5  ;;  %v2717_v15 = vpop.f32.mrf.mxu1 }
 0x999   :  { %v16030_v50 = vadd.f32 %v2717_v15, %v15961_v3 }
 0x99a   :  { %v12338_v16 = vpop.f32.mrf.mxu1 }
 0x99c   :  { %2810 = vmax.xlane.f32.xlu0 %v2809_v28 }
 0x9a0   :  { %2816 = vmax.xlane.f32.xlu0 %v2815_v36 }
 0x9a9   :  { %3004 = vrot.lane.b32.xlu1 %v15498_v20, %s14656_s2  ;;  %v2812_v20 = vsel %vm708_vm1, %v16030_v50, -inf }
 0x9ad   :  { %3051 = vrot.lane.b32.xlu1 %v15517_v23, %s14656_s2  ;;  %v2818_v23 = vsel %vm708_vm1, %v16033_v31, -inf }
 0x9b1   :  { %3098 = vrot.lane.b32.xlu1 %v15525_v22, %s14656_s2 }
 0x9b6   :  { %2957 = vrot.lane.b32.xlu0 %v15503_v14, %s14656_s2 }
 0x9ba   :  { %3145 = vrot.lane.b32.xlu0 %v15535_v33, %s14656_s2 }
 0x9d5   :  { %2813 = vmax.xlane.f32.xlu1 %v2812_v20 }
 0x9d9   :  { %2819 = vmax.xlane.f32.xlu1 %v2818_v23 }
 0x9ea   :  { %3192 = vrot.lane.b32.xlu1 %v15533_v6, %s14656_s2 }
 0xa09   :  { %v2775_v14 = vpop.xlane.xlu0 %2774 }
 0xa0a   :  { %v2821_v22 = vsub.f32 %v15954_v45, %v2775_v14 }
 0xa0c   :  { %v2837_v33 = vmul.f32 1.442695, %v2821_v22 }
 0xa0d   :  { %v2778_v25 = vpop.xlane.xlu1 %2777  ;;  %v2781_v4 = vpop.xlane.xlu0 %2780 }
 0xa0e   :  { %13513 = vpow2.f32 %v2837_v33  ;;  %v2822_v3 = vsub.f32 %v15964_v57, %v2778_v25  ;;  %v2823_v46 = vsub.f32 %v15956_v37, %v2781_v4 }
 0xa10   :  { %v2839_v29 = vmul.f32 1.442695, %v2822_v3  ;;  %v2841_v5 = vmul.f32 1.442695, %v2823_v46 }
 0xa11   :  { %v2784_v15 = vpop.xlane.xlu0 %2783 }
 0xa12   :  { %13515 = vpow2.f32 %v2839_v29  ;;  %v2824_v16 = vsub.f32 %v15967_v8, %v2784_v15 }
 0xa13   :  { %13517 = vpow2.f32 %v2841_v5 }
 0xa14   :  { %v2843_v28 = vmul.f32 1.442695, %v2824_v16 }
 0xa15   :  { %v2790_v6 = vpop.xlane.xlu1 %2789  ;;  %v2787_v36 = vpop.xlane.xlu0 %2786 }
 0xa16   :  { %13519 = vpow2.f32 %v2843_v28  ;;  %v2826_v45 = vsub.f32 %v15978_v0, %v2790_v6  ;;  %v2825_v20 = vsub.f32 %v15973_v19, %v2787_v36 }
 0xa18   :  { %v2847_v23 = vmul.f32 1.442695, %v2826_v45  ;;  %v2845_v14 = vmul.f32 1.442695, %v2825_v20 }
 0xa19   :  { %v2796_v57 = vpop.xlane.xlu1 %2795  ;;  %v2793_v22 = vpop.xlane.xlu0 %2792 }
 0xa1a   :  { %13521 = vpow2.f32 %v2847_v23  ;;  %v2828_v37 = vsub.f32 %v15983_v62, %v2796_v57  ;;  %v2827_v33 = vsub.f32 %v15980_v58, %v2793_v22 }
 0xa1b   :  { %v16049_v25 = vpop.eup %13513  ;;  %13523 = vpow2.f32 %v2845_v14 }
 0xa1c   :  { %v2851_v8 = vmul.f32 1.442695, %v2828_v37  ;;  %v2849_v4 = vmul.f32 1.442695, %v2827_v33  ;;  %v2869_v3 = vsel %vm708_vm1, %v16049_v25, 0.0 }
 0xa1d   :  { %v2802_v0 = vpop.xlane.xlu1 %2801  ;;  %2870 = vadd.xlane.f32.xlu0 %v2869_v3  ;;  %v2799_v19 = vpop.xlane.xlu0 %2798 }
 0xa1e   :  { %13525 = vpow2.f32 %v2851_v8  ;;  %v2830_v46 = vsub.f32 %v15996_v38, %v2802_v0  ;;  %v2829_v29 = vsub.f32 %v15989_v12, %v2799_v19 }
 0xa1f   :  { %v16055_v5 = vpop.eup %13515  ;;  %13527 = vpow2.f32 %v2849_v4 }
 0xa20   :  { %v16057_v58 = vpop.eup %13517  ;;  %v2855_v62 = vmul.f32 1.442695, %v2830_v46  ;;  %v2853_v15 = vmul.f32 1.442695, %v2829_v29  ;;  %v2872_v16 = vsel %vm708_vm1, %v16055_v5, 0.0 }
 0xa21   :  { %v2808_v28 = vpop.xlane.xlu1 %2807  ;;  %2873 = vadd.xlane.f32.xlu1 %v2872_v16  ;;  %v2875_v6 = vsel %vm708_vm1, %v16057_v58, 0.0  ;;  %v2805_v36 = vpop.xlane.xlu0 %2804 }
 0xa22   :  { %13529 = vpow2.f32 %v2855_v62  ;;  %v2832_v38 = vsub.f32 %v16001_v56, %v2808_v28  ;;  %2876 = vadd.xlane.f32.xlu0 %v2875_v6  ;;  %v2831_v12 = vsub.f32 %v15998_v21, %v2805_v36 }
 0xa23   :  { %v16065_v45 = vpop.eup %13519  ;;  %13531 = vpow2.f32 %v2853_v15 }
 0xa24   :  { %v2859_v20 = vmul.f32 1.442695, %v2832_v38  ;;  %v2857_v23 = vmul.f32 1.442695, %v2831_v12  ;;  %v2878_v14 = vsel %vm708_vm1, %v16065_v45, 0.0 }
 0xa25   :  { %v3005_v57 = vpop.permute.xlu1 %3004  ;;  %2879 = vadd.xlane.f32.xlu1 %v2878_v14  ;;  %v2811_v22 = vpop.xlane.xlu0 %2810 }
 0xa26   :  { %13533 = vpow2.f32 %v2859_v20  ;;  %v2833_v37 = vsub.f32 %v16007_v9, %v2811_v22  ;;  %12352 = vmatpush3.bf16.msra.mxu0 %v3005_v57 }
 0xa27   :  { %v16070_v33 = vpop.eup %13521  ;;  %13535 = vpow2.f32 %v2857_v23  ;;  %12363 = vmatprep.subr.bf16.mxu0 %v18714_v49 }
 0xa28   :  { %v16073_v21 = vpop.eup %13523  ;;  %v2861_v56 = vmul.f32 1.442695, %v2833_v37  ;;  %v2884_v8 = vsel %vm708_vm1, %v16070_v33, 0.0 }
 0xa29   :  { %2885 = vadd.xlane.f32.xlu1 %v2884_v8  ;;  %v2881_v4 = vsel %vm708_vm1, %v16073_v21, 0.0  ;;  %v2817_v3 = vpop.xlane.xlu0 %2816  ;;  %v3052_v37 = vpop.permute.xlu1 %3051 }
 0xa2a   :  { %13537 = vpow2.f32 %v2861_v56  ;;  %2882 = vadd.xlane.f32.xlu0 %v2881_v4  ;;  %v2835_v9 = vsub.f32 %v16013_v2, %v2817_v3 }
 0xa2b   :  { %v16080_v0 = vpop.eup %13525 }
 0xa2c   :  { %v16082_v19 = vpop.eup %13527  ;;  %v2865_v46 = vmul.f32 1.442695, %v2835_v9  ;;  %v2890_v29 = vsel %vm708_vm1, %v16080_v0, 0.0 }
 0xa2d   :  { %2891 = vadd.xlane.f32.xlu1 %v2890_v29  ;;  %v2887_v62 = vsel %vm708_vm1, %v16082_v19, 0.0  ;;  %v2958_v15 = vpop.permute.xlu0 %2957  ;;  %v3099_v56 = vpop.permute.xlu1 %3098 }
 0xa2e   :  { %13539 = vpow2.f32 %v2865_v46  ;;  %2888 = vadd.xlane.f32.xlu0 %v2887_v62  ;;  %12346 = vmatpush3.bf16.msra.mxu1 %v2958_v15 }
 0xa2f   :  { %v16088_v16 = vpop.eup %13529  ;;  %12357 = vmatprep.subr.bf16.mxu1 %v18714_v49 }
 0xa30   :  { %v16091_v2 = vpop.eup %13531  ;;  %v2896_v28 = vsel %vm708_vm1, %v16088_v16, 0.0 }
 0xa31   :  { %2897 = vadd.xlane.f32.xlu1 %v2896_v28  ;;  %v2893_v6 = vsel %vm708_vm1, %v16091_v2, 0.0 }
 0xa32   :  { %2894 = vadd.xlane.f32.xlu0 %v2893_v6 }
 0xa33   :  { %v16097_v36 = vpop.eup %13533 }
 0xa34   :  { %v16099_v38 = vpop.eup %13535  ;;  %v2902_v12 = vsel %vm708_vm1, %v16097_v36, 0.0 }
 0xa35   :  { %2903 = vadd.xlane.f32.xlu1 %v2902_v12  ;;  %v2899_v20 = vsel %vm708_vm1, %v16099_v38, 0.0 }
 0xa36   :  { %2900 = vadd.xlane.f32.xlu0 %v2899_v20 }
 0xa37   :  { %v16105_v23 = vpop.eup %13537 }
 0xa38   :  { %v2905_v14 = vsel %vm708_vm1, %v16105_v23, 0.0 }
 0xa3a   :  { %2906 = vadd.xlane.f32.xlu0 %v2905_v14 }
 0xa3b   :  { %v16109_v57 = vpop.eup %13539 }
 0xa3c   :  { %v2911_v22 = vsel %vm708_vm1, %v16109_v57, 0.0 }
 0xa3e   :  { %2912 = vadd.xlane.f32.xlu0 %v2911_v22 }
 0xa54   :  { %3239 = vrot.lane.b32.xlu0 %v15551_v35, %s14656_s2 }
 0xa5e   :  { %v2814_v8 = vpop.xlane.xlu1 %2813 }
 0xa5f   :  { %v2834_v4 = vsub.f32 %v16030_v50, %v2814_v8  ;;  %v3146_v50 = vpop.permute.xlu0 %3145 }
 0xa61   :  { %v2863_v3 = vmul.f32 1.442695, %v2834_v4 }
 0xa62   :  { %v2820_v9 = vpop.xlane.xlu1 %2819 }
 0xa63   :  { %13541 = vpow2.f32 %v2863_v3  ;;  %v2836_v46 = vsub.f32 %v16033_v31, %v2820_v9 }
 0xa65   :  { %v2867_v29 = vmul.f32 1.442695, %v2836_v46 }
 0xa66   :  { %v16127_v6 = vpop.permute.xlu1 %3192 }
 0xa67   :  { %13543 = vpow2.f32 %v2867_v29 }
 0xa70   :  { %v16117_v62 = vpop.eup %13541 }
 0xa71   :  { %v2908_v15 = vsel %vm708_vm1, %v16117_v62, 0.0 }
 0xa72   :  { %2909 = vadd.xlane.f32.xlu1 %v2908_v15 }
 0xa74   :  { %v16121_v28 = vpop.eup %13543 }
 0xa75   :  { %v2914_v35 = vsel %vm708_vm1, %v16121_v28, 0.0 }
 0xa76   :  { %2915 = vadd.xlane.f32.xlu1 %v2914_v35 }
 0xa87   :  { %3286 = vrot.lane.b32.xlu1 %v15546_v18, %s14656_s2 }
 0xaa6   :  { %v2871_v31 = vpop.xlane.xlu0 %2870 }
 0xaa7   :  { %13545 = vrcp.f32 %v2871_v31 }
 0xaaa   :  { %v2874_v12 = vpop.xlane.xlu1 %2873 }
 0xaab   :  { %13547 = vrcp.f32 %v2874_v12  ;;  %v2877_v20 = vpop.xlane.xlu0 %2876 }
 0xaac   :  { %13549 = vrcp.f32 %v2877_v20 }
 0xaae   :  { %v2880_v14 = vpop.xlane.xlu1 %2879 }
 0xaaf   :  { %13551 = vrcp.f32 %v2880_v14 }
 0xab2   :  { %v2886_v22 = vpop.xlane.xlu1 %2885 }
 0xab3   :  { %13553 = vrcp.f32 %v2886_v22  ;;  %v2883_v8 = vpop.xlane.xlu0 %2882 }
 0xab4   :  { %13555 = vrcp.f32 %v2883_v8  ;;  %v13546_v4 = vpop.eup %13545 }
 0xab5   :  { %v2933_v46 = vmul.f32 %v13546_v4, %v16049_v25 }
 0xab6   :  { %v2892_v3 = vpop.xlane.xlu1 %2891 }
 0xab7   :  { %13557 = vrcp.f32 %v2892_v3  ;;  %v2889_v9 = vpop.xlane.xlu0 %2888 }
 0xab8   :  { %v13548_v18 = vpop.eup %13547  ;;  %13559 = vrcp.f32 %v2889_v9 }
 0xab9   :  { %v2934_v29 = vmul.f32 %v13548_v18, %v16055_v5  ;;  %v13550_v15 = vpop.eup %13549 }
 0xaba   :  { %v2898_v35 = vpop.xlane.xlu1 %2897  ;;  %v2935_v14 = vmul.f32 %v13550_v15, %v16057_v58 }
 0xabb   :  { %13561 = vrcp.f32 %v2898_v35  ;;  %v2895_v31 = vpop.xlane.xlu0 %2894  ;;  %v2949_v12 = vpack.c.bf16 %v2934_v29, %v2933_v46 }
 0xabc   :  { %v13552_v20 = vpop.eup %13551  ;;  %13563 = vrcp.f32 %v2895_v31 }
 0xabd   :  { %12348 = vmatmul.mubr.msk.bf16.vlgmr.msra.gmra.mxu1 %vm708_vm1, %v2949_v12  ;;  %v2936_v22 = vmul.f32 %v13552_v20, %v16065_v45 }
 0xabe   :  { %12358 = vmatpush3.bf16.msra.mxu1 %v3052_v37  ;;  %v2904_v8 = vpop.xlane.xlu1 %2903  ;;  %12359 = vmatprep.mubr.msk.bf16.mxu1 %vm14651_vm2, %v18714_v49 }
 0xabf   :  { %13565 = vrcp.f32 %v2904_v8  ;;  %v2901_v25 = vpop.xlane.xlu0 %2900  ;;  %v2950_v5 = vpack.c.bf16 %v2936_v22, %v2935_v14  ;;  %12369 = vmatprep.subr.bf16.mxu1 %v18714_v49 }
 0xac0   :  { %v13554_v4 = vpop.eup %13553  ;;  %13567 = vrcp.f32 %v2901_v25 }
 0xac1   :  { %v13556_v3 = vpop.eup %13555  ;;  %12354 = vmatmul.mubr.msk.bf16.vlgmr.msra.gmra.mxu0 %vm708_vm1, %v2950_v5  ;;  %v2938_v9 = vmul.f32 %v13554_v4, %v16070_v33 }
 0xac2   :  { %12364 = vmatpush3.bf16.msra.mxu0 %v3099_v56  ;;  %v2937_v58 = vmul.f32 %v13556_v3, %v16073_v21  ;;  %12365 = vmatprep.mubr.msk.bf16.mxu0 %vm14651_vm2, %v18714_v49 }
 0xac3   :  { %v2907_v45 = vpop.xlane.xlu0 %2906  ;;  %12375 = vmatprep.subr.bf16.mxu0 %v18714_v49 }
 0xac4   :  { %v13558_v37 = vpop.eup %13557  ;;  %v2951_v18 = vpack.c.bf16 %v2938_v9, %v2937_v58  ;;  %13569 = vrcp.f32 %v2907_v45 }
 0xac5   :  { %v13560_v46 = vpop.eup %13559  ;;  %v2940_v29 = vmul.f32 %v13558_v37, %v16080_v0 }
 0xac6   :  { %12360 = vmatmul.mubr.msk.bf16.vlgmr.msra.gmra.mxu1 %vm708_vm1, %v2951_v18  ;;  %v2939_v15 = vmul.f32 %v13560_v46, %v16082_v19  ;;  %v13352_v18 = vld [vmem:[%s18715_s3] sm:$0xff]   ;;  %s18744_s3 = sld [smem:[#allocation55_spill]] }
 0xac7   :  { %12370 = vmatpush3.bf16.msra.mxu1 %v3146_v50  ;;  %12371 = vmatprep.mubr.msk.bf16.mxu1 %vm14651_vm2, %v18714_v49  ;;  %v2913_v21 = vpop.xlane.xlu0 %2912 }
 0xac8   :  { %v13562_v33 = vpop.eup %13561  ;;  %v2952_v56 = vpack.c.bf16 %v2940_v29, %v2939_v15  ;;  %12381 = vmatprep.subr.bf16.mxu1 %v18714_v49 }
 0xac9   :  { %v13564_v35 = vpop.eup %13563  ;;  %v2942_v31 = vmul.f32 %v13562_v33, %v16088_v16 }
 0xaca   :  { %12366 = vmatmul.mubr.msk.bf16.vlgmr.msra.gmra.mxu0 %vm708_vm1, %v2952_v56  ;;  %v2941_v0 = vmul.f32 %v13564_v35, %v16091_v2 }
 0xacb   :  { %12376 = vmatpush3.bf16.msra.mxu0 %v16127_v6  ;;  %12377 = vmatprep.mubr.msk.bf16.mxu0 %vm14651_vm2, %v18714_v49  ;;  %v3240_v14 = vpop.permute.xlu0 %3239 }
 0xacc   :  { %v13566_v19 = vpop.eup %13565  ;;  %v2953_v50 = vpack.c.bf16 %v2942_v31, %v2941_v0  ;;  %12387 = vmatprep.subr.bf16.mxu0 %v18714_v49 }
 0xacd   :  { %v13568_v12 = vpop.eup %13567  ;;  %v2944_v20 = vmul.f32 %v13566_v19, %v16097_v36 }
 0xace   :  { %12372 = vmatmul.mubr.msk.bf16.vlgmr.msra.gmra.mxu1 %vm708_vm1, %v2953_v50  ;;  %v2943_v16 = vmul.f32 %v13568_v12, %v16099_v38 }
 0xacf   :  { %12382 = vmatpush3.bf16.msra.mxu1 %v3240_v14  ;;  %12383 = vmatprep.mubr.msk.bf16.mxu1 %vm14651_vm2, %v18714_v49 }
 0xad0   :  { %v2954_v2 = vpack.c.bf16 %v2944_v20, %v2943_v16  ;;  %12393 = vmatprep.subr.bf16.mxu1 %v13352_v18 }
 0xad1   :  { %v13570_v38 = vpop.eup %13569 }
 0xad2   :  { %12378 = vmatmul.mubr.msk.bf16.vlgmr.msra.gmra.mxu0 %vm708_vm1, %v2954_v2  ;;  %v2945_v25 = vmul.f32 %v13570_v38, %v16105_v23 }
 0xad3   :  { %12389 = vmatprep.mubr.msk.bf16.mxu0 %vm14651_vm2, %v18714_v49 }
 0xafb   :  { %v2910_v6 = vpop.xlane.xlu1 %2909 }
 0xafc   :  { %13571 = vrcp.f32 %v2910_v6 }
 0xafd   :  { %13573 = vrcp.f32 %v2913_v21 }
 0xaff   :  { %v2916_v36 = vpop.xlane.xlu1 %2915 }
 0xb00   :  { %13575 = vrcp.f32 %v2916_v36 }
 0xb03   :  { %v3287_v22 = vpop.permute.xlu1 %3286 }
 0xb04   :  { %12388 = vmatpush3.bf16.msra.mxu0 %v3287_v22 }
 0xb09   :  { %v13572_v8 = vpop.eup %13571 }
 0xb0a   :  { %v2946_v5 = vmul.f32 %v13572_v8, %v16117_v62  ;;  %v13574_v4 = vpop.eup %13573 }
 0xb0b   :  { %v2947_v58 = vmul.f32 %v13574_v4, %v16109_v57 }
 0xb0c   :  { %v2955_v3 = vpack.c.bf16 %v2946_v5, %v2945_v25 }
 0xb0d   :  { %v13576_v9 = vpop.eup %13575 }
 0xb0e   :  { %12384 = vmatmul.mubr.msk.bf16.vlgmr.msra.gmra.mxu1 %vm708_vm1, %v2955_v3  ;;  %v2948_v45 = vmul.f32 %v13576_v9, %v16121_v28 }
 0xb0f   :  { %12394 = vmatpush3.bf16.msra.mxu1 %v13352_v18 }
 0xb10   :  { %v2956_v37 = vpack.c.bf16 %v2948_v45, %v2947_v58 }
 0xb12   :  { %12390 = vmatmul.mubr.msk.bf16.vlgmr.msra.gmra.mxu0 %vm708_vm1, %v2956_v37 }
 0xb7d   :  { %v2997_v46 = vpop.f32.mrf.mxu1 }
 0xb7f   :  { %v12349_v29 = vpop.f32.mrf.mxu1 }
 0xb81   :  { %v3000_v23 = vpop.f32.mrf.mxu1  ;;  %v3044_v15 = vpop.f32.mrf.mxu0 }
 0xb82   :  { %v13208_v62 = vpack.i.bf16 %v3000_v23, %v2997_v46 }
 0xb83   :  { %v12350_v33 = vpop.f32.mrf.mxu1  ;;  %v12355_v21 = vpop.f32.mrf.mxu0 }
 0xb84   :  { %13209 = vrot.lane.b32.xlu0 %v13208_v62, %s14657_s7 }
 0xb85   :  { %v3047_v56 = vpop.f32.mrf.mxu0 }
 0xb86   :  { %v13213_v57 = vpack.i.bf16 %v3047_v56, %v3044_v15  ;;  %v3091_v35 = vpop.f32.mrf.mxu1 }
 0xb87   :  { %v12356_v28 = vpop.f32.mrf.mxu0 }
 0xb88   :  { %v12361_v31 = vpop.f32.mrf.mxu1  ;;  %13214 = vrot.lane.b32.xlu1 %v13213_v57, %s14657_s7 }
 0xb8a   :  { %v3094_v0 = vpop.f32.mrf.mxu1  ;;  %v3138_v19 = vpop.f32.mrf.mxu0 }
 0xb8b   :  { %v13218_v50 = vpack.i.bf16 %v3094_v0, %v3091_v35 }
 0xb8c   :  { %v12362_v12 = vpop.f32.mrf.mxu1  ;;  %v12367_v20 = vpop.f32.mrf.mxu0 }
 0xb8d   :  { %13219 = vrot.lane.b32.xlu0 %v13218_v50, %s14657_s7 }
 0xb8e   :  { %v3141_v14 = vpop.f32.mrf.mxu0  ;;  %v3185_v16 = vpop.f32.mrf.mxu1 }
 0xb8f   :  { %v13223_v2 = vpack.i.bf16 %v3141_v14, %v3138_v19 }
 0xb90   :  { %v12368_v6 = vpop.f32.mrf.mxu0  ;;  %v12373_v36 = vpop.f32.mrf.mxu1 }
 0xb91   :  { %13224 = vrot.lane.b32.xlu1 %v13223_v2, %s14657_s7 }
 0xb92   :  { %v3188_v22 = vpop.f32.mrf.mxu1  ;;  %v3232_v38 = vpop.f32.mrf.mxu0 }
 0xb93   :  { %v13228_v8 = vpack.i.bf16 %v3188_v22, %v3185_v16 }
 0xb94   :  { %v12374_v25 = vpop.f32.mrf.mxu1  ;;  %v12379_v5 = vpop.f32.mrf.mxu0 }
 0xb95   :  { %13229 = vrot.lane.b32.xlu0 %v13228_v8, %s14657_s7 }
 0xb96   :  { %v3235_v4 = vpop.f32.mrf.mxu0 }
 0xb97   :  { %v13233_v3 = vpack.i.bf16 %v3235_v4, %v3232_v38 }
 0xb98   :  { %v12380_v9 = vpop.f32.mrf.mxu0 }
 0xb99   :  { %13234 = vrot.lane.b32.xlu1 %v13233_v3, %s14657_s7 }
 0xbce   :  { %v3279_v58 = vpop.f32.mrf.mxu1 }
 0xbd0   :  { %v12385_v45 = vpop.f32.mrf.mxu1 }
 0xbd2   :  { %v3282_v37 = vpop.f32.mrf.mxu1  ;;  %v3326_v18 = vpop.f32.mrf.mxu0 }
 0xbd3   :  { %v13238_v46 = vpack.i.bf16 %v3282_v37, %v3279_v58 }
 0xbd4   :  { %v12386_v29 = vpop.f32.mrf.mxu1  ;;  %v12391_v23 = vpop.f32.mrf.mxu0 }
 0xbd5   :  { %13239 = vrot.lane.b32.xlu0 %v13238_v46, %s14657_s7 }
 0xbd6   :  { %v3329_v15 = vpop.f32.mrf.mxu0 }
 0xbd7   :  { %v13243_v62 = vpack.i.bf16 %v3329_v15, %v3326_v18 }
 0xbd8   :  { %v12392_v33 = vpop.f32.mrf.mxu0 }
 0xbd9   :  { %13244 = vrot.lane.b32.xlu1 %v13243_v62, %s14657_s7 }
 0xbf6   :  { %v13210_v21 = vpop.permute.xlu0 %13209 }
 0xbf7   :  { %v13212_v56 = vunpack.i.h.bf16 %v13210_v21  ;;  %v13211_v57 = vunpack.i.l.bf16 %v13210_v21 }
 0xbf9   :  { %v3398_v35 = vsel %vm1399_vm3, %v15923_v17, %v13212_v56  ;;  %v3397_v28 = vsel %vm1399_vm3, %v15921_v24, %v13211_v57 }
 0xbfa   :  { %v13215_v31 = vpop.permute.xlu1 %13214  ;;  %v3413_v0 = vpack.c.bf16 %v3398_v35, %v3397_v28 }
 0xbfb   :  { %v13217_v19 = vunpack.i.h.bf16 %v13215_v31  ;;  %v13216_v50 = vunpack.i.l.bf16 %v13215_v31 }
 0xbfc   :  { %12395 = vmatprep.mubr.msk.bf16.mxu1 %vm708_vm1, %v3413_v0 }
 0xbfd   :  { %v3400_v12 = vsel %vm1399_vm3, %v15927_v60, %v13217_v19  ;;  %v3399_v20 = vsel %vm1399_vm3, %v15925_v1, %v13216_v50 }
 0xbfe   :  { %v3414_v14 = vpack.c.bf16 %v3400_v12, %v3399_v20 }
 0xbff   :  { %v13220_v16 = vpop.permute.xlu0 %13219 }
 0xc00   :  { %v13222_v2 = vunpack.i.h.bf16 %v13220_v16  ;;  %v13221_v6 = vunpack.i.l.bf16 %v13220_v16  ;;  %12396 = vmatmul.mubr.msk.bf16.vlgmr.msra.gmra.mxu1 %vm708_vm1, %v3414_v14 }
 0xc02   :  { %v3402_v24 = vsel %vm1399_vm3, %v15935_v59, %v13222_v2  ;;  %v3401_v17 = vsel %vm1399_vm3, %v15931_v10, %v13221_v6 }
 0xc03   :  { %v13225_v36 = vpop.permute.xlu1 %13224  ;;  %v3415_v22 = vpack.c.bf16 %v3402_v24, %v3401_v17 }
 0xc04   :  { %v13227_v38 = vunpack.i.h.bf16 %v13225_v36  ;;  %v13226_v8 = vunpack.i.l.bf16 %v13225_v36 }
 0xc05   :  { %12399 = vmatprep.mubr.msk.bf16.mxu1 %vm708_vm1, %v3415_v22 }
 0xc06   :  { %v3404_v1 = vsel %vm1399_vm3, %v15933_v48, %v13227_v38  ;;  %v3403_v60 = vsel %vm1399_vm3, %v15929_v7, %v13226_v8 }
 0xc07   :  { %v13230_v25 = vpop.permute.xlu0 %13229  ;;  %v3416_v5 = vpack.c.bf16 %v3404_v1, %v3403_v60 }
 0xc08   :  { %v13232_v4 = vunpack.i.h.bf16 %v13230_v25  ;;  %v13231_v3 = vunpack.i.l.bf16 %v13230_v25 }
 0xc09   :  { %12400 = vmatmul.mubr.msk.bf16.gmra.mxu1 %vm708_vm1, %v3416_v5 }
 0xc0a   :  { %v3406_v10 = vsel %vm1399_vm3, %v15947_v32, %v13232_v4  ;;  %v3405_v59 = vsel %vm1399_vm3, %v15943_v47, %v13231_v3 }
 0xc0b   :  { %v13235_v9 = vpop.permute.xlu1 %13234  ;;  %v3417_v58 = vpack.c.bf16 %v3406_v10, %v3405_v59 }
 0xc0c   :  { %v13237_v45 = vunpack.i.h.bf16 %v13235_v9  ;;  %v13236_v37 = vunpack.i.l.bf16 %v13235_v9 }
 0xc0d   :  { %12403 = vmatprep.mubr.msk.bf16.mxu1 %vm708_vm1, %v3417_v58 }
 0xc0e   :  { %v3408_v7 = vsel %vm1399_vm3, %v15939_v44, %v13237_v45  ;;  %v3407_v48 = vsel %vm1399_vm3, %v15937_v43, %v13236_v37 }
 0xc0f   :  { %v3418_v18 = vpack.c.bf16 %v3408_v7, %v3407_v48 }
 0xc11   :  { %12404 = vmatmul.mubr.msk.bf16.gmra.mxu1 %vm708_vm1, %v3418_v18 }
 0xc47   :  { %v13240_v32 = vpop.permute.xlu0 %13239 }
 0xc48   :  { %v13242_v46 = vunpack.i.h.bf16 %v13240_v32  ;;  %v13241_v29 = vunpack.i.l.bf16 %v13240_v32 }
 0xc4a   :  { %v3410_v47 = vsel %vm1399_vm3, %v15951_v52, %v13242_v46  ;;  %v3409_v23 = vsel %vm1399_vm3, %v15949_v34, %v13241_v29  ;;  %v16220_v52 = vld [vmem:[%s18716_s14] ss:$0 sm:$0xff]  ;;  %s18745_s14 = sld [smem:[#allocation90_spill]] }
 0xc4b   :  { %v13245_v15 = vpop.permute.xlu1 %13244  ;;  %v3419_v62 = vpack.c.bf16 %v3410_v47, %v3409_v23 }
 0xc4c   :  { %v13247_v33 = vunpack.i.h.bf16 %v13245_v15  ;;  %v13246_v44 = vunpack.i.l.bf16 %v13245_v15 }
 0xc4d   :  { %12407 = vmatprep.mubr.msk.bf16.mxu1 %vm708_vm1, %v3419_v62  ;;  %v18717_v62 = vld [vmem:[#allocation100_spill] sm:$0xff] }
 0xc4e   :  { %v3412_v43 = vsel %vm1399_vm3, %v15945_v55, %v13247_v33  ;;  %v3411_v21 = vsel %vm1399_vm3, %v15941_v39, %v13246_v44 }
 0xc4f   :  { %v3420_v56 = vpack.c.bf16 %v3412_v43, %v3411_v21 }
 0xc51   :  { %12408 = vmatmul.mubr.msk.bf16.gmra.mxu1 %vm708_vm1, %v3420_v56  ;;  %v18718_v56 = vld [vmem:[#allocation99_spill] sm:$0xff] }
 0xcc0   :  { %v12397_v57 = vpop.f32.mrf.mxu1 }
 0xcc1   :  { %v3503_v34 = vadd.f32 %v12397_v57, %v16220_v52 }
 0xcc2   :  { %v3494_v35 = vpop.f32.mrf.mxu1 }
 0xcc3   :  { %v3495_v28 = vadd.f32 %v16220_v52, %v3494_v35  ;;  %v16228_v55 = vadd.f32 %v3503_v34, %v15231_v42  ;;  %v18719_v35 = vld [vmem:[#allocation101_spill] sm:$0xff] }
 0xcc4   :  { %v12398_v31 = vpop.f32.mrf.mxu1 }
 0xcc5   :  { %v16225_v0 = vadd.f32 %v3495_v28, %v15218_v26  ;;  %v3506_v39 = vadd.f32 %v12398_v31, %v16220_v52  ;;  %v3581_v2 = vsel %vm708_vm1, %v16228_v55, 0.0 }
 0xcc6   :  { %v3497_v19 = vpop.f32.mrf.mxu1 }
 0xcc7   :  { %v3498_v50 = vadd.f32 %v16220_v52, %v3497_v19  ;;  %v3575_v12 = vsel %vm708_vm1, %v16225_v0, 0.0  ;;  %v16238_v16 = vadd.f32 %v3506_v39, %v15241_v30 }
 0xcc8   :  { %3576 = vadd.xlane.f32.xlu0 %v3575_v12 }
 0xcc9   :  { %v16235_v20 = vadd.f32 %v3498_v50, %v15228_v41  ;;  %v12401_v14 = vpop.f32.mrf.mxu1  ;;  %v3584_v30 = vsel %vm708_vm1, %v16238_v16, 0.0 }
 0xcca   :  { %v3519_v17 = vadd.f32 %v12401_v14, %v16220_v52 }
 0xccb   :  { %v3510_v26 = vpop.f32.mrf.mxu1  ;;  %v3578_v42 = vsel %vm708_vm1, %v16235_v20, 0.0 }
 0xccc   :  { %v3511_v6 = vadd.f32 %v16220_v52, %v3510_v26  ;;  %3579 = vadd.xlane.f32.xlu1 %v3578_v42  ;;  %3582 = vadd.xlane.f32.xlu0 %v3581_v2  ;;  %v16257_v60 = vadd.f32 %v3519_v17, %v15259_v13 }
 0xccd   :  { %v12402_v24 = vpop.f32.mrf.mxu1 }
 0xcce   :  { %v16247_v41 = vadd.f32 %v3511_v6, %v15245_v61  ;;  %v3522_v22 = vadd.f32 %v12402_v24, %v16220_v52  ;;  %v3593_v9 = vsel %vm708_vm1, %v16257_v60, 0.0 }
 0xccf   :  { %v3513_v36 = vpop.f32.mrf.mxu1 }
 0xcd0   :  { %v3514_v38 = vadd.f32 %v16220_v52, %v3513_v36  ;;  %3585 = vadd.xlane.f32.xlu0 %v3584_v30  ;;  %v3587_v61 = vsel %vm708_vm1, %v16247_v41, 0.0  ;;  %v16262_v5 = vadd.f32 %v3522_v22, %v15269_v51 }
 0xcd1   :  { %v12405_v8 = vpop.f32.mrf.mxu1 }
 0xcd2   :  { %v16254_v1 = vadd.f32 %v3514_v38, %v15255_v40  ;;  %v3535_v40 = vadd.f32 %v12405_v8, %v16220_v52  ;;  %v3596_v45 = vsel %vm708_vm1, %v16262_v5, 0.0 }
 0xcd3   :  { %v3526_v25 = vpop.f32.mrf.mxu1 }
 0xcd4   :  { %v3527_v4 = vadd.f32 %v16220_v52, %v3526_v25  ;;  %v3590_v3 = vsel %vm708_vm1, %v16254_v1, 0.0  ;;  %3588 = vadd.xlane.f32.xlu0 %v3587_v61  ;;  %v16281_v7 = vadd.f32 %v3535_v40, %v15287_v54 }
 0xcd5   :  { %v12406_v10 = vpop.f32.mrf.mxu1  ;;  %3591 = vadd.xlane.f32.xlu1 %v3590_v3 }
 0xcd6   :  { %v16269_v13 = vadd.f32 %v3527_v4, %v15273_v27  ;;  %v3538_v51 = vadd.f32 %v12406_v10, %v16220_v52  ;;  %v3605_v32 = vsel %vm708_vm1, %v16281_v7, 0.0 }
 0xcd7   :  { %v3529_v59 = vpop.f32.mrf.mxu1 }
 0xcd8   :  { %v3530_v58 = vadd.f32 %v16220_v52, %v3529_v59  ;;  %3594 = vadd.xlane.f32.xlu0 %v3593_v9  ;;  %v3599_v27 = vsel %vm708_vm1, %v16269_v13, 0.0  ;;  %v16286_v48 = vadd.f32 %v3538_v51, %v15297_v11 }
 0xcd9   :  { %3597 = vadd.xlane.f32.xlu1 %v3596_v45 }
 0xcda   :  { %v16278_v37 = vadd.f32 %v3530_v58, %v15283_v63  ;;  %v3608_v63 = vsel %vm708_vm1, %v16286_v48, 0.0 }
 0xcdc   :  { %v3602_v18 = vsel %vm708_vm1, %v16278_v37, 0.0  ;;  %3600 = vadd.xlane.f32.xlu0 %v3599_v27 }
 0xcdd   :  { %3603 = vadd.xlane.f32.xlu1 %v3602_v18 }
 0xce0   :  { %3606 = vadd.xlane.f32.xlu0 %v3605_v32 }
 0xce1   :  { %3609 = vadd.xlane.f32.xlu1 %v3608_v63 }
 0xd11   :  { %v12409_v54 = vpop.f32.mrf.mxu1 }
 0xd12   :  { %v3551_v29 = vadd.f32 %v12409_v54, %v16220_v52 }
 0xd13   :  { %v3542_v46 = vpop.f32.mrf.mxu1 }
 0xd14   :  { %v3543_v11 = vadd.f32 %v16220_v52, %v3542_v46  ;;  %v16300_v33 = vadd.f32 %v3551_v29, %v18717_v62 }
 0xd15   :  { %v12410_v47 = vpop.f32.mrf.mxu1 }
 0xd16   :  { %v16297_v23 = vadd.f32 %v3543_v11, %v15301_v53  ;;  %v3554_v44 = vadd.f32 %v12410_v47, %v16220_v52  ;;  %v3617_v28 = vsel %vm708_vm1, %v16300_v33, 0.0 }
 0xd17   :  { %v3545_v15 = vpop.f32.mrf.mxu1 }
 0xd18   :  { %v3546_v43 = vadd.f32 %v16220_v52, %v3545_v15  ;;  %v3611_v21 = vsel %vm708_vm1, %v16297_v23, 0.0  ;;  %v16310_v34 = vadd.f32 %v3554_v44, %v18719_v35 }
 0xd19   :  { %3612 = vadd.xlane.f32.xlu0 %v3611_v21 }
 0xd1a   :  { %v16307_v57 = vadd.f32 %v3546_v43, %v18718_v56  ;;  %v3620_v52 = vsel %vm708_vm1, %v16310_v34, 0.0 }
 0xd1c   :  { %v3614_v53 = vsel %vm708_vm1, %v16307_v57, 0.0 }
 0xd1d   :  { %3615 = vadd.xlane.f32.xlu1 %v3614_v53  ;;  %3618 = vadd.xlane.f32.xlu0 %v3617_v28 }
 0xd21   :  { %3621 = vadd.xlane.f32.xlu1 %v3620_v52 }
 0xd51   :  { %v3577_v31 = vpop.xlane.xlu0 %3576 }
 0xd52   :  { %v3623_v19 = vmul.f32 0.0625, %v3577_v31 }
 0xd54   :  { %v16319_v39 = vsub.f32 %v16225_v0, %v3623_v19 }
 0xd55   :  { %v3580_v50 = vpop.xlane.xlu1 %3579  ;;  %v3583_v12 = vpop.xlane.xlu0 %3582 }
 0xd56   :  { %v3624_v14 = vmul.f32 0.0625, %v3580_v50  ;;  %v3625_v26 = vmul.f32 0.0625, %v3583_v12  ;;  %v3655_v42 = vmul.f32 %v16319_v39, %v16319_v39 }
 0xd58   :  { %v16324_v2 = vsub.f32 %v16235_v20, %v3624_v14  ;;  %v16327_v6 = vsub.f32 %v16228_v55, %v3625_v26  ;;  %v3671_v24 = vsel %vm708_vm1, %v3655_v42, 0.0 }
 0xd59   :  { %3672 = vadd.xlane.f32.xlu0 %v3671_v24  ;;  %v3586_v17 = vpop.xlane.xlu0 %3585 }
 0xd5a   :  { %v3626_v36 = vmul.f32 0.0625, %v3586_v17  ;;  %v3656_v30 = vmul.f32 %v16324_v2, %v16324_v2  ;;  %v3657_v22 = vmul.f32 %v16327_v6, %v16327_v6 }
 0xd5c   :  { %v16335_v38 = vsub.f32 %v16238_v16, %v3626_v36  ;;  %v3674_v8 = vsel %vm708_vm1, %v3656_v30, 0.0  ;;  %v3677_v25 = vsel %vm708_vm1, %v3657_v22, 0.0 }
 0xd5d   :  { %3675 = vadd.xlane.f32.xlu1 %v3674_v8  ;;  %3678 = vadd.xlane.f32.xlu0 %v3677_v25  ;;  %v3589_v61 = vpop.xlane.xlu0 %3588  ;;  %v13353_v25 = vld [vmem:[%s18720_s4] sm:$0xff]   ;;  %s18746_s4 = sld [smem:[#allocation85_spill]] }
 0xd5e   :  { %v3592_v4 = vpop.xlane.xlu1 %3591  ;;  %v3627_v3 = vmul.f32 0.0625, %v3589_v61  ;;  %v3658_v10 = vmul.f32 %v16335_v38, %v16335_v38  ;;  %12411 = vmatprep.subr.bf16.mxu0 %v13353_v25 }
 0xd5f   :  { %v3628_v40 = vmul.f32 0.0625, %v3592_v4  ;;  %12412 = vmatpush3.bf16.msra.mxu0 %v13353_v25 }
 0xd60   :  { %v16342_v59 = vsub.f32 %v16247_v41, %v3627_v3  ;;  %v3680_v9 = vsel %vm708_vm1, %v3658_v10, 0.0 }
 0xd61   :  { %v16346_v51 = vsub.f32 %v16254_v1, %v3628_v40  ;;  %3681 = vadd.xlane.f32.xlu1 %v3680_v9  ;;  %v3595_v58 = vpop.xlane.xlu0 %3594 }
 0xd62   :  { %v3598_v45 = vpop.xlane.xlu1 %3597  ;;  %v3629_v27 = vmul.f32 0.0625, %v3595_v58  ;;  %v3659_v18 = vmul.f32 %v16342_v59, %v16342_v59 }
 0xd63   :  { %v3630_v32 = vmul.f32 0.0625, %v3598_v45  ;;  %v3660_v63 = vmul.f32 %v16346_v51, %v16346_v51 }
 0xd64   :  { %v16353_v54 = vsub.f32 %v16257_v60, %v3629_v27  ;;  %v3683_v46 = vsel %vm708_vm1, %v3659_v18, 0.0 }
 0xd65   :  { %v16357_v29 = vsub.f32 %v16262_v5, %v3630_v32  ;;  %v3686_v11 = vsel %vm708_vm1, %v3660_v63, 0.0  ;;  %3684 = vadd.xlane.f32.xlu0 %v3683_v46  ;;  %v3601_v47 = vpop.xlane.xlu0 %3600 }
 0xd66   :  { %v3604_v15 = vpop.xlane.xlu1 %3603  ;;  %3687 = vadd.xlane.f32.xlu1 %v3686_v11  ;;  %v3631_v62 = vmul.f32 0.0625, %v3601_v47  ;;  %v3661_v44 = vmul.f32 %v16353_v54, %v16353_v54 }
 0xd67   :  { %v3632_v43 = vmul.f32 0.0625, %v3604_v15  ;;  %v3662_v21 = vmul.f32 %v16357_v29, %v16357_v29 }
 0xd68   :  { %v16365_v56 = vsub.f32 %v16269_v13, %v3631_v62  ;;  %v3689_v35 = vsel %vm708_vm1, %v3661_v44, 0.0 }
 0xd69   :  { %v16369_v53 = vsub.f32 %v16278_v37, %v3632_v43  ;;  %v3692_v28 = vsel %vm708_vm1, %v3662_v21, 0.0  ;;  %3690 = vadd.xlane.f32.xlu0 %v3689_v35  ;;  %v3607_v52 = vpop.xlane.xlu0 %3606 }
 0xd6a   :  { %v3610_v31 = vpop.xlane.xlu1 %3609  ;;  %3693 = vadd.xlane.f32.xlu1 %v3692_v28  ;;  %v3633_v19 = vmul.f32 0.0625, %v3607_v52  ;;  %v3663_v50 = vmul.f32 %v16365_v56, %v16365_v56 }
 0xd6b   :  { %v3634_v12 = vmul.f32 0.0625, %v3610_v31  ;;  %v3664_v14 = vmul.f32 %v16369_v53, %v16369_v53 }
 0xd6c   :  { %v16377_v26 = vsub.f32 %v16281_v7, %v3633_v19  ;;  %v3695_v42 = vsel %vm708_vm1, %v3663_v50, 0.0 }
 0xd6d   :  { %v16381_v24 = vsub.f32 %v16286_v48, %v3634_v12  ;;  %v3698_v17 = vsel %vm708_vm1, %v3664_v14, 0.0  ;;  %3696 = vadd.xlane.f32.xlu0 %v3695_v42 }
 0xd6e   :  { %3699 = vadd.xlane.f32.xlu1 %v3698_v17  ;;  %v3665_v36 = vmul.f32 %v16377_v26, %v16377_v26 }
 0xd6f   :  { %v3666_v30 = vmul.f32 %v16381_v24, %v16381_v24 }
 0xd70   :  { %v3701_v22 = vsel %vm708_vm1, %v3665_v36, 0.0 }
 0xd71   :  { %v3704_v8 = vsel %vm708_vm1, %v3666_v30, 0.0  ;;  %3702 = vadd.xlane.f32.xlu0 %v3701_v22 }
 0xd72   :  { %3705 = vadd.xlane.f32.xlu1 %v3704_v8 }
 0xda2   :  { %v3613_v61 = vpop.xlane.xlu0 %3612 }
 0xda3   :  { %v3635_v4 = vmul.f32 0.0625, %v3613_v61 }
 0xda5   :  { %v16392_v3 = vsub.f32 %v16297_v23, %v3635_v4 }
 0xda6   :  { %v3616_v10 = vpop.xlane.xlu1 %3615  ;;  %v3619_v40 = vpop.xlane.xlu0 %3618 }
 0xda7   :  { %v3636_v9 = vmul.f32 0.0625, %v3616_v10  ;;  %v3637_v58 = vmul.f32 0.0625, %v3619_v40  ;;  %v3667_v45 = vmul.f32 %v16392_v3, %v16392_v3 }
 0xda9   :  { %v16397_v27 = vsub.f32 %v16307_v57, %v3636_v9  ;;  %v16400_v18 = vsub.f32 %v16300_v33, %v3637_v58  ;;  %v3707_v32 = vsel %vm708_vm1, %v3667_v45, 0.0 }
 0xdaa   :  { %v3622_v63 = vpop.xlane.xlu1 %3621  ;;  %3708 = vadd.xlane.f32.xlu0 %v3707_v32 }
 0xdab   :  { %v3638_v46 = vmul.f32 0.0625, %v3622_v63  ;;  %v3668_v11 = vmul.f32 %v16397_v27, %v16397_v27  ;;  %v3669_v47 = vmul.f32 %v16400_v18, %v16400_v18 }
 0xdad   :  { %v16408_v15 = vsub.f32 %v16310_v34, %v3638_v46  ;;  %v3710_v62 = vsel %vm708_vm1, %v3668_v11, 0.0  ;;  %v3713_v44 = vsel %vm708_vm1, %v3669_v47, 0.0  ;;  %v16416_v46 = vld [vmem:[%s18721_s0] ss:$0 sm:$0xff]  ;;  %s14661_s0 = smov 64  }
 0xdae   :  { %3711 = vadd.xlane.f32.xlu1 %v3710_v62  ;;  %3714 = vadd.xlane.f32.xlu0 %v3713_v44 }
 0xdaf   :  { %v3670_v43 = vmul.f32 %v16408_v15, %v16408_v15 }
 0xdb1   :  { %v3716_v21 = vsel %vm708_vm1, %v3670_v43, 0.0 }
 0xdb2   :  { %3717 = vadd.xlane.f32.xlu1 %v3716_v21 }
 0xde2   :  { %v3673_v35 = vpop.xlane.xlu0 %3672 }
 0xde3   :  { %v3719_v28 = vmul.f32 0.0625, %v3673_v35 }
 0xde5   :  { %v3735_v52 = vadd.f32 1e-05, %v3719_v28 }
 0xde6   :  { %v3676_v31 = vpop.xlane.xlu1 %3675  ;;  %v3679_v19 = vpop.xlane.xlu0 %3678 }
 0xde7   :  { %13577 = vrsqrt.f32 %v3735_v52  ;;  %v3720_v50 = vmul.f32 0.0625, %v3676_v31  ;;  %v3721_v12 = vmul.f32 0.0625, %v3679_v19  ;;  %v16421_v19 = vld [vmem:[%s18722_s8] ss:$0 sm:$0xff]  ;;  %s14662_s8 = smov 56  }
 0xde9   :  { %v3736_v14 = vadd.f32 1e-05, %v3720_v50  ;;  %v3737_v42 = vadd.f32 1e-05, %v3721_v12 }
 0xdea   :  { %v3682_v17 = vpop.xlane.xlu1 %3681 }
 0xdeb   :  { %13579 = vrsqrt.f32 %v3736_v14  ;;  %v3722_v36 = vmul.f32 0.0625, %v3682_v17 }
 0xdec   :  { %13581 = vrsqrt.f32 %v3737_v42 }
 0xded   :  { %v3738_v30 = vadd.f32 1e-05, %v3722_v36 }
 0xdee   :  { %v3685_v22 = vpop.xlane.xlu0 %3684 }
 0xdef   :  { %13583 = vrsqrt.f32 %v3738_v30  ;;  %v3688_v8 = vpop.xlane.xlu1 %3687  ;;  %v3723_v25 = vmul.f32 0.0625, %v3685_v22 }
 0xdf0   :  { %v3724_v61 = vmul.f32 0.0625, %v3688_v8 }
 0xdf1   :  { %v3739_v4 = vadd.f32 1e-05, %v3723_v25 }
 0xdf2   :  { %v3740_v10 = vadd.f32 1e-05, %v3724_v61  ;;  %v3691_v40 = vpop.xlane.xlu0 %3690 }
 0xdf3   :  { %13585 = vrsqrt.f32 %v3739_v4  ;;  %v3694_v9 = vpop.xlane.xlu1 %3693  ;;  %v3725_v58 = vmul.f32 0.0625, %v3691_v40 }
 0xdf4   :  { %v13578_v45 = vpop.eup %13577  ;;  %13587 = vrsqrt.f32 %v3740_v10  ;;  %v3726_v32 = vmul.f32 0.0625, %v3694_v9 }
 0xdf5   :  { %v3741_v63 = vadd.f32 1e-05, %v3725_v58  ;;  %v3767_v11 = vmul.f32 %v13578_v45, %v16319_v39 }
 0xdf6   :  { %v3742_v47 = vadd.f32 1e-05, %v3726_v32  ;;  %v3697_v62 = vpop.xlane.xlu0 %3696 }
 0xdf7   :  { %13589 = vrsqrt.f32 %v3741_v63  ;;  %v3700_v44 = vpop.xlane.xlu1 %3699  ;;  %v3727_v43 = vmul.f32 0.0625, %v3697_v62  ;;  %v3789_v28 = vmul.f32 %v16416_v46, %v3767_v11 }
 0xdf8   :  { %v13580_v21 = vpop.eup %13579  ;;  %13591 = vrsqrt.f32 %v3742_v47  ;;  %v3728_v35 = vmul.f32 0.0625, %v3700_v44 }
 0xdf9   :  { %v13582_v52 = vpop.eup %13581  ;;  %v3743_v31 = vadd.f32 1e-05, %v3727_v43  ;;  %v3768_v50 = vmul.f32 %v13580_v21, %v16324_v2  ;;  %v3811_v8 = vadd.f32 %v16421_v19, %v3789_v28 }
 0xdfa   :  { %v3769_v12 = vmul.f32 %v13582_v52, %v16327_v6  ;;  %v3744_v14 = vadd.f32 1e-05, %v3728_v35  ;;  %v3703_v39 = vpop.xlane.xlu0 %3702 }
 0xdfb   :  { %13593 = vrsqrt.f32 %v3743_v31  ;;  %v3706_v42 = vpop.xlane.xlu1 %3705  ;;  %v3729_v17 = vmul.f32 0.0625, %v3703_v39  ;;  %v3790_v36 = vmul.f32 %v16416_v46, %v3768_v50 }
 0xdfc   :  { %v13584_v30 = vpop.eup %13583  ;;  %13595 = vrsqrt.f32 %v3744_v14  ;;  %v3730_v22 = vmul.f32 0.0625, %v3706_v42  ;;  %v3791_v2 = vmul.f32 %v16416_v46, %v3769_v12 }
 0xdfd   :  { %v3770_v25 = vmul.f32 %v13584_v30, %v16335_v38  ;;  %v3745_v61 = vadd.f32 1e-05, %v3729_v17  ;;  %v3812_v4 = vadd.f32 %v16421_v19, %v3790_v36 }
 0xdfe   :  { %v3746_v6 = vadd.f32 1e-05, %v3730_v22  ;;  %v3813_v45 = vadd.f32 %v16421_v19, %v3791_v2 }
 0xdff   :  { %13597 = vrsqrt.f32 %v3745_v61  ;;  %v3827_v10 = vpack.c.bf16 %v3812_v4, %v3811_v8  ;;  %v3792_v40 = vmul.f32 %v16416_v46, %v3770_v25 }
 0xe00   :  { %v13586_v9 = vpop.eup %13585  ;;  %13599 = vrsqrt.f32 %v3746_v6 }
 0xe01   :  { %v13588_v58 = vpop.eup %13587  ;;  %12413 = vmatprep.mubr.msk.bf16.mxu0 %vm708_vm1, %v3827_v10  ;;  %v3814_v32 = vadd.f32 %v16421_v19, %v3792_v40  ;;  %v3771_v38 = vmul.f32 %v13586_v9, %v16342_v59 }
 0xe02   :  { %v3772_v63 = vmul.f32 %v13588_v58, %v16346_v51 }
 0xe03   :  { %v3828_v11 = vpack.c.bf16 %v3814_v32, %v3813_v45  ;;  %v3793_v47 = vmul.f32 %v16416_v46, %v3771_v38 }
 0xe04   :  { %v13590_v62 = vpop.eup %13589  ;;  %v3794_v44 = vmul.f32 %v16416_v46, %v3772_v63 }
 0xe05   :  { %v13592_v43 = vpop.eup %13591  ;;  %12414 = vmatmul.mubr.msk.bf16.vlgmr.msra.gmra.mxu0 %vm708_vm1, %v3828_v11  ;;  %v3815_v21 = vadd.f32 %v16421_v19, %v3793_v47  ;;  %v3773_v35 = vmul.f32 %v13590_v62, %v16353_v54 }
 0xe06   :  { %v3816_v28 = vadd.f32 %v16421_v19, %v3794_v44  ;;  %v3774_v52 = vmul.f32 %v13592_v43, %v16357_v29 }
 0xe07   :  { %v3795_v59 = vmul.f32 %v16416_v46, %v3773_v35 }
 0xe08   :  { %v13594_v51 = vpop.eup %13593  ;;  %v3829_v31 = vpack.c.bf16 %v3816_v28, %v3815_v21  ;;  %v3796_v50 = vmul.f32 %v16416_v46, %v3774_v52 }
 0xe09   :  { %v13596_v12 = vpop.eup %13595  ;;  %v3817_v14 = vadd.f32 %v16421_v19, %v3795_v59  ;;  %v3775_v39 = vmul.f32 %v13594_v51, %v16365_v56 }
 0xe0a   :  { %12417 = vmatprep.mubr.msk.bf16.mxu0 %vm708_vm1, %v3829_v31  ;;  %v3818_v42 = vadd.f32 %v16421_v19, %v3796_v50  ;;  %v3776_v54 = vmul.f32 %v13596_v12, %v16369_v53 }
 0xe0b   :  { %v3797_v17 = vmul.f32 %v16416_v46, %v3775_v39 }
 0xe0c   :  { %v13598_v29 = vpop.eup %13597  ;;  %v3830_v36 = vpack.c.bf16 %v3818_v42, %v3817_v14  ;;  %v3798_v30 = vmul.f32 %v16416_v46, %v3776_v54 }
 0xe0d   :  { %v13600_v22 = vpop.eup %13599  ;;  %v3819_v8 = vadd.f32 %v16421_v19, %v3797_v17  ;;  %v3777_v25 = vmul.f32 %v13598_v29, %v16377_v26  ;;  %v13354_v29 = vld [vmem:[%s18723_s10 + $0x8] sm:$0xff]  }
 0xe0e   :  { %12418 = vmatmul.mubr.msk.bf16.gmra.mxu0 %vm708_vm1, %v3830_v36  ;;  %v3820_v56 = vadd.f32 %v16421_v19, %v3798_v30  ;;  %v3778_v61 = vmul.f32 %v13600_v22, %v16381_v24  ;;  %12429 = vmatprep.subr.bf16.mxu1 %v13354_v29  ;;  %v13355_v36 = vld [vmem:[%s18723_s10] sm:$0xff]   ;;  %s14663_s10 = smov 80  }
 0xe0f   :  { %v3799_v4 = vmul.f32 %v16416_v46, %v3777_v25  ;;  %12430 = vmatpush3.bf16.msra.mxu1 %v13354_v29 }
 0xe10   :  { %v3831_v53 = vpack.c.bf16 %v3820_v56, %v3819_v8  ;;  %v3800_v2 = vmul.f32 %v16416_v46, %v3778_v61  ;;  %12431 = vmatprep.subr.bf16.mxu1 %v13355_v36 }
 0xe11   :  { %v3821_v6 = vadd.f32 %v16421_v19, %v3799_v4 }
 0xe12   :  { %12421 = vmatprep.mubr.msk.bf16.mxu0 %vm708_vm1, %v3831_v53  ;;  %v3822_v10 = vadd.f32 %v16421_v19, %v3800_v2 }
 0xe13   :  { %12432 = vmatpush3.bf16.msra.mxu1 %v13355_v36 }
 0xe14   :  { %v3832_v40 = vpack.c.bf16 %v3822_v10, %v3821_v6 }
 0xe16   :  { %12422 = vmatmul.mubr.msk.bf16.gmra.mxu0 %vm708_vm1, %v3832_v40 }
 0xe33   :  { %v3709_v26 = vpop.xlane.xlu0 %3708 }
 0xe34   :  { %v3731_v9 = vmul.f32 0.0625, %v3709_v26 }
 0xe36   :  { %v3747_v58 = vadd.f32 1e-05, %v3731_v9 }
 0xe37   :  { %v3712_v45 = vpop.xlane.xlu1 %3711  ;;  %v3715_v32 = vpop.xlane.xlu0 %3714 }
 0xe38   :  { %13601 = vrsqrt.f32 %v3747_v58  ;;  %v3732_v24 = vmul.f32 0.0625, %v3712_v45  ;;  %v3733_v38 = vmul.f32 0.0625, %v3715_v32 }
 0xe3a   :  { %v3748_v63 = vadd.f32 1e-05, %v3732_v24  ;;  %v3749_v11 = vadd.f32 1e-05, %v3733_v38 }
 0xe3b   :  { %v3718_v47 = vpop.xlane.xlu1 %3717 }
 0xe3c   :  { %13603 = vrsqrt.f32 %v3748_v63  ;;  %v3734_v62 = vmul.f32 0.0625, %v3718_v47 }
 0xe3d   :  { %13605 = vrsqrt.f32 %v3749_v11 }
 0xe3e   :  { %v3750_v44 = vadd.f32 1e-05, %v3734_v62 }
 0xe40   :  { %13607 = vrsqrt.f32 %v3750_v44 }
 0xe45   :  { %v13602_v43 = vpop.eup %13601 }
 0xe46   :  { %v3779_v21 = vmul.f32 %v13602_v43, %v16392_v3 }
 0xe48   :  { %v3801_v59 = vmul.f32 %v16416_v46, %v3779_v21 }
 0xe49   :  { %v13604_v35 = vpop.eup %13603 }
 0xe4a   :  { %v13606_v28 = vpop.eup %13605  ;;  %v3780_v52 = vmul.f32 %v13604_v35, %v16397_v27  ;;  %v3823_v12 = vadd.f32 %v16421_v19, %v3801_v59 }
 0xe4b   :  { %v3781_v51 = vmul.f32 %v13606_v28, %v16400_v18 }
 0xe4c   :  { %v3802_v31 = vmul.f32 %v16416_v46, %v3780_v52 }
 0xe4d   :  { %v13608_v50 = vpop.eup %13607  ;;  %v3803_v39 = vmul.f32 %v16416_v46, %v3781_v51 }
 0xe4e   :  { %v3824_v14 = vadd.f32 %v16421_v19, %v3802_v31  ;;  %v3782_v3 = vmul.f32 %v13608_v50, %v16408_v15  ;;  %v16480_v15 = vld [vmem:[%s18724_s11] ss:$0 sm:$0xff]  ;;  %s14664_s11 = smov 72  }
 0xe4f   :  { %v3825_v18 = vadd.f32 %v16421_v19, %v3803_v39 }
 0xe50   :  { %v3833_v42 = vpack.c.bf16 %v3824_v14, %v3823_v12  ;;  %v3804_v27 = vmul.f32 %v16416_v46, %v3782_v3 }
 0xe52   :  { %12425 = vmatprep.mubr.msk.bf16.mxu0 %vm708_vm1, %v3833_v42  ;;  %v3826_v54 = vadd.f32 %v16421_v19, %v3804_v27 }
 0xe54   :  { %v3834_v17 = vpack.c.bf16 %v3826_v54, %v3825_v18 }
 0xe56   :  { %12426 = vmatmul.mubr.msk.bf16.gmra.mxu0 %vm708_vm1, %v3834_v17 }
 0xec5   :  { %v12415_v30 = vpop.f32.mrf.mxu0 }
 0xec6   :  { %v16483_v46 = vadd.f32 %v12415_v30, %v16480_v15 }
 0xec7   :  { %v3908_v22 = vpop.f32.mrf.mxu0 }
 0xec8   :  { %v3973_v8 = vmul.f32 %v16483_v46, %v16483_v46  ;;  %v16488_v19 = vadd.f32 %v16480_v15, %v3908_v22 }
 0xec9   :  { %v12416_v25 = vpop.f32.mrf.mxu0 }
 0xeca   :  { %v3989_v56 = vmul.f32 %v3973_v8, %v16483_v46  ;;  %v3971_v61 = vmul.f32 %v16488_v19, %v16488_v19  ;;  %v16494_v4 = vadd.f32 %v12416_v25, %v16480_v15 }
 0xecb   :  { %v3911_v53 = vpop.f32.mrf.mxu0 }
 0xecc   :  { %v4005_v2 = vmul.f32 0.044715, %v3989_v56  ;;  %v3987_v6 = vmul.f32 %v3971_v61, %v16488_v19  ;;  %v3974_v10 = vmul.f32 %v16494_v4, %v16494_v4  ;;  %v16500_v40 = vadd.f32 %v16480_v15, %v3911_v53 }
 0xece   :  { %v4021_v26 = vadd.f32 %v4005_v2, %v16483_v46  ;;  %v4003_v9 = vmul.f32 0.044715, %v3987_v6  ;;  %v3990_v58 = vmul.f32 %v3974_v10, %v16494_v4  ;;  %v3972_v45 = vmul.f32 %v16500_v40, %v16500_v40  ;;  %v12419_v32 = vpop.f32.mrf.mxu0 }
 0xecf   :  { %v16507_v24 = vadd.f32 %v12419_v32, %v16480_v15 }
 0xed0   :  { %v4037_v38 = vmul.f32 0.7978846, %v4021_v26  ;;  %v4019_v63 = vadd.f32 %v4003_v9, %v16488_v19  ;;  %v4006_v11 = vmul.f32 0.044715, %v3990_v58  ;;  %v3988_v47 = vmul.f32 %v3972_v45, %v16500_v40  ;;  %v3924_v62 = vpop.f32.mrf.mxu0 }
 0xed1   :  { %v3977_v44 = vmul.f32 %v16507_v24, %v16507_v24  ;;  %v16514_v43 = vadd.f32 %v16480_v15, %v3924_v62 }
 0xed2   :  { %v4035_v21 = vmul.f32 0.7978846, %v4019_v63  ;;  %v4022_v35 = vadd.f32 %v4006_v11, %v16494_v4  ;;  %v4004_v28 = vmul.f32 0.044715, %v3988_v47  ;;  %v12420_v52 = vpop.f32.mrf.mxu0  ;;  %13609 = vtanh.f32 %v4037_v38 }
 0xed3   :  { %v3993_v59 = vmul.f32 %v3977_v44, %v16507_v24  ;;  %v3975_v51 = vmul.f32 %v16514_v43, %v16514_v43  ;;  %v16521_v31 = vadd.f32 %v12420_v52, %v16480_v15 }
 0xed4   :  { %13611 = vtanh.f32 %v4035_v21  ;;  %v4038_v50 = vmul.f32 0.7978846, %v4022_v35  ;;  %v4020_v12 = vadd.f32 %v4004_v28, %v16500_v40  ;;  %v3927_v14 = vpop.f32.mrf.mxu0 }
 0xed5   :  { %v4009_v3 = vmul.f32 0.044715, %v3993_v59  ;;  %v3991_v39 = vmul.f32 %v3975_v51, %v16514_v43  ;;  %v3978_v42 = vmul.f32 %v16521_v31, %v16521_v31  ;;  %v16528_v27 = vadd.f32 %v16480_v15, %v3927_v14 }
 0xed6   :  { %13613 = vtanh.f32 %v4038_v50  ;;  %v4036_v18 = vmul.f32 0.7978846, %v4020_v12  ;;  %v12423_v54 = vpop.f32.mrf.mxu0 }
 0xed7   :  { %v4025_v17 = vadd.f32 %v4009_v3, %v16507_v24  ;;  %v4007_v29 = vmul.f32 0.044715, %v3991_v39  ;;  %v3994_v36 = vmul.f32 %v3978_v42, %v16521_v31  ;;  %v3976_v30 = vmul.f32 %v16528_v27, %v16528_v27 }
 0xed8   :  { %13615 = vtanh.f32 %v4036_v18  ;;  %v16535_v22 = vadd.f32 %v12423_v54, %v16480_v15  ;;  %v3940_v8 = vpop.f32.mrf.mxu0 }
 0xed9   :  { %v4041_v25 = vmul.f32 0.7978846, %v4025_v17  ;;  %v4023_v56 = vadd.f32 %v4007_v29, %v16514_v43  ;;  %v4010_v61 = vmul.f32 0.044715, %v3994_v36  ;;  %v3992_v53 = vmul.f32 %v3976_v30, %v16528_v27 }
 0xeda   :  { %v3981_v2 = vmul.f32 %v16535_v22, %v16535_v22  ;;  %v16542_v6 = vadd.f32 %v16480_v15, %v3940_v8  ;;  %v12424_v10 = vpop.f32.mrf.mxu0 }
 0xedb   :  { %v4039_v26 = vmul.f32 0.7978846, %v4023_v56  ;;  %v4026_v9 = vadd.f32 %v4010_v61, %v16521_v31  ;;  %v4008_v58 = vmul.f32 0.044715, %v3992_v53  ;;  %13617 = vtanh.f32 %v4041_v25 }
 0xedc   :  { %v3997_v45 = vmul.f32 %v3981_v2, %v16535_v22  ;;  %v3979_v32 = vmul.f32 %v16542_v6, %v16542_v6  ;;  %v16549_v38 = vadd.f32 %v12424_v10, %v16480_v15  ;;  %v3943_v63 = vpop.f32.mrf.mxu0 }
 0xedd   :  { %13619 = vtanh.f32 %v4039_v26  ;;  %v4042_v11 = vmul.f32 0.7978846, %v4026_v9  ;;  %v4024_v47 = vadd.f32 %v4008_v58, %v16528_v27  ;;  %v16553_v62 = vadd.f32 %v16480_v15, %v3943_v63 }
 0xede   :  { %v4013_v44 = vmul.f32 0.044715, %v3997_v45  ;;  %v3995_v21 = vmul.f32 %v3979_v32, %v16542_v6  ;;  %v3982_v35 = vmul.f32 %v16549_v38, %v16549_v38 }
 0xedf   :  { %13621 = vtanh.f32 %v4042_v11  ;;  %v4040_v28 = vmul.f32 0.7978846, %v4024_v47  ;;  %v3980_v52 = vmul.f32 %v16553_v62, %v16553_v62  ;;  %v13610_v59 = vpop.eup %13609 }
 0xee0   :  { %v4029_v51 = vadd.f32 %v4013_v44, %v16535_v22  ;;  %v4011_v50 = vmul.f32 0.044715, %v3995_v21  ;;  %v3998_v12 = vmul.f32 %v3982_v35, %v16549_v38  ;;  %v4069_v17 = vadd.f32 1.0, %v13610_v59 }
 0xee1   :  { %v13612_v14 = vpop.eup %13611  ;;  %13623 = vtanh.f32 %v4040_v28  ;;  %v3996_v3 = vmul.f32 %v3980_v52, %v16553_v62 }
 0xee2   :  { %v4067_v39 = vadd.f32 1.0, %v13612_v14  ;;  %v4045_v42 = vmul.f32 0.7978846, %v4029_v51  ;;  %v4027_v18 = vadd.f32 %v4011_v50, %v16542_v6  ;;  %v4014_v29 = vmul.f32 0.044715, %v3998_v12 }
 0xee3   :  { %v13614_v54 = vpop.eup %13613  ;;  %v4012_v36 = vmul.f32 0.044715, %v3996_v3  ;;  %v4085_v26 = vmul.f32 0.5, %v4069_v17 }
 0xee4   :  { %v4070_v30 = vadd.f32 1.0, %v13614_v54  ;;  %13625 = vtanh.f32 %v4045_v42  ;;  %v4043_v25 = vmul.f32 0.7978846, %v4027_v18  ;;  %v4030_v56 = vadd.f32 %v4014_v29, %v16549_v38 }
 0xee5   :  { %v13616_v8 = vpop.eup %13615  ;;  %v4028_v61 = vadd.f32 %v4012_v36, %v16553_v62  ;;  %v4083_v53 = vmul.f32 0.5, %v4067_v39  ;;  %v4101_v21 = vmul.f32 %v4085_v26, %v16483_v46 }
 0xee6   :  { %v4086_v2 = vmul.f32 0.5, %v4070_v30  ;;  %v4068_v10 = vadd.f32 1.0, %v13616_v8  ;;  %13627 = vtanh.f32 %v4043_v25  ;;  %v4046_v9 = vmul.f32 0.7978846, %v4030_v56 }
 0xee7   :  { %v4044_v58 = vmul.f32 0.7978846, %v4028_v61  ;;  %v4099_v47 = vmul.f32 %v4083_v53, %v16488_v19 }
 0xee8   :  { %v4084_v45 = vmul.f32 0.5, %v4068_v10  ;;  %v13618_v32 = vpop.eup %13617  ;;  %v4102_v63 = vmul.f32 %v4086_v2, %v16494_v4  ;;  %13629 = vtanh.f32 %v4046_v9 }
 0xee9   :  { %13631 = vtanh.f32 %v4044_v58  ;;  %v4073_v52 = vadd.f32 1.0, %v13618_v32 }
 0xeea   :  { %v13620_v11 = vpop.eup %13619  ;;  %v4100_v44 = vmul.f32 %v4084_v45, %v16500_v40  ;;  %v4116_v51 = vpack.c.bf16 %v4102_v63, %v4101_v21 }
 0xeeb   :  { %v4071_v35 = vadd.f32 1.0, %v13620_v11  ;;  %v4089_v3 = vmul.f32 0.5, %v4073_v52 }
 0xeec   :  { %v13622_v28 = vpop.eup %13621  ;;  %v4115_v59 = vpack.c.bf16 %v4100_v44, %v4099_v47 }
 0xeed   :  { %v4074_v50 = vadd.f32 1.0, %v13622_v28  ;;  %v4087_v4 = vmul.f32 0.5, %v4071_v35  ;;  %v4105_v17 = vmul.f32 %v4089_v3, %v16507_v24 }
 0xeee   :  { %v13624_v12 = vpop.eup %13623  ;;  %12433 = vmatprep.mubr.msk.bf16.mxu1 %vm4146_vm4, %v4115_v59 }
 0xeef   :  { %v4090_v14 = vmul.f32 0.5, %v4074_v50  ;;  %12434 = vmatmul.mubr.msk.bf16.vlgmr.msra.gmra.mxu1 %vm4146_vm4, %v4116_v51  ;;  %v4072_v19 = vadd.f32 1.0, %v13624_v12  ;;  %v4103_v42 = vmul.f32 %v4087_v4, %v16514_v43 }
 0xef1   :  { %v4088_v39 = vmul.f32 0.5, %v4072_v19  ;;  %v13626_v40 = vpop.eup %13625  ;;  %v4106_v46 = vmul.f32 %v4090_v14, %v16521_v31 }
 0xef2   :  { %v4077_v29 = vadd.f32 1.0, %v13626_v40 }
 0xef3   :  { %v4104_v18 = vmul.f32 %v4088_v39, %v16528_v27  ;;  %v13628_v54 = vpop.eup %13627  ;;  %v4118_v25 = vpack.c.bf16 %v4106_v46, %v4105_v17 }
 0xef4   :  { %v4075_v30 = vadd.f32 1.0, %v13628_v54  ;;  %v4093_v2 = vmul.f32 0.5, %v4077_v29 }
 0xef5   :  { %v4117_v36 = vpack.c.bf16 %v4104_v18, %v4103_v42  ;;  %v13630_v8 = vpop.eup %13629 }
 0xef6   :  { %v13632_v56 = vpop.eup %13631  ;;  %v4078_v61 = vadd.f32 1.0, %v13630_v8  ;;  %v4091_v31 = vmul.f32 0.5, %v4075_v30  ;;  %v4109_v9 = vmul.f32 %v4093_v2, %v16535_v22 }
 0xef7   :  { %12437 = vmatprep.mubr.msk.bf16.mxu1 %vm4146_vm4, %v4117_v36  ;;  %v4076_v53 = vadd.f32 1.0, %v13632_v56 }
 0xef8   :  { %12438 = vmatmul.mubr.msk.bf16.gmra.mxu1 %vm4146_vm4, %v4118_v25  ;;  %v4094_v43 = vmul.f32 0.5, %v4078_v61  ;;  %v4107_v24 = vmul.f32 %v4091_v31, %v16542_v6 }
 0xef9   :  { %v4092_v10 = vmul.f32 0.5, %v4076_v53 }
 0xefa   :  { %v4110_v27 = vmul.f32 %v4094_v43, %v16549_v38 }
 0xefb   :  { %v4108_v26 = vmul.f32 %v4092_v10, %v16553_v62 }
 0xefc   :  { %v4120_v45 = vpack.c.bf16 %v4110_v27, %v4109_v9 }
 0xefd   :  { %v4119_v58 = vpack.c.bf16 %v4108_v26, %v4107_v24 }
 0xeff   :  { %12441 = vmatprep.mubr.msk.bf16.mxu1 %vm4146_vm4, %v4119_v58 }
 0xf00   :  { %12442 = vmatmul.mubr.msk.bf16.gmra.mxu1 %vm4146_vm4, %v4120_v45  ;;  %v4284_v45 = vld [vmem:[%s18725_s29] sm:$0xff] }
 0xf01   :  { %12481 = vmatprep.mubr.f32.mxu0 %v4284_v45  ;;  %v4298_v45 = vld [vmem:[%s18725_s29 + $0x70] sm:$0xff] }
 0xf16   :  { %v12427_v32 = vpop.f32.mrf.mxu0 }
 0xf17   :  { %v3965_v63 = vadd.f32 %v12427_v32, %v16480_v15 }
 0xf18   :  { %v3956_v11 = vpop.f32.mrf.mxu0 }
 0xf19   :  { %v3985_v47 = vmul.f32 %v3965_v63, %v3965_v63  ;;  %v3957_v44 = vadd.f32 %v16480_v15, %v3956_v11 }
 0xf1a   :  { %v12428_v38 = vpop.f32.mrf.mxu0 }
 0xf1b   :  { %v4001_v21 = vmul.f32 %v3985_v47, %v3965_v63  ;;  %v3983_v6 = vmul.f32 %v3957_v44, %v3957_v44  ;;  %v3968_v62 = vadd.f32 %v12428_v38, %v16480_v15 }
 0xf1c   :  { %v3959_v35 = vpop.f32.mrf.mxu0 }
 0xf1d   :  { %v4017_v22 = vmul.f32 0.044715, %v4001_v21  ;;  %v3999_v28 = vmul.f32 %v3983_v6, %v3957_v44  ;;  %v3986_v52 = vmul.f32 %v3968_v62, %v3968_v62  ;;  %v3960_v59 = vadd.f32 %v16480_v15, %v3959_v35 }
 0xf1f   :  { %v4033_v51 = vadd.f32 %v4017_v22, %v3965_v63  ;;  %v4015_v50 = vmul.f32 0.044715, %v3999_v28  ;;  %v4002_v12 = vmul.f32 %v3986_v52, %v3968_v62  ;;  %v3984_v4 = vmul.f32 %v3960_v59, %v3960_v59 }
 0xf21   :  { %v4049_v14 = vmul.f32 0.7978846, %v4033_v51  ;;  %v4031_v19 = vadd.f32 %v4015_v50, %v3957_v44  ;;  %v4018_v3 = vmul.f32 0.044715, %v4002_v12  ;;  %v4000_v39 = vmul.f32 %v3984_v4, %v3960_v59  ;;  %v11596_v51 = vld [vmem:[%s18726_s15] ss:$0 sm:$0xff] }
 0xf22   :  { %s18747_s15 = sld [smem:[#allocation88_spill]] }
 0xf23   :  { %v4047_v40 = vmul.f32 0.7978846, %v4031_v19  ;;  %v4034_v46 = vadd.f32 %v4018_v3, %v3968_v62  ;;  %v4016_v42 = vmul.f32 0.044715, %v4000_v39  ;;  %13633 = vtanh.f32 %v4049_v14 }
 0xf25   :  { %13635 = vtanh.f32 %v4047_v40  ;;  %v4050_v18 = vmul.f32 0.7978846, %v4034_v46  ;;  %v4032_v54 = vadd.f32 %v4016_v42, %v3960_v59 }
 0xf27   :  { %13637 = vtanh.f32 %v4050_v18  ;;  %v4048_v17 = vmul.f32 0.7978846, %v4032_v54 }
 0xf29   :  { %13639 = vtanh.f32 %v4048_v17 }
 0xf30   :  { %v13634_v29 = vpop.eup %13633 }
 0xf31   :  { %v4081_v8 = vadd.f32 1.0, %v13634_v29 }
 0xf32   :  { %v13636_v15 = vpop.eup %13635 }
 0xf33   :  { %v4079_v36 = vadd.f32 1.0, %v13636_v15  ;;  %v4097_v2 = vmul.f32 0.5, %v4081_v8 }
 0xf34   :  { %v13638_v30 = vpop.eup %13637 }
 0xf35   :  { %v4082_v25 = vadd.f32 1.0, %v13638_v30  ;;  %v4095_v31 = vmul.f32 0.5, %v4079_v36  ;;  %v4113_v26 = vmul.f32 %v4097_v2, %v3965_v63  ;;  %v4290_v2 = vld [vmem:[%s18725_s29 + $0x30] sm:$0xff] }
 0xf36   :  { %v13640_v56 = vpop.eup %13639 }
 0xf37   :  { %v4098_v61 = vmul.f32 0.5, %v4082_v25  ;;  %v4080_v53 = vadd.f32 1.0, %v13640_v56  ;;  %v4111_v27 = vmul.f32 %v4095_v31, %v3957_v44  ;;  %v4288_v31 = vld [vmem:[%s18725_s29 + $0x20] sm:$0xff] }
 0xf39   :  { %v4096_v43 = vmul.f32 0.5, %v4080_v53  ;;  %v4114_v10 = vmul.f32 %v4098_v61, %v3968_v62 }
 0xf3b   :  { %v4112_v24 = vmul.f32 %v4096_v43, %v3960_v59  ;;  %v4122_v58 = vpack.c.bf16 %v4114_v10, %v4113_v26  ;;  %v4291_v43 = vld [vmem:[%s18725_s29 + $0x38] sm:$0xff]  ;;  %v4292_v10 = vld [vmem:[%s18725_s29 + $0x40] sm:$0xff] }
 0xf3c   :  { %v4295_v26 = vld [vmem:[%s18725_s29 + $0x58] sm:$0xff] }
 0xf3d   :  { %v4121_v9 = vpack.c.bf16 %v4112_v24, %v4111_v27  ;;  %v4293_v27 = vld [vmem:[%s18725_s29 + $0x48] sm:$0xff]  ;;  %v4294_v24 = vld [vmem:[%s18725_s29 + $0x50] sm:$0xff] }
 0xf3f   :  { %12445 = vmatprep.mubr.msk.bf16.mxu1 %vm4146_vm4, %v4121_v9  ;;  %v4296_v9 = vld [vmem:[%s18725_s29 + $0x60] sm:$0xff] }
 0xf40   :  { %12446 = vmatmul.mubr.msk.bf16.gmra.mxu1 %vm4146_vm4, %v4122_v58  ;;  %v4297_v58 = vld [vmem:[%s18725_s29 + $0x68] sm:$0xff] }
 0xfaf   :  { %v12435_v32 = vpop.f32.mrf.mxu1 }
 0xfb0   :  { %v4214_v56 = vadd.f32 %v12435_v32, %v11596_v51  ;;  %v4299_v32 = vld [vmem:[%s18725_s29 + $0x78] sm:$0xff] }
 0xfb1   :  { %v16591_v11 = vpop.f32.mrf.mxu1 }
 0xfb2   :  { %v4206_v53 = vadd.f32 %v11596_v51, %v16591_v11 }
 0xfb3   :  { %v12436_v47 = vpop.f32.mrf.mxu1 }
 0xfb4   :  { %v4217_v25 = vadd.f32 %v12436_v47, %v11596_v51 }
 0xfb5   :  { %v16593_v38 = vpop.f32.mrf.mxu1 }
 0xfb6   :  { %v4209_v61 = vadd.f32 %v11596_v51, %v16593_v38 }
 0xfb8   :  { %v12439_v21 = vpop.f32.mrf.mxu1 }
 0xfb9   :  { %v4230_v36 = vadd.f32 %v12439_v21, %v11596_v51 }
 0xfba   :  { %v4221_v6 = vpop.f32.mrf.mxu1 }
 0xfbb   :  { %v4222_v8 = vadd.f32 %v11596_v51, %v4221_v6 }
 0xfbc   :  { %v12440_v44 = vpop.f32.mrf.mxu1 }
 0xfbd   :  { %v4233_v15 = vadd.f32 %v12440_v44, %v11596_v51 }
 0xfbe   :  { %v4224_v62 = vpop.f32.mrf.mxu1 }
 0xfbf   :  { %v4225_v30 = vadd.f32 %v11596_v51, %v4224_v62 }
 0xfc0   :  { %v12443_v63 = vpop.f32.mrf.mxu1 }
 0xfc1   :  { %v4246_v18 = vadd.f32 %v12443_v63, %v11596_v51 }
 0xfc2   :  { %v4237_v35 = vpop.f32.mrf.mxu1 }
 0xfc4   :  { %v12444_v22 = vpop.f32.mrf.mxu1 }
 0xfc5   :  { %v4249_v46 = vadd.f32 %v12444_v22, %v11596_v51 }
 0xfc6   :  { %v4240_v28 = vpop.f32.mrf.mxu1 }
 0xfc7   :  { %v4279_v17 = vadd.f32 %v4249_v46, %v16286_v48  ;;  %v4241_v29 = vadd.f32 %v11596_v51, %v4240_v28  ;;  %v4275_v48 = vadd.f32 %v4233_v15, %v16262_v5  ;;  %v4271_v5 = vadd.f32 %v4217_v25, %v16238_v16 }
 0xfc8   :  { %v4268_v16 = vadd.f32 %v4206_v53, %v16225_v0  ;;  %v4289_v0 = vld [vmem:[%s18725_s29 + $0x28] sm:$0xff] }
0x1000   :  { %v12447_v52 = vpop.f32.mrf.mxu1 }
0x1001   :  { %v4262_v12 = vadd.f32 %v12447_v52, %v11596_v51 }
0x1002   :  { %v4253_v59 = vpop.f32.mrf.mxu1 }
0x1003   :  { %v4282_v39 = vadd.f32 %v4262_v12, %v16300_v33  ;;  %v4254_v40 = vadd.f32 %v11596_v51, %v4253_v59  ;;  %v4278_v33 = vadd.f32 %v4246_v18, %v16281_v7  ;;  %v4274_v7 = vadd.f32 %v4230_v36, %v16257_v60 }
0x1004   :  { %v12448_v50 = vpop.f32.mrf.mxu1  ;;  %v4270_v60 = vadd.f32 %v4214_v56, %v16228_v55  ;;  %v4286_v55 = vld [vmem:[%s18725_s29 + $0x10] sm:$0xff] }
0x1005   :  { %v4265_v4 = vadd.f32 %v12448_v50, %v11596_v51  ;;  %v4280_v54 = vadd.f32 %v4254_v40, %v16297_v23 }
0x1006   :  { %v4256_v14 = vpop.f32.mrf.mxu1 }
0x1007   :  { %v4283_v19 = vadd.f32 %v4265_v4, %v16310_v34  ;;  %v4257_v3 = vadd.f32 %v11596_v51, %v4256_v14  ;;  %v4238_v34 = vadd.f32 %v11596_v51, %v4237_v35 }
0x1009   :  { %12449 = vmatprep.subr.mxu0 %v4283_v19  ;;  %v4281_v42 = vadd.f32 %v4257_v3, %v16307_v57  ;;  %v4277_v57 = vadd.f32 %v4241_v29, %v16278_v37  ;;  %v4276_v23 = vadd.f32 %v4238_v34, %v16269_v13  ;;  %v4273_v37 = vadd.f32 %v4225_v30, %v16254_v1  ;;  %v4285_v1 = vld [vmem:[%s18725_s29 + $0x8] sm:$0xff] }
0x100a   :  { %12450 = vmatpush3.msra.mxu0 %v4283_v19  ;;  %v4272_v13 = vadd.f32 %v4222_v8, %v16247_v41  ;;  %v4269_v41 = vadd.f32 %v4209_v61, %v16235_v20  ;;  %v4287_v20 = vld [vmem:[%s18725_s29 + $0x18] sm:$0xff]  ;;  %s14665_s29 = smov 40  }
0x100b   :  { %12451 = vmatprep.subr.mxu0 %v4282_v39 }
0x100c   :  { %12452 = vmatpush3.msra.mxu0 %v4282_v39 }
0x100d   :  { %12453 = vmatprep.subr.mxu0 %v4281_v42 }
0x100e   :  { %12454 = vmatpush3.msra.mxu0 %v4281_v42 }
0x100f   :  { %12455 = vmatprep.subr.mxu0 %v4280_v54 }
0x1010   :  { %12456 = vmatpush3.msra.mxu0 %v4280_v54 }
0x1011   :  { %12457 = vmatprep.subr.mxu0 %v4279_v17 }
0x1012   :  { %12458 = vmatpush3.msra.mxu0 %v4279_v17 }
0x1013   :  { %12459 = vmatprep.subr.mxu0 %v4278_v33 }
0x1014   :  { %12460 = vmatpush3.msra.mxu0 %v4278_v33 }
0x1015   :  { %12461 = vmatprep.subr.mxu0 %v4277_v57 }
0x1016   :  { %12462 = vmatpush3.msra.mxu0 %v4277_v57 }
0x1017   :  { %12463 = vmatprep.subr.mxu0 %v4276_v23 }
0x1018   :  { %12464 = vmatpush3.msra.mxu0 %v4276_v23 }
0x1019   :  { %12465 = vmatprep.subr.mxu0 %v4275_v48 }
0x101a   :  { %12466 = vmatpush3.msra.mxu0 %v4275_v48 }
0x101b   :  { %12467 = vmatprep.subr.mxu0 %v4274_v7 }
0x101c   :  { %12468 = vmatpush3.msra.mxu0 %v4274_v7 }
0x101d   :  { %12469 = vmatprep.subr.mxu0 %v4273_v37 }
0x101e   :  { %12470 = vmatpush3.msra.mxu0 %v4273_v37 }
0x101f   :  { %12471 = vmatprep.subr.mxu0 %v4272_v13 }
0x1020   :  { %12472 = vmatpush3.msra.mxu0 %v4272_v13 }
0x1021   :  { %12473 = vmatprep.subr.mxu0 %v4271_v5 }
0x1022   :  { %12474 = vmatpush3.msra.mxu0 %v4271_v5 }
0x1023   :  { %12475 = vmatprep.subr.mxu0 %v4270_v60 }
0x1024   :  { %12476 = vmatpush3.msra.mxu0 %v4270_v60 }
0x1025   :  { %12477 = vmatprep.subr.mxu0 %v4269_v41 }
0x1026   :  { %12478 = vmatpush3.msra.mxu0 %v4269_v41 }
0x1027   :  { %12479 = vmatprep.subr.mxu0 %v4268_v16 }
0x1028   :  { %12480 = vmatpush3.msra.mxu0 %v4268_v16 }
0x1029   :  { %12482 = vmatmul.mubr.f32.vlgmr.msra.gmra.mxu0 %v4285_v1  ;;  %12523 = vmatprep.subr.bf16.mxu0 %v18714_v49 }
0x102a   :  { %12484 = vmatprep.mubr.f32.mxu0 %v4286_v55 }
0x102d   :  { %12485 = vmatmul.mubr.f32.gmra.mxu0 %v4287_v20 }
0x102e   :  { %12487 = vmatprep.mubr.f32.mxu0 %v4288_v31 }
0x1031   :  { %12488 = vmatmul.mubr.f32.gmra.mxu0 %v4289_v0 }
0x1032   :  { %12490 = vmatprep.mubr.f32.mxu0 %v4290_v2 }
0x1035   :  { %12491 = vmatmul.mubr.f32.gmra.mxu0 %v4291_v43 }
0x1036   :  { %12493 = vmatprep.mubr.f32.mxu0 %v4292_v10 }
0x1039   :  { %12494 = vmatmul.mubr.f32.gmra.mxu0 %v4293_v27 }
0x103a   :  { %12496 = vmatprep.mubr.f32.mxu0 %v4294_v24 }
0x103d   :  { %12497 = vmatmul.mubr.f32.gmra.mxu0 %v4295_v26 }
0x103e   :  { %12499 = vmatprep.mubr.f32.mxu0 %v4296_v9 }
0x1041   :  { %12500 = vmatmul.mubr.f32.gmra.mxu0 %v4297_v58 }
0x1042   :  { %12502 = vmatprep.mubr.f32.mxu0 %v4298_v45 }
0x1045   :  { %12503 = vmatmul.mubr.f32.gmra.mxu0 %v4299_v32 }
0x1046   :  { %12525 = vmatprep.mubr.msk.bf16.mxu0 %vm14651_vm2, %v18714_v49 }
0x10e9   :  { %v16632_v11 = vpop.f32.mrf.mxu0 }
0x10ea   :  { %v4450_v47 = vsel %vm708_vm1, %v16632_v11, 0.0 }
0x10eb   :  { %4451 = vadd.xlane.f32.xlu1 %v4450_v47  ;;  %v16636_v38 = vpop.f32.mrf.mxu0 }
0x10ec   :  { %v4447_v21 = vsel %vm708_vm1, %v16636_v38, 0.0 }
0x10ed   :  { %4448 = vadd.xlane.f32.xlu0 %v4447_v21  ;;  %v16640_v6 = vpop.f32.mrf.mxu0 }
0x10ee   :  { %v4456_v44 = vsel %vm708_vm1, %v16640_v6, 0.0 }
0x10ef   :  { %4457 = vadd.xlane.f32.xlu1 %v4456_v44  ;;  %v16644_v62 = vpop.f32.mrf.mxu0 }
0x10f0   :  { %v4453_v63 = vsel %vm708_vm1, %v16644_v62, 0.0 }
0x10f1   :  { %4454 = vadd.xlane.f32.xlu0 %v4453_v63  ;;  %v16648_v35 = vpop.f32.mrf.mxu0 }
0x10f2   :  { %v4462_v22 = vsel %vm708_vm1, %v16648_v35, 0.0 }
0x10f3   :  { %4463 = vadd.xlane.f32.xlu1 %v4462_v22  ;;  %v16652_v28 = vpop.f32.mrf.mxu0 }
0x10f4   :  { %v4459_v52 = vsel %vm708_vm1, %v16652_v28, 0.0 }
0x10f5   :  { %4460 = vadd.xlane.f32.xlu0 %v4459_v52  ;;  %v16656_v59 = vpop.f32.mrf.mxu0 }
0x10f6   :  { %v4468_v51 = vsel %vm708_vm1, %v16656_v59, 0.0 }
0x10f7   :  { %4469 = vadd.xlane.f32.xlu1 %v4468_v51  ;;  %v16660_v50 = vpop.f32.mrf.mxu0 }
0x10f8   :  { %v4465_v12 = vsel %vm708_vm1, %v16660_v50, 0.0 }
0x10f9   :  { %4466 = vadd.xlane.f32.xlu0 %v4465_v12  ;;  %v16664_v4 = vpop.f32.mrf.mxu0 }
0x10fa   :  { %v4474_v14 = vsel %vm708_vm1, %v16664_v4, 0.0 }
0x10fb   :  { %4475 = vadd.xlane.f32.xlu1 %v4474_v14  ;;  %v16668_v19 = vpop.f32.mrf.mxu0 }
0x10fc   :  { %v4471_v3 = vsel %vm708_vm1, %v16668_v19, 0.0 }
0x10fd   :  { %4472 = vadd.xlane.f32.xlu0 %v4471_v3  ;;  %v16672_v39 = vpop.f32.mrf.mxu0 }
0x10fe   :  { %v4480_v40 = vsel %vm708_vm1, %v16672_v39, 0.0 }
0x10ff   :  { %4481 = vadd.xlane.f32.xlu1 %v4480_v40  ;;  %v16676_v46 = vpop.f32.mrf.mxu0 }
0x1100   :  { %v4477_v42 = vsel %vm708_vm1, %v16676_v46, 0.0 }
0x1101   :  { %4478 = vadd.xlane.f32.xlu0 %v4477_v42  ;;  %v16680_v18 = vpop.f32.mrf.mxu0 }
0x1102   :  { %18727 = vst [vmem:[#allocation100_spill] sm:$0xff] %v16680_v18  ;;  %v4486_v54 = vsel %vm708_vm1, %v16680_v18, 0.0 }
0x1103   :  { %4487 = vadd.xlane.f32.xlu1 %v4486_v54  ;;  %v16684_v17 = vpop.f32.mrf.mxu0 }
0x1104   :  { %18728 = vst [vmem:[#allocation99_spill] sm:$0xff] %v16684_v17  ;;  %v4483_v29 = vsel %vm708_vm1, %v16684_v17, 0.0 }
0x1105   :  { %4484 = vadd.xlane.f32.xlu0 %v4483_v29  ;;  %v16688_v33 = vpop.f32.mrf.mxu0 }
0x1106   :  { %18729 = vst [vmem:[#allocation101_spill] sm:$0xff] %v16688_v33  ;;  %v4492_v34 = vsel %vm708_vm1, %v16688_v33, 0.0 }
0x1107   :  { %4493 = vadd.xlane.f32.xlu1 %v4492_v34  ;;  %v16692_v15 = vpop.f32.mrf.mxu0 }
0x1108   :  { %18730 = vst [vmem:[#allocation102_spill] sm:$0xff] %v16692_v15  ;;  %v4489_v57 = vsel %vm708_vm1, %v16692_v15, 0.0 }
0x1109   :  { %4490 = vadd.xlane.f32.xlu0 %v4489_v57 }
0x1174   :  { %v4452_v36 = vpop.xlane.xlu1 %4451 }
0x1175   :  { %v4496_v23 = vmul.f32 0.0625, %v4452_v36 }
0x1176   :  { %v4449_v48 = vpop.xlane.xlu0 %4448 }
0x1177   :  { %v16697_v30 = vsub.f32 %v16632_v11, %v4496_v23  ;;  %v4495_v7 = vmul.f32 0.0625, %v4449_v48 }
0x1178   :  { %v4458_v8 = vpop.xlane.xlu1 %4457 }
0x1179   :  { %v16700_v25 = vsub.f32 %v16636_v38, %v4495_v7  ;;  %v4498_v37 = vmul.f32 0.0625, %v4458_v8  ;;  %v4528_v56 = vmul.f32 %v16697_v30, %v16697_v30 }
0x117a   :  { %v4455_v13 = vpop.xlane.xlu0 %4454 }
0x117b   :  { %v16705_v5 = vsub.f32 %v16640_v6, %v4498_v37  ;;  %v4497_v61 = vmul.f32 0.0625, %v4455_v13  ;;  %v4546_v60 = vsel %vm708_vm1, %v4528_v56, 0.0  ;;  %v4527_v53 = vmul.f32 %v16700_v25, %v16700_v25 }
0x117c   :  { %v4464_v41 = vpop.xlane.xlu1 %4463  ;;  %4547 = vadd.xlane.f32.xlu1 %v4546_v60 }
0x117d   :  { %v16711_v16 = vsub.f32 %v16644_v62, %v4497_v61  ;;  %v4500_v1 = vmul.f32 0.0625, %v4464_v41  ;;  %v4543_v55 = vsel %vm708_vm1, %v4527_v53, 0.0  ;;  %v4530_v20 = vmul.f32 %v16705_v5, %v16705_v5 }
0x117e   :  { %v4461_v31 = vpop.xlane.xlu0 %4460  ;;  %4544 = vadd.xlane.f32.xlu0 %v4543_v55 }
0x117f   :  { %v16717_v0 = vsub.f32 %v16648_v35, %v4500_v1  ;;  %v4499_v2 = vmul.f32 0.0625, %v4461_v31  ;;  %v4552_v43 = vsel %vm708_vm1, %v4530_v20, 0.0  ;;  %v4529_v10 = vmul.f32 %v16711_v16, %v16711_v16 }
0x1180   :  { %v4470_v27 = vpop.xlane.xlu1 %4469  ;;  %4553 = vadd.xlane.f32.xlu1 %v4552_v43 }
0x1181   :  { %v16723_v24 = vsub.f32 %v16652_v28, %v4499_v2  ;;  %v4502_v26 = vmul.f32 0.0625, %v4470_v27  ;;  %v4549_v9 = vsel %vm708_vm1, %v4529_v10, 0.0  ;;  %v4532_v58 = vmul.f32 %v16717_v0, %v16717_v0 }
0x1182   :  { %v4467_v45 = vpop.xlane.xlu0 %4466  ;;  %4550 = vadd.xlane.f32.xlu0 %v4549_v9 }
0x1183   :  { %v16729_v32 = vsub.f32 %v16656_v59, %v4502_v26  ;;  %v4501_v47 = vmul.f32 0.0625, %v4467_v45  ;;  %v4558_v21 = vsel %vm708_vm1, %v4532_v58, 0.0  ;;  %v4531_v44 = vmul.f32 %v16723_v24, %v16723_v24 }
0x1184   :  { %v4476_v63 = vpop.xlane.xlu1 %4475  ;;  %4559 = vadd.xlane.f32.xlu1 %v4558_v21 }
0x1185   :  { %v16735_v22 = vsub.f32 %v16660_v50, %v4501_v47  ;;  %v4504_v52 = vmul.f32 0.0625, %v4476_v63  ;;  %v4555_v51 = vsel %vm708_vm1, %v4531_v44, 0.0  ;;  %v4534_v12 = vmul.f32 %v16729_v32, %v16729_v32 }
0x1186   :  { %v4473_v14 = vpop.xlane.xlu0 %4472  ;;  %4556 = vadd.xlane.f32.xlu0 %v4555_v51 }
0x1187   :  { %v16741_v3 = vsub.f32 %v16664_v4, %v4504_v52  ;;  %v4503_v40 = vmul.f32 0.0625, %v4473_v14  ;;  %v4564_v42 = vsel %vm708_vm1, %v4534_v12, 0.0  ;;  %v4533_v54 = vmul.f32 %v16735_v22, %v16735_v22 }
0x1188   :  { %v4482_v29 = vpop.xlane.xlu1 %4481  ;;  %4565 = vadd.xlane.f32.xlu1 %v4564_v42  ;;  %v13356_v42 = vld [vmem:[%s18731_s20] sm:$0xff]   ;;  %s14666_s20 = smov 24  }
0x1189   :  { %v16747_v34 = vsub.f32 %v16668_v19, %v4503_v40  ;;  %v4506_v57 = vmul.f32 0.0625, %v4482_v29  ;;  %v4561_v36 = vsel %vm708_vm1, %v4533_v54, 0.0  ;;  %v4536_v23 = vmul.f32 %v16741_v3, %v16741_v3  ;;  %12505 = vmatprep.subr.bf16.mxu1 %v13356_v42 }
0x118a   :  { %v4479_v48 = vpop.xlane.xlu0 %4478  ;;  %4562 = vadd.xlane.f32.xlu0 %v4561_v36  ;;  %12506 = vmatpush3.bf16.msra.mxu1 %v13356_v42 }
0x118b   :  { %v16753_v7 = vsub.f32 %v16672_v39, %v4506_v57  ;;  %v4505_v8 = vmul.f32 0.0625, %v4479_v48  ;;  %v4570_v37 = vsel %vm708_vm1, %v4536_v23, 0.0  ;;  %v4535_v56 = vmul.f32 %v16747_v34, %v16747_v34  ;;  %12547 = vmatprep.subr.bf16.mxu1 %v18714_v49 }
0x118c   :  { %v4488_v13 = vpop.xlane.xlu1 %4487  ;;  %4571 = vadd.xlane.f32.xlu1 %v4570_v37 }
0x118d   :  { %v16759_v61 = vsub.f32 %v16676_v46, %v4505_v8  ;;  %v4508_v60 = vmul.f32 0.0625, %v4488_v13  ;;  %v4567_v53 = vsel %vm708_vm1, %v4535_v56, 0.0  ;;  %v4538_v41 = vmul.f32 %v16753_v7, %v16753_v7 }
0x118e   :  { %v4485_v1 = vpop.xlane.xlu0 %4484  ;;  %4568 = vadd.xlane.f32.xlu0 %v4567_v53 }
0x118f   :  { %v16765_v55 = vsub.f32 %v16680_v18, %v4508_v60  ;;  %v4507_v20 = vmul.f32 0.0625, %v4485_v1  ;;  %v4576_v31 = vsel %vm708_vm1, %v4538_v41, 0.0  ;;  %v4537_v2 = vmul.f32 %v16759_v61, %v16759_v61  ;;  %v4870_v18 = vld [vmem:[%s18732_s19 + $0xd8] sm:$0xff] }
0x1190   :  { %4577 = vadd.xlane.f32.xlu1 %v4576_v31  ;;  %v4494_v43 = vpop.xlane.xlu1 %4493 }
0x1191   :  { %v16771_v10 = vsub.f32 %v16684_v17, %v4507_v20  ;;  %v4510_v27 = vmul.f32 0.0625, %v4494_v43  ;;  %v4573_v26 = vsel %vm708_vm1, %v4537_v2, 0.0  ;;  %v4540_v9 = vmul.f32 %v16765_v55, %v16765_v55 }
0x1192   :  { %4574 = vadd.xlane.f32.xlu0 %v4573_v26  ;;  %v4491_v58 = vpop.xlane.xlu0 %4490 }
0x1193   :  { %v16777_v45 = vsub.f32 %v16688_v33, %v4510_v27  ;;  %v4509_v47 = vmul.f32 0.0625, %v4491_v58  ;;  %v4582_v21 = vsel %vm708_vm1, %v4540_v9, 0.0  ;;  %v4539_v44 = vmul.f32 %v16771_v10, %v16771_v10 }
0x1194   :  { %4583 = vadd.xlane.f32.xlu1 %v4582_v21 }
0x1195   :  { %v16783_v63 = vsub.f32 %v16692_v15, %v4509_v47  ;;  %v4579_v52 = vsel %vm708_vm1, %v4539_v44, 0.0  ;;  %v4542_v51 = vmul.f32 %v16777_v45, %v16777_v45  ;;  %v4873_v15 = vld [vmem:[%s18732_s19 + $0xf0] sm:$0xff] }
0x1196   :  { %4580 = vadd.xlane.f32.xlu0 %v4579_v52 }
0x1197   :  { %v4588_v12 = vsel %vm708_vm1, %v4542_v51, 0.0  ;;  %v4541_v14 = vmul.f32 %v16783_v63, %v16783_v63 }
0x1198   :  { %4589 = vadd.xlane.f32.xlu1 %v4588_v12 }
0x1199   :  { %v4585_v40 = vsel %vm708_vm1, %v4541_v14, 0.0  ;;  %v16794_v14 = vld [vmem:[#allocation7] ss:$0 sm:$0xff] }
0x119a   :  { %4586 = vadd.xlane.f32.xlu0 %v4585_v40 }
0x1205   :  { %v4548_v54 = vpop.xlane.xlu1 %4547 }
0x1206   :  { %v4592_v29 = vmul.f32 0.0625, %v4548_v54 }
0x1207   :  { %v4545_v57 = vpop.xlane.xlu0 %4544 }
0x1208   :  { %v4608_v36 = vadd.f32 1e-05, %v4592_v29  ;;  %v4591_v23 = vmul.f32 0.0625, %v4545_v57 }
0x1209   :  { %v4554_v48 = vpop.xlane.xlu1 %4553 }
0x120a   :  { %13641 = vrsqrt.f32 %v4608_v36  ;;  %v4607_v8 = vadd.f32 1e-05, %v4591_v23  ;;  %v4594_v37 = vmul.f32 0.0625, %v4554_v48 }
0x120b   :  { %v4551_v56 = vpop.xlane.xlu0 %4550 }
0x120c   :  { %13643 = vrsqrt.f32 %v4607_v8  ;;  %v4610_v13 = vadd.f32 1e-05, %v4594_v37  ;;  %v4593_v60 = vmul.f32 0.0625, %v4551_v56 }
0x120d   :  { %v4560_v53 = vpop.xlane.xlu1 %4559 }
0x120e   :  { %13645 = vrsqrt.f32 %v4610_v13  ;;  %v4609_v41 = vadd.f32 1e-05, %v4593_v60  ;;  %v4596_v1 = vmul.f32 0.0625, %v4560_v53  ;;  %v16799_v13 = vld [vmem:[#allocation5] ss:$0 sm:$0xff] }
0x120f   :  { %v4557_v20 = vpop.xlane.xlu0 %4556 }
0x1210   :  { %13647 = vrsqrt.f32 %v4609_v41  ;;  %v4612_v31 = vadd.f32 1e-05, %v4596_v1  ;;  %v4595_v2 = vmul.f32 0.0625, %v4557_v20 }
0x1211   :  { %v4566_v43 = vpop.xlane.xlu1 %4565 }
0x1212   :  { %13649 = vrsqrt.f32 %v4612_v31  ;;  %v4611_v27 = vadd.f32 1e-05, %v4595_v2  ;;  %v4598_v26 = vmul.f32 0.0625, %v4566_v43 }
0x1213   :  { %v4563_v9 = vpop.xlane.xlu0 %4562 }
0x1214   :  { %13651 = vrsqrt.f32 %v4611_v27  ;;  %v4614_v58 = vadd.f32 1e-05, %v4598_v26  ;;  %v4597_v47 = vmul.f32 0.0625, %v4563_v9 }
0x1215   :  { %v4572_v21 = vpop.xlane.xlu1 %4571 }
0x1216   :  { %13653 = vrsqrt.f32 %v4614_v58  ;;  %v4613_v44 = vadd.f32 1e-05, %v4597_v47  ;;  %v4600_v52 = vmul.f32 0.0625, %v4572_v21 }
0x1217   :  { %v13642_v51 = vpop.eup %13641  ;;  %v4569_v12 = vpop.xlane.xlu0 %4568 }
0x1218   :  { %13655 = vrsqrt.f32 %v4613_v44  ;;  %v4616_v40 = vadd.f32 1e-05, %v4600_v52  ;;  %v4599_v42 = vmul.f32 0.0625, %v4569_v12  ;;  %v4640_v54 = vmul.f32 %v13642_v51, %v16697_v30 }
0x1219   :  { %v13644_v29 = vpop.eup %13643  ;;  %v4578_v57 = vpop.xlane.xlu1 %4577 }
0x121a   :  { %13657 = vrsqrt.f32 %v4616_v40  ;;  %v4615_v36 = vadd.f32 1e-05, %v4599_v42  ;;  %v4602_v23 = vmul.f32 0.0625, %v4578_v57  ;;  %v4639_v48 = vmul.f32 %v13644_v29, %v16700_v25 }
0x121b   :  { %v13646_v8 = vpop.eup %13645  ;;  %v4575_v37 = vpop.xlane.xlu0 %4574  ;;  %v4662_v56 = vmul.f32 %v16794_v14, %v4640_v54 }
0x121c   :  { %v4642_v60 = vmul.f32 %v13646_v8, %v16705_v5  ;;  %13659 = vrsqrt.f32 %v4615_v36  ;;  %v4618_v53 = vadd.f32 1e-05, %v4602_v23  ;;  %v4601_v41 = vmul.f32 0.0625, %v4575_v37 }
0x121d   :  { %v13648_v1 = vpop.eup %13647  ;;  %v4584_v30 = vpop.xlane.xlu1 %4583  ;;  %v4661_v20 = vmul.f32 %v16794_v14, %v4639_v48  ;;  %v4684_v5 = vadd.f32 %v16799_v13, %v4662_v56 }
0x121e   :  { %v4664_v31 = vmul.f32 %v16794_v14, %v4642_v60  ;;  %v4641_v2 = vmul.f32 %v13648_v1, %v16711_v16  ;;  %13661 = vrsqrt.f32 %v4618_v53  ;;  %v4617_v25 = vadd.f32 1e-05, %v4601_v41 }
0x121f   :  { %v13650_v43 = vpop.eup %13649  ;;  %v4604_v27 = vmul.f32 0.0625, %v4584_v30  ;;  %v4581_v26 = vpop.xlane.xlu0 %4580  ;;  %v4683_v9 = vadd.f32 %v16799_v13, %v4661_v20 }
0x1220   :  { %v4663_v58 = vmul.f32 %v16794_v14, %v4641_v2  ;;  %13663 = vrsqrt.f32 %v4617_v25  ;;  %v4603_v47 = vmul.f32 0.0625, %v4581_v26  ;;  %v4686_v44 = vadd.f32 %v16799_v13, %v4664_v31 }
0x1221   :  { %v13652_v21 = vpop.eup %13651  ;;  %v4620_v52 = vadd.f32 1e-05, %v4604_v27  ;;  %v4590_v51 = vpop.xlane.xlu1 %4589  ;;  %v4699_v12 = vpack.c.bf16 %v4684_v5, %v4683_v9  ;;  %v4644_v16 = vmul.f32 %v13650_v43, %v16717_v0 }
0x1222   :  { %v4685_v40 = vadd.f32 %v16799_v13, %v4663_v58  ;;  %v4619_v42 = vadd.f32 1e-05, %v4603_v47  ;;  %v4606_v54 = vmul.f32 0.0625, %v4590_v51  ;;  %v4643_v29 = vmul.f32 %v13652_v21, %v16723_v24 }
0x1223   :  { %v13654_v57 = vpop.eup %13653  ;;  %13665 = vrsqrt.f32 %v4620_v52  ;;  %12507 = vmatprep.mubr.msk.bf16.mxu1 %vm708_vm1, %v4699_v12  ;;  %v4587_v36 = vpop.xlane.xlu0 %4586  ;;  %v4666_v23 = vmul.f32 %v16794_v14, %v4644_v16 }
0x1224   :  { %v4700_v48 = vpack.c.bf16 %v4686_v44, %v4685_v40  ;;  %v4646_v8 = vmul.f32 %v13654_v57, %v16729_v32  ;;  %13667 = vrsqrt.f32 %v4619_v42  ;;  %v4622_v37 = vadd.f32 1e-05, %v4606_v54 }
0x1225   :  { %v13656_v56 = vpop.eup %13655  ;;  %v4605_v0 = vmul.f32 0.0625, %v4587_v36  ;;  %v4665_v60 = vmul.f32 %v16794_v14, %v4643_v29  ;;  %v4688_v20 = vadd.f32 %v16799_v13, %v4666_v23 }
0x1226   :  { %v4645_v53 = vmul.f32 %v13656_v56, %v16735_v22  ;;  %13669 = vrsqrt.f32 %v4622_v37  ;;  %12508 = vmatmul.mubr.msk.bf16.vlgmr.msra.gmra.mxu1 %vm708_vm1, %v4700_v48  ;;  %v4668_v24 = vmul.f32 %v16794_v14, %v4646_v8 }
0x1227   :  { %v13658_v41 = vpop.eup %13657  ;;  %v4621_v1 = vadd.f32 1e-05, %v4605_v0  ;;  %v4687_v30 = vadd.f32 %v16799_v13, %v4665_v60 }
0x1228   :  { %v4667_v32 = vmul.f32 %v16794_v14, %v4645_v53  ;;  %v4648_v31 = vmul.f32 %v13658_v41, %v16741_v3  ;;  %v4690_v43 = vadd.f32 %v16799_v13, %v4668_v24 }
0x1229   :  { %v13660_v2 = vpop.eup %13659  ;;  %13671 = vrsqrt.f32 %v4621_v1  ;;  %v4701_v25 = vpack.c.bf16 %v4688_v20, %v4687_v30  ;;  %v16856_v1 = vld [vmem:[#allocation13] ss:$0 sm:$0xff] }
0x122a   :  { %v4689_v22 = vadd.f32 %v16799_v13, %v4667_v32  ;;  %v4647_v27 = vmul.f32 %v13660_v2, %v16747_v34  ;;  %v4670_v26 = vmul.f32 %v16794_v14, %v4648_v31 }
0x122b   :  { %v13662_v9 = vpop.eup %13661  ;;  %12511 = vmatprep.mubr.msk.bf16.mxu1 %vm708_vm1, %v4701_v25 }
0x122c   :  { %v4650_v5 = vmul.f32 %v13662_v9, %v16753_v7  ;;  %v4702_v58 = vpack.c.bf16 %v4690_v43, %v4689_v22  ;;  %v4669_v47 = vmul.f32 %v16794_v14, %v4647_v27  ;;  %v4692_v52 = vadd.f32 %v16799_v13, %v4670_v26 }
0x122d   :  { %v13664_v3 = vpop.eup %13663 }
0x122e   :  { %v4649_v21 = vmul.f32 %v13664_v3, %v16759_v61  ;;  %12512 = vmatmul.mubr.msk.bf16.gmra.mxu1 %vm708_vm1, %v4702_v58  ;;  %v4691_v44 = vadd.f32 %v16799_v13, %v4669_v47  ;;  %v4672_v34 = vmul.f32 %v16794_v14, %v4650_v5 }
0x1230   :  { %v13666_v51 = vpop.eup %13665  ;;  %v4703_v12 = vpack.c.bf16 %v4692_v52, %v4691_v44  ;;  %v4671_v16 = vmul.f32 %v16794_v14, %v4649_v21  ;;  %v4694_v61 = vadd.f32 %v16799_v13, %v4672_v34 }
0x1231   :  { %v13668_v40 = vpop.eup %13667  ;;  %v4652_v7 = vmul.f32 %v13666_v51, %v16765_v55 }
0x1232   :  { %12515 = vmatprep.mubr.msk.bf16.mxu1 %vm708_vm1, %v4703_v12  ;;  %v4693_v42 = vadd.f32 %v16799_v13, %v4671_v16  ;;  %v4651_v54 = vmul.f32 %v13668_v40, %v16771_v10 }
0x1233   :  { %v13670_v29 = vpop.eup %13669  ;;  %v4674_v57 = vmul.f32 %v16794_v14, %v4652_v7 }
0x1234   :  { %v4654_v36 = vmul.f32 %v13670_v29, %v16777_v45  ;;  %v4704_v23 = vpack.c.bf16 %v4694_v61, %v4693_v42  ;;  %v4673_v48 = vmul.f32 %v16794_v14, %v4651_v54 }
0x1235   :  { %v4696_v37 = vadd.f32 %v16799_v13, %v4674_v57 }
0x1236   :  { %v13672_v8 = vpop.eup %13671  ;;  %12516 = vmatmul.mubr.msk.bf16.gmra.mxu1 %vm708_vm1, %v4704_v23  ;;  %v4695_v55 = vadd.f32 %v16799_v13, %v4673_v48  ;;  %v4676_v0 = vmul.f32 %v16794_v14, %v4654_v36 }
0x1237   :  { %v4653_v56 = vmul.f32 %v13672_v8, %v16783_v63 }
0x1238   :  { %v4705_v10 = vpack.c.bf16 %v4696_v37, %v4695_v55  ;;  %v4698_v53 = vadd.f32 %v16799_v13, %v4676_v0 }
0x1239   :  { %v4675_v60 = vmul.f32 %v16794_v14, %v4653_v56 }
0x123a   :  { %12519 = vmatprep.mubr.msk.bf16.mxu1 %vm708_vm1, %v4705_v10 }
0x123b   :  { %v4697_v45 = vadd.f32 %v16799_v13, %v4675_v60 }
0x123d   :  { %v4706_v24 = vpack.c.bf16 %v4698_v53, %v4697_v45 }
0x123f   :  { %12520 = vmatmul.mubr.msk.bf16.gmra.mxu1 %vm708_vm1, %v4706_v24 }
0x1240   :  { %12549 = vmatprep.mubr.msk.bf16.mxu1 %vm14651_vm2, %v18714_v49 }
0x12e6   :  { %v12509_v41 = vpop.f32.mrf.mxu1 }
0x12e7   :  { %v4789_v30 = vadd.f32 %v12509_v41, %v16856_v1 }
0x12e8   :  { %v4780_v63 = vpop.f32.mrf.mxu1 }
0x12e9   :  { %v4781_v14 = vadd.f32 %v16856_v1, %v4780_v63  ;;  %v4877_v2 = vmul.f32 0.35355338, %v4789_v30 }
0x12ea   :  { %v12510_v20 = vpop.f32.mrf.mxu1 }
0x12eb   :  { %v4792_v32 = vadd.f32 %v12510_v20, %v16856_v1  ;;  %v4875_v27 = vmul.f32 0.35355338, %v4781_v14 }
0x12ec   :  { %v4783_v31 = vpop.f32.mrf.mxu1 }
0x12ed   :  { %v4878_v13 = vmul.f32 0.35355338, %v4792_v32  ;;  %v16861_v25 = vpack.c.bf16 %v4792_v32, %v4789_v30  ;;  %v4784_v22 = vadd.f32 %v16856_v1, %v4783_v31 }
0x12ee   :  { %v12513_v43 = vpop.f32.mrf.mxu1 }
0x12ef   :  { %v16864_v26 = vpack.c.bf16 %v4878_v13, %v4877_v2  ;;  %v4876_v9 = vmul.f32 0.35355338, %v4784_v22  ;;  %v16866_v5 = vpack.c.bf16 %v4784_v22, %v4781_v14  ;;  %4958 = vrot.lane.b32.xlu1 %v16861_v25, %s14652_s30  ;;  %v4805_v3 = vadd.f32 %v12513_v43, %v16856_v1 }
0x12f0   :  { %v4796_v58 = vpop.f32.mrf.mxu1 }
0x12f1   :  { %v16870_v47 = vpack.c.bf16 %v4876_v9, %v4875_v27  ;;  %4908 = vrot.lane.b32.xlu0 %v16866_v5, %s14652_s30  ;;  %v4797_v44 = vadd.f32 %v16856_v1, %v4796_v58  ;;  %v4881_v51 = vmul.f32 0.35355338, %v4805_v3 }
0x12f2   :  { %v12514_v21 = vpop.f32.mrf.mxu1 }
0x12f3   :  { %v4808_v52 = vadd.f32 %v12514_v21, %v16856_v1  ;;  %v4879_v7 = vmul.f32 0.35355338, %v4797_v44 }
0x12f4   :  { %v4799_v34 = vpop.f32.mrf.mxu1 }
0x12f5   :  { %v4882_v12 = vmul.f32 0.35355338, %v4808_v52  ;;  %v4800_v16 = vadd.f32 %v16856_v1, %v4799_v34  ;;  %v16888_v8 = vpack.c.bf16 %v4808_v52, %v4805_v3 }
0x12f6   :  { %v12517_v40 = vpop.f32.mrf.mxu1 }
0x12f7   :  { %v16878_v42 = vpack.c.bf16 %v4882_v12, %v4881_v51  ;;  %v4880_v61 = vmul.f32 0.35355338, %v4800_v16  ;;  %v16880_v54 = vpack.c.bf16 %v4800_v16, %v4797_v44  ;;  %v4821_v36 = vadd.f32 %v12517_v40, %v16856_v1 }
0x12f8   :  { %v4812_v29 = vpop.f32.mrf.mxu1 }
0x12f9   :  { %v16882_v57 = vpack.c.bf16 %v4880_v61, %v4879_v7  ;;  %5008 = vrot.lane.b32.xlu1 %v16880_v54, %s14652_s30  ;;  %v4813_v23 = vadd.f32 %v16856_v1, %v4812_v29  ;;  %v4885_v56 = vmul.f32 0.35355338, %v4821_v36 }
0x12fa   :  { %v12518_v48 = vpop.f32.mrf.mxu1 }
0x12fb   :  { %v4824_v55 = vadd.f32 %v12518_v48, %v16856_v1  ;;  %v4883_v60 = vmul.f32 0.35355338, %v4813_v23 }
0x12fc   :  { %v4815_v37 = vpop.f32.mrf.mxu1 }
0x12fd   :  { %v4886_v0 = vmul.f32 0.35355338, %v4824_v55  ;;  %v4816_v10 = vadd.f32 %v16856_v1, %v4815_v37  ;;  %5058 = vrot.lane.b32.xlu1 %v16888_v8, %s14652_s30  ;;  %v16896_v53 = vpack.c.bf16 %v4824_v55, %v4821_v36 }
0x12ff   :  { %v16894_v45 = vpack.c.bf16 %v4886_v0, %v4885_v56  ;;  %v4884_v24 = vmul.f32 0.35355338, %v4816_v10  ;;  %v16898_v41 = vpack.c.bf16 %v4816_v10, %v4813_v23  ;;  %v12521_v63 = vpop.f32.mrf.mxu1 }
0x1300   :  { %v4837_v14 = vadd.f32 %v12521_v63, %v16856_v1 }
0x1301   :  { %v16900_v30 = vpack.c.bf16 %v4884_v24, %v4883_v60  ;;  %v4828_v20 = vpop.f32.mrf.mxu1  ;;  %5158 = vrot.lane.b32.xlu1 %v16896_v53, %s14652_s30  ;;  %5108 = vrot.lane.b32.xlu0 %v16898_v41, %s14652_s30  ;;  %v4843_v24 = vld [vmem:[%s18732_s19] sm:$0xff] }
0x1302   :  { %v4829_v31 = vadd.f32 %v16856_v1, %v4828_v20  ;;  %v4889_v22 = vmul.f32 0.35355338, %v4837_v14 }
0x1303   :  { %v12522_v32 = vpop.f32.mrf.mxu1 }
0x1304   :  { %v4840_v2 = vadd.f32 %v12522_v32, %v16856_v1  ;;  %v4887_v58 = vmul.f32 0.35355338, %v4829_v31  ;;  %v4844_v32 = vld [vmem:[%s18732_s19 + $0x8] sm:$0xff] }
0x1305   :  { %v4831_v13 = vpop.f32.mrf.mxu1 }
0x1306   :  { %v4890_v43 = vmul.f32 0.35355338, %v4840_v2  ;;  %v16909_v27 = vpack.c.bf16 %v4840_v2, %v4837_v14  ;;  %v4832_v9 = vadd.f32 %v16856_v1, %v4831_v13 }
0x1308   :  { %v16912_v3 = vpack.c.bf16 %v4890_v43, %v4889_v22  ;;  %v4888_v21 = vmul.f32 0.35355338, %v4832_v9  ;;  %v16914_v44 = vpack.c.bf16 %v4832_v9, %v4829_v31  ;;  %5258 = vrot.lane.b32.xlu1 %v16909_v27, %s14652_s30  ;;  %v4845_v43 = vld [vmem:[%s18732_s19 + $0x10] sm:$0xff] }
0x130a   :  { %v16918_v52 = vpack.c.bf16 %v4888_v21, %v4887_v58  ;;  %5208 = vrot.lane.b32.xlu0 %v16914_v44, %s14652_s30 }
0x130c   :  { %5538 = vrot.lane.b32.xlu1 %v16861_v25, %s14653_s25 }
0x130e   :  { %5491 = vrot.lane.b32.xlu0 %v16866_v5, %s14653_s25 }
0x1310   :  { %5585 = vrot.lane.b32.xlu1 %v16880_v54, %s14653_s25 }
0x1314   :  { %5632 = vrot.lane.b32.xlu1 %v16888_v8, %s14653_s25 }
0x1361   :  { %v4959_v51 = vpop.permute.xlu1 %4958 }
0x1362   :  { %v4964_v12 = vsel %vm1399_vm3, %v4959_v51, 0 }
0x1363   :  { %v4909_v1 = vpop.permute.xlu0 %4908 }
0x1364   :  { %v4914_v34 = vsel %vm1399_vm3, %v4909_v1, 0 }
0x1365   :  { %12524 = vmatpush3.bf16.xpose.msra.mxu0 %v4914_v34  ;;  %v4846_v34 = vld [vmem:[%s18732_s19 + $0x18] sm:$0xff] }
0x1366   :  { %12529 = vmatprep.subr.bf16.mxu0 %v18714_v49 }
0x136b   :  { %v5009_v16 = vpop.permute.xlu1 %5008 }
0x136c   :  { %12526 = vmatmul.mubr.msk.bf16.vlgmr.msra.gmra.mxu0 %vm1399_vm3, %v16870_v47  ;;  %v5014_v7 = vsel %vm1399_vm3, %v5009_v16, 0 }
0x136d   :  { %12530 = vmatpush3.bf16.xpose.msra.mxu0 %v4964_v12  ;;  %12531 = vmatprep.mubr.msk.bf16.mxu0 %vm14651_vm2, %v18714_v49 }
0x136e   :  { %12535 = vmatprep.subr.bf16.mxu0 %v18714_v49 }
0x136f   :  { %v5059_v29 = vpop.permute.xlu1 %5058 }
0x1370   :  { %v5064_v36 = vsel %vm1399_vm3, %v5059_v29, 0 }
0x1373   :  { %v5109_v40 = vpop.permute.xlu0 %5108  ;;  %v5159_v55 = vpop.permute.xlu1 %5158 }
0x1374   :  { %v5114_v61 = vsel %vm1399_vm3, %v5109_v40, 0  ;;  %12532 = vmatmul.mubr.msk.bf16.vlgmr.msra.gmra.mxu0 %vm1399_vm3, %v16864_v26  ;;  %v5164_v37 = vsel %vm1399_vm3, %v5159_v55, 0 }
0x1375   :  { %12536 = vmatpush3.bf16.xpose.msra.mxu0 %v5014_v7  ;;  %12548 = vmatpush3.bf16.xpose.msra.mxu1 %v5114_v61  ;;  %v4847_v7 = vld [vmem:[%s18732_s19 + $0x20] sm:$0xff] }
0x1376   :  { %12537 = vmatprep.mubr.msk.bf16.mxu0 %vm14651_vm2, %v18714_v49  ;;  %12541 = vmatprep.subr.bf16.mxu0 %v18714_v49 }
0x1377   :  { %12559 = vmatprep.subr.bf16.mxu1 %v18714_v49 }
0x137a   :  { %v5259_v0 = vpop.permute.xlu1 %5258 }
0x137b   :  { %v5264_v10 = vsel %vm1399_vm3, %v5259_v0, 0 }
0x137c   :  { %v5209_v23 = vpop.permute.xlu0 %5208  ;;  %12538 = vmatmul.mubr.msk.bf16.vlgmr.msra.gmra.mxu0 %vm1399_vm3, %v16882_v57  ;;  %12550 = vmatmul.mubr.msk.bf16.vlgmr.msra.gmra.mxu1 %vm1399_vm3, %v16900_v30 }
0x137d   :  { %v5214_v48 = vsel %vm1399_vm3, %v5209_v23, 0  ;;  %12542 = vmatpush3.bf16.xpose.msra.mxu0 %v5064_v36  ;;  %12543 = vmatprep.mubr.msk.bf16.mxu0 %vm14651_vm2, %v18714_v49  ;;  %v4851_v36 = vld [vmem:[%s18732_s19 + $0x40] sm:$0xff] }
0x137e   :  { %12560 = vmatpush3.bf16.xpose.msra.mxu1 %v5214_v48  ;;  %12561 = vmatprep.mubr.msk.bf16.mxu1 %vm14651_vm2, %v18714_v49  ;;  %v5539_v60 = vpop.permute.xlu1 %5538 }
0x137f   :  { %12553 = vmatprep.subr.bf16.mxu0 %v18714_v49  ;;  %12571 = vmatprep.subr.bf16.mxu1 %v18714_v49 }
0x1380   :  { %v5492_v56 = vpop.permute.xlu0 %5491 }
0x1384   :  { %12544 = vmatmul.mubr.msk.bf16.vlgmr.msra.gmra.mxu0 %vm1399_vm3, %v16878_v42 }
0x1385   :  { %12562 = vmatmul.mubr.msk.bf16.vlgmr.msra.gmra.mxu1 %vm1399_vm3, %v16918_v52  ;;  %12554 = vmatpush3.bf16.xpose.msra.mxu0 %v5164_v37 }
0x1386   :  { %12572 = vmatpush3.bf16.msra.mxu1 %v5492_v56  ;;  %12555 = vmatprep.mubr.msk.bf16.mxu0 %vm14651_vm2, %v18714_v49  ;;  %v4848_v56 = vld [vmem:[%s18732_s19 + $0x28] sm:$0xff] }
0x1387   :  { %12565 = vmatprep.subr.bf16.mxu0 %v18714_v49  ;;  %12573 = vmatprep.mubr.msk.bf16.mxu1 %vm14651_vm2, %v18714_v49 }
0x1388   :  { %12583 = vmatprep.subr.bf16.mxu1 %v18714_v49 }
0x138c   :  { %12556 = vmatmul.mubr.msk.bf16.vlgmr.msra.gmra.mxu0 %vm1399_vm3, %v16894_v45 }
0x138d   :  { %12566 = vmatpush3.bf16.xpose.msra.mxu0 %v5264_v10  ;;  %12567 = vmatprep.mubr.msk.bf16.mxu0 %vm14651_vm2, %v18714_v49 }
0x138e   :  { %12577 = vmatprep.subr.bf16.mxu0 %v18714_v49 }
0x1394   :  { %12568 = vmatmul.mubr.msk.bf16.vlgmr.msra.gmra.mxu0 %vm1399_vm3, %v16912_v3 }
0x1395   :  { %12578 = vmatpush3.bf16.msra.mxu0 %v5539_v60  ;;  %12579 = vmatprep.mubr.msk.bf16.mxu0 %vm14651_vm2, %v18714_v49 }
0x1396   :  { %12589 = vmatprep.subr.bf16.mxu0 %v18714_v49 }
0x142c   :  { %v4950_v63 = vpop.f32.mrf.mxu0 }
0x142d   :  { %v16981_v20 = vadd.f32 %v4950_v63, %v4843_v24  ;;  %v4852_v24 = vld [vmem:[%s18732_s19 + $0x48] sm:$0xff] }
0x142e   :  { %v12527_v14 = vpop.f32.mrf.mxu0 }
0x142f   :  { %v5307_v31 = vsel %vm708_vm1, %v16981_v20, -inf }
0x1430   :  { %5308 = vmax.xlane.f32.xlu0 %v5307_v31  ;;  %v4953_v2 = vpop.f32.mrf.mxu0 }
0x1431   :  { %v16986_v13 = vadd.f32 %v4953_v2, %v4844_v32  ;;  %v4849_v2 = vld [vmem:[%s18732_s19 + $0x30] sm:$0xff] }
0x1432   :  { %v12528_v22 = vpop.f32.mrf.mxu0 }
0x1433   :  { %v5310_v9 = vsel %vm708_vm1, %v16986_v13, -inf }
0x1434   :  { %5311 = vmax.xlane.f32.xlu1 %v5310_v9  ;;  %v5000_v58 = vpop.f32.mrf.mxu0 }
0x1435   :  { %v16991_v21 = vadd.f32 %v5000_v58, %v4845_v43 }
0x1436   :  { %v12533_v1 = vpop.f32.mrf.mxu0 }
0x1437   :  { %v5313_v51 = vsel %vm708_vm1, %v16991_v21, -inf  ;;  %v4855_v1 = vld [vmem:[%s18732_s19 + $0x60] sm:$0xff] }
0x1438   :  { %5314 = vmax.xlane.f32.xlu0 %v5313_v51  ;;  %v5003_v12 = vpop.f32.mrf.mxu0 }
0x1439   :  { %v16996_v16 = vadd.f32 %v5003_v12, %v4846_v34 }
0x143a   :  { %v12534_v40 = vpop.f32.mrf.mxu0 }
0x143b   :  { %v5316_v61 = vsel %vm708_vm1, %v16996_v16, -inf  ;;  %v4850_v40 = vld [vmem:[%s18732_s19 + $0x38] sm:$0xff] }
0x143c   :  { %5317 = vmax.xlane.f32.xlu0 %v5316_v61  ;;  %v5050_v29 = vpop.f32.mrf.mxu0  ;;  %v5150_v23 = vpop.f32.mrf.mxu1 }
0x143d   :  { %v17002_v48 = vadd.f32 %v5050_v29, %v4847_v7  ;;  %v17005_v0 = vadd.f32 %v5150_v23, %v4851_v36 }
0x143e   :  { %v12539_v55 = vpop.f32.mrf.mxu0  ;;  %v12551_v37 = vpop.f32.mrf.mxu1 }
0x143f   :  { %v5319_v10 = vsel %vm708_vm1, %v17002_v48, -inf  ;;  %v5331_v9 = vsel %vm708_vm1, %v17005_v0, -inf  ;;  %v4856_v55 = vld [vmem:[%s18732_s19 + $0x68] sm:$0xff] }
0x1440   :  { %5320 = vmax.xlane.f32.xlu0 %v5319_v10  ;;  %v5053_v60 = vpop.f32.mrf.mxu0  ;;  %v5153_v63 = vpop.f32.mrf.mxu1 }
0x1441   :  { %v17010_v14 = vadd.f32 %v5053_v60, %v4848_v56  ;;  %v17013_v22 = vadd.f32 %v5153_v63, %v4852_v24  ;;  %v4853_v60 = vld [vmem:[%s18732_s19 + $0x50] sm:$0xff] }
0x1442   :  { %v12540_v32 = vpop.f32.mrf.mxu0  ;;  %v12552_v31 = vpop.f32.mrf.mxu1 }
0x1443   :  { %v5322_v43 = vsel %vm708_vm1, %v17010_v14, -inf  ;;  %v5334_v36 = vsel %vm708_vm1, %v17013_v22, -inf }
0x1444   :  { %5323 = vmax.xlane.f32.xlu1 %v5322_v43  ;;  %v5100_v58 = vpop.f32.mrf.mxu0  ;;  %5332 = vmax.xlane.f32.xlu0 %v5331_v9 }
0x1445   :  { %v17020_v34 = vadd.f32 %v5100_v58, %v4849_v2  ;;  %v5250_v51 = vpop.f32.mrf.mxu1  ;;  %v4854_v58 = vld [vmem:[%s18732_s19 + $0x58] sm:$0xff] }
0x1446   :  { %v12545_v12 = vpop.f32.mrf.mxu0  ;;  %v17023_v7 = vadd.f32 %v5250_v51, %v4855_v1 }
0x1447   :  { %v12563_v61 = vpop.f32.mrf.mxu1  ;;  %v5325_v29 = vsel %vm708_vm1, %v17020_v34, -inf }
0x1448   :  { %v5103_v23 = vpop.f32.mrf.mxu0  ;;  %5326 = vmax.xlane.f32.xlu0 %v5325_v29  ;;  %5335 = vmax.xlane.f32.xlu1 %v5334_v36  ;;  %v5343_v31 = vsel %vm708_vm1, %v17023_v7, -inf  ;;  %v4857_v29 = vld [vmem:[%s18732_s19 + $0x70] sm:$0xff] }
0x1449   :  { %v17030_v37 = vadd.f32 %v5103_v23, %v4850_v40  ;;  %v5253_v56 = vpop.f32.mrf.mxu1 }
0x144a   :  { %v12546_v10 = vpop.f32.mrf.mxu0  ;;  %v17033_v24 = vadd.f32 %v5253_v56, %v4856_v55 }
0x144b   :  { %v12564_v63 = vpop.f32.mrf.mxu1  ;;  %v5328_v32 = vsel %vm708_vm1, %v17030_v37, -inf }
0x144c   :  { %v5200_v2 = vpop.f32.mrf.mxu0  ;;  %5329 = vmax.xlane.f32.xlu1 %v5328_v32  ;;  %5344 = vmax.xlane.f32.xlu0 %v5343_v31  ;;  %v5346_v51 = vsel %vm708_vm1, %v17033_v24, -inf  ;;  %v4858_v32 = vld [vmem:[%s18732_s19 + $0x78] sm:$0xff] }
0x144d   :  { %v17039_v43 = vadd.f32 %v5200_v2, %v4853_v60 }
0x144e   :  { %v12557_v9 = vpop.f32.mrf.mxu0 }
0x144f   :  { %v5337_v1 = vsel %vm708_vm1, %v17039_v43, -inf  ;;  %v17064_v9 = vpop.permute.xlu1 %5585 }
0x1450   :  { %v5203_v12 = vpop.f32.mrf.mxu0  ;;  %5338 = vmax.xlane.f32.xlu0 %v5337_v1  ;;  %5347 = vmax.xlane.f32.xlu1 %v5346_v51 }
0x1451   :  { %v17046_v40 = vadd.f32 %v5203_v12, %v4854_v58 }
0x1452   :  { %v12558_v61 = vpop.f32.mrf.mxu0 }
0x1453   :  { %v5340_v36 = vsel %vm708_vm1, %v17046_v40, -inf  ;;  %v17066_v58 = vpop.permute.xlu1 %5632 }
0x1454   :  { %v5300_v23 = vpop.f32.mrf.mxu0  ;;  %5341 = vmax.xlane.f32.xlu1 %v5340_v36 }
0x1455   :  { %v17051_v55 = vadd.f32 %v5300_v23, %v4857_v29 }
0x1456   :  { %v12569_v56 = vpop.f32.mrf.mxu0 }
0x1457   :  { %v5349_v10 = vsel %vm708_vm1, %v17051_v55, -inf }
0x1458   :  { %v5303_v60 = vpop.f32.mrf.mxu0  ;;  %5350 = vmax.xlane.f32.xlu0 %v5349_v10 }
0x1459   :  { %v17060_v31 = vadd.f32 %v5303_v60, %v4858_v32 }
0x145a   :  { %v12570_v63 = vpop.f32.mrf.mxu0 }
0x145b   :  { %v5352_v2 = vsel %vm708_vm1, %v17060_v31, -inf }
0x1465   :  { %5726 = vrot.lane.b32.xlu1 %v16896_v53, %s14653_s25 }
0x146e   :  { %5679 = vrot.lane.b32.xlu0 %v16898_v41, %s14653_s25 }
0x1489   :  { %5353 = vmax.xlane.f32.xlu1 %v5352_v2 }
0x14b9   :  { %v5309_v1 = vpop.xlane.xlu0 %5308 }
0x14ba   :  { %v5355_v51 = vsub.f32 %v16981_v20, %v5309_v1 }
0x14bc   :  { %v5371_v12 = vmul.f32 1.442695, %v5355_v51 }
0x14bd   :  { %v5312_v61 = vpop.xlane.xlu1 %5311 }
0x14be   :  { %13673 = vpow2.f32 %v5371_v12  ;;  %v5356_v29 = vsub.f32 %v16986_v13, %v5312_v61 }
0x14c0   :  { %v5373_v36 = vmul.f32 1.442695, %v5356_v29 }
0x14c1   :  { %v5315_v23 = vpop.xlane.xlu0 %5314 }
0x14c2   :  { %13675 = vpow2.f32 %v5373_v36  ;;  %v5357_v56 = vsub.f32 %v16991_v21, %v5315_v23 }
0x14c4   :  { %v5375_v10 = vmul.f32 1.442695, %v5357_v56 }
0x14c5   :  { %v5318_v60 = vpop.xlane.xlu0 %5317 }
0x14c6   :  { %13677 = vpow2.f32 %v5375_v10  ;;  %v5358_v63 = vsub.f32 %v16996_v16, %v5318_v60 }
0x14c8   :  { %v5377_v32 = vmul.f32 1.442695, %v5358_v63 }
0x14c9   :  { %v5321_v2 = vpop.xlane.xlu0 %5320 }
0x14ca   :  { %13679 = vpow2.f32 %v5377_v32  ;;  %v5359_v20 = vsub.f32 %v17002_v48, %v5321_v2 }
0x14cb   :  { %v17073_v1 = vpop.eup %13673 }
0x14cc   :  { %v5379_v51 = vmul.f32 1.442695, %v5359_v20  ;;  %v5403_v13 = vsel %vm708_vm1, %v17073_v1, 0.0 }
0x14cd   :  { %v5324_v12 = vpop.xlane.xlu1 %5323  ;;  %5404 = vadd.xlane.f32.xlu0 %v5403_v13  ;;  %v5333_v61 = vpop.xlane.xlu0 %5332 }
0x14ce   :  { %13681 = vpow2.f32 %v5379_v51  ;;  %v5360_v21 = vsub.f32 %v17010_v14, %v5324_v12  ;;  %v5363_v29 = vsub.f32 %v17005_v0, %v5333_v61 }
0x14cf   :  { %v17079_v16 = vpop.eup %13675 }
0x14d0   :  { %v5381_v36 = vmul.f32 1.442695, %v5360_v21  ;;  %v5387_v23 = vmul.f32 1.442695, %v5363_v29  ;;  %v5406_v48 = vsel %vm708_vm1, %v17079_v16, 0.0 }
0x14d1   :  { %v5336_v56 = vpop.xlane.xlu1 %5335  ;;  %5407 = vadd.xlane.f32.xlu1 %v5406_v48  ;;  %v5327_v10 = vpop.xlane.xlu0 %5326 }
0x14d2   :  { %13683 = vpow2.f32 %v5381_v36  ;;  %v5364_v60 = vsub.f32 %v17013_v22, %v5336_v56  ;;  %v5361_v63 = vsub.f32 %v17020_v34, %v5327_v10 }
0x14d3   :  { %v17085_v32 = vpop.eup %13677  ;;  %13685 = vpow2.f32 %v5387_v23 }
0x14d4   :  { %v5389_v14 = vmul.f32 1.442695, %v5364_v60  ;;  %v5383_v0 = vmul.f32 1.442695, %v5361_v63  ;;  %v5409_v2 = vsel %vm708_vm1, %v17085_v32, 0.0 }
0x14d5   :  { %v5330_v20 = vpop.xlane.xlu1 %5329  ;;  %5410 = vadd.xlane.f32.xlu0 %v5409_v2  ;;  %v5345_v51 = vpop.xlane.xlu0 %5344 }
0x14d6   :  { %13687 = vpow2.f32 %v5389_v14  ;;  %v5362_v13 = vsub.f32 %v17030_v37, %v5330_v20  ;;  %v5367_v12 = vsub.f32 %v17023_v7, %v5345_v51 }
0x14d7   :  { %v17091_v61 = vpop.eup %13679  ;;  %13689 = vpow2.f32 %v5383_v0 }
0x14d8   :  { %v5385_v22 = vmul.f32 1.442695, %v5362_v13  ;;  %v5395_v34 = vmul.f32 1.442695, %v5367_v12  ;;  %v5412_v21 = vsel %vm708_vm1, %v17091_v61, 0.0 }
0x14d9   :  { %v5348_v29 = vpop.xlane.xlu1 %5347  ;;  %5413 = vadd.xlane.f32.xlu1 %v5412_v21  ;;  %v5339_v36 = vpop.xlane.xlu0 %5338 }
0x14da   :  { %13691 = vpow2.f32 %v5385_v22  ;;  %v5368_v23 = vsub.f32 %v17033_v24, %v5348_v29  ;;  %v5365_v48 = vsub.f32 %v17039_v43, %v5339_v36 }
0x14db   :  { %v17097_v56 = vpop.eup %13681  ;;  %13693 = vpow2.f32 %v5395_v34 }
0x14dc   :  { %v5397_v7 = vmul.f32 1.442695, %v5368_v23  ;;  %v5391_v37 = vmul.f32 1.442695, %v5365_v48  ;;  %v5415_v10 = vsel %vm708_vm1, %v17097_v56, 0.0 }
0x14dd   :  { %5416 = vadd.xlane.f32.xlu0 %v5415_v10  ;;  %v5342_v23 = vpop.xlane.xlu1 %5341 }
0x14de   :  { %13695 = vpow2.f32 %v5397_v7  ;;  %v5366_v7 = vsub.f32 %v17046_v40, %v5342_v23 }
0x14df   :  { %v17101_v60 = vpop.eup %13683  ;;  %13697 = vpow2.f32 %v5391_v37 }
0x14e0   :  { %v17103_v63 = vpop.eup %13685  ;;  %v5418_v24 = vsel %vm708_vm1, %v17101_v60, 0.0  ;;  %v5393_v10 = vmul.f32 1.442695, %v5366_v7 }
0x14e1   :  { %5419 = vadd.xlane.f32.xlu1 %v5418_v24  ;;  %v5427_v43 = vsel %vm708_vm1, %v17103_v63, 0.0  ;;  %v5351_v48 = vpop.xlane.xlu0 %5350  ;;  %v17149_v40 = vpop.permute.xlu1 %5726 }
0x14e2   :  { %5428 = vadd.xlane.f32.xlu0 %v5427_v43  ;;  %v5369_v37 = vsub.f32 %v17051_v55, %v5351_v48  ;;  %13699 = vpow2.f32 %v5393_v10 }
0x14e3   :  { %v17109_v14 = vpop.eup %13687 }
0x14e4   :  { %v17111_v0 = vpop.eup %13689  ;;  %v5430_v2 = vsel %vm708_vm1, %v17109_v14, 0.0  ;;  %v5399_v24 = vmul.f32 1.442695, %v5369_v37 }
0x14e5   :  { %5431 = vadd.xlane.f32.xlu1 %v5430_v2  ;;  %v5421_v20 = vsel %vm708_vm1, %v17111_v0, 0.0 }
0x14e6   :  { %5422 = vadd.xlane.f32.xlu0 %v5421_v20  ;;  %13701 = vpow2.f32 %v5399_v24 }
0x14e7   :  { %v17117_v51 = vpop.eup %13691 }
0x14e8   :  { %v17119_v13 = vpop.eup %13693  ;;  %v5424_v12 = vsel %vm708_vm1, %v17117_v51, 0.0 }
0x14e9   :  { %5425 = vadd.xlane.f32.xlu1 %v5424_v12  ;;  %v5439_v22 = vsel %vm708_vm1, %v17119_v13, 0.0 }
0x14ea   :  { %5440 = vadd.xlane.f32.xlu0 %v5439_v22 }
0x14eb   :  { %v17125_v34 = vpop.eup %13695 }
0x14ec   :  { %v17127_v21 = vpop.eup %13697  ;;  %v5442_v29 = vsel %vm708_vm1, %v17125_v34, 0.0 }
0x14ed   :  { %5443 = vadd.xlane.f32.xlu1 %v5442_v29  ;;  %v5433_v36 = vsel %vm708_vm1, %v17127_v21, 0.0 }
0x14ee   :  { %5434 = vadd.xlane.f32.xlu0 %v5433_v36 }
0x14ef   :  { %v17139_v43 = vpop.eup %13699 }
0x14f0   :  { %v5436_v20 = vsel %vm708_vm1, %v17139_v43, 0.0 }
0x14f3   :  { %v17141_v2 = vpop.eup %13701 }
0x14f4   :  { %v5445_v12 = vsel %vm708_vm1, %v17141_v2, 0.0 }
0x14fe   :  { %5820 = vrot.lane.b32.xlu1 %v16909_v27, %s14653_s25 }
0x1504   :  { %5773 = vrot.lane.b32.xlu0 %v16914_v44, %s14653_s25 }
0x1512   :  { %v5354_v55 = vpop.xlane.xlu1 %5353 }
0x1513   :  { %v5370_v22 = vsub.f32 %v17060_v31, %v5354_v55 }
0x1515   :  { %v5401_v29 = vmul.f32 1.442695, %v5370_v22 }
0x1517   :  { %13703 = vpow2.f32 %v5401_v29 }
0x1522   :  { %5437 = vadd.xlane.f32.xlu1 %v5436_v20 }
0x1523   :  { %5446 = vadd.xlane.f32.xlu0 %v5445_v12 }
0x1524   :  { %v17166_v36 = vpop.eup %13703 }
0x1533   :  { %5922 = vrot.lane.b32.xlu1 %v16861_v25, %s14654_s1 }
0x1539   :  { %5870 = vrot.lane.b32.xlu0 %v16866_v5, %s14654_s1 }
0x153d   :  { %5868 = vrot.lane.b32.xlu0 %v16870_v47, %s14655_s9  ;;  %v5680_v47 = vpop.permute.xlu0 %5679 }
0x1541   :  { %5920 = vrot.lane.b32.xlu0 %v16864_v26, %s14655_s9 }
0x1545   :  { %5972 = vrot.lane.b32.xlu0 %v16882_v57, %s14655_s9  ;;  %v5448_v57 = vsel %vm708_vm1, %v17166_v36, 0.0 }
0x1549   :  { %6024 = vrot.lane.b32.xlu0 %v16878_v42, %s14655_s9 }
0x154d   :  { %6076 = vrot.lane.b32.xlu0 %v16900_v30, %s14655_s9 }
0x1551   :  { %6128 = vrot.lane.b32.xlu0 %v16894_v45, %s14655_s9 }
0x1555   :  { %6180 = vrot.lane.b32.xlu0 %v16918_v52, %s14655_s9 }
0x1556   :  { %v5405_v26 = vpop.xlane.xlu0 %5404 }
0x1557   :  { %5449 = vadd.xlane.f32.xlu1 %v5448_v57  ;;  %13705 = vrcp.f32 %v5405_v26 }
0x155a   :  { %v5408_v31 = vpop.xlane.xlu1 %5407 }
0x155b   :  { %13707 = vrcp.f32 %v5408_v31 }
0x155e   :  { %v5411_v42 = vpop.xlane.xlu0 %5410 }
0x155f   :  { %13709 = vrcp.f32 %v5411_v42 }
0x1562   :  { %v5414_v30 = vpop.xlane.xlu1 %5413 }
0x1563   :  { %13711 = vrcp.f32 %v5414_v30 }
0x1564   :  { %v13706_v23 = vpop.eup %13705 }
0x1565   :  { %v5467_v52 = vmul.f32 %v13706_v23, %v17073_v1 }
0x1566   :  { %v5417_v45 = vpop.xlane.xlu0 %5416 }
0x1567   :  { %13713 = vrcp.f32 %v5417_v45 }
0x1568   :  { %v13708_v48 = vpop.eup %13707  ;;  %5974 = vrot.lane.b32.xlu1 %v16880_v54, %s14654_s1 }
0x1569   :  { %v5468_v7 = vmul.f32 %v13708_v48, %v17079_v16 }
0x156a   :  { %v5420_v37 = vpop.xlane.xlu1 %5419 }
0x156b   :  { %13715 = vrcp.f32 %v5420_v37  ;;  %v5429_v10 = vpop.xlane.xlu0 %5428  ;;  %v5483_v24 = vpack.c.bf16 %v5468_v7, %v5467_v52 }
0x156c   :  { %6026 = vrot.lane.b32.xlu1 %v16888_v8, %s14654_s1  ;;  %v13710_v20 = vpop.eup %13709 }
0x156d   :  { %12574 = vmatmul.mubr.msk.bf16.vlgmr.msra.gmra.mxu1 %vm708_vm1, %v5483_v24  ;;  %v5469_v55 = vmul.f32 %v13710_v20, %v17085_v32 }
0x156e   :  { %12584 = vmatpush3.bf16.msra.mxu1 %v17064_v9  ;;  %v5432_v12 = vpop.xlane.xlu1 %5431  ;;  %12585 = vmatprep.mubr.msk.bf16.mxu1 %vm14651_vm2, %v18714_v49 }
0x156f   :  { %13717 = vrcp.f32 %v5432_v12  ;;  %v5423_v1 = vpop.xlane.xlu0 %5422  ;;  %12595 = vmatprep.subr.bf16.mxu1 %v18714_v49 }
0x1570   :  { %v13712_v16 = vpop.eup %13711  ;;  %13719 = vrcp.f32 %v5429_v10  ;;  %6078 = vrot.lane.b32.xlu1 %v16898_v41, %s14654_s1 }
0x1571   :  { %v5470_v22 = vmul.f32 %v13712_v16, %v17091_v61  ;;  %13721 = vrcp.f32 %v5423_v1 }
0x1572   :  { %v5426_v29 = vpop.xlane.xlu1 %5425 }
0x1573   :  { %13723 = vrcp.f32 %v5426_v29  ;;  %v5484_v9 = vpack.c.bf16 %v5470_v22, %v5469_v55  ;;  %v5441_v57 = vpop.xlane.xlu0 %5440 }
0x1574   :  { %6130 = vrot.lane.b32.xlu1 %v16896_v53, %s14654_s1  ;;  %v13714_v26 = vpop.eup %13713 }
0x1575   :  { %12580 = vmatmul.mubr.msk.bf16.vlgmr.msra.gmra.mxu0 %vm708_vm1, %v5484_v9  ;;  %v5471_v61 = vmul.f32 %v13714_v26, %v17097_v56 }
0x1576   :  { %12590 = vmatpush3.bf16.msra.mxu0 %v17066_v58  ;;  %v5444_v31 = vpop.xlane.xlu1 %5443  ;;  %12591 = vmatprep.mubr.msk.bf16.mxu0 %vm14651_vm2, %v18714_v49 }
0x1577   :  { %13725 = vrcp.f32 %v5444_v31  ;;  %12601 = vmatprep.subr.bf16.mxu0 %v18714_v49  ;;  %v5435_v52 = vpop.xlane.xlu0 %5434 }
0x1578   :  { %v13716_v32 = vpop.eup %13715  ;;  %6182 = vrot.lane.b32.xlu1 %v16914_v44, %s14654_s1  ;;  %13727 = vrcp.f32 %v5441_v57 }
0x1579   :  { %v5472_v42 = vmul.f32 %v13716_v32, %v17101_v60  ;;  %13729 = vrcp.f32 %v5435_v52 }
0x157b   :  { %v5485_v30 = vpack.c.bf16 %v5472_v42, %v5471_v61  ;;  %v5774_v20 = vpop.permute.xlu0 %5773 }
0x157c   :  { %v13718_v23 = vpop.eup %13717  ;;  %6234 = vrot.lane.b32.xlu1 %v16909_v27, %s14654_s1 }
0x157d   :  { %v13720_v58 = vpop.eup %13719  ;;  %12586 = vmatmul.mubr.msk.bf16.vlgmr.msra.gmra.mxu1 %vm708_vm1, %v5485_v30  ;;  %v5476_v48 = vmul.f32 %v13718_v23, %v17109_v14 }
0x157e   :  { %v13722_v45 = vpop.eup %13721  ;;  %12596 = vmatpush3.bf16.msra.mxu1 %v5680_v47  ;;  %12597 = vmatprep.mubr.msk.bf16.mxu1 %vm14651_vm2, %v18714_v49  ;;  %v5475_v60 = vmul.f32 %v13720_v58, %v17103_v63 }
0x157f   :  { %12607 = vmatprep.subr.bf16.mxu1 %v18714_v49  ;;  %v5473_v7 = vmul.f32 %v13722_v45, %v17111_v0 }
0x1580   :  { %v13724_v56 = vpop.eup %13723  ;;  %6232 = vrot.lane.b32.xlu1 %v16912_v3, %s14655_s9  ;;  %v5487_v47 = vpack.c.bf16 %v5476_v48, %v5475_v60 }
0x1581   :  { %v5474_v37 = vmul.f32 %v13724_v56, %v17117_v51  ;;  %v5821_v51 = vpop.permute.xlu1 %5820 }
0x1583   :  { %v5486_v10 = vpack.c.bf16 %v5474_v37, %v5473_v7 }
0x1584   :  { %v13726_v24 = vpop.eup %13725 }
0x1585   :  { %12592 = vmatmul.mubr.msk.bf16.vlgmr.msra.gmra.mxu0 %vm708_vm1, %v5486_v10  ;;  %12598 = vmatmul.mubr.msk.bf16.vlgmr.msra.gmra.mxu1 %vm708_vm1, %v5487_v47  ;;  %v13728_v14 = vpop.eup %13727  ;;  %v5480_v3 = vmul.f32 %v13726_v24, %v17125_v34 }
0x1586   :  { %12602 = vmatpush3.bf16.msra.mxu0 %v17149_v40  ;;  %12608 = vmatpush3.bf16.msra.mxu1 %v5774_v20  ;;  %v5479_v63 = vmul.f32 %v13728_v14, %v17119_v13  ;;  %v13730_v16 = vpop.eup %13729 }
0x1587   :  { %12609 = vmatprep.mubr.msk.bf16.mxu1 %vm14651_vm2, %v18714_v49  ;;  %12619 = vmatprep.subr.bf16.mxu1 %v18714_v49  ;;  %v5477_v22 = vmul.f32 %v13730_v16, %v17127_v21 }
0x1588   :  { %12603 = vmatprep.mubr.msk.bf16.mxu0 %vm14651_vm2, %v18714_v49  ;;  %12613 = vmatprep.subr.bf16.mxu0 %v18714_v49  ;;  %v5489_v0 = vpack.c.bf16 %v5480_v3, %v5479_v63 }
0x158d   :  { %12610 = vmatmul.mubr.msk.bf16.vlgmr.msra.gmra.mxu1 %vm708_vm1, %v5489_v0 }
0x158e   :  { %12621 = vmatprep.mubr.msk.bf16.mxu1 %vm14651_vm2, %v18714_v49 }
0x15ab   :  { %v5438_v34 = vpop.xlane.xlu1 %5437 }
0x15ac   :  { %13731 = vrcp.f32 %v5438_v34  ;;  %v5447_v40 = vpop.xlane.xlu0 %5446 }
0x15ad   :  { %13733 = vrcp.f32 %v5447_v40 }
0x15af   :  { %v5923_v26 = vpop.permute.xlu1 %5922 }
0x15b0   :  { %v5871_v12 = vpop.permute.xlu0 %5870  ;;  %v5928_v37 = vsel %vm1399_vm3, %v5923_v26, 0 }
0x15b1   :  { %v5876_v1 = vsel %vm1399_vm3, %v5871_v12, 0 }
0x15b2   :  { %12620 = vmatpush3.bf16.xpose.msra.mxu1 %v5876_v1 }
0x15b3   :  { %12631 = vmatprep.subr.bf16.mxu1 %v18714_v49 }
0x15b4   :  { %v5869_v55 = vpop.permute.xlu0 %5868 }
0x15b8   :  { %v5921_v57 = vpop.permute.xlu0 %5920 }
0x15b9   :  { %v13732_v13 = vpop.eup %13731  ;;  %12622 = vmatmul.mubr.msk.bf16.vlgmr.msra.gmra.mxu1 %vm1399_vm3, %v5869_v55 }
0x15ba   :  { %v5478_v29 = vmul.f32 %v13732_v13, %v17139_v43  ;;  %12633 = vmatprep.mubr.msk.bf16.mxu1 %vm14651_vm2, %v18714_v49  ;;  %v13734_v30 = vpop.eup %13733 }
0x15bb   :  { %v5481_v48 = vmul.f32 %v13734_v30, %v17141_v2 }
0x15bc   :  { %v5488_v9 = vpack.c.bf16 %v5478_v29, %v5477_v22  ;;  %v5973_v21 = vpop.permute.xlu0 %5972 }
0x15be   :  { %12604 = vmatmul.mubr.msk.bf16.vlgmr.msra.gmra.mxu0 %vm708_vm1, %v5488_v9 }
0x15bf   :  { %12614 = vmatpush3.bf16.msra.mxu0 %v5821_v51  ;;  %12615 = vmatprep.mubr.msk.bf16.mxu0 %vm14651_vm2, %v18714_v49 }
0x15c0   :  { %12625 = vmatprep.subr.bf16.mxu0 %v18714_v49  ;;  %v6025_v42 = vpop.permute.xlu0 %6024 }
0x15c4   :  { %v6077_v56 = vpop.permute.xlu0 %6076 }
0x15c8   :  { %v6129_v2 = vpop.permute.xlu0 %6128 }
0x15cc   :  { %v6181_v24 = vpop.permute.xlu0 %6180 }
0x15e0   :  { %v5450_v31 = vpop.xlane.xlu1 %5449 }
0x15e1   :  { %13735 = vrcp.f32 %v5450_v31 }
0x15e4   :  { %v5975_v32 = vpop.permute.xlu1 %5974 }
0x15e5   :  { %v5980_v43 = vsel %vm1399_vm3, %v5975_v32, 0 }
0x15e6   :  { %12632 = vmatpush3.bf16.xpose.msra.mxu1 %v5980_v43 }
0x15e7   :  { %12643 = vmatprep.subr.bf16.mxu1 %v18714_v49 }
0x15e8   :  { %v6027_v61 = vpop.permute.xlu1 %6026 }
0x15ec   :  { %v6079_v23 = vpop.permute.xlu1 %6078 }
0x15ed   :  { %v6084_v58 = vsel %vm1399_vm3, %v6079_v23, 0  ;;  %12634 = vmatmul.mubr.msk.bf16.vlgmr.msra.gmra.mxu1 %vm1399_vm3, %v5973_v21 }
0x15ee   :  { %v13736_v45 = vpop.eup %13735  ;;  %12644 = vmatpush3.bf16.xpose.msra.mxu1 %v6084_v58  ;;  %12645 = vmatprep.mubr.msk.bf16.mxu1 %vm14651_vm2, %v18714_v49 }
0x15ef   :  { %v5482_v52 = vmul.f32 %v13736_v45, %v17166_v36  ;;  %12655 = vmatprep.subr.bf16.mxu1 %v18714_v49  ;;  %v6032_v36 = vsel %vm1399_vm3, %v6027_v61, 0 }
0x15f0   :  { %v6131_v60 = vpop.permute.xlu1 %6130 }
0x15f1   :  { %v5490_v7 = vpack.c.bf16 %v5482_v52, %v5481_v48  ;;  %v6136_v20 = vsel %vm1399_vm3, %v6131_v60, 0  ;;  %v4859_v48 = vld [vmem:[%s18732_s19 + $0x80] sm:$0xff] }
0x15f3   :  { %12616 = vmatmul.mubr.msk.bf16.vlgmr.msra.gmra.mxu0 %vm708_vm1, %v5490_v7  ;;  %v4860_v7 = vld [vmem:[%s18732_s19 + $0x88] sm:$0xff] }
0x15f4   :  { %12626 = vmatpush3.bf16.xpose.msra.mxu0 %v5928_v37  ;;  %v6183_v10 = vpop.permute.xlu1 %6182  ;;  %12627 = vmatprep.mubr.msk.bf16.mxu0 %vm14651_vm2, %v18714_v49 }
0x15f5   :  { %v6188_v47 = vsel %vm1399_vm3, %v6183_v10, 0  ;;  %12646 = vmatmul.mubr.msk.bf16.vlgmr.msra.gmra.mxu1 %vm1399_vm3, %v6077_v56  ;;  %12637 = vmatprep.subr.bf16.mxu0 %v18714_v49 }
0x15f6   :  { %12656 = vmatpush3.bf16.xpose.msra.mxu1 %v6188_v47  ;;  %12657 = vmatprep.mubr.msk.bf16.mxu1 %vm14651_vm2, %v18714_v49 }
0x15f7   :  { %12667 = vmatprep.subr.bf16.mxu1 %v18714_v49 }
0x15f8   :  { %v6235_v14 = vpop.permute.xlu1 %6234 }
0x15f9   :  { %v6240_v3 = vsel %vm1399_vm3, %v6235_v14, 0 }
0x15fb   :  { %12628 = vmatmul.mubr.msk.bf16.vlgmr.msra.gmra.mxu0 %vm1399_vm3, %v5921_v57 }
0x15fc   :  { %12638 = vmatpush3.bf16.xpose.msra.mxu0 %v6032_v36  ;;  %12639 = vmatprep.mubr.msk.bf16.mxu0 %vm14651_vm2, %v18714_v49  ;;  %v6233_v63 = vpop.permute.xlu1 %6232 }
0x15fd   :  { %12658 = vmatmul.mubr.msk.bf16.vlgmr.msra.gmra.mxu1 %vm1399_vm3, %v6181_v24  ;;  %12649 = vmatprep.subr.bf16.mxu0 %v18714_v49 }
0x15fe   :  { %12669 = vmatprep.mubr.msk.bf16.mxu1 %vm14651_vm2, %v18714_v49 }
0x1603   :  { %12640 = vmatmul.mubr.msk.bf16.vlgmr.msra.gmra.mxu0 %vm1399_vm3, %v6025_v42 }
0x1604   :  { %12650 = vmatpush3.bf16.xpose.msra.mxu0 %v6136_v20  ;;  %12651 = vmatprep.mubr.msk.bf16.mxu0 %vm14651_vm2, %v18714_v49 }
0x1605   :  { %12661 = vmatprep.subr.bf16.mxu0 %v18714_v49 }
0x160b   :  { %12652 = vmatmul.mubr.msk.bf16.vlgmr.msra.gmra.mxu0 %vm1399_vm3, %v6129_v2 }
0x160c   :  { %12662 = vmatpush3.bf16.xpose.msra.mxu0 %v6240_v3  ;;  %12663 = vmatprep.mubr.msk.bf16.mxu0 %vm14651_vm2, %v18714_v49 }
0x160d   :  { %12673 = vmatprep.subr.bf16.mxu0 %v18714_v49 }
0x1613   :  { %12664 = vmatmul.mubr.msk.bf16.vlgmr.msra.gmra.mxu0 %vm1399_vm3, %v6233_v63 }
0x1614   :  { %12675 = vmatprep.mubr.msk.bf16.mxu0 %vm14651_vm2, %v18714_v49 }
0x162d   :  { %v17275_v0 = vpop.f32.mrf.mxu1 }
0x162f   :  { %v12575_v51 = vpop.f32.mrf.mxu1 }
0x1631   :  { %v17277_v34 = vpop.f32.mrf.mxu1 }
0x1633   :  { %v12576_v40 = vpop.f32.mrf.mxu1 }
0x1634   :  { %v4864_v40 = vld [vmem:[%s18732_s19 + $0xa8] sm:$0xff] }
0x1635   :  { %v17279_v12 = vpop.f32.mrf.mxu0 }
0x1637   :  { %v12581_v1 = vpop.f32.mrf.mxu0 }
0x1639   :  { %v17281_v16 = vpop.f32.mrf.mxu0 }
0x163b   :  { %v12582_v55 = vpop.f32.mrf.mxu0 }
0x163d   :  { %v17283_v13 = vpop.f32.mrf.mxu1 }
0x163f   :  { %v12587_v22 = vpop.f32.mrf.mxu1 }
0x1641   :  { %v17285_v29 = vpop.f32.mrf.mxu1 }
0x1643   :  { %v12588_v9 = vpop.f32.mrf.mxu1 }
0x1645   :  { %v17287_v26 = vpop.f32.mrf.mxu0  ;;  %v17289_v57 = vpop.f32.mrf.mxu1 }
0x1647   :  { %v12593_v31 = vpop.f32.mrf.mxu0  ;;  %v12599_v21 = vpop.f32.mrf.mxu1 }
0x1649   :  { %v17291_v32 = vpop.f32.mrf.mxu0  ;;  %v17293_v43 = vpop.f32.mrf.mxu1 }
0x164b   :  { %v12594_v61 = vpop.f32.mrf.mxu0  ;;  %v12600_v42 = vpop.f32.mrf.mxu1 }
0x164d   :  { %v17295_v30 = vpop.f32.mrf.mxu1 }
0x164f   :  { %v12611_v23 = vpop.f32.mrf.mxu1 }
0x1651   :  { %v17297_v58 = vpop.f32.mrf.mxu1 }
0x1653   :  { %v12612_v45 = vpop.f32.mrf.mxu1 }
0x1679   :  { %v5912_v52 = vpop.f32.mrf.mxu1 }
0x167a   :  { %v17300_v56 = vadd.f32 %v5912_v52, %v4859_v48  ;;  %v4861_v52 = vld [vmem:[%s18732_s19 + $0x90] sm:$0xff] }
0x167b   :  { %v12623_v60 = vpop.f32.mrf.mxu1 }
0x167c   :  { %v6283_v37 = vsel %vm708_vm1, %v17300_v56, -inf }
0x167d   :  { %6284 = vmax.xlane.f32.xlu0 %v6283_v37  ;;  %v5915_v10 = vpop.f32.mrf.mxu1 }
0x167e   :  { %v17305_v47 = vadd.f32 %v5915_v10, %v4860_v7  ;;  %v17307_v2 = vpop.f32.mrf.mxu0 }
0x167f   :  { %v12624_v36 = vpop.f32.mrf.mxu1 }
0x1680   :  { %v12605_v24 = vpop.f32.mrf.mxu0  ;;  %v6286_v20 = vsel %vm708_vm1, %v17305_v47, -inf }
0x1681   :  { %6287 = vmax.xlane.f32.xlu1 %v6286_v20  ;;  %v4862_v24 = vld [vmem:[%s18732_s19 + $0x98] sm:$0xff] }
0x1682   :  { %v17311_v14 = vpop.f32.mrf.mxu0 }
0x1684   :  { %v12606_v3 = vpop.f32.mrf.mxu0 }
0x1685   :  { %v4863_v3 = vld [vmem:[%s18732_s19 + $0xa0] sm:$0xff] }
0x16ad   :  { %v6016_v63 = vpop.f32.mrf.mxu1 }
0x16af   :  { %v12635_v51 = vpop.f32.mrf.mxu1 }
0x16b1   :  { %v6019_v1 = vpop.f32.mrf.mxu1 }
0x16b2   :  { %v17314_v55 = vadd.f32 %v6019_v1, %v4864_v40 }
0x16b3   :  { %v17316_v22 = vpop.f32.mrf.mxu0  ;;  %v12636_v9 = vpop.f32.mrf.mxu1 }
0x16b4   :  { %v6298_v31 = vsel %vm708_vm1, %v17314_v55, -inf }
0x16b5   :  { %v12617_v21 = vpop.f32.mrf.mxu0  ;;  %6299 = vmax.xlane.f32.xlu1 %v6298_v31  ;;  %v6120_v61 = vpop.f32.mrf.mxu1 }
0x16b6   :  { %v17331_v21 = vadd.f32 %v6016_v63, %v4863_v3 }
0x16b7   :  { %v17320_v42 = vpop.f32.mrf.mxu0  ;;  %v12647_v23 = vpop.f32.mrf.mxu1 }
0x16b9   :  { %v12618_v45 = vpop.f32.mrf.mxu0  ;;  %v6123_v48 = vpop.f32.mrf.mxu1 }
0x16ba   :  { %v4865_v45 = vld [vmem:[%s18732_s19 + $0xb0] sm:$0xff] }
0x16bb   :  { %v5964_v60 = vpop.f32.mrf.mxu0  ;;  %v12648_v7 = vpop.f32.mrf.mxu1 }
0x16bc   :  { %v17323_v37 = vadd.f32 %v5964_v60, %v4861_v52 }
0x16bd   :  { %v12629_v10 = vpop.f32.mrf.mxu0  ;;  %v6224_v36 = vpop.f32.mrf.mxu1 }
0x16be   :  { %v6289_v20 = vsel %vm708_vm1, %v17323_v37, -inf  ;;  %v4866_v10 = vld [vmem:[%s18732_s19 + $0xb8] sm:$0xff] }
0x16bf   :  { %6290 = vmax.xlane.f32.xlu0 %v6289_v20  ;;  %v5967_v51 = vpop.f32.mrf.mxu0  ;;  %v12659_v40 = vpop.f32.mrf.mxu1 }
0x16c0   :  { %v17329_v1 = vadd.f32 %v5967_v51, %v4862_v24  ;;  %v6295_v24 = vsel %vm708_vm1, %v17331_v21, -inf  ;;  %v4867_v51 = vld [vmem:[%s18732_s19 + $0xc0] sm:$0xff]  ;;  %v4868_v40 = vld [vmem:[%s18732_s19 + $0xc8] sm:$0xff] }
0x16c1   :  { %v12630_v9 = vpop.f32.mrf.mxu0  ;;  %v6227_v31 = vpop.f32.mrf.mxu1 }
0x16c2   :  { %v6292_v23 = vsel %vm708_vm1, %v17329_v1, -inf }
0x16c3   :  { %6293 = vmax.xlane.f32.xlu0 %v6292_v23  ;;  %v6068_v52 = vpop.f32.mrf.mxu0  ;;  %v12660_v60 = vpop.f32.mrf.mxu1  ;;  %v17345_v23 = vadd.f32 %v6120_v61, %v4867_v51  ;;  %v4871_v51 = vld [vmem:[%s18732_s19 + $0xe0] sm:$0xff] }
0x16c4   :  { %v17337_v20 = vadd.f32 %v6068_v52, %v4865_v45  ;;  %v17347_v60 = vadd.f32 %v6123_v48, %v4868_v40  ;;  %v4872_v40 = vld [vmem:[%s18732_s19 + $0xe8] sm:$0xff] }
0x16c5   :  { %v12641_v7 = vpop.f32.mrf.mxu0  ;;  %v6307_v61 = vsel %vm708_vm1, %v17345_v23, -inf }
0x16c6   :  { %v6301_v45 = vsel %vm708_vm1, %v17337_v20, -inf  ;;  %v4869_v7 = vld [vmem:[%s18732_s19 + $0xd0] sm:$0xff]  ;;  %v6310_v48 = vsel %vm708_vm1, %v17347_v60, -inf }
0x16c7   :  { %6296 = vmax.xlane.f32.xlu0 %v6295_v24  ;;  %v6071_v63 = vpop.f32.mrf.mxu0 }
0x16c8   :  { %v17343_v3 = vadd.f32 %v6071_v63, %v4866_v10 }
0x16c9   :  { %v12642_v9 = vpop.f32.mrf.mxu0 }
0x16ca   :  { %v6304_v52 = vsel %vm708_vm1, %v17343_v3, -inf }
0x16cb   :  { %6302 = vmax.xlane.f32.xlu0 %v6301_v45  ;;  %6305 = vmax.xlane.f32.xlu1 %v6304_v52  ;;  %v6172_v24 = vpop.f32.mrf.mxu0  ;;  %v17365_v52 = vadd.f32 %v6224_v36, %v4871_v51 }
0x16cc   :  { %v17355_v10 = vadd.f32 %v6172_v24, %v4869_v7 }
0x16cd   :  { %v12653_v33 = vpop.f32.mrf.mxu0 }
0x16ce   :  { %v17367_v33 = vadd.f32 %v6227_v31, %v4872_v40  ;;  %v6313_v7 = vsel %vm708_vm1, %v17355_v10, -inf }
0x16cf   :  { %6308 = vmax.xlane.f32.xlu0 %v6307_v61  ;;  %6311 = vmax.xlane.f32.xlu1 %v6310_v48  ;;  %v6175_v63 = vpop.f32.mrf.mxu0 }
0x16d0   :  { %v17363_v9 = vadd.f32 %v6175_v63, %v4870_v18  ;;  %v6319_v18 = vsel %vm708_vm1, %v17365_v52, -inf  ;;  %v6322_v36 = vsel %vm708_vm1, %v17367_v33, -inf }
0x16d1   :  { %v12654_v45 = vpop.f32.mrf.mxu0 }
0x16d2   :  { %v6316_v24 = vsel %vm708_vm1, %v17363_v9, -inf  ;;  %v4874_v45 = vld [vmem:[%s18732_s19 + $0xf8] sm:$0xff]  ;;  %s18748_s19 = sld [smem:[#allocation91_spill]] }
0x16d3   :  { %6314 = vmax.xlane.f32.xlu0 %v6313_v7  ;;  %6317 = vmax.xlane.f32.xlu1 %v6316_v24  ;;  %v6276_v17 = vpop.f32.mrf.mxu0 }
0x16d4   :  { %v17374_v48 = vadd.f32 %v6276_v17, %v4873_v15 }
0x16d5   :  { %v12665_v61 = vpop.f32.mrf.mxu0 }
0x16d6   :  { %v6325_v40 = vsel %vm708_vm1, %v17374_v48, -inf }
0x16d7   :  { %v6279_v31 = vpop.f32.mrf.mxu0  ;;  %6320 = vmax.xlane.f32.xlu0 %v6319_v18  ;;  %6323 = vmax.xlane.f32.xlu1 %v6322_v36 }
0x16d8   :  { %v17394_v7 = vadd.f32 %v6279_v31, %v4874_v45 }
0x16d9   :  { %v12666_v51 = vpop.f32.mrf.mxu0 }
0x16db   :  { %6326 = vmax.xlane.f32.xlu0 %v6325_v40 }
0x16e8   :  { %6514 = vrot.lane.b32.xlu1 %v16861_v25, %s14656_s2  ;;  %v6328_v25 = vsel %vm708_vm1, %v17394_v7, -inf }
0x16ec   :  { %6561 = vrot.lane.b32.xlu1 %v16880_v54, %s14656_s2 }
0x16f0   :  { %6608 = vrot.lane.b32.xlu1 %v16888_v8, %s14656_s2 }
0x16f1   :  { %6467 = vrot.lane.b32.xlu0 %v16866_v5, %s14656_s2 }
0x16f5   :  { %6655 = vrot.lane.b32.xlu0 %v16898_v41, %s14656_s2 }
0x1706   :  { %v6285_v17 = vpop.xlane.xlu0 %6284 }
0x1707   :  { %v6331_v15 = vsub.f32 %v17300_v56, %v6285_v17 }
0x1709   :  { %v6347_v63 = vmul.f32 1.442695, %v6331_v15 }
0x170a   :  { %v6288_v8 = vpop.xlane.xlu1 %6287 }
0x170b   :  { %13737 = vpow2.f32 %v6347_v63  ;;  %v6332_v41 = vsub.f32 %v17305_v47, %v6288_v8 }
0x170d   :  { %v6349_v56 = vmul.f32 1.442695, %v6332_v41 }
0x170f   :  { %13739 = vpow2.f32 %v6349_v56 }
0x1714   :  { %6329 = vmax.xlane.f32.xlu1 %v6328_v25 }
0x1718   :  { %v17398_v54 = vpop.eup %13737 }
0x1719   :  { %v6379_v5 = vsel %vm708_vm1, %v17398_v54, 0.0 }
0x171a   :  { %6380 = vadd.xlane.f32.xlu0 %v6379_v5 }
0x171c   :  { %v17405_v24 = vpop.eup %13739 }
0x171d   :  { %v6382_v36 = vsel %vm708_vm1, %v17405_v24, 0.0 }
0x1725   :  { %6702 = vrot.lane.b32.xlu1 %v16896_v53, %s14656_s2 }
0x173e   :  { %v6300_v61 = vpop.xlane.xlu1 %6299 }
0x173f   :  { %v6336_v51 = vsub.f32 %v17314_v55, %v6300_v61 }
0x1741   :  { %v6357_v47 = vmul.f32 1.442695, %v6336_v51 }
0x1748   :  { %v6291_v18 = vpop.xlane.xlu0 %6290 }
0x1749   :  { %v6333_v31 = vsub.f32 %v17323_v37, %v6291_v18  ;;  %6383 = vadd.xlane.f32.xlu1 %v6382_v36 }
0x174b   :  { %v6351_v40 = vmul.f32 1.442695, %v6333_v31 }
0x174c   :  { %v6294_v17 = vpop.xlane.xlu0 %6293 }
0x174d   :  { %13741 = vpow2.f32 %v6351_v40  ;;  %v6334_v53 = vsub.f32 %v17329_v1, %v6294_v17 }
0x174f   :  { %v6353_v15 = vmul.f32 1.442695, %v6334_v53 }
0x1750   :  { %v6297_v63 = vpop.xlane.xlu0 %6296 }
0x1751   :  { %13743 = vpow2.f32 %v6353_v15  ;;  %v6335_v45 = vsub.f32 %v17331_v21, %v6297_v63 }
0x1752   :  { %13745 = vpow2.f32 %v6357_v47 }
0x1753   :  { %v6355_v25 = vmul.f32 1.442695, %v6335_v45 }
0x1754   :  { %v6306_v5 = vpop.xlane.xlu1 %6305  ;;  %v6303_v8 = vpop.xlane.xlu0 %6302 }
0x1755   :  { %13747 = vpow2.f32 %v6355_v25  ;;  %v6338_v37 = vsub.f32 %v17343_v3, %v6306_v5  ;;  %v6337_v55 = vsub.f32 %v17337_v20, %v6303_v8 }
0x1757   :  { %v6361_v41 = vmul.f32 1.442695, %v6338_v37  ;;  %v6359_v56 = vmul.f32 1.442695, %v6337_v55 }
0x1758   :  { %v6312_v61 = vpop.xlane.xlu1 %6311  ;;  %v6309_v18 = vpop.xlane.xlu0 %6308 }
0x1759   :  { %13749 = vpow2.f32 %v6361_v41  ;;  %v6340_v1 = vsub.f32 %v17347_v60, %v6312_v61  ;;  %v6339_v36 = vsub.f32 %v17345_v23, %v6309_v18 }
0x175a   :  { %v17417_v31 = vpop.eup %13741  ;;  %13751 = vpow2.f32 %v6359_v56 }
0x175b   :  { %v6365_v21 = vmul.f32 1.442695, %v6340_v1  ;;  %v6363_v51 = vmul.f32 1.442695, %v6339_v36  ;;  %v6385_v40 = vsel %vm708_vm1, %v17417_v31, 0.0 }
0x175c   :  { %v6318_v3 = vpop.xlane.xlu1 %6317  ;;  %6386 = vadd.xlane.f32.xlu0 %v6385_v40  ;;  %v6315_v20 = vpop.xlane.xlu0 %6314 }
0x175d   :  { %13753 = vpow2.f32 %v6365_v21  ;;  %v6342_v17 = vsub.f32 %v17363_v9, %v6318_v3  ;;  %v6341_v53 = vsub.f32 %v17355_v10, %v6315_v20 }
0x175e   :  { %v17423_v47 = vpop.eup %13743  ;;  %13755 = vpow2.f32 %v6363_v51 }
0x175f   :  { %v6369_v23 = vmul.f32 1.442695, %v6342_v17  ;;  %v6367_v60 = vmul.f32 1.442695, %v6341_v53  ;;  %v6388_v15 = vsel %vm708_vm1, %v17423_v47, 0.0  ;;  %v17427_v63 = vpop.eup %13745 }
0x1760   :  { %v6324_v45 = vpop.xlane.xlu1 %6323  ;;  %6389 = vadd.xlane.f32.xlu1 %v6388_v15  ;;  %v6321_v25 = vpop.xlane.xlu0 %6320  ;;  %v6394_v55 = vsel %vm708_vm1, %v17427_v63, 0.0 }
0x1761   :  { %13757 = vpow2.f32 %v6369_v23  ;;  %v6344_v5 = vsub.f32 %v17367_v33, %v6324_v45  ;;  %v6343_v9 = vsub.f32 %v17365_v52, %v6321_v25 }
0x1762   :  { %v17431_v8 = vpop.eup %13747  ;;  %13759 = vpow2.f32 %v6367_v60 }
0x1763   :  { %v6373_v10 = vmul.f32 1.442695, %v6344_v5  ;;  %v6371_v37 = vmul.f32 1.442695, %v6343_v9  ;;  %v6391_v41 = vsel %vm708_vm1, %v17431_v8, 0.0 }
0x1764   :  { %v6515_v56 = vpop.permute.xlu1 %6514  ;;  %6395 = vadd.xlane.f32.xlu1 %v6394_v55  ;;  %6392 = vadd.xlane.f32.xlu0 %v6391_v41  ;;  %v6327_v61 = vpop.xlane.xlu0 %6326 }
0x1765   :  { %13761 = vpow2.f32 %v6373_v10  ;;  %v6345_v33 = vsub.f32 %v17374_v48, %v6327_v61  ;;  %12674 = vmatpush3.bf16.msra.mxu0 %v6515_v56 }
0x1766   :  { %v17438_v52 = vpop.eup %13749  ;;  %13763 = vpow2.f32 %v6371_v37  ;;  %12685 = vmatprep.subr.bf16.mxu0 %v18714_v49 }
0x1767   :  { %v17441_v18 = vpop.eup %13751  ;;  %v6375_v1 = vmul.f32 1.442695, %v6345_v33  ;;  %v6400_v36 = vsel %vm708_vm1, %v17438_v52, 0.0 }
0x1768   :  { %6401 = vadd.xlane.f32.xlu1 %v6400_v36  ;;  %v6397_v21 = vsel %vm708_vm1, %v17441_v18, 0.0  ;;  %v6468_v51 = vpop.permute.xlu0 %6467  ;;  %v6562_v37 = vpop.permute.xlu1 %6561 }
0x1769   :  { %13765 = vpow2.f32 %v6375_v1  ;;  %6398 = vadd.xlane.f32.xlu0 %v6397_v21  ;;  %12668 = vmatpush3.bf16.msra.mxu1 %v6468_v51 }
0x176a   :  { %v17447_v48 = vpop.eup %13753  ;;  %12679 = vmatprep.subr.bf16.mxu1 %v18714_v49 }
0x176b   :  { %v17450_v40 = vpop.eup %13755  ;;  %v6406_v3 = vsel %vm708_vm1, %v17447_v48, 0.0 }
0x176c   :  { %6407 = vadd.xlane.f32.xlu1 %v6406_v3  ;;  %v6403_v20 = vsel %vm708_vm1, %v17450_v40, 0.0  ;;  %v6609_v55 = vpop.permute.xlu1 %6608  ;;  %v6656_v36 = vpop.permute.xlu0 %6655 }
0x176d   :  { %6404 = vadd.xlane.f32.xlu0 %v6403_v20 }
0x176e   :  { %v17456_v17 = vpop.eup %13757 }
0x176f   :  { %v17458_v53 = vpop.eup %13759  ;;  %v6412_v23 = vsel %vm708_vm1, %v17456_v17, 0.0 }
0x1770   :  { %6413 = vadd.xlane.f32.xlu1 %v6412_v23  ;;  %v6409_v60 = vsel %vm708_vm1, %v17458_v53, 0.0 }
0x1771   :  { %6410 = vadd.xlane.f32.xlu0 %v6409_v60 }
0x1772   :  { %v17464_v15 = vpop.eup %13761 }
0x1773   :  { %v17466_v45 = vpop.eup %13763  ;;  %v6418_v25 = vsel %vm708_vm1, %v17464_v15, 0.0 }
0x1774   :  { %6419 = vadd.xlane.f32.xlu1 %v6418_v25  ;;  %v6415_v5 = vsel %vm708_vm1, %v17466_v45, 0.0 }
0x1775   :  { %6416 = vadd.xlane.f32.xlu0 %v6415_v5 }
0x1776   :  { %v17472_v9 = vpop.eup %13765 }
0x1777   :  { %v6421_v10 = vsel %vm708_vm1, %v17472_v9, 0.0 }
0x1779   :  { %6422 = vadd.xlane.f32.xlu0 %v6421_v10 }
0x178f   :  { %6749 = vrot.lane.b32.xlu0 %v16914_v44, %s14656_s2 }
0x179d   :  { %v6330_v41 = vpop.xlane.xlu1 %6329 }
0x179e   :  { %v6346_v56 = vsub.f32 %v17394_v7, %v6330_v41 }
0x17a0   :  { %v6377_v61 = vmul.f32 1.442695, %v6346_v56 }
0x17a1   :  { %v17485_v21 = vpop.permute.xlu1 %6702 }
0x17a2   :  { %13767 = vpow2.f32 %v6377_v61 }
0x17a3   :  { %v6381_v44 = vpop.xlane.xlu0 %6380 }
0x17a4   :  { %13769 = vrcp.f32 %v6381_v44 }
0x17af   :  { %v17479_v33 = vpop.eup %13767 }
0x17b0   :  { %v6424_v1 = vsel %vm708_vm1, %v17479_v33, 0.0 }
0x17b1   :  { %6425 = vadd.xlane.f32.xlu1 %v6424_v1  ;;  %v13770_v3 = vpop.eup %13769 }
0x17b2   :  { %v6443_v20 = vmul.f32 %v13770_v3, %v17398_v54 }
0x17c2   :  { %6796 = vrot.lane.b32.xlu1 %v16909_v27, %s14656_s2 }
0x17d2   :  { %v6384_v51 = vpop.xlane.xlu1 %6383 }
0x17d3   :  { %13771 = vrcp.f32 %v6384_v51 }
0x17e0   :  { %v13772_v7 = vpop.eup %13771 }
0x17e1   :  { %v6444_v23 = vmul.f32 %v13772_v7, %v17405_v24 }
0x17e3   :  { %v6459_v60 = vpack.c.bf16 %v6444_v23, %v6443_v20 }
0x17e5   :  { %12670 = vmatmul.mubr.msk.bf16.vlgmr.msra.gmra.mxu1 %vm708_vm1, %v6459_v60  ;;  %v6387_v25 = vpop.xlane.xlu0 %6386 }
0x17e6   :  { %12680 = vmatpush3.bf16.msra.mxu1 %v6562_v37  ;;  %12681 = vmatprep.mubr.msk.bf16.mxu1 %vm14651_vm2, %v18714_v49  ;;  %13773 = vrcp.f32 %v6387_v25 }
0x17e7   :  { %12691 = vmatprep.subr.bf16.mxu1 %v18714_v49 }
0x17e9   :  { %v6390_v27 = vpop.xlane.xlu1 %6389 }
0x17ea   :  { %13775 = vrcp.f32 %v6390_v27 }
0x17ed   :  { %v6396_v5 = vpop.xlane.xlu1 %6395  ;;  %v6393_v10 = vpop.xlane.xlu0 %6392 }
0x17ee   :  { %13777 = vrcp.f32 %v6396_v5 }
0x17ef   :  { %13779 = vrcp.f32 %v6393_v10 }
0x17f1   :  { %v6402_v54 = vpop.xlane.xlu1 %6401 }
0x17f2   :  { %13781 = vrcp.f32 %v6402_v54  ;;  %v6399_v24 = vpop.xlane.xlu0 %6398 }
0x17f3   :  { %13783 = vrcp.f32 %v6399_v24  ;;  %v13774_v41 = vpop.eup %13773 }
0x17f4   :  { %v6445_v1 = vmul.f32 %v13774_v41, %v17417_v31 }
0x17f5   :  { %v6408_v56 = vpop.xlane.xlu1 %6407 }
0x17f6   :  { %13785 = vrcp.f32 %v6408_v56  ;;  %v6405_v37 = vpop.xlane.xlu0 %6404 }
0x17f7   :  { %v13776_v61 = vpop.eup %13775  ;;  %13787 = vrcp.f32 %v6405_v37 }
0x17f8   :  { %v6446_v44 = vmul.f32 %v13776_v61, %v17423_v47 }
0x17f9   :  { %v6414_v51 = vpop.xlane.xlu1 %6413 }
0x17fa   :  { %13789 = vrcp.f32 %v6414_v51  ;;  %v6411_v3 = vpop.xlane.xlu0 %6410  ;;  %v6460_v7 = vpack.c.bf16 %v6446_v44, %v6445_v1 }
0x17fb   :  { %v13778_v20 = vpop.eup %13777  ;;  %13791 = vrcp.f32 %v6411_v3 }
0x17fc   :  { %v13780_v23 = vpop.eup %13779  ;;  %v6448_v60 = vmul.f32 %v13778_v20, %v17427_v63  ;;  %12676 = vmatmul.mubr.msk.bf16.vlgmr.msra.gmra.mxu0 %vm708_vm1, %v6460_v7 }
0x17fd   :  { %v6447_v25 = vmul.f32 %v13780_v23, %v17431_v8  ;;  %12686 = vmatpush3.bf16.msra.mxu0 %v6609_v55  ;;  %v6420_v27 = vpop.xlane.xlu1 %6419  ;;  %12687 = vmatprep.mubr.msk.bf16.mxu0 %vm14651_vm2, %v18714_v49 }
0x17fe   :  { %13793 = vrcp.f32 %v6420_v27  ;;  %v6417_v31 = vpop.xlane.xlu0 %6416  ;;  %12697 = vmatprep.subr.bf16.mxu0 %v18714_v49 }
0x17ff   :  { %v13782_v47 = vpop.eup %13781  ;;  %13795 = vrcp.f32 %v6417_v31  ;;  %v6461_v5 = vpack.c.bf16 %v6448_v60, %v6447_v25 }
0x1800   :  { %v13784_v10 = vpop.eup %13783  ;;  %v6450_v54 = vmul.f32 %v13782_v47, %v17438_v52 }
0x1801   :  { %v6449_v63 = vmul.f32 %v13784_v10, %v17441_v18  ;;  %12682 = vmatmul.mubr.msk.bf16.vlgmr.msra.gmra.mxu1 %vm708_vm1, %v6461_v5  ;;  %v13357_v10 = vld [vmem:[%s18733_s16] sm:$0xff]   ;;  %s18749_s16 = sld [smem:[#allocation92_spill]] }
0x1802   :  { %12692 = vmatpush3.bf16.msra.mxu1 %v6656_v36  ;;  %12693 = vmatprep.mubr.msk.bf16.mxu1 %vm14651_vm2, %v18714_v49  ;;  %v6423_v55 = vpop.xlane.xlu0 %6422 }
0x1803   :  { %v13786_v8 = vpop.eup %13785  ;;  %v6462_v24 = vpack.c.bf16 %v6450_v54, %v6449_v63  ;;  %12703 = vmatprep.subr.bf16.mxu1 %v18714_v49  ;;  %13797 = vrcp.f32 %v6423_v55 }
0x1804   :  { %v13788_v41 = vpop.eup %13787  ;;  %v6452_v56 = vmul.f32 %v13786_v8, %v17447_v48 }
0x1805   :  { %v6451_v37 = vmul.f32 %v13788_v41, %v17450_v40  ;;  %12688 = vmatmul.mubr.msk.bf16.vlgmr.msra.gmra.mxu0 %vm708_vm1, %v6462_v24 }
0x1806   :  { %12698 = vmatpush3.bf16.msra.mxu0 %v17485_v21  ;;  %12699 = vmatprep.mubr.msk.bf16.mxu0 %vm14651_vm2, %v18714_v49  ;;  %v6750_v44 = vpop.permute.xlu0 %6749 }
0x1807   :  { %v13790_v52 = vpop.eup %13789  ;;  %v6463_v18 = vpack.c.bf16 %v6452_v56, %v6451_v37  ;;  %12709 = vmatprep.subr.bf16.mxu0 %v18714_v49 }
0x1808   :  { %v13792_v36 = vpop.eup %13791  ;;  %v6454_v61 = vmul.f32 %v13790_v52, %v17456_v17 }
0x1809   :  { %v6453_v1 = vmul.f32 %v13792_v36, %v17458_v53  ;;  %12694 = vmatmul.mubr.msk.bf16.vlgmr.msra.gmra.mxu1 %vm708_vm1, %v6463_v18 }
0x180a   :  { %12704 = vmatpush3.bf16.msra.mxu1 %v6750_v44  ;;  %12705 = vmatprep.mubr.msk.bf16.mxu1 %vm14651_vm2, %v18714_v49 }
0x180b   :  { %v13794_v48 = vpop.eup %13793  ;;  %v6464_v40 = vpack.c.bf16 %v6454_v61, %v6453_v1  ;;  %12715 = vmatprep.subr.bf16.mxu1 %v13357_v10 }
0x180c   :  { %v13796_v21 = vpop.eup %13795  ;;  %v6456_v51 = vmul.f32 %v13794_v48, %v17464_v15 }
0x180d   :  { %v6455_v3 = vmul.f32 %v13796_v21, %v17466_v45  ;;  %12700 = vmatmul.mubr.msk.bf16.vlgmr.msra.gmra.mxu0 %vm708_vm1, %v6464_v40 }
0x180e   :  { %12711 = vmatprep.mubr.msk.bf16.mxu0 %vm14651_vm2, %v18714_v49 }
0x180f   :  { %v6465_v17 = vpack.c.bf16 %v6456_v51, %v6455_v3 }
0x1810   :  { %v13798_v20 = vpop.eup %13797 }
0x1811   :  { %12706 = vmatmul.mubr.msk.bf16.vlgmr.msra.gmra.mxu1 %vm708_vm1, %v6465_v17  ;;  %v6457_v15 = vmul.f32 %v13798_v20, %v17472_v9 }
0x1812   :  { %12716 = vmatpush3.bf16.msra.mxu1 %v13357_v10 }
0x183a   :  { %v6426_v53 = vpop.xlane.xlu1 %6425 }
0x183b   :  { %13799 = vrcp.f32 %v6426_v53 }
0x183e   :  { %v6797_v7 = vpop.permute.xlu1 %6796 }
0x183f   :  { %12710 = vmatpush3.bf16.msra.mxu0 %v6797_v7 }
0x1848   :  { %v13800_v23 = vpop.eup %13799 }
0x1849   :  { %v6458_v45 = vmul.f32 %v13800_v23, %v17479_v33 }
0x184b   :  { %v6466_v60 = vpack.c.bf16 %v6458_v45, %v6457_v15 }
0x184d   :  { %12712 = vmatmul.mubr.msk.bf16.vlgmr.msra.gmra.mxu0 %vm708_vm1, %v6466_v60 }
0x18a5   :  { %v6507_v25 = vpop.f32.mrf.mxu1 }
0x18a7   :  { %v12671_v27 = vpop.f32.mrf.mxu1 }
0x18a9   :  { %v6510_v31 = vpop.f32.mrf.mxu1 }
0x18aa   :  { %v13248_v47 = vpack.i.bf16 %v6510_v31, %v6507_v25 }
0x18ab   :  { %v12672_v5 = vpop.f32.mrf.mxu1 }
0x18ac   :  { %13249 = vrot.lane.b32.xlu0 %v13248_v47, %s14657_s7 }
0x18bc   :  { %v6554_v54 = vpop.f32.mrf.mxu0 }
0x18be   :  { %v12677_v63 = vpop.f32.mrf.mxu0 }
0x18c0   :  { %v6557_v8 = vpop.f32.mrf.mxu0 }
0x18c1   :  { %v13253_v55 = vpack.i.bf16 %v6557_v8, %v6554_v54  ;;  %v6601_v9 = vpop.f32.mrf.mxu1 }
0x18c2   :  { %v12678_v24 = vpop.f32.mrf.mxu0 }
0x18c3   :  { %v12683_v33 = vpop.f32.mrf.mxu1  ;;  %13254 = vrot.lane.b32.xlu1 %v13253_v55, %s14657_s7 }
0x18c5   :  { %v6604_v41 = vpop.f32.mrf.mxu1  ;;  %v6648_v56 = vpop.f32.mrf.mxu0 }
0x18c6   :  { %v13258_v37 = vpack.i.bf16 %v6604_v41, %v6601_v9 }
0x18c7   :  { %v12684_v52 = vpop.f32.mrf.mxu1  ;;  %v12689_v18 = vpop.f32.mrf.mxu0 }
0x18c8   :  { %13259 = vrot.lane.b32.xlu0 %v13258_v37, %s14657_s7 }
0x18c9   :  { %v6651_v36 = vpop.f32.mrf.mxu0  ;;  %v6695_v61 = vpop.f32.mrf.mxu1 }
0x18ca   :  { %v13263_v1 = vpack.i.bf16 %v6651_v36, %v6648_v56 }
0x18cb   :  { %v12690_v44 = vpop.f32.mrf.mxu0  ;;  %v12695_v48 = vpop.f32.mrf.mxu1 }
0x18cc   :  { %13264 = vrot.lane.b32.xlu1 %v13263_v1, %s14657_s7 }
0x18cd   :  { %v6698_v40 = vpop.f32.mrf.mxu1  ;;  %v6742_v21 = vpop.f32.mrf.mxu0 }
0x18ce   :  { %v13268_v51 = vpack.i.bf16 %v6698_v40, %v6695_v61 }
0x18cf   :  { %v12696_v3 = vpop.f32.mrf.mxu1  ;;  %v12701_v17 = vpop.f32.mrf.mxu0 }
0x18d0   :  { %13269 = vrot.lane.b32.xlu0 %v13268_v51, %s14657_s7 }
0x18d1   :  { %v6745_v53 = vpop.f32.mrf.mxu0  ;;  %v6789_v7 = vpop.f32.mrf.mxu1 }
0x18d2   :  { %v13273_v20 = vpack.i.bf16 %v6745_v53, %v6742_v21 }
0x18d3   :  { %v12702_v23 = vpop.f32.mrf.mxu0  ;;  %v12707_v15 = vpop.f32.mrf.mxu1 }
0x18d4   :  { %13274 = vrot.lane.b32.xlu1 %v13273_v20, %s14657_s7 }
0x18d5   :  { %v6792_v45 = vpop.f32.mrf.mxu1 }
0x18d6   :  { %v13278_v60 = vpack.i.bf16 %v6792_v45, %v6789_v7 }
0x18d7   :  { %v12708_v25 = vpop.f32.mrf.mxu1 }
0x18d8   :  { %13279 = vrot.lane.b32.xlu0 %v13278_v60, %s14657_s7 }
0x190d   :  { %v6836_v27 = vpop.f32.mrf.mxu0 }
0x190f   :  { %v12713_v31 = vpop.f32.mrf.mxu0 }
0x1911   :  { %v6839_v47 = vpop.f32.mrf.mxu0 }
0x1912   :  { %v13283_v5 = vpack.i.bf16 %v6839_v47, %v6836_v27 }
0x1913   :  { %v12714_v10 = vpop.f32.mrf.mxu0 }
0x1914   :  { %13284 = vrot.lane.b32.xlu1 %v13283_v5, %s14657_s7 }
0x191e   :  { %v13250_v54 = vpop.permute.xlu0 %13249 }
0x191f   :  { %v13252_v63 = vunpack.i.h.bf16 %v13250_v54  ;;  %v13251_v8 = vunpack.i.l.bf16 %v13250_v54 }
0x1921   :  { %v6908_v55 = vsel %vm1399_vm3, %v17277_v34, %v13252_v63  ;;  %v6907_v9 = vsel %vm1399_vm3, %v17275_v0, %v13251_v8 }
0x1922   :  { %v6923_v24 = vpack.c.bf16 %v6908_v55, %v6907_v9 }
0x1924   :  { %12717 = vmatprep.mubr.msk.bf16.mxu1 %vm708_vm1, %v6923_v24 }
0x1935   :  { %v13255_v33 = vpop.permute.xlu1 %13254 }
0x1936   :  { %v13257_v41 = vunpack.i.h.bf16 %v13255_v33  ;;  %v13256_v56 = vunpack.i.l.bf16 %v13255_v33 }
0x1938   :  { %v6910_v37 = vsel %vm1399_vm3, %v17281_v16, %v13257_v41  ;;  %v6909_v52 = vsel %vm1399_vm3, %v17279_v12, %v13256_v56 }
0x1939   :  { %v6924_v18 = vpack.c.bf16 %v6910_v37, %v6909_v52 }
0x193a   :  { %v13260_v36 = vpop.permute.xlu0 %13259 }
0x193b   :  { %v13262_v61 = vunpack.i.h.bf16 %v13260_v36  ;;  %v13261_v1 = vunpack.i.l.bf16 %v13260_v36  ;;  %12718 = vmatmul.mubr.msk.bf16.vlgmr.msra.gmra.mxu1 %vm708_vm1, %v6924_v18 }
0x193d   :  { %v6912_v0 = vsel %vm1399_vm3, %v17285_v29, %v13262_v61  ;;  %v6911_v34 = vsel %vm1399_vm3, %v17283_v13, %v13261_v1 }
0x193e   :  { %v13265_v44 = vpop.permute.xlu1 %13264  ;;  %v6925_v48 = vpack.c.bf16 %v6912_v0, %v6911_v34 }
0x193f   :  { %v13267_v40 = vunpack.i.h.bf16 %v13265_v44  ;;  %v13266_v21 = vunpack.i.l.bf16 %v13265_v44 }
0x1940   :  { %12721 = vmatprep.mubr.msk.bf16.mxu1 %vm708_vm1, %v6925_v48 }
0x1941   :  { %v6914_v12 = vsel %vm1399_vm3, %v17291_v32, %v13267_v40  ;;  %v6913_v16 = vsel %vm1399_vm3, %v17287_v26, %v13266_v21 }
0x1942   :  { %v6926_v51 = vpack.c.bf16 %v6914_v12, %v6913_v16  ;;  %v13270_v3 = vpop.permute.xlu0 %13269 }
0x1943   :  { %v13272_v17 = vunpack.i.h.bf16 %v13270_v3  ;;  %v13271_v53 = vunpack.i.l.bf16 %v13270_v3 }
0x1944   :  { %12722 = vmatmul.mubr.msk.bf16.gmra.mxu1 %vm708_vm1, %v6926_v51 }
0x1945   :  { %v6916_v13 = vsel %vm1399_vm3, %v17293_v43, %v13272_v17  ;;  %v6915_v29 = vsel %vm1399_vm3, %v17289_v57, %v13271_v53 }
0x1946   :  { %v13275_v7 = vpop.permute.xlu1 %13274  ;;  %v6927_v20 = vpack.c.bf16 %v6916_v13, %v6915_v29 }
0x1947   :  { %v13277_v23 = vunpack.i.h.bf16 %v13275_v7  ;;  %v13276_v15 = vunpack.i.l.bf16 %v13275_v7 }
0x1948   :  { %12725 = vmatprep.mubr.msk.bf16.mxu1 %vm708_vm1, %v6927_v20 }
0x1949   :  { %v6918_v26 = vsel %vm1399_vm3, %v17311_v14, %v13277_v23  ;;  %v6917_v32 = vsel %vm1399_vm3, %v17307_v2, %v13276_v15 }
0x194a   :  { %v6928_v45 = vpack.c.bf16 %v6918_v26, %v6917_v32  ;;  %v13280_v60 = vpop.permute.xlu0 %13279 }
0x194b   :  { %v13282_v25 = vunpack.i.h.bf16 %v13280_v60  ;;  %v13281_v27 = vunpack.i.l.bf16 %v13280_v60 }
0x194c   :  { %12726 = vmatmul.mubr.msk.bf16.gmra.mxu1 %vm708_vm1, %v6928_v45 }
0x194d   :  { %v6920_v57 = vsel %vm1399_vm3, %v17297_v58, %v13282_v25  ;;  %v6919_v43 = vsel %vm1399_vm3, %v17295_v30, %v13281_v27  ;;  %v17577_v58 = vld [vmem:[#allocation11] ss:$0 sm:$0xff] }
0x194e   :  { %v6929_v31 = vpack.c.bf16 %v6920_v57, %v6919_v43  ;;  %v18734_v57 = vld [vmem:[#allocation99_spill] sm:$0xff] }
0x1950   :  { %12729 = vmatprep.mubr.msk.bf16.mxu1 %vm708_vm1, %v6929_v31 }
0x1986   :  { %v13285_v47 = vpop.permute.xlu1 %13284 }
0x1987   :  { %v13287_v14 = vunpack.i.h.bf16 %v13285_v47  ;;  %v13286_v5 = vunpack.i.l.bf16 %v13285_v47  ;;  %v18735_v47 = vld [vmem:[#allocation102_spill] sm:$0xff] }
0x1989   :  { %v6922_v2 = vsel %vm1399_vm3, %v17320_v42, %v13287_v14  ;;  %v6921_v10 = vsel %vm1399_vm3, %v17316_v22, %v13286_v5 }
0x198a   :  { %v6930_v54 = vpack.c.bf16 %v6922_v2, %v6921_v10 }
0x198c   :  { %12730 = vmatmul.mubr.msk.bf16.gmra.mxu1 %vm708_vm1, %v6930_v54  ;;  %v18736_v54 = vld [vmem:[#allocation100_spill] sm:$0xff] }
0x19fb   :  { %v12719_v63 = vpop.f32.mrf.mxu1 }
0x19fc   :  { %v7013_v30 = vadd.f32 %v12719_v63, %v17577_v58 }
0x19fd   :  { %v7004_v8 = vpop.f32.mrf.mxu1 }
0x19fe   :  { %v7005_v55 = vadd.f32 %v17577_v58, %v7004_v8  ;;  %v17585_v42 = vadd.f32 %v7013_v30, %v16644_v62  ;;  %v18737_v8 = vld [vmem:[#allocation101_spill] sm:$0xff] }
0x19ff   :  { %v12720_v9 = vpop.f32.mrf.mxu1 }
0x1a00   :  { %v17582_v24 = vadd.f32 %v7005_v55, %v16636_v38  ;;  %v7016_v22 = vadd.f32 %v12720_v9, %v17577_v58  ;;  %v7091_v36 = vsel %vm708_vm1, %v17585_v42, 0.0 }
0x1a01   :  { %v7007_v33 = vpop.f32.mrf.mxu1 }
0x1a02   :  { %v7008_v41 = vadd.f32 %v17577_v58, %v7007_v33  ;;  %v7085_v56 = vsel %vm708_vm1, %v17582_v24, 0.0  ;;  %v17595_v18 = vadd.f32 %v16640_v6, %v7016_v22 }
0x1a03   :  { %7086 = vadd.xlane.f32.xlu0 %v7085_v56 }
0x1a04   :  { %v17592_v37 = vadd.f32 %v16632_v11, %v7008_v41  ;;  %v12723_v52 = vpop.f32.mrf.mxu1  ;;  %v7094_v6 = vsel %vm708_vm1, %v17595_v18, 0.0 }
0x1a05   :  { %v7029_v0 = vadd.f32 %v12723_v52, %v17577_v58 }
0x1a06   :  { %v7020_v38 = vpop.f32.mrf.mxu1  ;;  %v7088_v62 = vsel %vm708_vm1, %v17592_v37, 0.0 }
0x1a07   :  { %v7021_v61 = vadd.f32 %v17577_v58, %v7020_v38  ;;  %7089 = vadd.xlane.f32.xlu1 %v7088_v62  ;;  %7092 = vadd.xlane.f32.xlu0 %v7091_v36  ;;  %v17614_v12 = vadd.f32 %v7029_v0, %v16660_v50 }
0x1a08   :  { %v12724_v1 = vpop.f32.mrf.mxu1 }
0x1a09   :  { %v17604_v11 = vadd.f32 %v7021_v61, %v16652_v28  ;;  %v7032_v44 = vadd.f32 %v12724_v1, %v17577_v58  ;;  %v7103_v29 = vsel %vm708_vm1, %v17614_v12, 0.0 }
0x1a0a   :  { %v7023_v34 = vpop.f32.mrf.mxu1 }
0x1a0b   :  { %v7024_v48 = vadd.f32 %v17577_v58, %v7023_v34  ;;  %7095 = vadd.xlane.f32.xlu0 %v7094_v6  ;;  %v7097_v28 = vsel %vm708_vm1, %v17604_v11, 0.0  ;;  %v17619_v51 = vadd.f32 %v16656_v59, %v7032_v44 }
0x1a0c   :  { %v12727_v40 = vpop.f32.mrf.mxu1 }
0x1a0d   :  { %v17611_v21 = vadd.f32 %v16648_v35, %v7024_v48  ;;  %v7045_v35 = vadd.f32 %v12727_v40, %v17577_v58  ;;  %v7106_v20 = vsel %vm708_vm1, %v17619_v51, 0.0 }
0x1a0e   :  { %v7036_v16 = vpop.f32.mrf.mxu1 }
0x1a0f   :  { %v7037_v3 = vadd.f32 %v17577_v58, %v7036_v16  ;;  %v7100_v17 = vsel %vm708_vm1, %v17611_v21, 0.0  ;;  %7098 = vadd.xlane.f32.xlu0 %v7097_v28  ;;  %v17638_v15 = vadd.f32 %v7045_v35, %v16676_v46 }
0x1a10   :  { %v12728_v53 = vpop.f32.mrf.mxu1  ;;  %7101 = vadd.xlane.f32.xlu1 %v7100_v17 }
0x1a11   :  { %v17626_v50 = vadd.f32 %v7037_v3, %v16668_v19  ;;  %v7048_v59 = vadd.f32 %v12728_v53, %v17577_v58  ;;  %v7115_v45 = vsel %vm708_vm1, %v17638_v15, 0.0 }
0x1a12   :  { %v7039_v13 = vpop.f32.mrf.mxu1 }
0x1a13   :  { %v7040_v7 = vadd.f32 %v17577_v58, %v7039_v13  ;;  %7104 = vadd.xlane.f32.xlu0 %v7103_v29  ;;  %v7109_v19 = vsel %vm708_vm1, %v17626_v50, 0.0  ;;  %v17643_v26 = vadd.f32 %v16672_v39, %v7048_v59 }
0x1a14   :  { %7107 = vadd.xlane.f32.xlu1 %v7106_v20 }
0x1a15   :  { %v17635_v23 = vadd.f32 %v16664_v4, %v7040_v7  ;;  %v7118_v4 = vsel %vm708_vm1, %v17643_v26, 0.0 }
0x1a17   :  { %v7112_v32 = vsel %vm708_vm1, %v17635_v23, 0.0  ;;  %7110 = vadd.xlane.f32.xlu0 %v7109_v19 }
0x1a18   :  { %7113 = vadd.xlane.f32.xlu1 %v7112_v32 }
0x1a1b   :  { %7116 = vadd.xlane.f32.xlu0 %v7115_v45 }
0x1a1c   :  { %7119 = vadd.xlane.f32.xlu1 %v7118_v4 }
0x1a4c   :  { %v12731_v46 = vpop.f32.mrf.mxu1 }
0x1a4d   :  { %v7061_v25 = vadd.f32 %v12731_v46, %v17577_v58 }
0x1a4e   :  { %v7052_v60 = vpop.f32.mrf.mxu1 }
0x1a4f   :  { %v7053_v39 = vadd.f32 %v17577_v58, %v7052_v60  ;;  %v17657_v14 = vadd.f32 %v7061_v25, %v18735_v47 }
0x1a50   :  { %v12732_v27 = vpop.f32.mrf.mxu1 }
0x1a51   :  { %v17654_v43 = vadd.f32 %v7053_v39, %v18734_v57  ;;  %v7064_v5 = vadd.f32 %v12732_v27, %v17577_v58  ;;  %v7127_v9 = vsel %vm708_vm1, %v17657_v14, 0.0 }
0x1a52   :  { %v7055_v31 = vpop.f32.mrf.mxu1 }
0x1a53   :  { %v7056_v2 = vadd.f32 %v17577_v58, %v7055_v31  ;;  %v7121_v10 = vsel %vm708_vm1, %v17654_v43, 0.0  ;;  %v17667_v30 = vadd.f32 %v18737_v8, %v7064_v5 }
0x1a54   :  { %7122 = vadd.xlane.f32.xlu0 %v7121_v10 }
0x1a55   :  { %v17664_v63 = vadd.f32 %v18736_v54, %v7056_v2  ;;  %v7130_v58 = vsel %vm708_vm1, %v17667_v30, 0.0 }
0x1a57   :  { %v7124_v55 = vsel %vm708_vm1, %v17664_v63, 0.0 }
0x1a58   :  { %7125 = vadd.xlane.f32.xlu1 %v7124_v55  ;;  %7128 = vadd.xlane.f32.xlu0 %v7127_v9 }
0x1a5c   :  { %7131 = vadd.xlane.f32.xlu1 %v7130_v58 }
0x1a8c   :  { %v7087_v33 = vpop.xlane.xlu0 %7086 }
0x1a8d   :  { %v7133_v22 = vmul.f32 0.0625, %v7087_v33 }
0x1a8f   :  { %v17676_v41 = vsub.f32 %v17582_v24, %v7133_v22 }
0x1a90   :  { %v7090_v56 = vpop.xlane.xlu1 %7089  ;;  %v7093_v52 = vpop.xlane.xlu0 %7092 }
0x1a91   :  { %v7134_v38 = vmul.f32 0.0625, %v7090_v56  ;;  %v7135_v62 = vmul.f32 0.0625, %v7093_v52  ;;  %v7165_v36 = vmul.f32 %v17676_v41, %v17676_v41 }
0x1a93   :  { %v17681_v61 = vsub.f32 %v17592_v37, %v7134_v38  ;;  %v17684_v1 = vsub.f32 %v17585_v42, %v7135_v62  ;;  %v7181_v0 = vsel %vm708_vm1, %v7165_v36, 0.0 }
0x1a94   :  { %7182 = vadd.xlane.f32.xlu0 %v7181_v0  ;;  %v7096_v34 = vpop.xlane.xlu0 %7095 }
0x1a95   :  { %v7136_v6 = vmul.f32 0.0625, %v7096_v34  ;;  %v7166_v44 = vmul.f32 %v17681_v61, %v17681_v61  ;;  %v7167_v48 = vmul.f32 %v17684_v1, %v17684_v1 }
0x1a97   :  { %v17692_v40 = vsub.f32 %v17595_v18, %v7136_v6  ;;  %v7184_v16 = vsel %vm708_vm1, %v7166_v44, 0.0  ;;  %v7187_v28 = vsel %vm708_vm1, %v7167_v48, 0.0 }
0x1a98   :  { %7185 = vadd.xlane.f32.xlu1 %v7184_v16  ;;  %7188 = vadd.xlane.f32.xlu0 %v7187_v28  ;;  %v7099_v3 = vpop.xlane.xlu0 %7098  ;;  %v13358_v28 = vld [vmem:[%s18738_s5] sm:$0xff]  }
0x1a99   :  { %v7102_v17 = vpop.xlane.xlu1 %7101  ;;  %v7137_v53 = vmul.f32 0.0625, %v7099_v3  ;;  %v7168_v35 = vmul.f32 %v17692_v40, %v17692_v40  ;;  %12733 = vmatprep.subr.bf16.mxu0 %v13358_v28 }
0x1a9a   :  { %v7138_v13 = vmul.f32 0.0625, %v7102_v17  ;;  %12734 = vmatpush3.bf16.msra.mxu0 %v13358_v28 }
0x1a9b   :  { %v17699_v29 = vsub.f32 %v17604_v11, %v7137_v53  ;;  %v7190_v59 = vsel %vm708_vm1, %v7168_v35, 0.0 }
0x1a9c   :  { %v17703_v7 = vsub.f32 %v17611_v21, %v7138_v13  ;;  %7191 = vadd.xlane.f32.xlu1 %v7190_v59  ;;  %v7105_v20 = vpop.xlane.xlu0 %7104 }
0x1a9d   :  { %v7108_v19 = vpop.xlane.xlu1 %7107  ;;  %v7139_v32 = vmul.f32 0.0625, %v7105_v20  ;;  %v7169_v45 = vmul.f32 %v17699_v29, %v17699_v29 }
0x1a9e   :  { %v7140_v4 = vmul.f32 0.0625, %v7108_v19  ;;  %v7170_v46 = vmul.f32 %v17703_v7, %v17703_v7 }
0x1a9f   :  { %v17710_v60 = vsub.f32 %v17614_v12, %v7139_v32  ;;  %v7193_v25 = vsel %vm708_vm1, %v7169_v45, 0.0 }
0x1aa0   :  { %v17714_v39 = vsub.f32 %v17619_v51, %v7140_v4  ;;  %v7196_v27 = vsel %vm708_vm1, %v7170_v46, 0.0  ;;  %7194 = vadd.xlane.f32.xlu0 %v7193_v25  ;;  %v7111_v57 = vpop.xlane.xlu0 %7110 }
0x1aa1   :  { %v7114_v31 = vpop.xlane.xlu1 %7113  ;;  %7197 = vadd.xlane.f32.xlu1 %v7196_v27  ;;  %v7141_v47 = vmul.f32 0.0625, %v7111_v57  ;;  %v7171_v5 = vmul.f32 %v17710_v60, %v17710_v60 }
0x1aa2   :  { %v7142_v2 = vmul.f32 0.0625, %v7114_v31  ;;  %v7172_v10 = vmul.f32 %v17714_v39, %v17714_v39 }
0x1aa3   :  { %v17722_v54 = vsub.f32 %v17626_v50, %v7141_v47  ;;  %v7199_v8 = vsel %vm708_vm1, %v7171_v5, 0.0 }
0x1aa4   :  { %v17726_v55 = vsub.f32 %v17635_v23, %v7142_v2  ;;  %v7202_v9 = vsel %vm708_vm1, %v7172_v10, 0.0  ;;  %7200 = vadd.xlane.f32.xlu0 %v7199_v8  ;;  %v7117_v58 = vpop.xlane.xlu0 %7116 }
0x1aa5   :  { %v7120_v33 = vpop.xlane.xlu1 %7119  ;;  %7203 = vadd.xlane.f32.xlu1 %v7202_v9  ;;  %v7143_v22 = vmul.f32 0.0625, %v7117_v58  ;;  %v7173_v56 = vmul.f32 %v17722_v54, %v17722_v54 }
0x1aa6   :  { %v7144_v52 = vmul.f32 0.0625, %v7120_v33  ;;  %v7174_v38 = vmul.f32 %v17726_v55, %v17726_v55 }
0x1aa7   :  { %v17734_v62 = vsub.f32 %v17638_v15, %v7143_v22  ;;  %v7205_v36 = vsel %vm708_vm1, %v7173_v56, 0.0 }
0x1aa8   :  { %v17738_v0 = vsub.f32 %v17643_v26, %v7144_v52  ;;  %v7208_v34 = vsel %vm708_vm1, %v7174_v38, 0.0  ;;  %7206 = vadd.xlane.f32.xlu0 %v7205_v36 }
0x1aa9   :  { %7209 = vadd.xlane.f32.xlu1 %v7208_v34  ;;  %v7175_v6 = vmul.f32 %v17734_v62, %v17734_v62 }
0x1aaa   :  { %v7176_v44 = vmul.f32 %v17738_v0, %v17738_v0 }
0x1aab   :  { %v7211_v48 = vsel %vm708_vm1, %v7175_v6, 0.0 }
0x1aac   :  { %v7214_v16 = vsel %vm708_vm1, %v7176_v44, 0.0  ;;  %7212 = vadd.xlane.f32.xlu0 %v7211_v48 }
0x1aad   :  { %7215 = vadd.xlane.f32.xlu1 %v7214_v16 }
0x1add   :  { %v7123_v3 = vpop.xlane.xlu0 %7122 }
0x1ade   :  { %v7145_v17 = vmul.f32 0.0625, %v7123_v3 }
0x1ae0   :  { %v17749_v53 = vsub.f32 %v17654_v43, %v7145_v17 }
0x1ae1   :  { %v7126_v35 = vpop.xlane.xlu1 %7125  ;;  %v7129_v13 = vpop.xlane.xlu0 %7128 }
0x1ae2   :  { %v7146_v59 = vmul.f32 0.0625, %v7126_v35  ;;  %v7147_v20 = vmul.f32 0.0625, %v7129_v13  ;;  %v7177_v19 = vmul.f32 %v17749_v53, %v17749_v53 }
0x1ae4   :  { %v17754_v32 = vsub.f32 %v17664_v63, %v7146_v59  ;;  %v17757_v45 = vsub.f32 %v17657_v14, %v7147_v20  ;;  %v7217_v4 = vsel %vm708_vm1, %v7177_v19, 0.0 }
0x1ae5   :  { %v7132_v46 = vpop.xlane.xlu1 %7131  ;;  %7218 = vadd.xlane.f32.xlu0 %v7217_v4 }
0x1ae6   :  { %v7148_v25 = vmul.f32 0.0625, %v7132_v46  ;;  %v7178_v27 = vmul.f32 %v17754_v32, %v17754_v32  ;;  %v7179_v57 = vmul.f32 %v17757_v45, %v17757_v45  ;;  %v17772_v46 = vld [vmem:[#allocation10] ss:$0 sm:$0xff] }
0x1ae8   :  { %v17765_v31 = vsub.f32 %v17667_v30, %v7148_v25  ;;  %v7220_v47 = vsel %vm708_vm1, %v7178_v27, 0.0  ;;  %v7223_v5 = vsel %vm708_vm1, %v7179_v57, 0.0 }
0x1ae9   :  { %7221 = vadd.xlane.f32.xlu1 %v7220_v47  ;;  %7224 = vadd.xlane.f32.xlu0 %v7223_v5 }
0x1aea   :  { %v7180_v2 = vmul.f32 %v17765_v31, %v17765_v31 }
0x1aec   :  { %v7226_v10 = vsel %vm708_vm1, %v7180_v2, 0.0 }
0x1aed   :  { %7227 = vadd.xlane.f32.xlu1 %v7226_v10 }
0x1b1d   :  { %v7183_v8 = vpop.xlane.xlu0 %7182 }
0x1b1e   :  { %v7229_v9 = vmul.f32 0.0625, %v7183_v8 }
0x1b20   :  { %v7245_v58 = vadd.f32 1e-05, %v7229_v9 }
0x1b21   :  { %v7186_v33 = vpop.xlane.xlu1 %7185  ;;  %v7189_v22 = vpop.xlane.xlu0 %7188 }
0x1b22   :  { %13801 = vrsqrt.f32 %v7245_v58  ;;  %v7230_v56 = vmul.f32 0.0625, %v7186_v33  ;;  %v7231_v52 = vmul.f32 0.0625, %v7189_v22  ;;  %v17776_v22 = vld [vmem:[#allocation8] ss:$0 sm:$0xff] }
0x1b24   :  { %v7246_v38 = vadd.f32 1e-05, %v7230_v56  ;;  %v7247_v36 = vadd.f32 1e-05, %v7231_v52 }
0x1b25   :  { %v7192_v34 = vpop.xlane.xlu1 %7191 }
0x1b26   :  { %13803 = vrsqrt.f32 %v7246_v38  ;;  %v7232_v6 = vmul.f32 0.0625, %v7192_v34 }
0x1b27   :  { %13805 = vrsqrt.f32 %v7247_v36 }
0x1b28   :  { %v7248_v44 = vadd.f32 1e-05, %v7232_v6 }
0x1b29   :  { %v7195_v48 = vpop.xlane.xlu0 %7194 }
0x1b2a   :  { %13807 = vrsqrt.f32 %v7248_v44  ;;  %v7198_v16 = vpop.xlane.xlu1 %7197  ;;  %v7233_v28 = vmul.f32 0.0625, %v7195_v48 }
0x1b2b   :  { %v7234_v3 = vmul.f32 0.0625, %v7198_v16 }
0x1b2c   :  { %v7249_v17 = vadd.f32 1e-05, %v7233_v28 }
0x1b2d   :  { %v7250_v35 = vadd.f32 1e-05, %v7234_v3  ;;  %v7201_v13 = vpop.xlane.xlu0 %7200 }
0x1b2e   :  { %13809 = vrsqrt.f32 %v7249_v17  ;;  %v7204_v59 = vpop.xlane.xlu1 %7203  ;;  %v7235_v20 = vmul.f32 0.0625, %v7201_v13 }
0x1b2f   :  { %v13802_v19 = vpop.eup %13801  ;;  %13811 = vrsqrt.f32 %v7250_v35  ;;  %v7236_v4 = vmul.f32 0.0625, %v7204_v59 }
0x1b30   :  { %v7251_v25 = vadd.f32 1e-05, %v7235_v20  ;;  %v7277_v27 = vmul.f32 %v13802_v19, %v17676_v41 }
0x1b31   :  { %v7252_v57 = vadd.f32 1e-05, %v7236_v4  ;;  %v7207_v47 = vpop.xlane.xlu0 %7206 }
0x1b32   :  { %13813 = vrsqrt.f32 %v7251_v25  ;;  %v7210_v5 = vpop.xlane.xlu1 %7209  ;;  %v7237_v2 = vmul.f32 0.0625, %v7207_v47  ;;  %v7299_v9 = vmul.f32 %v17772_v46, %v7277_v27 }
0x1b33   :  { %v13804_v10 = vpop.eup %13803  ;;  %13815 = vrsqrt.f32 %v7252_v57  ;;  %v7238_v8 = vmul.f32 0.0625, %v7210_v5 }
0x1b34   :  { %v13806_v58 = vpop.eup %13805  ;;  %v7253_v33 = vadd.f32 1e-05, %v7237_v2  ;;  %v7278_v56 = vmul.f32 %v13804_v10, %v17681_v61  ;;  %v7321_v16 = vadd.f32 %v17776_v22, %v7299_v9 }
0x1b35   :  { %v7279_v52 = vmul.f32 %v13806_v58, %v17684_v1  ;;  %v7254_v38 = vadd.f32 1e-05, %v7238_v8  ;;  %v7213_v41 = vpop.xlane.xlu0 %7212 }
0x1b36   :  { %13817 = vrsqrt.f32 %v7253_v33  ;;  %v7216_v36 = vpop.xlane.xlu1 %7215  ;;  %v7239_v34 = vmul.f32 0.0625, %v7213_v41  ;;  %v7300_v6 = vmul.f32 %v17772_v46, %v7278_v56 }
0x1b37   :  { %v13808_v44 = vpop.eup %13807  ;;  %13819 = vrsqrt.f32 %v7254_v38  ;;  %v7240_v48 = vmul.f32 0.0625, %v7216_v36  ;;  %v7301_v28 = vmul.f32 %v17772_v46, %v7279_v52 }
0x1b38   :  { %v7280_v3 = vmul.f32 %v13808_v44, %v17692_v40  ;;  %v7255_v17 = vadd.f32 1e-05, %v7239_v34  ;;  %v7322_v61 = vadd.f32 %v17776_v22, %v7300_v6 }
0x1b39   :  { %v7256_v1 = vadd.f32 1e-05, %v7240_v48  ;;  %v7323_v19 = vadd.f32 %v17776_v22, %v7301_v28 }
0x1b3a   :  { %v7302_v35 = vmul.f32 %v17772_v46, %v7280_v3  ;;  %13821 = vrsqrt.f32 %v7255_v17  ;;  %v7337_v13 = vpack.c.bf16 %v7322_v61, %v7321_v16 }
0x1b3b   :  { %v13810_v59 = vpop.eup %13809  ;;  %13823 = vrsqrt.f32 %v7256_v1 }
0x1b3c   :  { %v13812_v20 = vpop.eup %13811  ;;  %12735 = vmatprep.mubr.msk.bf16.mxu0 %vm708_vm1, %v7337_v13  ;;  %v7324_v4 = vadd.f32 %v17776_v22, %v7302_v35  ;;  %v7281_v25 = vmul.f32 %v13810_v59, %v17699_v29 }
0x1b3d   :  { %v7282_v40 = vmul.f32 %v13812_v20, %v17703_v7 }
0x1b3e   :  { %v7338_v27 = vpack.c.bf16 %v7324_v4, %v7323_v19  ;;  %v7303_v57 = vmul.f32 %v17772_v46, %v7281_v25 }
0x1b3f   :  { %v13814_v47 = vpop.eup %13813  ;;  %v7304_v5 = vmul.f32 %v17772_v46, %v7282_v40 }
0x1b40   :  { %v13816_v2 = vpop.eup %13815  ;;  %v7283_v10 = vmul.f32 %v13814_v47, %v17710_v60  ;;  %12736 = vmatmul.mubr.msk.bf16.vlgmr.msra.gmra.mxu0 %vm708_vm1, %v7338_v27  ;;  %v7325_v8 = vadd.f32 %v17776_v22, %v7303_v57 }
0x1b41   :  { %v7284_v9 = vmul.f32 %v13816_v2, %v17714_v39  ;;  %v7326_v58 = vadd.f32 %v17776_v22, %v7304_v5 }
0x1b42   :  { %v7305_v29 = vmul.f32 %v17772_v46, %v7283_v10 }
0x1b43   :  { %v13818_v7 = vpop.eup %13817  ;;  %v7339_v33 = vpack.c.bf16 %v7326_v58, %v7325_v8  ;;  %v7306_v56 = vmul.f32 %v17772_v46, %v7284_v9 }
0x1b44   :  { %v13820_v52 = vpop.eup %13819  ;;  %v7327_v38 = vadd.f32 %v17776_v22, %v7305_v29  ;;  %v7285_v41 = vmul.f32 %v13818_v7, %v17722_v54 }
0x1b45   :  { %12739 = vmatprep.mubr.msk.bf16.mxu0 %vm708_vm1, %v7339_v33  ;;  %v7328_v60 = vadd.f32 %v17776_v22, %v7306_v56  ;;  %v7286_v36 = vmul.f32 %v13820_v52, %v17726_v55 }
0x1b46   :  { %v7307_v39 = vmul.f32 %v17772_v46, %v7285_v41 }
0x1b47   :  { %v13822_v34 = vpop.eup %13821  ;;  %v7340_v6 = vpack.c.bf16 %v7328_v60, %v7327_v38  ;;  %v7308_v44 = vmul.f32 %v17772_v46, %v7286_v36 }
0x1b48   :  { %v13824_v48 = vpop.eup %13823  ;;  %v7287_v16 = vmul.f32 %v13822_v34, %v17734_v62  ;;  %v7329_v28 = vadd.f32 %v17776_v22, %v7307_v39  ;;  %v13360_v34 = vld [vmem:[%s18739_s18] sm:$0xff]  }
0x1b49   :  { %v7288_v3 = vmul.f32 %v13824_v48, %v17738_v0  ;;  %12740 = vmatmul.mubr.msk.bf16.gmra.mxu0 %vm708_vm1, %v7340_v6  ;;  %v7330_v54 = vadd.f32 %v17776_v22, %v7308_v44  ;;  %v17835_v6 = vld [vmem:[%s18740_s22] ss:$0 sm:$0xff] }
0x1b4a   :  { %v7309_v17 = vmul.f32 %v17772_v46, %v7287_v16 }
0x1b4b   :  { %v7341_v55 = vpack.c.bf16 %v7330_v54, %v7329_v28  ;;  %v7310_v61 = vmul.f32 %v17772_v46, %v7288_v3 }
0x1b4c   :  { %v7331_v1 = vadd.f32 %v17776_v22, %v7309_v17 }
0x1b4d   :  { %12743 = vmatprep.mubr.msk.bf16.mxu0 %vm708_vm1, %v7341_v55  ;;  %v7332_v35 = vadd.f32 %v17776_v22, %v7310_v61 }
0x1b4f   :  { %v7342_v62 = vpack.c.bf16 %v7332_v35, %v7331_v1 }
0x1b51   :  { %12744 = vmatmul.mubr.msk.bf16.gmra.mxu0 %vm708_vm1, %v7342_v62 }
0x1b6e   :  { %v7219_v13 = vpop.xlane.xlu0 %7218 }
0x1b6f   :  { %v7241_v0 = vmul.f32 0.0625, %v7219_v13 }
0x1b71   :  { %v7257_v59 = vadd.f32 1e-05, %v7241_v0 }
0x1b72   :  { %v7222_v20 = vpop.xlane.xlu1 %7221  ;;  %v7225_v19 = vpop.xlane.xlu0 %7224 }
0x1b73   :  { %13825 = vrsqrt.f32 %v7257_v59  ;;  %v7242_v4 = vmul.f32 0.0625, %v7222_v20  ;;  %v7243_v25 = vmul.f32 0.0625, %v7225_v19 }
0x1b75   :  { %v7258_v40 = vadd.f32 1e-05, %v7242_v4  ;;  %v7259_v27 = vadd.f32 1e-05, %v7243_v25 }
0x1b76   :  { %v7228_v57 = vpop.xlane.xlu1 %7227 }
0x1b77   :  { %13827 = vrsqrt.f32 %v7258_v40  ;;  %v7244_v47 = vmul.f32 0.0625, %v7228_v57 }
0x1b78   :  { %13829 = vrsqrt.f32 %v7259_v27 }
0x1b79   :  { %v7260_v5 = vadd.f32 1e-05, %v7244_v47 }
0x1b7b   :  { %13831 = vrsqrt.f32 %v7260_v5 }
0x1b80   :  { %v13826_v2 = vpop.eup %13825 }
0x1b81   :  { %v7289_v10 = vmul.f32 %v13826_v2, %v17749_v53 }
0x1b83   :  { %v7311_v29 = vmul.f32 %v17772_v46, %v7289_v10 }
0x1b84   :  { %v13828_v8 = vpop.eup %13827 }
0x1b85   :  { %v13830_v9 = vpop.eup %13829  ;;  %v7290_v58 = vmul.f32 %v13828_v8, %v17754_v32  ;;  %v7333_v38 = vadd.f32 %v17776_v22, %v7311_v29 }
0x1b86   :  { %v7291_v7 = vmul.f32 %v13830_v9, %v17757_v45 }
0x1b87   :  { %v7312_v33 = vmul.f32 %v17772_v46, %v7290_v58 }
0x1b88   :  { %v13832_v56 = vpop.eup %13831  ;;  %v7313_v41 = vmul.f32 %v17772_v46, %v7291_v7 }
0x1b89   :  { %v7292_v52 = vmul.f32 %v13832_v56, %v17765_v31  ;;  %v7334_v53 = vadd.f32 %v17776_v22, %v7312_v33  ;;  %v13359_v31 = vld [vmem:[%s18739_s18 + $0x8] sm:$0xff]  }
0x1b8a   :  { %v7335_v45 = vadd.f32 %v17776_v22, %v7313_v41  ;;  %12751 = vmatprep.subr.bf16.mxu1 %v13359_v31 }
0x1b8b   :  { %v7343_v60 = vpack.c.bf16 %v7334_v53, %v7333_v38  ;;  %v7314_v32 = vmul.f32 %v17772_v46, %v7292_v52  ;;  %12752 = vmatpush3.bf16.msra.mxu1 %v13359_v31 }
0x1b8c   :  { %12753 = vmatprep.subr.bf16.mxu1 %v13360_v34 }
0x1b8d   :  { %12747 = vmatprep.mubr.msk.bf16.mxu0 %vm708_vm1, %v7343_v60  ;;  %v7336_v36 = vadd.f32 %v17776_v22, %v7314_v32 }
0x1b8f   :  { %v7344_v39 = vpack.c.bf16 %v7336_v36, %v7335_v45  ;;  %12754 = vmatpush3.bf16.msra.mxu1 %v13360_v34 }
0x1b91   :  { %12748 = vmatmul.mubr.msk.bf16.gmra.mxu0 %vm708_vm1, %v7344_v39 }
0x1c00   :  { %v12737_v44 = vpop.f32.mrf.mxu0 }
0x1c01   :  { %v17838_v46 = vadd.f32 %v12737_v44, %v17835_v6 }
0x1c02   :  { %v7418_v48 = vpop.f32.mrf.mxu0 }
0x1c03   :  { %v7483_v16 = vmul.f32 %v17838_v46, %v17838_v46  ;;  %v17843_v22 = vadd.f32 %v17835_v6, %v7418_v48 }
0x1c04   :  { %v12738_v28 = vpop.f32.mrf.mxu0 }
0x1c05   :  { %v7499_v3 = vmul.f32 %v7483_v16, %v17838_v46  ;;  %v7481_v54 = vmul.f32 %v17843_v22, %v17843_v22  ;;  %v17849_v17 = vadd.f32 %v12738_v28, %v17835_v6 }
0x1c06   :  { %v7421_v55 = vpop.f32.mrf.mxu0 }
0x1c07   :  { %v7515_v61 = vmul.f32 0.044715, %v7499_v3  ;;  %v7497_v1 = vmul.f32 %v7481_v54, %v17843_v22  ;;  %v7484_v35 = vmul.f32 %v17849_v17, %v17849_v17  ;;  %v17855_v62 = vadd.f32 %v17835_v6, %v7421_v55 }
0x1c09   :  { %v7531_v13 = vadd.f32 %v7515_v61, %v17838_v46  ;;  %v7513_v0 = vmul.f32 0.044715, %v7497_v1  ;;  %v7500_v59 = vmul.f32 %v7484_v35, %v17849_v17  ;;  %v7482_v20 = vmul.f32 %v17855_v62, %v17855_v62  ;;  %v12741_v19 = vpop.f32.mrf.mxu0 }
0x1c0a   :  { %v17862_v4 = vadd.f32 %v12741_v19, %v17835_v6 }
0x1c0b   :  { %v7547_v25 = vmul.f32 0.7978846, %v7531_v13  ;;  %v7529_v40 = vadd.f32 %v7513_v0, %v17843_v22  ;;  %v7516_v27 = vmul.f32 0.044715, %v7500_v59  ;;  %v7498_v57 = vmul.f32 %v7482_v20, %v17855_v62  ;;  %v7434_v47 = vpop.f32.mrf.mxu0 }
0x1c0c   :  { %v7487_v5 = vmul.f32 %v17862_v4, %v17862_v4  ;;  %v17869_v2 = vadd.f32 %v17835_v6, %v7434_v47 }
0x1c0d   :  { %v7545_v10 = vmul.f32 0.7978846, %v7529_v40  ;;  %v7532_v8 = vadd.f32 %v7516_v27, %v17849_v17  ;;  %v7514_v9 = vmul.f32 0.044715, %v7498_v57  ;;  %v12742_v58 = vpop.f32.mrf.mxu0  ;;  %13833 = vtanh.f32 %v7547_v25 }
0x1c0e   :  { %v7503_v29 = vmul.f32 %v7487_v5, %v17862_v4  ;;  %v7485_v7 = vmul.f32 %v17869_v2, %v17869_v2  ;;  %v17876_v33 = vadd.f32 %v12742_v58, %v17835_v6 }
0x1c0f   :  { %13835 = vtanh.f32 %v7545_v10  ;;  %v7548_v56 = vmul.f32 0.7978846, %v7532_v8  ;;  %v7530_v52 = vadd.f32 %v7514_v9, %v17855_v62  ;;  %v7437_v38 = vpop.f32.mrf.mxu0 }
0x1c10   :  { %v7519_v53 = vmul.f32 0.044715, %v7503_v29  ;;  %v7501_v41 = vmul.f32 %v7485_v7, %v17869_v2  ;;  %v7488_v60 = vmul.f32 %v17876_v33, %v17876_v33  ;;  %v17883_v32 = vadd.f32 %v17835_v6, %v7437_v38 }
0x1c11   :  { %13837 = vtanh.f32 %v7548_v56  ;;  %v7546_v45 = vmul.f32 0.7978846, %v7530_v52  ;;  %v12745_v36 = vpop.f32.mrf.mxu0 }
0x1c12   :  { %v7535_v39 = vadd.f32 %v7519_v53, %v17862_v4  ;;  %v7517_v31 = vmul.f32 0.044715, %v7501_v41  ;;  %v7504_v34 = vmul.f32 %v7488_v60, %v17876_v33  ;;  %v7486_v44 = vmul.f32 %v17883_v32, %v17883_v32 }
0x1c13   :  { %13839 = vtanh.f32 %v7546_v45  ;;  %v17890_v48 = vadd.f32 %v12745_v36, %v17835_v6  ;;  %v7450_v16 = vpop.f32.mrf.mxu0 }
0x1c14   :  { %v7551_v28 = vmul.f32 0.7978846, %v7535_v39  ;;  %v7533_v3 = vadd.f32 %v7517_v31, %v17869_v2  ;;  %v7520_v54 = vmul.f32 0.044715, %v7504_v34  ;;  %v7502_v55 = vmul.f32 %v7486_v44, %v17883_v32 }
0x1c15   :  { %v7491_v61 = vmul.f32 %v17890_v48, %v17890_v48  ;;  %v17897_v1 = vadd.f32 %v17835_v6, %v7450_v16  ;;  %v12746_v35 = vpop.f32.mrf.mxu0 }
0x1c16   :  { %v7549_v13 = vmul.f32 0.7978846, %v7533_v3  ;;  %v7536_v0 = vadd.f32 %v7520_v54, %v17876_v33  ;;  %v7518_v59 = vmul.f32 0.044715, %v7502_v55  ;;  %13841 = vtanh.f32 %v7551_v28 }
0x1c17   :  { %v7507_v20 = vmul.f32 %v7491_v61, %v17890_v48  ;;  %v7489_v19 = vmul.f32 %v17897_v1, %v17897_v1  ;;  %v17904_v25 = vadd.f32 %v12746_v35, %v17835_v6  ;;  %v7453_v40 = vpop.f32.mrf.mxu0 }
0x1c18   :  { %13843 = vtanh.f32 %v7549_v13  ;;  %v7552_v27 = vmul.f32 0.7978846, %v7536_v0  ;;  %v7534_v57 = vadd.f32 %v7518_v59, %v17883_v32  ;;  %v17908_v47 = vadd.f32 %v17835_v6, %v7453_v40 }
0x1c19   :  { %v7523_v5 = vmul.f32 0.044715, %v7507_v20  ;;  %v7505_v10 = vmul.f32 %v7489_v19, %v17897_v1  ;;  %v7492_v8 = vmul.f32 %v17904_v25, %v17904_v25 }
0x1c1a   :  { %13845 = vtanh.f32 %v7552_v27  ;;  %v7550_v9 = vmul.f32 0.7978846, %v7534_v57  ;;  %v7490_v58 = vmul.f32 %v17908_v47, %v17908_v47  ;;  %v13834_v29 = vpop.eup %13833 }
0x1c1b   :  { %v7539_v7 = vadd.f32 %v7523_v5, %v17890_v48  ;;  %v7521_v56 = vmul.f32 0.044715, %v7505_v10  ;;  %v7508_v52 = vmul.f32 %v7492_v8, %v17904_v25  ;;  %v7579_v39 = vadd.f32 1.0, %v13834_v29 }
0x1c1c   :  { %v13836_v38 = vpop.eup %13835  ;;  %13847 = vtanh.f32 %v7550_v9  ;;  %v7506_v53 = vmul.f32 %v7490_v58, %v17908_v47 }
0x1c1d   :  { %v7577_v41 = vadd.f32 1.0, %v13836_v38  ;;  %v7555_v60 = vmul.f32 0.7978846, %v7539_v7  ;;  %v7537_v45 = vadd.f32 %v7521_v56, %v17897_v1  ;;  %v7524_v31 = vmul.f32 0.044715, %v7508_v52 }
0x1c1e   :  { %v13838_v36 = vpop.eup %13837  ;;  %v7522_v34 = vmul.f32 0.044715, %v7506_v53  ;;  %v7595_v13 = vmul.f32 0.5, %v7579_v39 }
0x1c1f   :  { %v7580_v44 = vadd.f32 1.0, %v13838_v36  ;;  %13849 = vtanh.f32 %v7555_v60  ;;  %v7553_v28 = vmul.f32 0.7978846, %v7537_v45  ;;  %v7540_v3 = vadd.f32 %v7524_v31, %v17904_v25 }
0x1c20   :  { %v13840_v16 = vpop.eup %13839  ;;  %v7538_v54 = vadd.f32 %v7522_v34, %v17908_v47  ;;  %v7593_v55 = vmul.f32 0.5, %v7577_v41  ;;  %v7611_v10 = vmul.f32 %v7595_v13, %v17838_v46 }
0x1c21   :  { %v7596_v61 = vmul.f32 0.5, %v7580_v44  ;;  %v7578_v35 = vadd.f32 1.0, %v13840_v16  ;;  %13851 = vtanh.f32 %v7553_v28  ;;  %v7556_v0 = vmul.f32 0.7978846, %v7540_v3 }
0x1c22   :  { %v7554_v59 = vmul.f32 0.7978846, %v7538_v54  ;;  %v7609_v57 = vmul.f32 %v7593_v55, %v17843_v22 }
0x1c23   :  { %v7594_v20 = vmul.f32 0.5, %v7578_v35  ;;  %v13842_v19 = vpop.eup %13841  ;;  %v7612_v40 = vmul.f32 %v7596_v61, %v17849_v17  ;;  %13853 = vtanh.f32 %v7556_v0 }
0x1c24   :  { %13855 = vtanh.f32 %v7554_v59  ;;  %v7583_v58 = vadd.f32 1.0, %v13842_v19 }
0x1c25   :  { %v13844_v27 = vpop.eup %13843  ;;  %v7610_v5 = vmul.f32 %v7594_v20, %v17855_v62  ;;  %v7626_v7 = vpack.c.bf16 %v7612_v40, %v7611_v10 }
0x1c26   :  { %v7581_v8 = vadd.f32 1.0, %v13844_v27  ;;  %v7599_v22 = vmul.f32 0.5, %v7583_v58 }
0x1c27   :  { %v13846_v9 = vpop.eup %13845  ;;  %v7625_v29 = vpack.c.bf16 %v7610_v5, %v7609_v57 }
0x1c28   :  { %v7584_v56 = vadd.f32 1.0, %v13846_v9  ;;  %v7597_v38 = vmul.f32 0.5, %v7581_v8  ;;  %v7615_v39 = vmul.f32 %v7599_v22, %v17862_v4 }
0x1c29   :  { %v13848_v52 = vpop.eup %13847  ;;  %12755 = vmatprep.mubr.msk.bf16.mxu1 %vm4146_vm4, %v7625_v29 }
0x1c2a   :  { %v7600_v17 = vmul.f32 0.5, %v7584_v56  ;;  %v7582_v53 = vadd.f32 1.0, %v13848_v52  ;;  %12756 = vmatmul.mubr.msk.bf16.vlgmr.msra.gmra.mxu1 %vm4146_vm4, %v7626_v7  ;;  %v7613_v46 = vmul.f32 %v7597_v38, %v17869_v2 }
0x1c2c   :  { %v7598_v41 = vmul.f32 0.5, %v7582_v53  ;;  %v13850_v60 = vpop.eup %13849  ;;  %v7616_v62 = vmul.f32 %v7600_v17, %v17876_v33 }
0x1c2d   :  { %v7587_v31 = vadd.f32 1.0, %v13850_v60 }
0x1c2e   :  { %v7614_v45 = vmul.f32 %v7598_v41, %v17883_v32  ;;  %v13852_v36 = vpop.eup %13851  ;;  %v7628_v28 = vpack.c.bf16 %v7616_v62, %v7615_v39 }
0x1c2f   :  { %v7585_v34 = vadd.f32 1.0, %v13852_v36  ;;  %v7603_v33 = vmul.f32 0.5, %v7587_v31 }
0x1c30   :  { %v7627_v44 = vpack.c.bf16 %v7614_v45, %v7613_v46  ;;  %v13854_v16 = vpop.eup %13853 }
0x1c31   :  { %v13856_v3 = vpop.eup %13855  ;;  %v7588_v54 = vadd.f32 1.0, %v13854_v16  ;;  %v7601_v55 = vmul.f32 0.5, %v7585_v34  ;;  %v7619_v0 = vmul.f32 %v7603_v33, %v17890_v48 }
0x1c32   :  { %12759 = vmatprep.mubr.msk.bf16.mxu1 %vm4146_vm4, %v7627_v44  ;;  %v7586_v61 = vadd.f32 1.0, %v13856_v3 }
0x1c33   :  { %12760 = vmatmul.mubr.msk.bf16.gmra.mxu1 %vm4146_vm4, %v7628_v28  ;;  %v7604_v2 = vmul.f32 0.5, %v7588_v54  ;;  %v7617_v4 = vmul.f32 %v7601_v55, %v17897_v1 }
0x1c34   :  { %v7602_v35 = vmul.f32 0.5, %v7586_v61 }
0x1c35   :  { %v7620_v32 = vmul.f32 %v7604_v2, %v17904_v25 }
0x1c36   :  { %v7618_v13 = vmul.f32 %v7602_v35, %v17908_v47 }
0x1c37   :  { %v7630_v20 = vpack.c.bf16 %v7620_v32, %v7619_v0 }
0x1c38   :  { %v7629_v59 = vpack.c.bf16 %v7618_v13, %v7617_v4 }
0x1c3a   :  { %12763 = vmatprep.mubr.msk.bf16.mxu1 %vm4146_vm4, %v7629_v59 }
0x1c3b   :  { %12764 = vmatmul.mubr.msk.bf16.gmra.mxu1 %vm4146_vm4, %v7630_v20  ;;  %v7793_v20 = vld [vmem:[%s18741_s23] sm:$0xff] }
0x1c3c   :  { %12803 = vmatprep.mubr.f32.mxu0 %v7793_v20  ;;  %v7807_v20 = vld [vmem:[%s18741_s23 + $0x70] sm:$0xff] }
0x1c51   :  { %v12749_v19 = vpop.f32.mrf.mxu0 }
0x1c52   :  { %v7475_v40 = vadd.f32 %v12749_v19, %v17835_v6 }
0x1c53   :  { %v7466_v27 = vpop.f32.mrf.mxu0 }
0x1c54   :  { %v7495_v57 = vmul.f32 %v7475_v40, %v7475_v40  ;;  %v7467_v5 = vadd.f32 %v17835_v6, %v7466_v27 }
0x1c55   :  { %v12750_v25 = vpop.f32.mrf.mxu0 }
0x1c56   :  { %v7511_v10 = vmul.f32 %v7495_v57, %v7475_v40  ;;  %v7493_v1 = vmul.f32 %v7467_v5, %v7467_v5  ;;  %v7478_v47 = vadd.f32 %v12750_v25, %v17835_v6 }
0x1c57   :  { %v7469_v8 = vpop.f32.mrf.mxu0 }
0x1c58   :  { %v7527_v48 = vmul.f32 0.044715, %v7511_v10  ;;  %v7509_v9 = vmul.f32 %v7493_v1, %v7467_v5  ;;  %v7496_v58 = vmul.f32 %v7478_v47, %v7478_v47  ;;  %v7470_v29 = vadd.f32 %v17835_v6, %v7469_v8 }
0x1c5a   :  { %v7543_v7 = vadd.f32 %v7527_v48, %v7475_v40  ;;  %v7525_v56 = vmul.f32 0.044715, %v7509_v9  ;;  %v7512_v52 = vmul.f32 %v7496_v58, %v7478_v47  ;;  %v7494_v38 = vmul.f32 %v7470_v29, %v7470_v29 }
0x1c5c   :  { %v7559_v17 = vmul.f32 0.7978846, %v7543_v7  ;;  %v7541_v53 = vadd.f32 %v7525_v56, %v7467_v5  ;;  %v7528_v22 = vmul.f32 0.044715, %v7512_v52  ;;  %v7510_v41 = vmul.f32 %v7494_v38, %v7470_v29  ;;  %v11673_v7 = vld [vmem:[#allocation2] ss:$0 sm:$0xff] }
0x1c5e   :  { %v7557_v60 = vmul.f32 0.7978846, %v7541_v53  ;;  %v7544_v62 = vadd.f32 %v7528_v22, %v7478_v47  ;;  %v7526_v46 = vmul.f32 0.044715, %v7510_v41  ;;  %13857 = vtanh.f32 %v7559_v17 }
0x1c60   :  { %13859 = vtanh.f32 %v7557_v60  ;;  %v7560_v45 = vmul.f32 0.7978846, %v7544_v62  ;;  %v7542_v36 = vadd.f32 %v7526_v46, %v7470_v29 }
0x1c62   :  { %13861 = vtanh.f32 %v7560_v45  ;;  %v7558_v39 = vmul.f32 0.7978846, %v7542_v36 }
0x1c64   :  { %13863 = vtanh.f32 %v7558_v39 }
0x1c6b   :  { %v13858_v31 = vpop.eup %13857 }
0x1c6c   :  { %v7591_v16 = vadd.f32 1.0, %v13858_v31 }
0x1c6d   :  { %v13860_v6 = vpop.eup %13859 }
0x1c6e   :  { %v7589_v34 = vadd.f32 1.0, %v13860_v6  ;;  %v7607_v33 = vmul.f32 0.5, %v7591_v16 }
0x1c6f   :  { %v13862_v44 = vpop.eup %13861 }
0x1c70   :  { %v7592_v28 = vadd.f32 1.0, %v13862_v44  ;;  %v7605_v54 = vmul.f32 0.5, %v7589_v34  ;;  %v7623_v13 = vmul.f32 %v7607_v33, %v7475_v40  ;;  %v7798_v33 = vld [vmem:[%s18741_s23 + $0x28] sm:$0xff] }
0x1c71   :  { %v13864_v3 = vpop.eup %13863 }
0x1c72   :  { %v7608_v55 = vmul.f32 0.5, %v7592_v28  ;;  %v7590_v61 = vadd.f32 1.0, %v13864_v3  ;;  %v7621_v32 = vmul.f32 %v7605_v54, %v7467_v5 }
0x1c74   :  { %v7606_v2 = vmul.f32 0.5, %v7590_v61  ;;  %v7624_v35 = vmul.f32 %v7608_v55, %v7478_v47  ;;  %v7794_v55 = vld [vmem:[%s18741_s23 + $0x8] sm:$0xff]  ;;  %v7796_v61 = vld [vmem:[%s18741_s23 + $0x18] sm:$0xff] }
0x1c76   :  { %v7622_v4 = vmul.f32 %v7606_v2, %v7470_v29  ;;  %v7632_v59 = vpack.c.bf16 %v7624_v35, %v7623_v13  ;;  %v7800_v2 = vld [vmem:[%s18741_s23 + $0x38] sm:$0xff]  ;;  %v7801_v35 = vld [vmem:[%s18741_s23 + $0x40] sm:$0xff] }
0x1c77   :  { %v7804_v13 = vld [vmem:[%s18741_s23 + $0x58] sm:$0xff] }
0x1c78   :  { %v7631_v0 = vpack.c.bf16 %v7622_v4, %v7621_v32  ;;  %v7802_v32 = vld [vmem:[%s18741_s23 + $0x48] sm:$0xff]  ;;  %v7803_v4 = vld [vmem:[%s18741_s23 + $0x50] sm:$0xff] }
0x1c7a   :  { %12767 = vmatprep.mubr.msk.bf16.mxu1 %vm4146_vm4, %v7631_v0  ;;  %v7805_v0 = vld [vmem:[%s18741_s23 + $0x60] sm:$0xff] }
0x1c7b   :  { %12768 = vmatmul.mubr.msk.bf16.gmra.mxu1 %vm4146_vm4, %v7632_v59  ;;  %v7806_v59 = vld [vmem:[%s18741_s23 + $0x68] sm:$0xff] }
0x1cea   :  { %v12757_v19 = vpop.f32.mrf.mxu1 }
0x1ceb   :  { %v7723_v3 = vadd.f32 %v12757_v19, %v11673_v7  ;;  %v7808_v19 = vld [vmem:[%s18741_s23 + $0x78] sm:$0xff] }
0x1cec   :  { %v17946_v27 = vpop.f32.mrf.mxu1 }
0x1cee   :  { %v12758_v57 = vpop.f32.mrf.mxu1 }
0x1cef   :  { %v7726_v28 = vadd.f32 %v12758_v57, %v11673_v7 }
0x1cf0   :  { %v17948_v25 = vpop.f32.mrf.mxu1 }
0x1cf1   :  { %v7718_v54 = vadd.f32 %v11673_v7, %v17948_v25 }
0x1cf3   :  { %v12761_v10 = vpop.f32.mrf.mxu1 }
0x1cf4   :  { %v7739_v34 = vadd.f32 %v12761_v10, %v11673_v7 }
0x1cf5   :  { %v7730_v1 = vpop.f32.mrf.mxu1 }
0x1cf6   :  { %v7731_v16 = vadd.f32 %v11673_v7, %v7730_v1 }
0x1cf7   :  { %v12762_v47 = vpop.f32.mrf.mxu1 }
0x1cf8   :  { %v7742_v6 = vadd.f32 %v12762_v47, %v11673_v7 }
0x1cf9   :  { %v7733_v5 = vpop.f32.mrf.mxu1 }
0x1cfa   :  { %v7734_v44 = vadd.f32 %v11673_v7, %v7733_v5 }
0x1cfb   :  { %v12765_v8 = vpop.f32.mrf.mxu1 }
0x1cfc   :  { %v7755_v45 = vadd.f32 %v12765_v8, %v11673_v7 }
0x1cfd   :  { %v7746_v40 = vpop.f32.mrf.mxu1 }
0x1cff   :  { %v12766_v48 = vpop.f32.mrf.mxu1 }
0x1d00   :  { %v7758_v62 = vadd.f32 %v12766_v48, %v11673_v7 }
0x1d01   :  { %v7749_v9 = vpop.f32.mrf.mxu1 }
0x1d02   :  { %v7788_v39 = vadd.f32 %v7758_v62, %v17643_v26  ;;  %v7750_v31 = vadd.f32 %v11673_v7, %v7749_v9  ;;  %v7784_v26 = vadd.f32 %v7742_v6, %v17619_v51  ;;  %v7780_v51 = vadd.f32 %v7726_v28, %v17595_v18 }
0x1d3b   :  { %v12769_v58 = vpop.f32.mrf.mxu1 }
0x1d3c   :  { %v7771_v52 = vadd.f32 %v12769_v58, %v11673_v7 }
0x1d3d   :  { %v7762_v29 = vpop.f32.mrf.mxu1 }
0x1d3e   :  { %v7791_v41 = vadd.f32 %v7771_v52, %v17657_v14  ;;  %v7763_v60 = vadd.f32 %v11673_v7, %v7762_v29  ;;  %v7787_v14 = vadd.f32 %v7755_v45, %v17638_v15  ;;  %v7783_v15 = vadd.f32 %v7739_v34, %v17614_v12 }
0x1d3f   :  { %v12770_v56 = vpop.f32.mrf.mxu1  ;;  %v7779_v12 = vadd.f32 %v7723_v3, %v17585_v42  ;;  %v7795_v42 = vld [vmem:[%s18741_s23 + $0x10] sm:$0xff] }
0x1d40   :  { %v7774_v38 = vadd.f32 %v12770_v56, %v11673_v7  ;;  %v7789_v36 = vadd.f32 %v7763_v60, %v17654_v43 }
0x1d41   :  { %v7765_v17 = vpop.f32.mrf.mxu1 }
0x1d42   :  { %v7792_v53 = vadd.f32 %v7774_v38, %v17667_v30  ;;  %v7766_v22 = vadd.f32 %v11673_v7, %v7765_v17  ;;  %v7747_v30 = vadd.f32 %v11673_v7, %v7746_v40 }
0x1d44   :  { %12771 = vmatprep.subr.mxu0 %v7792_v53  ;;  %v7790_v46 = vadd.f32 %v7766_v22, %v17664_v63  ;;  %v7786_v63 = vadd.f32 %v7750_v31, %v17635_v23  ;;  %v7785_v43 = vadd.f32 %v7747_v30, %v17626_v50  ;;  %v7782_v23 = vadd.f32 %v7734_v44, %v17611_v21 }
0x1d45   :  { %12772 = vmatpush3.msra.mxu0 %v7792_v53  ;;  %v7781_v50 = vadd.f32 %v7731_v16, %v17604_v11  ;;  %v7715_v21 = vadd.f32 %v11673_v7, %v17946_v27  ;;  %v7778_v11 = vadd.f32 %v7718_v54, %v17592_v37  ;;  %v7797_v37 = vld [vmem:[%s18741_s23 + $0x20] sm:$0xff] }
0x1d46   :  { %12773 = vmatprep.subr.mxu0 %v7791_v41 }
0x1d47   :  { %12774 = vmatpush3.msra.mxu0 %v7791_v41  ;;  %v7777_v18 = vadd.f32 %v7715_v21, %v17582_v24  ;;  %v7799_v24 = vld [vmem:[%s18741_s23 + $0x30] sm:$0xff] }
0x1d48   :  { %12775 = vmatprep.subr.mxu0 %v7790_v46 }
0x1d49   :  { %12776 = vmatpush3.msra.mxu0 %v7790_v46 }
0x1d4a   :  { %12777 = vmatprep.subr.mxu0 %v7789_v36 }
0x1d4b   :  { %12778 = vmatpush3.msra.mxu0 %v7789_v36 }
0x1d4c   :  { %12779 = vmatprep.subr.mxu0 %v7788_v39 }
0x1d4d   :  { %12780 = vmatpush3.msra.mxu0 %v7788_v39 }
0x1d4e   :  { %12781 = vmatprep.subr.mxu0 %v7787_v14 }
0x1d4f   :  { %12782 = vmatpush3.msra.mxu0 %v7787_v14 }
0x1d50   :  { %12783 = vmatprep.subr.mxu0 %v7786_v63 }
0x1d51   :  { %12784 = vmatpush3.msra.mxu0 %v7786_v63 }
0x1d52   :  { %12785 = vmatprep.subr.mxu0 %v7785_v43 }
0x1d53   :  { %12786 = vmatpush3.msra.mxu0 %v7785_v43 }
0x1d54   :  { %12787 = vmatprep.subr.mxu0 %v7784_v26 }
0x1d55   :  { %12788 = vmatpush3.msra.mxu0 %v7784_v26 }
0x1d56   :  { %12789 = vmatprep.subr.mxu0 %v7783_v15 }
0x1d57   :  { %12790 = vmatpush3.msra.mxu0 %v7783_v15 }
0x1d58   :  { %12791 = vmatprep.subr.mxu0 %v7782_v23 }
0x1d59   :  { %12792 = vmatpush3.msra.mxu0 %v7782_v23 }
0x1d5a   :  { %12793 = vmatprep.subr.mxu0 %v7781_v50 }
0x1d5b   :  { %12794 = vmatpush3.msra.mxu0 %v7781_v50 }
0x1d5c   :  { %12795 = vmatprep.subr.mxu0 %v7780_v51 }
0x1d5d   :  { %12796 = vmatpush3.msra.mxu0 %v7780_v51 }
0x1d5e   :  { %12797 = vmatprep.subr.mxu0 %v7779_v12 }
0x1d5f   :  { %12798 = vmatpush3.msra.mxu0 %v7779_v12 }
0x1d60   :  { %12799 = vmatprep.subr.mxu0 %v7778_v11 }
0x1d61   :  { %12800 = vmatpush3.msra.mxu0 %v7778_v11 }
0x1d62   :  { %12801 = vmatprep.subr.mxu0 %v7777_v18 }
0x1d63   :  { %12802 = vmatpush3.msra.mxu0 %v7777_v18 }
0x1d64   :  { %12804 = vmatmul.mubr.f32.vlgmr.msra.gmra.mxu0 %v7794_v55 }
0x1d65   :  { %12806 = vmatprep.mubr.f32.mxu0 %v7795_v42 }
0x1d68   :  { %12807 = vmatmul.mubr.f32.gmra.mxu0 %v7796_v61 }
0x1d69   :  { %12809 = vmatprep.mubr.f32.mxu0 %v7797_v37 }
0x1d6c   :  { %12810 = vmatmul.mubr.f32.gmra.mxu0 %v7798_v33 }
0x1d6d   :  { %12812 = vmatprep.mubr.f32.mxu0 %v7799_v24 }
0x1d70   :  { %12813 = vmatmul.mubr.f32.gmra.mxu0 %v7800_v2 }
0x1d71   :  { %12815 = vmatprep.mubr.f32.mxu0 %v7801_v35 }
0x1d74   :  { %12816 = vmatmul.mubr.f32.gmra.mxu0 %v7802_v32 }
0x1d75   :  { %12818 = vmatprep.mubr.f32.mxu0 %v7803_v4 }
0x1d78   :  { %12819 = vmatmul.mubr.f32.gmra.mxu0 %v7804_v13 }
0x1d79   :  { %12821 = vmatprep.mubr.f32.mxu0 %v7805_v0 }
0x1d7c   :  { %12822 = vmatmul.mubr.f32.gmra.mxu0 %v7806_v59 }
0x1d7d   :  { %12824 = vmatprep.mubr.f32.mxu0 %v7807_v20 }
0x1d80   :  { %12825 = vmatmul.mubr.f32.gmra.mxu0 %v7808_v19 }
0x1e24   :  { %v12805_v27 = vpop.f32.mrf.mxu0 }
0x1e26   :  { %v7875_v57 = vpop.f32.mrf.mxu0 }
0x1e28   :  { %v12808_v25 = vpop.f32.mrf.mxu0 }
0x1e2a   :  { %v7885_v10 = vpop.f32.mrf.mxu0 }
0x1e2c   :  { %v12811_v1 = vpop.f32.mrf.mxu0 }
0x1e2d   :  { %7960 = vrot.lane.b32.xlu1 %v12811_v1, %s14658_s26  ;;  %v13364_v1 = vld [vmem:[%s18742_s28] sm:$0xff]  }
0x1e2e   :  { %v7895_v47 = vpop.f32.mrf.mxu0 }
0x1e2f   :  { %7958 = vrot.lane.b32.xlu0 %v7895_v47, %s14658_s26 }
0x1e30   :  { %v12814_v5 = vpop.f32.mrf.mxu0 }
0x1e31   :  { %7964 = vrot.lane.b32.xlu1 %v12814_v5, %s14658_s26 }
0x1e32   :  { %v7905_v8 = vpop.f32.mrf.mxu0 }
0x1e34   :  { %v12817_v40 = vpop.f32.mrf.mxu0 }
0x1e35   :  { %7962 = vrot.lane.b32.xlu1 %v7905_v8, %s14658_s26 }
0x1e36   :  { %v7915_v48 = vpop.f32.mrf.mxu0 }
0x1e37   :  { %7974 = vrot.lane.b32.xlu0 %v7915_v48, %s14659_s13 }
0x1e38   :  { %v12820_v9 = vpop.f32.mrf.mxu0 }
0x1e39   :  { %7976 = vrot.lane.b32.xlu1 %v12817_v40, %s14659_s13 }
0x1e3a   :  { %v7925_v58 = vpop.f32.mrf.mxu0 }
0x1e3b   :  { %7978 = vrot.lane.b32.xlu0 %v7925_v58, %s14659_s13 }
0x1e3c   :  { %v12823_v29 = vpop.f32.mrf.mxu0 }
0x1e3d   :  { %7980 = vrot.lane.b32.xlu1 %v12820_v9, %s14659_s13 }
0x1e3e   :  { %v7935_v7 = vpop.f32.mrf.mxu0 }
0x1e3f   :  { %7990 = vrot.lane.b32.xlu0 %v7935_v7, %s14660_s27 }
0x1e40   :  { %v12826_v56 = vpop.f32.mrf.mxu0 }
0x1e41   :  { %7992 = vrot.lane.b32.xlu1 %v12823_v29, %s14660_s27 }
0x1e42   :  { %v7945_v52 = vpop.f32.mrf.mxu0 }
0x1e43   :  { %7994 = vrot.lane.b32.xlu0 %v7945_v52, %s14660_s27 }
0x1e45   :  { %7996 = vrot.lane.b32.xlu1 %v12826_v56, %s14660_s27 }
0x1e9f   :  { %v7961_v38 = vpop.permute.xlu1 %7960 }
0x1ea0   :  { %v8003_v31 = vsel %vm708_vm1, %v12805_v27, %v7961_v38 }
0x1ea1   :  { %v7959_v53 = vpop.permute.xlu0 %7958 }
0x1ea2   :  { %v8002_v45 = vsel %vm708_vm1, %v7875_v57, %v7959_v53  ;;  %v13361_v57 = vld [vmem:[%s18742_s28 + $0x18] sm:$0xff]   ;;  %v11684_v53 = vld [vmem:[%s18743_s6] ss:$0 sm:$0xff] }
0x1ea3   :  { %v7965_v17 = vpop.permute.xlu1 %7964  ;;  %12827 = vmatprep.subr.bf16.mxu1 %v13361_v57 }
0x1ea4   :  { %v8005_v16 = vsel %vm708_vm1, %v12808_v25, %v7965_v17  ;;  %12828 = vmatpush3.bf16.msra.mxu1 %v13361_v57  ;;  %v13362_v25 = vld [vmem:[%s18742_s28 + $0x10] sm:$0xff]  }
0x1ea5   :  { %12829 = vmatprep.subr.bf16.mxu1 %v13362_v25 }
0x1ea7   :  { %v7963_v22 = vpop.permute.xlu1 %7962 }
0x1ea8   :  { %v8004_v34 = vsel %vm708_vm1, %v7885_v10, %v7963_v22  ;;  %12830 = vmatpush3.bf16.msra.mxu1 %v13362_v25  ;;  %v13363_v10 = vld [vmem:[%s18742_s28 + $0x8] sm:$0xff]  }
0x1ea9   :  { %v7975_v41 = vpop.permute.xlu0 %7974  ;;  %12831 = vmatprep.subr.bf16.mxu1 %v13363_v10  ;;  %v13365_v25 = vld [vmem:[%s18745_s14 + $0x8] sm:$0xff]  }
0x1eaa   :  { %v8006_v36 = vsel %vm4146_vm4, %v8002_v45, %v7975_v41  ;;  %v11685_v45 = vld [vmem:[%s18744_s3] ss:$0 sm:$0xff]  ;;  %12839 = vmatprep.subr.bf16.mxu0 %v13365_v25 }
0x1eab   :  { %v7977_v60 = vpop.permute.xlu1 %7976  ;;  %12840 = vmatpush3.bf16.msra.mxu0 %v13365_v25  ;;  %v8335_v25 = vld [vmem:[%s18746_s4 + $0x8] sm:$0xff] }
0x1eac   :  { %v8007_v30 = vsel %vm4146_vm4, %v8003_v31, %v7977_v60  ;;  %12832 = vmatpush3.bf16.msra.mxu1 %v13363_v10  ;;  %v13366_v10 = vld [vmem:[%s18745_s14] sm:$0xff]  }
0x1ead   :  { %v7979_v62 = vpop.permute.xlu0 %7978  ;;  %12833 = vmatprep.subr.bf16.mxu1 %v13364_v1  ;;  %12841 = vmatprep.subr.bf16.mxu0 %v13366_v10 }
0x1eae   :  { %v8008_v26 = vsel %vm4146_vm4, %v8004_v34, %v7979_v62 }
0x1eaf   :  { %v7981_v46 = vpop.permute.xlu1 %7980  ;;  %12842 = vmatpush3.bf16.msra.mxu0 %v13366_v10 }
0x1eb0   :  { %v8009_v23 = vsel %vm4146_vm4, %v8005_v16, %v7981_v46  ;;  %12834 = vmatpush3.bf16.msra.mxu1 %v13364_v1  ;;  %12853 = vmatprep.subr.bf16.mxu0 %v18714_v49 }
0x1eb1   :  { %v7991_v39 = vpop.permute.xlu0 %7990  ;;  %12847 = vmatprep.subr.bf16.mxu1 %v18714_v49 }
0x1eb2   :  { %v8010_v14 = vsel %vm584_vm0, %v8006_v36, %v7991_v39 }
0x1eb3   :  { %v7993_v6 = vpop.permute.xlu1 %7992  ;;  %v8017_v63 = vsel %vm8016_vm5, %v8010_v14, 0.0 }
0x1eb4   :  { %v8011_v43 = vsel %vm584_vm0, %v8007_v30, %v7993_v6  ;;  %8018 = vadd.xlane.f32.xlu0 %v8017_v63 }
0x1eb5   :  { %v7995_v44 = vpop.permute.xlu0 %7994  ;;  %v8020_v15 = vsel %vm8016_vm5, %v8011_v43, 0.0 }
0x1eb6   :  { %v8012_v28 = vsel %vm584_vm0, %v8008_v26, %v7995_v44  ;;  %8021 = vadd.xlane.f32.xlu1 %v8020_v15 }
0x1eb7   :  { %v7997_v3 = vpop.permute.xlu1 %7996  ;;  %v8023_v50 = vsel %vm8016_vm5, %v8012_v28, 0.0 }
0x1eb8   :  { %v8013_v51 = vsel %vm584_vm0, %v8009_v23, %v7997_v3  ;;  %8024 = vadd.xlane.f32.xlu0 %v8023_v50 }
0x1eb9   :  { %v8026_v54 = vsel %vm8016_vm5, %v8013_v51, 0.0 }
0x1ebc   :  { %8027 = vadd.xlane.f32.xlu0 %v8026_v54 }
0x1f3d   :  { %v8019_v12 = vpop.xlane.xlu0 %8018 }
0x1f3e   :  { %v8030_v21 = vmul.f32 0.015625, %v8019_v12 }
0x1f3f   :  { %v8022_v11 = vpop.xlane.xlu1 %8021 }
0x1f40   :  { %v8034_v18 = vsub.f32 %v8010_v14, %v8030_v21  ;;  %v8031_v55 = vmul.f32 0.015625, %v8022_v11 }
0x1f41   :  { %v8025_v42 = vpop.xlane.xlu0 %8024 }
0x1f42   :  { %v8035_v61 = vsub.f32 %v8011_v43, %v8031_v55  ;;  %v8032_v37 = vmul.f32 0.015625, %v8025_v42  ;;  %v8038_v33 = vmul.f32 %v8034_v18, %v8034_v18 }
0x1f44   :  { %v8036_v24 = vsub.f32 %v8012_v28, %v8032_v37  ;;  %v8042_v2 = vsel %vm8016_vm5, %v8038_v33, 0.0  ;;  %v8039_v35 = vmul.f32 %v8035_v61, %v8035_v61 }
0x1f45   :  { %8043 = vadd.xlane.f32.xlu0 %v8042_v2  ;;  %v8028_v32 = vpop.xlane.xlu0 %8027 }
0x1f46   :  { %v8033_v4 = vmul.f32 0.015625, %v8028_v32  ;;  %v8045_v13 = vsel %vm8016_vm5, %v8039_v35, 0.0  ;;  %v8040_v0 = vmul.f32 %v8036_v24, %v8036_v24 }
0x1f47   :  { %8046 = vadd.xlane.f32.xlu1 %v8045_v13 }
0x1f48   :  { %v8037_v59 = vsub.f32 %v8013_v51, %v8033_v4  ;;  %v8048_v20 = vsel %vm8016_vm5, %v8040_v0, 0.0 }
0x1f49   :  { %8049 = vadd.xlane.f32.xlu0 %v8048_v20 }
0x1f4a   :  { %v8041_v19 = vmul.f32 %v8037_v59, %v8037_v59 }
0x1f4c   :  { %v8051_v27 = vsel %vm8016_vm5, %v8041_v19, 0.0 }
0x1f4d   :  { %8052 = vadd.xlane.f32.xlu1 %v8051_v27 }
0x1fce   :  { %v8044_v47 = vpop.xlane.xlu0 %8043 }
0x1fcf   :  { %v8054_v5 = vmul.f32 0.015625, %v8044_v47 }
0x1fd0   :  { %v8047_v8 = vpop.xlane.xlu1 %8046 }
0x1fd1   :  { %v8058_v40 = vadd.f32 1e-05, %v8054_v5  ;;  %v8055_v48 = vmul.f32 0.015625, %v8047_v8 }
0x1fd2   :  { %v8050_v9 = vpop.xlane.xlu0 %8049 }
0x1fd3   :  { %13865 = vrsqrt.f32 %v8058_v40  ;;  %v8059_v58 = vadd.f32 1e-05, %v8055_v48  ;;  %v8056_v29 = vmul.f32 0.015625, %v8050_v9 }
0x1fd5   :  { %13867 = vrsqrt.f32 %v8059_v58  ;;  %v8060_v7 = vadd.f32 1e-05, %v8056_v29 }
0x1fd6   :  { %v8053_v56 = vpop.xlane.xlu1 %8052 }
0x1fd7   :  { %13869 = vrsqrt.f32 %v8060_v7  ;;  %v8057_v52 = vmul.f32 0.015625, %v8053_v56 }
0x1fd9   :  { %v8061_v38 = vadd.f32 1e-05, %v8057_v52 }
0x1fdb   :  { %13871 = vrsqrt.f32 %v8061_v38 }
0x1fe0   :  { %v13866_v17 = vpop.eup %13865 }
0x1fe1   :  { %v8066_v22 = vmul.f32 %v13866_v17, %v8034_v18 }
0x1fe2   :  { %v13868_v41 = vpop.eup %13867 }
0x1fe3   :  { %v8067_v60 = vmul.f32 %v13868_v41, %v8035_v61  ;;  %v8076_v62 = vmul.f32 %v11684_v53, %v8066_v22 }
0x1fe4   :  { %v13870_v46 = vpop.eup %13869 }
0x1fe5   :  { %v8068_v36 = vmul.f32 %v13870_v46, %v8036_v24  ;;  %v8077_v39 = vmul.f32 %v11684_v53, %v8067_v60  ;;  %v8086_v31 = vadd.f32 %v11685_v45, %v8076_v62 }
0x1fe7   :  { %v8087_v14 = vadd.f32 %v11685_v45, %v8077_v39  ;;  %v8078_v63 = vmul.f32 %v11684_v53, %v8068_v36 }
0x1fe8   :  { %v13872_v30 = vpop.eup %13871 }
0x1fe9   :  { %v8069_v6 = vmul.f32 %v13872_v30, %v8037_v59  ;;  %v8090_v34 = vpack.c.bf16 %v8087_v14, %v8086_v31  ;;  %v8088_v26 = vadd.f32 %v11685_v45, %v8078_v63 }
0x1feb   :  { %v8079_v43 = vmul.f32 %v11684_v53, %v8069_v6  ;;  %12835 = vmatprep.mubr.msk.bf16.mxu1 %vm8016_vm5, %v8090_v34  ;;  %v11692_v53 = vld [vmem:[#allocation19] ss:$0 sm:$0xff] }
0x1fed   :  { %v8089_v44 = vadd.f32 %v11685_v45, %v8079_v43  ;;  %v11693_v45 = vld [vmem:[#allocation17] ss:$0 sm:$0xff] }
0x1fef   :  { %v8091_v15 = vpack.c.bf16 %v8089_v44, %v8088_v26 }
0x1ff1   :  { %12836 = vmatmul.mubr.msk.bf16.vlgmr.msra.gmra.mxu1 %vm8016_vm5, %v8091_v15 }
0x1ff2   :  { %12849 = vmatprep.mubr.msk.bf16.mxu1 %vm14651_vm2, %v18714_v49 }
0x20b1   :  { %v18022_v16 = vpop.f32.mrf.mxu1 }
0x20b2   :  { %v8187_v51 = vsel %vm4146_vm4, %v18022_v16, 0.0 }
0x20b3   :  { %v18024_v28 = vpop.f32.mrf.mxu1 }
0x20b4   :  { %v8181_v23 = vsel %vm4146_vm4, %v18024_v28, 0.0 }
0x20b5   :  { %8182 = vadd.xlane.f32.xlu0 %v8181_v23  ;;  %v18028_v3 = vpop.f32.mrf.mxu1  ;;  %v11694_v23 = vld [vmem:[#allocation25] ss:$0 sm:$0xff] }
0x20b6   :  { %v8190_v12 = vsel %vm4146_vm4, %v18028_v3, 0.0 }
0x20b7   :  { %v18030_v50 = vpop.f32.mrf.mxu1 }
0x20b8   :  { %v8184_v54 = vsel %vm4146_vm4, %v18030_v50, 0.0 }
0x20b9   :  { %8188 = vadd.xlane.f32.xlu0 %v8187_v51  ;;  %8185 = vadd.xlane.f32.xlu1 %v8184_v54 }
0x20bd   :  { %8191 = vadd.xlane.f32.xlu1 %v8190_v12 }
0x213e   :  { %v8183_v21 = vpop.xlane.xlu0 %8182 }
0x213f   :  { %v8194_v11 = vmul.f32 0.03125, %v8183_v21 }
0x2141   :  { %v8198_v18 = vsub.f32 %v18024_v28, %v8194_v11 }
0x2142   :  { %v8189_v55 = vpop.xlane.xlu0 %8188  ;;  %v8186_v42 = vpop.xlane.xlu1 %8185 }
0x2143   :  { %v8196_v61 = vmul.f32 0.03125, %v8189_v55  ;;  %v8195_v37 = vmul.f32 0.03125, %v8186_v42  ;;  %v8202_v33 = vmul.f32 %v8198_v18, %v8198_v18 }
0x2145   :  { %v8200_v24 = vsub.f32 %v18022_v16, %v8196_v61  ;;  %v8199_v2 = vsub.f32 %v18030_v50, %v8195_v37  ;;  %v8206_v35 = vsel %vm4146_vm4, %v8202_v33, 0.0 }
0x2146   :  { %8207 = vadd.xlane.f32.xlu0 %v8206_v35  ;;  %v8192_v32 = vpop.xlane.xlu1 %8191 }
0x2147   :  { %v8197_v4 = vmul.f32 0.03125, %v8192_v32  ;;  %v8204_v13 = vmul.f32 %v8200_v24, %v8200_v24  ;;  %v8203_v0 = vmul.f32 %v8199_v2, %v8199_v2 }
0x2149   :  { %v8201_v59 = vsub.f32 %v18028_v3, %v8197_v4  ;;  %v8212_v20 = vsel %vm4146_vm4, %v8204_v13, 0.0  ;;  %v8209_v19 = vsel %vm4146_vm4, %v8203_v0, 0.0 }
0x214a   :  { %8213 = vadd.xlane.f32.xlu0 %v8212_v20  ;;  %8210 = vadd.xlane.f32.xlu1 %v8209_v19  ;;  %v8334_v19 = vld [vmem:[%s18746_s4] sm:$0xff] }
0x214b   :  { %v8205_v27 = vmul.f32 %v8201_v59, %v8201_v59 }
0x214d   :  { %v8215_v57 = vsel %vm4146_vm4, %v8205_v27, 0.0 }
0x214e   :  { %8216 = vadd.xlane.f32.xlu1 %v8215_v57 }
0x21cf   :  { %v8208_v1 = vpop.xlane.xlu0 %8207 }
0x21d0   :  { %v8218_v47 = vmul.f32 0.03125, %v8208_v1 }
0x21d2   :  { %v8222_v5 = vadd.f32 1e-05, %v8218_v47 }
0x21d3   :  { %v8214_v8 = vpop.xlane.xlu0 %8213  ;;  %v8211_v40 = vpop.xlane.xlu1 %8210 }
0x21d4   :  { %13873 = vrsqrt.f32 %v8222_v5  ;;  %v8220_v48 = vmul.f32 0.03125, %v8214_v8  ;;  %v8219_v9 = vmul.f32 0.03125, %v8211_v40 }
0x21d6   :  { %v8224_v58 = vadd.f32 1e-05, %v8220_v48  ;;  %v8223_v29 = vadd.f32 1e-05, %v8219_v9 }
0x21d7   :  { %v8217_v7 = vpop.xlane.xlu1 %8216 }
0x21d8   :  { %13875 = vrsqrt.f32 %v8224_v58  ;;  %v8221_v56 = vmul.f32 0.03125, %v8217_v7 }
0x21d9   :  { %13877 = vrsqrt.f32 %v8223_v29 }
0x21da   :  { %v8225_v52 = vadd.f32 1e-05, %v8221_v56 }
0x21dc   :  { %13879 = vrsqrt.f32 %v8225_v52 }
0x21e1   :  { %v13874_v38 = vpop.eup %13873 }
0x21e2   :  { %v8230_v17 = vmul.f32 %v13874_v38, %v8198_v18 }
0x21e4   :  { %v8240_v46 = vmul.f32 %v11692_v53, %v8230_v17 }
0x21e5   :  { %v13876_v22 = vpop.eup %13875 }
0x21e6   :  { %v13878_v41 = vpop.eup %13877  ;;  %v8232_v60 = vmul.f32 %v13876_v22, %v8200_v24  ;;  %v8250_v30 = vadd.f32 %v11693_v45, %v8240_v46 }
0x21e7   :  { %v8231_v62 = vmul.f32 %v13878_v41, %v8199_v2 }
0x21e8   :  { %v8242_v14 = vmul.f32 %v11692_v53, %v8232_v60 }
0x21e9   :  { %v13880_v36 = vpop.eup %13879  ;;  %v8241_v39 = vmul.f32 %v11692_v53, %v8231_v62 }
0x21ea   :  { %v8233_v31 = vmul.f32 %v13880_v36, %v8201_v59  ;;  %v8252_v43 = vadd.f32 %v11693_v45, %v8242_v14 }
0x21eb   :  { %v8251_v6 = vadd.f32 %v11693_v45, %v8241_v39 }
0x21ec   :  { %v8243_v63 = vmul.f32 %v11692_v53, %v8233_v31 }
0x21ed   :  { %v8254_v34 = vpack.c.bf16 %v8251_v6, %v8250_v30 }
0x21ee   :  { %v8253_v26 = vadd.f32 %v11693_v45, %v8243_v63 }
0x21ef   :  { %12843 = vmatprep.mubr.msk.bf16.mxu0 %vm4146_vm4, %v8254_v34 }
0x21f0   :  { %v8255_v44 = vpack.c.bf16 %v8253_v26, %v8252_v43 }
0x21f2   :  { %12844 = vmatmul.mubr.msk.bf16.vlgmr.msra.gmra.mxu0 %vm4146_vm4, %v8255_v44 }
0x21f3   :  { %12855 = vmatprep.mubr.msk.bf16.mxu0 %vm14651_vm2, %v18714_v49 }
0x22b2   :  { %v12845_v15 = vpop.f32.mrf.mxu0 }
0x22b3   :  { %v8328_v54 = vadd.f32 %v12845_v15, %v11694_v23 }
0x22b4   :  { %v8319_v51 = vpop.f32.mrf.mxu0 }
0x22b5   :  { %v8320_v21 = vadd.f32 %v11694_v23, %v8319_v51  ;;  %v8344_v55 = vmul.f32 0.35355338, %v8328_v54 }
0x22b6   :  { %v12846_v12 = vpop.f32.mrf.mxu0 }
0x22b7   :  { %v8331_v11 = vadd.f32 %v12846_v12, %v11694_v23  ;;  %v8342_v33 = vmul.f32 0.35355338, %v8320_v21 }
0x22b8   :  { %v8322_v18 = vpop.f32.mrf.mxu0 }
0x22b9   :  { %v8345_v42 = vmul.f32 0.35355338, %v8331_v11  ;;  %v18053_v61 = vpack.c.bf16 %v8331_v11, %v8328_v54  ;;  %v8323_v37 = vadd.f32 %v11694_v23, %v8322_v18 }
0x22bb   :  { %v18055_v24 = vpack.c.bf16 %v8345_v42, %v8344_v55  ;;  %v8343_v2 = vmul.f32 0.35355338, %v8323_v37  ;;  %v18057_v35 = vpack.c.bf16 %v8323_v37, %v8320_v21  ;;  %8401 = vrot.lane.b32.xlu1 %v18053_v61, %s14653_s25 }
0x22bd   :  { %v18061_v32 = vpack.c.bf16 %v8343_v2, %v8342_v33  ;;  %8351 = vrot.lane.b32.xlu0 %v18057_v35, %s14653_s25 }
0x232d   :  { %v8402_v4 = vpop.permute.xlu1 %8401 }
0x232e   :  { %v8407_v13 = vsel %vm1399_vm3, %v8402_v4, 0 }
0x232f   :  { %12854 = vmatpush3.bf16.xpose.msra.mxu0 %v8407_v13  ;;  %v8352_v0 = vpop.permute.xlu0 %8351 }
0x2330   :  { %v8357_v59 = vsel %vm1399_vm3, %v8352_v0, 0  ;;  %12865 = vmatprep.subr.bf16.mxu0 %v18714_v49 }
0x2331   :  { %12848 = vmatpush3.bf16.xpose.msra.mxu1 %v8357_v59 }
0x2332   :  { %12859 = vmatprep.subr.bf16.mxu1 %v18714_v49 }
0x2336   :  { %12856 = vmatmul.mubr.msk.bf16.vlgmr.msra.gmra.mxu0 %vm1399_vm3, %v18055_v24 }
0x2337   :  { %12867 = vmatprep.mubr.msk.bf16.mxu0 %vm14651_vm2, %v18714_v49 }
0x2338   :  { %12850 = vmatmul.mubr.msk.bf16.vlgmr.msra.gmra.mxu1 %vm1399_vm3, %v18061_v32 }
0x2339   :  { %12861 = vmatprep.mubr.msk.bf16.mxu1 %vm14651_vm2, %v18714_v49 }
0x23f6   :  { %v8443_v20 = vpop.f32.mrf.mxu0 }
0x23f7   :  { %v8444_v29 = vadd.f32 %v8443_v20, %v8334_v19 }
0x23f8   :  { %v8393_v27 = vpop.f32.mrf.mxu1  ;;  %v12857_v57 = vpop.f32.mrf.mxu0 }
0x23f9   :  { %v8394_v10 = vadd.f32 %v8393_v27, %v8334_v19  ;;  %v8456_v52 = vsel %vm708_vm1, %v8444_v29, -inf }
0x23fa   :  { %v12851_v1 = vpop.f32.mrf.mxu1  ;;  %v8446_v47 = vpop.f32.mrf.mxu0 }
0x23fb   :  { %v8447_v5 = vadd.f32 %v8446_v47, %v8335_v25  ;;  %v8450_v8 = vsel %vm708_vm1, %v8394_v10, -inf }
0x23fc   :  { %v12858_v40 = vpop.f32.mrf.mxu0  ;;  %8451 = vmax.xlane.f32.xlu1 %v8450_v8  ;;  %v8396_v48 = vpop.f32.mrf.mxu1 }
0x23fd   :  { %v8397_v9 = vadd.f32 %v8396_v48, %v8335_v25  ;;  %v8459_v7 = vsel %vm708_vm1, %v8447_v5, -inf }
0x23fe   :  { %v12852_v58 = vpop.f32.mrf.mxu1 }
0x23ff   :  { %v8453_v56 = vsel %vm708_vm1, %v8397_v9, -inf }
0x2400   :  { %8460 = vmax.xlane.f32.xlu1 %v8459_v7  ;;  %8454 = vmax.xlane.f32.xlu0 %v8453_v56  ;;  %v8336_v7 = vld [vmem:[%s18746_s4 + $0x10] sm:$0xff] }
0x2404   :  { %8457 = vmax.xlane.f32.xlu0 %v8456_v52 }
0x2411   :  { %8543 = vrot.lane.b32.xlu1 %v18053_v61, %s14661_s0 }
0x2415   :  { %8593 = vrot.lane.b32.xlu1 %v18057_v35, %s14656_s2 }
0x2485   :  { %v8452_v38 = vpop.xlane.xlu1 %8451 }
0x2486   :  { %v8462_v60 = vsub.f32 %v8394_v10, %v8452_v38 }
0x2488   :  { %v8466_v31 = vmul.f32 1.442695, %v8462_v60  ;;  %v8337_v60 = vld [vmem:[%s18746_s4 + $0x18] sm:$0xff] }
0x2489   :  { %v8461_v17 = vpop.xlane.xlu1 %8460  ;;  %v8455_v53 = vpop.xlane.xlu0 %8454 }
0x248a   :  { %v8465_v22 = vsub.f32 %v8447_v5, %v8461_v17  ;;  %v8463_v41 = vsub.f32 %v8397_v9, %v8455_v53 }
0x248c   :  { %v8472_v62 = vmul.f32 1.442695, %v8465_v22  ;;  %v8468_v46 = vmul.f32 1.442695, %v8463_v41 }
0x248d   :  { %v8544_v45 = vpop.permute.xlu1 %8543  ;;  %v8458_v36 = vpop.xlane.xlu0 %8457 }
0x248e   :  { %13881 = vpow2.f32 %v8472_v62  ;;  %v8464_v39 = vsub.f32 %v8444_v29, %v8458_v36  ;;  %12866 = vmatpush3.bf16.msra.mxu0 %v8544_v45 }
0x248f   :  { %12877 = vmatprep.subr.bf16.mxu0 %v18714_v49  ;;  %13883 = vpow2.f32 %v8468_v46 }
0x2490   :  { %v8470_v14 = vmul.f32 1.442695, %v8464_v39 }
0x2491   :  { %v8594_v23 = vpop.permute.xlu1 %8593 }
0x2492   :  { %13885 = vpow2.f32 %v8470_v14  ;;  %v8599_v27 = vsel %vm1399_vm3, %v8594_v23, 0 }
0x2493   :  { %13887 = vpow2.f32 %v8466_v31 }
0x249b   :  { %v13882_v30 = vpop.eup %13881 }
0x249c   :  { %v8483_v6 = vsel %vm708_vm1, %v13882_v30, 0.0  ;;  %v13884_v63 = vpop.eup %13883 }
0x249d   :  { %8484 = vadd.xlane.f32.xlu1 %v8483_v6  ;;  %v8477_v43 = vsel %vm708_vm1, %v13884_v63, 0.0 }
0x249f   :  { %v13886_v34 = vpop.eup %13885 }
0x24a0   :  { %v8480_v26 = vsel %vm708_vm1, %v13886_v34, 0.0  ;;  %v13888_v44 = vpop.eup %13887 }
0x24a1   :  { %8478 = vadd.xlane.f32.xlu1 %v8477_v43  ;;  %8481 = vadd.xlane.f32.xlu0 %v8480_v26  ;;  %v8474_v15 = vsel %vm708_vm1, %v13888_v44, 0.0 }
0x24a5   :  { %8475 = vadd.xlane.f32.xlu0 %v8474_v15 }
0x24b2   :  { %8645 = vrot.lane.b32.xlu1 %v18053_v61, %s14656_s2 }
0x24b6   :  { %8643 = vrot.lane.b32.xlu1 %v18055_v24, %s14655_s9 }
0x24bb   :  { %8496 = vrot.lane.b32.xlu0 %v18057_v35, %s14661_s0 }
0x24bf   :  { %8591 = vrot.lane.b32.xlu0 %v18061_v32, %s14655_s9 }
0x2526   :  { %v8485_v51 = vpop.xlane.xlu1 %8484 }
0x2527   :  { %13889 = vrcp.f32 %v8485_v51 }
0x252a   :  { %v8479_v54 = vpop.xlane.xlu1 %8478  ;;  %v8482_v12 = vpop.xlane.xlu0 %8481 }
0x252b   :  { %13891 = vrcp.f32 %v8482_v12 }
0x252c   :  { %13893 = vrcp.f32 %v8479_v54 }
0x252e   :  { %v8476_v21 = vpop.xlane.xlu0 %8475  ;;  %v8646_v2 = vpop.permute.xlu1 %8645 }
0x252f   :  { %13895 = vrcp.f32 %v8476_v21  ;;  %v8651_v20 = vsel %vm1399_vm3, %v8646_v2, 0 }
0x2532   :  { %v8497_v11 = vpop.permute.xlu0 %8496  ;;  %v8644_v57 = vpop.permute.xlu1 %8643 }
0x2533   :  { %12860 = vmatpush3.bf16.msra.mxu1 %v8497_v11 }
0x2534   :  { %12871 = vmatprep.subr.bf16.mxu1 %v18714_v49  ;;  %v13890_v18 = vpop.eup %13889 }
0x2535   :  { %v8493_v37 = vmul.f32 %v13890_v18, %v13882_v30 }
0x2536   :  { %v8592_v25 = vpop.permute.xlu0 %8591 }
0x2538   :  { %v13892_v55 = vpop.eup %13891 }
0x2539   :  { %v13894_v42 = vpop.eup %13893  ;;  %v8492_v33 = vmul.f32 %v13892_v55, %v13886_v34 }
0x253a   :  { %v8491_v0 = vmul.f32 %v13894_v42, %v13884_v63 }
0x253b   :  { %v8495_v13 = vpack.c.bf16 %v8493_v37, %v8492_v33 }
0x253c   :  { %v13896_v4 = vpop.eup %13895 }
0x253d   :  { %v8490_v59 = vmul.f32 %v13896_v4, %v13888_v44  ;;  %12868 = vmatmul.mubr.msk.bf16.vlgmr.msra.gmra.mxu0 %vm708_vm1, %v8495_v13 }
0x253e   :  { %12878 = vmatpush3.bf16.xpose.msra.mxu0 %v8651_v20  ;;  %12879 = vmatprep.mubr.msk.bf16.mxu0 %vm14651_vm2, %v18714_v49 }
0x253f   :  { %v8494_v19 = vpack.c.bf16 %v8491_v0, %v8490_v59  ;;  %12889 = vmatprep.subr.bf16.mxu0 %v18714_v49 }
0x2541   :  { %12862 = vmatmul.mubr.msk.bf16.vlgmr.msra.gmra.mxu1 %vm708_vm1, %v8494_v19 }
0x2542   :  { %12872 = vmatpush3.bf16.xpose.msra.mxu1 %v8599_v27  ;;  %12873 = vmatprep.mubr.msk.bf16.mxu1 %vm14651_vm2, %v18714_v49 }
0x2543   :  { %12883 = vmatprep.subr.bf16.mxu1 %v18714_v49 }
0x2545   :  { %12880 = vmatmul.mubr.msk.bf16.vlgmr.msra.gmra.mxu0 %vm1399_vm3, %v8644_v57 }
0x2546   :  { %12891 = vmatprep.mubr.msk.bf16.mxu0 %vm14651_vm2, %v18714_v49 }
0x2549   :  { %12874 = vmatmul.mubr.msk.bf16.vlgmr.msra.gmra.mxu1 %vm1399_vm3, %v8592_v25 }
0x254a   :  { %12885 = vmatprep.mubr.msk.bf16.mxu1 %vm14651_vm2, %v18714_v49 }
0x25fd   :  { %v18117_v10 = vpop.f32.mrf.mxu0 }
0x25ff   :  { %v12869_v1 = vpop.f32.mrf.mxu0 }
0x2601   :  { %v18119_v47 = vpop.f32.mrf.mxu1  ;;  %v18121_v5 = vpop.f32.mrf.mxu0 }
0x2603   :  { %v12863_v8 = vpop.f32.mrf.mxu1  ;;  %v12870_v40 = vpop.f32.mrf.mxu0 }
0x2605   :  { %v18123_v48 = vpop.f32.mrf.mxu1  ;;  %v8687_v9 = vpop.f32.mrf.mxu0 }
0x2606   :  { %v8688_v53 = vadd.f32 %v8687_v9, %v8336_v7 }
0x2607   :  { %v12864_v58 = vpop.f32.mrf.mxu1  ;;  %v12881_v29 = vpop.f32.mrf.mxu0 }
0x2608   :  { %v8700_v39 = vsel %vm708_vm1, %v8688_v53, -inf }
0x2609   :  { %v8635_v56 = vpop.f32.mrf.mxu1  ;;  %v8690_v38 = vpop.f32.mrf.mxu0 }
0x260a   :  { %v8636_v52 = vadd.f32 %v8635_v56, %v8336_v7  ;;  %v8691_v36 = vadd.f32 %v8690_v38, %v8337_v60 }
0x260b   :  { %v12875_v17 = vpop.f32.mrf.mxu1  ;;  %v12882_v22 = vpop.f32.mrf.mxu0 }
0x260c   :  { %v8694_v41 = vsel %vm708_vm1, %v8636_v52, -inf  ;;  %v8703_v14 = vsel %vm708_vm1, %v8691_v36, -inf }
0x260d   :  { %8695 = vmax.xlane.f32.xlu0 %v8694_v41  ;;  %v8638_v62 = vpop.f32.mrf.mxu1 }
0x260e   :  { %v8639_v46 = vadd.f32 %v8638_v62, %v8337_v60 }
0x260f   :  { %v12876_v45 = vpop.f32.mrf.mxu1 }
0x2610   :  { %v8697_v31 = vsel %vm708_vm1, %v8639_v46, -inf }
0x2611   :  { %8701 = vmax.xlane.f32.xlu0 %v8700_v39  ;;  %8698 = vmax.xlane.f32.xlu1 %v8697_v31 }
0x2615   :  { %8704 = vmax.xlane.f32.xlu0 %v8703_v14 }
0x2622   :  { %8787 = vrot.lane.b32.xlu1 %v18053_v61, %s14662_s8 }
0x2626   :  { %8836 = vrot.lane.b32.xlu1 %v18057_v35, %s14663_s10 }
0x2696   :  { %v8696_v30 = vpop.xlane.xlu0 %8695 }
0x2697   :  { %v8706_v6 = vsub.f32 %v8636_v52, %v8696_v30 }
0x2699   :  { %v8710_v26 = vmul.f32 1.442695, %v8706_v6 }
0x269a   :  { %v8702_v63 = vpop.xlane.xlu0 %8701  ;;  %v8699_v34 = vpop.xlane.xlu1 %8698 }
0x269b   :  { %v8708_v43 = vsub.f32 %v8688_v53, %v8702_v63  ;;  %v8707_v15 = vsub.f32 %v8639_v46, %v8699_v34  ;;  %v8338_v34 = vld [vmem:[%s18746_s4 + $0x20] sm:$0xff] }
0x269d   :  { %v8714_v44 = vmul.f32 1.442695, %v8708_v43  ;;  %v8712_v12 = vmul.f32 1.442695, %v8707_v15 }
0x269e   :  { %v8705_v23 = vpop.xlane.xlu0 %8704  ;;  %v8788_v51 = vpop.permute.xlu1 %8787 }
0x269f   :  { %13897 = vpow2.f32 %v8714_v44  ;;  %v8709_v54 = vsub.f32 %v8691_v36, %v8705_v23  ;;  %12890 = vmatpush3.bf16.msra.mxu0 %v8788_v51 }
0x26a0   :  { %12901 = vmatprep.subr.bf16.mxu0 %v18714_v49  ;;  %13899 = vpow2.f32 %v8710_v26 }
0x26a1   :  { %v8716_v21 = vmul.f32 1.442695, %v8709_v54 }
0x26a2   :  { %v8837_v13 = vpop.permute.xlu1 %8836 }
0x26a3   :  { %13901 = vpow2.f32 %v8716_v21  ;;  %v8842_v17 = vsel %vm1399_vm3, %v8837_v13, 0 }
0x26a4   :  { %13903 = vpow2.f32 %v8712_v12  ;;  %v8339_v12 = vld [vmem:[%s18746_s4 + $0x28] sm:$0xff] }
0x26ac   :  { %v13898_v11 = vpop.eup %13897 }
0x26ad   :  { %v8724_v18 = vsel %vm708_vm1, %v13898_v11, 0.0  ;;  %v13900_v55 = vpop.eup %13899 }
0x26ae   :  { %8725 = vadd.xlane.f32.xlu0 %v8724_v18  ;;  %v8718_v37 = vsel %vm708_vm1, %v13900_v55, 0.0 }
0x26b0   :  { %v13902_v42 = vpop.eup %13901 }
0x26b1   :  { %v8727_v33 = vsel %vm708_vm1, %v13902_v42, 0.0  ;;  %v13904_v2 = vpop.eup %13903 }
0x26b2   :  { %8719 = vadd.xlane.f32.xlu0 %v8718_v37  ;;  %8728 = vadd.xlane.f32.xlu1 %v8727_v33  ;;  %v8721_v4 = vsel %vm708_vm1, %v13904_v2, 0.0 }
0x26b6   :  { %8722 = vadd.xlane.f32.xlu1 %v8721_v4 }
0x26c7   :  { %8887 = vrot.lane.b32.xlu1 %v18053_v61, %s14663_s10 }
0x26c8   :  { %8740 = vrot.lane.b32.xlu0 %v18057_v35, %s14662_s8 }
0x26cb   :  { %8885 = vrot.lane.b32.xlu1 %v18055_v24, %s14652_s30 }
0x26cc   :  { %8834 = vrot.lane.b32.xlu0 %v18061_v32, %s14652_s30 }
0x2737   :  { %v8726_v0 = vpop.xlane.xlu0 %8725 }
0x2738   :  { %13905 = vrcp.f32 %v8726_v0 }
0x273b   :  { %v8720_v59 = vpop.xlane.xlu0 %8719  ;;  %v8729_v20 = vpop.xlane.xlu1 %8728 }
0x273c   :  { %13907 = vrcp.f32 %v8729_v20 }
0x273d   :  { %13909 = vrcp.f32 %v8720_v59 }
0x273f   :  { %v8741_v19 = vpop.permute.xlu0 %8740  ;;  %v8723_v27 = vpop.xlane.xlu1 %8722 }
0x2740   :  { %13911 = vrcp.f32 %v8723_v27  ;;  %12884 = vmatpush3.bf16.msra.mxu1 %v8741_v19 }
0x2741   :  { %12895 = vmatprep.subr.bf16.mxu1 %v18714_v49 }
0x2743   :  { %v8888_v9 = vpop.permute.xlu1 %8887  ;;  %v8835_v22 = vpop.permute.xlu0 %8834 }
0x2744   :  { %v8893_v52 = vsel %vm1399_vm3, %v8888_v9, 0 }
0x2745   :  { %v13906_v57 = vpop.eup %13905 }
0x2746   :  { %v8736_v8 = vmul.f32 %v13906_v57, %v13898_v11 }
0x2747   :  { %v8886_v53 = vpop.permute.xlu1 %8885 }
0x2749   :  { %v13908_v25 = vpop.eup %13907 }
0x274a   :  { %v13910_v1 = vpop.eup %13909  ;;  %v8737_v40 = vmul.f32 %v13908_v25, %v13902_v42 }
0x274b   :  { %v8734_v7 = vmul.f32 %v13910_v1, %v13900_v55 }
0x274c   :  { %v8739_v29 = vpack.c.bf16 %v8737_v40, %v8736_v8 }
0x274d   :  { %v13912_v58 = vpop.eup %13911 }
0x274e   :  { %v8735_v56 = vmul.f32 %v13912_v58, %v13904_v2  ;;  %12892 = vmatmul.mubr.msk.bf16.vlgmr.msra.gmra.mxu0 %vm708_vm1, %v8739_v29 }
0x274f   :  { %12902 = vmatpush3.bf16.xpose.msra.mxu0 %v8893_v52  ;;  %12903 = vmatprep.mubr.msk.bf16.mxu0 %vm14651_vm2, %v18714_v49 }
0x2750   :  { %v8738_v38 = vpack.c.bf16 %v8735_v56, %v8734_v7  ;;  %12913 = vmatprep.subr.bf16.mxu0 %v18714_v49 }
0x2752   :  { %12886 = vmatmul.mubr.msk.bf16.vlgmr.msra.gmra.mxu1 %vm708_vm1, %v8738_v38 }
0x2753   :  { %12896 = vmatpush3.bf16.xpose.msra.mxu1 %v8842_v17  ;;  %12897 = vmatprep.mubr.msk.bf16.mxu1 %vm14651_vm2, %v18714_v49 }
0x2754   :  { %12907 = vmatprep.subr.bf16.mxu1 %v18714_v49 }
0x2756   :  { %12904 = vmatmul.mubr.msk.bf16.vlgmr.msra.gmra.mxu0 %vm1399_vm3, %v8886_v53 }
0x2757   :  { %12915 = vmatprep.mubr.msk.bf16.mxu0 %vm14651_vm2, %v18714_v49 }
0x275a   :  { %12898 = vmatmul.mubr.msk.bf16.vlgmr.msra.gmra.mxu1 %vm1399_vm3, %v8835_v22 }
0x275b   :  { %12909 = vmatprep.mubr.msk.bf16.mxu1 %vm14651_vm2, %v18714_v49 }
0x280e   :  { %v18165_v41 = vpop.f32.mrf.mxu0 }
0x2810   :  { %v12893_v60 = vpop.f32.mrf.mxu0 }
0x2812   :  { %v18167_v62 = vpop.f32.mrf.mxu1  ;;  %v18169_v46 = vpop.f32.mrf.mxu0 }
0x2813   :  { %v13293_v45 = vpack.i.bf16 %v18169_v46, %v18165_v41 }
0x2814   :  { %v12887_v36 = vpop.f32.mrf.mxu1  ;;  %v12894_v39 = vpop.f32.mrf.mxu0 }
0x2816   :  { %v18173_v31 = vpop.f32.mrf.mxu1  ;;  %v8929_v30 = vpop.f32.mrf.mxu0 }
0x2817   :  { %v13288_v14 = vpack.i.bf16 %v18173_v31, %v18167_v62  ;;  %v8930_v23 = vadd.f32 %v8929_v30, %v8338_v34 }
0x2818   :  { %v12888_v6 = vpop.f32.mrf.mxu1  ;;  %v12905_v63 = vpop.f32.mrf.mxu0 }
0x2819   :  { %v8942_v42 = vsel %vm708_vm1, %v8930_v23, -inf }
0x281a   :  { %v8878_v43 = vpop.f32.mrf.mxu1  ;;  %v8932_v44 = vpop.f32.mrf.mxu0 }
0x281b   :  { %v8879_v26 = vadd.f32 %v8878_v43, %v8338_v34  ;;  %v8933_v55 = vadd.f32 %v8932_v44, %v8339_v12 }
0x281c   :  { %v12899_v15 = vpop.f32.mrf.mxu1  ;;  %v12906_v51 = vpop.f32.mrf.mxu0 }
0x281d   :  { %v8936_v54 = vsel %vm708_vm1, %v8879_v26, -inf  ;;  %v8945_v33 = vsel %vm708_vm1, %v8933_v55, -inf }
0x281e   :  { %8937 = vmax.xlane.f32.xlu0 %v8936_v54  ;;  %v8881_v21 = vpop.f32.mrf.mxu1 }
0x281f   :  { %v8882_v11 = vadd.f32 %v8881_v21, %v8339_v12 }
0x2820   :  { %v12900_v18 = vpop.f32.mrf.mxu1 }
0x2821   :  { %v8939_v37 = vsel %vm708_vm1, %v8882_v11, -inf }
0x2822   :  { %8943 = vmax.xlane.f32.xlu0 %v8942_v42  ;;  %8940 = vmax.xlane.f32.xlu1 %v8939_v37 }
0x2826   :  { %8946 = vmax.xlane.f32.xlu0 %v8945_v33 }
0x2833   :  { %9029 = vrot.lane.b32.xlu1 %v18053_v61, %s14660_s27 }
0x2837   :  { %9078 = vrot.lane.b32.xlu1 %v18057_v35, %s14664_s11 }
0x28a7   :  { %v8938_v2 = vpop.xlane.xlu0 %8937 }
0x28a8   :  { %v8948_v4 = vsub.f32 %v8879_v26, %v8938_v2 }
0x28aa   :  { %v8952_v20 = vmul.f32 1.442695, %v8948_v4 }
0x28ab   :  { %v8944_v13 = vpop.xlane.xlu0 %8943  ;;  %v8941_v0 = vpop.xlane.xlu1 %8940 }
0x28ac   :  { %v8950_v59 = vsub.f32 %v8930_v23, %v8944_v13  ;;  %v8949_v27 = vsub.f32 %v8882_v11, %v8941_v0 }
0x28ae   :  { %v8956_v19 = vmul.f32 1.442695, %v8950_v59  ;;  %v8954_v8 = vmul.f32 1.442695, %v8949_v27  ;;  %v8340_v27 = vld [vmem:[%s18746_s4 + $0x30] sm:$0xff] }
0x28af   :  { %v8947_v57 = vpop.xlane.xlu0 %8946  ;;  %v9030_v25 = vpop.permute.xlu1 %9029 }
0x28b0   :  { %13913 = vpow2.f32 %v8956_v19  ;;  %v8951_v1 = vsub.f32 %v8933_v55, %v8947_v57  ;;  %12914 = vmatpush3.bf16.msra.mxu0 %v9030_v25 }
0x28b1   :  { %12925 = vmatprep.subr.bf16.mxu0 %v18714_v49  ;;  %13915 = vpow2.f32 %v8952_v20 }
0x28b2   :  { %v8958_v40 = vmul.f32 1.442695, %v8951_v1 }
0x28b3   :  { %v9079_v53 = vpop.permute.xlu1 %9078 }
0x28b4   :  { %13917 = vpow2.f32 %v8958_v40  ;;  %v9084_v12 = vsel %vm1399_vm3, %v9079_v53, 0 }
0x28b5   :  { %13919 = vpow2.f32 %v8954_v8 }
0x28bd   :  { %v13914_v9 = vpop.eup %13913 }
0x28be   :  { %v8966_v58 = vsel %vm708_vm1, %v13914_v9, 0.0  ;;  %v13916_v29 = vpop.eup %13915 }
0x28bf   :  { %8967 = vadd.xlane.f32.xlu0 %v8966_v58  ;;  %v8960_v56 = vsel %vm708_vm1, %v13916_v29, 0.0 }
0x28c1   :  { %v13918_v7 = vpop.eup %13917 }
0x28c2   :  { %v8969_v52 = vsel %vm708_vm1, %v13918_v7, 0.0  ;;  %v13920_v38 = vpop.eup %13919 }
0x28c3   :  { %8961 = vadd.xlane.f32.xlu0 %v8960_v56  ;;  %8970 = vadd.xlane.f32.xlu1 %v8969_v52  ;;  %v8963_v17 = vsel %vm708_vm1, %v13920_v38, 0.0 }
0x28c7   :  { %8964 = vadd.xlane.f32.xlu1 %v8963_v17 }
0x28d8   :  { %9129 = vrot.lane.b32.xlu1 %v18053_v61, %s14664_s11 }
0x28d9   :  { %8982 = vrot.lane.b32.xlu0 %v18057_v35, %s14660_s27 }
0x28dc   :  { %9127 = vrot.lane.b32.xlu1 %v18055_v24, %s14654_s1 }
0x28dd   :  { %9076 = vrot.lane.b32.xlu0 %v18061_v32, %s14654_s1 }
0x2948   :  { %v8968_v22 = vpop.xlane.xlu0 %8967 }
0x2949   :  { %13921 = vrcp.f32 %v8968_v22 }
0x294c   :  { %v8962_v60 = vpop.xlane.xlu0 %8961  ;;  %v8971_v36 = vpop.xlane.xlu1 %8970 }
0x294d   :  { %13923 = vrcp.f32 %v8971_v36 }
0x294e   :  { %13925 = vrcp.f32 %v8962_v60 }
0x2950   :  { %v8983_v39 = vpop.permute.xlu0 %8982  ;;  %v8965_v30 = vpop.xlane.xlu1 %8964 }
0x2951   :  { %13927 = vrcp.f32 %v8965_v30  ;;  %12908 = vmatpush3.bf16.msra.mxu1 %v8983_v39 }
0x2952   :  { %12919 = vmatprep.subr.bf16.mxu1 %v18714_v49 }
0x2954   :  { %v9130_v26 = vpop.permute.xlu1 %9129  ;;  %v9077_v11 = vpop.permute.xlu0 %9076 }
0x2955   :  { %v9135_v51 = vsel %vm1399_vm3, %v9130_v26, 0 }
0x2956   :  { %v13922_v6 = vpop.eup %13921 }
0x2957   :  { %v8978_v24 = vmul.f32 %v13922_v6, %v13914_v9 }
0x2958   :  { %v9128_v21 = vpop.permute.xlu1 %9127 }
0x295a   :  { %v13924_v63 = vpop.eup %13923 }
0x295b   :  { %v13926_v34 = vpop.eup %13925  ;;  %v8979_v43 = vmul.f32 %v13924_v63, %v13918_v7 }
0x295c   :  { %v8976_v15 = vmul.f32 %v13926_v34, %v13916_v29  ;;  %v8341_v29 = vld [vmem:[%s18746_s4 + $0x38] sm:$0xff] }
0x295d   :  { %v8981_v44 = vpack.c.bf16 %v8979_v43, %v8978_v24 }
0x295e   :  { %v13928_v32 = vpop.eup %13927 }
0x295f   :  { %v8977_v23 = vmul.f32 %v13928_v32, %v13920_v38  ;;  %12916 = vmatmul.mubr.msk.bf16.vlgmr.msra.gmra.mxu0 %vm708_vm1, %v8981_v44 }
0x2960   :  { %12926 = vmatpush3.bf16.xpose.msra.mxu0 %v9135_v51  ;;  %12927 = vmatprep.mubr.msk.bf16.mxu0 %vm14651_vm2, %v18714_v49 }
0x2961   :  { %v8980_v54 = vpack.c.bf16 %v8977_v23, %v8976_v15  ;;  %12937 = vmatprep.subr.bf16.mxu0 %v18714_v49 }
0x2963   :  { %12910 = vmatmul.mubr.msk.bf16.vlgmr.msra.gmra.mxu1 %vm708_vm1, %v8980_v54 }
0x2964   :  { %12920 = vmatpush3.bf16.xpose.msra.mxu1 %v9084_v12  ;;  %12921 = vmatprep.mubr.msk.bf16.mxu1 %vm14651_vm2, %v18714_v49 }
0x2965   :  { %12931 = vmatprep.subr.bf16.mxu1 %v18714_v49 }
0x2967   :  { %12928 = vmatmul.mubr.msk.bf16.vlgmr.msra.gmra.mxu0 %vm1399_vm3, %v9128_v21 }
0x2968   :  { %12939 = vmatprep.mubr.msk.bf16.mxu0 %vm14651_vm2, %v18714_v49 }
0x296b   :  { %12922 = vmatmul.mubr.msk.bf16.vlgmr.msra.gmra.mxu1 %vm1399_vm3, %v9077_v11 }
0x296c   :  { %12933 = vmatprep.mubr.msk.bf16.mxu1 %vm14651_vm2, %v18714_v49 }
0x2a1f   :  { %v18217_v18 = vpop.f32.mrf.mxu0 }
0x2a21   :  { %v12917_v55 = vpop.f32.mrf.mxu0 }
0x2a23   :  { %v9022_v42 = vpop.f32.mrf.mxu1  ;;  %v18219_v37 = vpop.f32.mrf.mxu0 }
0x2a24   :  { %v13303_v33 = vpack.i.bf16 %v18219_v37, %v18217_v18 }
0x2a25   :  { %v12911_v2 = vpop.f32.mrf.mxu1  ;;  %v12918_v4 = vpop.f32.mrf.mxu0 }
0x2a27   :  { %v9025_v13 = vpop.f32.mrf.mxu1  ;;  %v9171_v59 = vpop.f32.mrf.mxu0 }
0x2a28   :  { %v13298_v0 = vpack.i.bf16 %v9025_v13, %v9022_v42  ;;  %v9172_v40 = vadd.f32 %v9171_v59, %v8340_v27  ;;  %v13367_v59 = vld [vmem:[%s18747_s15 + $0x8] sm:$0xff]  }
0x2a29   :  { %v12912_v20 = vpop.f32.mrf.mxu1  ;;  %v12929_v19 = vpop.f32.mrf.mxu0 }
0x2a2a   :  { %v9184_v17 = vsel %vm708_vm1, %v9172_v40, -inf  ;;  %v13368_v19 = vld [vmem:[%s18747_s15] sm:$0xff]  }
0x2a2b   :  { %v9120_v57 = vpop.f32.mrf.mxu1  ;;  %v9174_v1 = vpop.f32.mrf.mxu0 }
0x2a2c   :  { %v9121_v25 = vadd.f32 %v9120_v57, %v8340_v27  ;;  %v9175_v38 = vadd.f32 %v9174_v1, %v8341_v29 }
0x2a2d   :  { %v12923_v8 = vpop.f32.mrf.mxu1  ;;  %v12930_v9 = vpop.f32.mrf.mxu0 }
0x2a2e   :  { %v9178_v58 = vsel %vm708_vm1, %v9121_v25, -inf  ;;  %v9187_v22 = vsel %vm708_vm1, %v9175_v38, -inf }
0x2a2f   :  { %9179 = vmax.xlane.f32.xlu0 %v9178_v58  ;;  %v9123_v7 = vpop.f32.mrf.mxu1 }
0x2a30   :  { %v9124_v56 = vadd.f32 %v9123_v7, %v8341_v29 }
0x2a31   :  { %v12924_v52 = vpop.f32.mrf.mxu1 }
0x2a32   :  { %v9181_v53 = vsel %vm708_vm1, %v9124_v56, -inf }
0x2a33   :  { %9185 = vmax.xlane.f32.xlu0 %v9184_v17  ;;  %9182 = vmax.xlane.f32.xlu1 %v9181_v53 }
0x2a37   :  { %9188 = vmax.xlane.f32.xlu0 %v9187_v22 }
0x2ab8   :  { %v9180_v60 = vpop.xlane.xlu0 %9179 }
0x2ab9   :  { %v9190_v36 = vsub.f32 %v9121_v25, %v9180_v60 }
0x2abb   :  { %v9194_v63 = vmul.f32 1.442695, %v9190_v36 }
0x2abc   :  { %v9186_v39 = vpop.xlane.xlu0 %9185  ;;  %v9183_v30 = vpop.xlane.xlu1 %9182 }
0x2abd   :  { %v9192_v6 = vsub.f32 %v9172_v40, %v9186_v39  ;;  %v9191_v24 = vsub.f32 %v9124_v56, %v9183_v30 }
0x2abf   :  { %v9198_v34 = vmul.f32 1.442695, %v9192_v6  ;;  %v9196_v32 = vmul.f32 1.442695, %v9191_v24 }
0x2ac0   :  { %v9189_v43 = vpop.xlane.xlu0 %9188 }
0x2ac1   :  { %13929 = vpow2.f32 %v9198_v34  ;;  %v9193_v26 = vsub.f32 %v9175_v38, %v9189_v43 }
0x2ac2   :  { %13931 = vpow2.f32 %v9194_v63 }
0x2ac3   :  { %v9200_v44 = vmul.f32 1.442695, %v9193_v26 }
0x2ac5   :  { %13933 = vpow2.f32 %v9200_v44 }
0x2ac6   :  { %13935 = vpow2.f32 %v9196_v32 }
0x2ace   :  { %v13930_v15 = vpop.eup %13929 }
0x2acf   :  { %v9208_v23 = vsel %vm708_vm1, %v13930_v15, 0.0  ;;  %v13932_v51 = vpop.eup %13931 }
0x2ad0   :  { %9209 = vadd.xlane.f32.xlu0 %v9208_v23  ;;  %v9202_v12 = vsel %vm708_vm1, %v13932_v51, 0.0 }
0x2ad2   :  { %v13934_v54 = vpop.eup %13933 }
0x2ad3   :  { %v9211_v21 = vsel %vm708_vm1, %v13934_v54, 0.0  ;;  %v13936_v11 = vpop.eup %13935 }
0x2ad4   :  { %9203 = vadd.xlane.f32.xlu0 %v9202_v12  ;;  %9212 = vadd.xlane.f32.xlu1 %v9211_v21  ;;  %v9205_v18 = vsel %vm708_vm1, %v13936_v11, 0.0 }
0x2ad8   :  { %9206 = vadd.xlane.f32.xlu1 %v9205_v18 }
0x2ae9   :  { %9271 = vrot.lane.b32.xlu1 %v18053_v61, %s14665_s29 }
0x2aea   :  { %9224 = vrot.lane.b32.xlu0 %v18057_v35, %s14665_s29 }
0x2aed   :  { %13289 = vrot.lane.b32.xlu1 %v13288_v14, %s14657_s7 }
0x2aee   :  { %13299 = vrot.lane.b32.xlu0 %v13298_v0, %s14658_s26 }
0x2af1   :  { %13294 = vrot.lane.b32.xlu1 %v13293_v45, %s14657_s7 }
0x2af5   :  { %13304 = vrot.lane.b32.xlu1 %v13303_v33, %s14658_s26 }
0x2b59   :  { %v9210_v55 = vpop.xlane.xlu0 %9209 }
0x2b5a   :  { %13937 = vrcp.f32 %v9210_v55 }
0x2b5d   :  { %v9204_v61 = vpop.xlane.xlu0 %9203  ;;  %v9213_v42 = vpop.xlane.xlu1 %9212 }
0x2b5e   :  { %13939 = vrcp.f32 %v9213_v42  ;;  %v11715_v42 = vld [vmem:[#allocation23] ss:$0 sm:$0xff] }
0x2b5f   :  { %13941 = vrcp.f32 %v9204_v61 }
0x2b61   :  { %v9225_v35 = vpop.permute.xlu0 %9224  ;;  %v9207_v37 = vpop.xlane.xlu1 %9206 }
0x2b62   :  { %13943 = vrcp.f32 %v9207_v37  ;;  %12932 = vmatpush3.bf16.msra.mxu1 %v9225_v35 }
0x2b63   :  { %12943 = vmatprep.subr.bf16.mxu1 %v13367_v59 }
0x2b65   :  { %v9272_v62 = vpop.permute.xlu1 %9271  ;;  %v13300_v53 = vpop.permute.xlu0 %13299 }
0x2b66   :  { %12938 = vmatpush3.bf16.msra.mxu0 %v9272_v62  ;;  %v13302_v43 = vunpack.i.h.bf16 %v13300_v53  ;;  %v13301_v26 = vunpack.i.l.bf16 %v13300_v53 }
0x2b67   :  { %v13938_v31 = vpop.eup %13937 }
0x2b68   :  { %v9220_v46 = vmul.f32 %v13938_v31, %v13930_v15 }
0x2b69   :  { %v13290_v7 = vpop.permute.xlu1 %13289 }
0x2b6a   :  { %v13292_v38 = vunpack.i.h.bf16 %v13290_v7  ;;  %v13291_v17 = vunpack.i.l.bf16 %v13290_v7 }
0x2b6b   :  { %v13940_v14 = vpop.eup %13939 }
0x2b6c   :  { %v13942_v41 = vpop.eup %13941  ;;  %v9221_v45 = vmul.f32 %v13940_v14, %v13934_v54  ;;  %v9367_v34 = vsel %vm1399_vm3, %v18123_v48, %v13292_v38  ;;  %v9366_v24 = vsel %vm1399_vm3, %v18119_v47, %v13291_v17 }
0x2b6d   :  { %v9218_v4 = vmul.f32 %v13942_v41, %v13932_v51  ;;  %v13295_v56 = vpop.permute.xlu1 %13294  ;;  %v9370_v21 = vsel %vm708_vm1, %v9366_v24, %v13301_v26 }
0x2b6e   :  { %v9223_v2 = vpack.c.bf16 %v9221_v45, %v9220_v46  ;;  %v13297_v22 = vunpack.i.h.bf16 %v13295_v56  ;;  %v13296_v60 = vunpack.i.l.bf16 %v13295_v56 }
0x2b6f   :  { %v13944_v33 = vpop.eup %13943 }
0x2b70   :  { %v9219_v13 = vmul.f32 %v13944_v33, %v13936_v11  ;;  %12940 = vmatmul.mubr.msk.bf16.vlgmr.msra.gmra.mxu0 %vm708_vm1, %v9223_v2  ;;  %v9369_v32 = vsel %vm1399_vm3, %v18121_v5, %v13297_v22  ;;  %v9368_v44 = vsel %vm1399_vm3, %v18117_v10, %v13296_v60  ;;  %v9371_v11 = vsel %vm708_vm1, %v9367_v34, %v13302_v43  ;;  %v13369_v22 = vld [vmem:[%s18748_s19 + $0x8] sm:$0xff]   ;;  %v13370_v60 = vld [vmem:[%s18748_s19] sm:$0xff]  }
0x2b71   :  { %v13305_v52 = vpop.permute.xlu1 %13304  ;;  %12951 = vmatprep.subr.bf16.mxu0 %v13369_v22 }
0x2b72   :  { %v9222_v0 = vpack.c.bf16 %v9219_v13, %v9218_v4  ;;  %v13307_v36 = vunpack.i.h.bf16 %v13305_v52  ;;  %v13306_v39 = vunpack.i.l.bf16 %v13305_v52  ;;  %12952 = vmatpush3.bf16.msra.mxu0 %v13369_v22 }
0x2b73   :  { %12953 = vmatprep.subr.bf16.mxu0 %v13370_v60 }
0x2b74   :  { %12934 = vmatmul.mubr.msk.bf16.vlgmr.msra.gmra.mxu1 %vm708_vm1, %v9222_v0  ;;  %v9372_v23 = vsel %vm708_vm1, %v9368_v44, %v13306_v39  ;;  %v9373_v51 = vsel %vm708_vm1, %v9369_v32, %v13307_v36 }
0x2b75   :  { %12944 = vmatpush3.bf16.msra.mxu1 %v13367_v59 }
0x2b76   :  { %12945 = vmatprep.subr.bf16.mxu1 %v13368_v19  ;;  %12954 = vmatpush3.bf16.msra.mxu0 %v13370_v60 }
0x2b79   :  { %12946 = vmatpush3.bf16.msra.mxu1 %v13368_v19 }
0x2c30   :  { %v9311_v20 = vpop.f32.mrf.mxu0 }
0x2c32   :  { %v12941_v27 = vpop.f32.mrf.mxu0 }
0x2c34   :  { %v9264_v57 = vpop.f32.mrf.mxu1  ;;  %v9314_v25 = vpop.f32.mrf.mxu0 }
0x2c35   :  { %v13313_v1 = vpack.i.bf16 %v9314_v25, %v9311_v20 }
0x2c36   :  { %v12935_v8 = vpop.f32.mrf.mxu1  ;;  %v12942_v40 = vpop.f32.mrf.mxu0 }
0x2c37   :  { %13314 = vrot.lane.b32.xlu1 %v13313_v1, %s14666_s20 }
0x2c38   :  { %v9267_v9 = vpop.f32.mrf.mxu1 }
0x2c39   :  { %v13308_v58 = vpack.i.bf16 %v9267_v9, %v9264_v57 }
0x2c3a   :  { %v12936_v29 = vpop.f32.mrf.mxu1 }
0x2c3b   :  { %13309 = vrot.lane.b32.xlu0 %v13308_v58, %s14666_s20 }
0x2ca9   :  { %v13315_v30 = vpop.permute.xlu1 %13314 }
0x2caa   :  { %v13317_v6 = vunpack.i.h.bf16 %v13315_v30  ;;  %v13316_v63 = vunpack.i.l.bf16 %v13315_v30 }
0x2cac   :  { %v9377_v48 = vsel %vm9374_vm6, %v9372_v23, %v13316_v63  ;;  %v9378_v47 = vsel %vm9374_vm6, %v9373_v51, %v13317_v6 }
0x2cad   :  { %v13310_v15 = vpop.permute.xlu0 %13309  ;;  %v9380_v55 = vpack.c.bf16 %v9378_v47, %v9377_v48 }
0x2cae   :  { %v13312_v54 = vunpack.i.h.bf16 %v13310_v15  ;;  %v13311_v12 = vunpack.i.l.bf16 %v13310_v15 }
0x2cb0   :  { %v9376_v5 = vsel %vm9374_vm6, %v9371_v11, %v13312_v54  ;;  %v9375_v18 = vsel %vm9374_vm6, %v9370_v21, %v13311_v12  ;;  %v11720_v54 = vld [vmem:[#allocation22] ss:$0 sm:$0xff] }
0x2cb1   :  { %v9379_v10 = vpack.c.bf16 %v9376_v5, %v9375_v18  ;;  %v11721_v5 = vld [vmem:[#allocation20] ss:$0 sm:$0xff] }
0x2cb3   :  { %12947 = vmatprep.mubr.msk.bf16.mxu1 %vm4146_vm4, %v9379_v10 }
0x2cb4   :  { %12948 = vmatmul.mubr.msk.bf16.vlgmr.msra.gmra.mxu1 %vm4146_vm4, %v9380_v55 }
0x2d74   :  { %v12949_v61 = vpop.f32.mrf.mxu1 }
0x2d75   :  { %v9453_v37 = vadd.f32 %v12949_v61, %v11715_v42 }
0x2d76   :  { %v9444_v35 = vpop.f32.mrf.mxu1 }
0x2d77   :  { %v9445_v62 = vadd.f32 %v11715_v42, %v9444_v35  ;;  %v18275_v46 = vadd.f32 %v18022_v16, %v9453_v37 }
0x2d78   :  { %v12950_v31 = vpop.f32.mrf.mxu1 }
0x2d79   :  { %v18272_v14 = vadd.f32 %v9445_v62, %v18024_v28  ;;  %v9456_v45 = vadd.f32 %v12950_v31, %v11715_v42  ;;  %v9471_v0 = vsel %vm4146_vm4, %v18275_v46, 0.0 }
0x2d7a   :  { %v9447_v41 = vpop.f32.mrf.mxu1 }
0x2d7b   :  { %v9448_v33 = vadd.f32 %v11715_v42, %v9447_v41  ;;  %v9465_v2 = vsel %vm4146_vm4, %v18272_v14, 0.0  ;;  %v18283_v13 = vadd.f32 %v18028_v3, %v9456_v45 }
0x2d7c   :  { %9466 = vadd.xlane.f32.xlu0 %v9465_v2  ;;  %v13372_v2 = vld [vmem:[%s18749_s16 + $0x10] sm:$0xff]  }
0x2d7d   :  { %v18280_v4 = vadd.f32 %v9448_v33, %v18030_v50  ;;  %v9474_v16 = vsel %vm4146_vm4, %v18283_v13, 0.0  ;;  %v13371_v33 = vld [vmem:[%s18749_s16 + $0x18] sm:$0xff]  }
0x2d7e   :  { %12959 = vmatprep.subr.bf16.mxu1 %v13371_v33 }
0x2d7f   :  { %v9468_v28 = vsel %vm4146_vm4, %v18280_v4, 0.0  ;;  %12960 = vmatpush3.bf16.msra.mxu1 %v13371_v33 }
0x2d80   :  { %9469 = vadd.xlane.f32.xlu1 %v9468_v28  ;;  %9472 = vadd.xlane.f32.xlu0 %v9471_v0  ;;  %v13373_v28 = vld [vmem:[%s18749_s16 + $0x8] sm:$0xff]   ;;  %v13374_v0 = vld [vmem:[%s18749_s16] sm:$0xff]  }
0x2d81   :  { %12961 = vmatprep.subr.bf16.mxu1 %v13372_v2 }
0x2d83   :  { %12962 = vmatpush3.bf16.msra.mxu1 %v13372_v2 }
0x2d84   :  { %9475 = vadd.xlane.f32.xlu0 %v9474_v16  ;;  %12963 = vmatprep.subr.bf16.mxu1 %v13373_v28  ;;  %v11722_v16 = vld [vmem:[#allocation14] ss:$0 sm:$0xff] }
0x2d87   :  { %12964 = vmatpush3.bf16.msra.mxu1 %v13373_v28 }
0x2d88   :  { %12965 = vmatprep.subr.bf16.mxu1 %v13374_v0 }
0x2d8b   :  { %12966 = vmatpush3.bf16.msra.mxu1 %v13374_v0 }
0x2d8c   :  { %12985 = vmatprep.subr.bf16.mxu1 %v18714_v49 }
0x2e05   :  { %v9467_v59 = vpop.xlane.xlu0 %9466 }
0x2e06   :  { %v9477_v20 = vmul.f32 0.03125, %v9467_v59 }
0x2e08   :  { %v9481_v50 = vsub.f32 %v18272_v14, %v9477_v20 }
0x2e09   :  { %v9470_v19 = vpop.xlane.xlu1 %9469  ;;  %v9473_v27 = vpop.xlane.xlu0 %9472 }
0x2e0a   :  { %v9478_v3 = vmul.f32 0.03125, %v9470_v19  ;;  %v9479_v57 = vmul.f32 0.03125, %v9473_v27  ;;  %v9485_v25 = vmul.f32 %v9481_v50, %v9481_v50 }
0x2e0c   :  { %v9482_v1 = vsub.f32 %v18280_v4, %v9478_v3  ;;  %v9483_v8 = vsub.f32 %v18275_v46, %v9479_v57  ;;  %v9489_v40 = vsel %vm4146_vm4, %v9485_v25, 0.0 }
0x2e0d   :  { %9490 = vadd.xlane.f32.xlu0 %v9489_v40  ;;  %v9476_v9 = vpop.xlane.xlu0 %9475 }
0x2e0e   :  { %v9480_v58 = vmul.f32 0.03125, %v9476_v9  ;;  %v9486_v29 = vmul.f32 %v9482_v1, %v9482_v1  ;;  %v9487_v7 = vmul.f32 %v9483_v8, %v9483_v8 }
0x2e10   :  { %v9484_v56 = vsub.f32 %v18283_v13, %v9480_v58  ;;  %v9492_v52 = vsel %vm4146_vm4, %v9486_v29, 0.0  ;;  %v9495_v38 = vsel %vm4146_vm4, %v9487_v7, 0.0 }
0x2e11   :  { %9493 = vadd.xlane.f32.xlu1 %v9492_v52  ;;  %9496 = vadd.xlane.f32.xlu0 %v9495_v38 }
0x2e12   :  { %v9488_v17 = vmul.f32 %v9484_v56, %v9484_v56 }
0x2e14   :  { %v9498_v53 = vsel %vm4146_vm4, %v9488_v17, 0.0 }
0x2e15   :  { %9499 = vadd.xlane.f32.xlu1 %v9498_v53 }
0x2e96   :  { %v9491_v36 = vpop.xlane.xlu0 %9490 }
0x2e97   :  { %v9501_v39 = vmul.f32 0.03125, %v9491_v36 }
0x2e99   :  { %v9505_v30 = vadd.f32 1e-05, %v9501_v39 }
0x2e9a   :  { %v9494_v6 = vpop.xlane.xlu1 %9493  ;;  %v9497_v63 = vpop.xlane.xlu0 %9496 }
0x2e9b   :  { %13945 = vrsqrt.f32 %v9505_v30  ;;  %v9502_v34 = vmul.f32 0.03125, %v9494_v6  ;;  %v9503_v24 = vmul.f32 0.03125, %v9497_v63 }
0x2e9d   :  { %v9506_v43 = vadd.f32 1e-05, %v9502_v34  ;;  %v9507_v26 = vadd.f32 1e-05, %v9503_v24 }
0x2e9e   :  { %v9500_v32 = vpop.xlane.xlu1 %9499 }
0x2e9f   :  { %13947 = vrsqrt.f32 %v9506_v43  ;;  %v9504_v44 = vmul.f32 0.03125, %v9500_v32 }
0x2ea0   :  { %13949 = vrsqrt.f32 %v9507_v26 }
0x2ea1   :  { %v9508_v15 = vadd.f32 1e-05, %v9504_v44 }
0x2ea3   :  { %13951 = vrsqrt.f32 %v9508_v15 }
0x2ea8   :  { %v13946_v23 = vpop.eup %13945 }
0x2ea9   :  { %v9513_v51 = vmul.f32 %v13946_v23, %v9481_v50 }
0x2eab   :  { %v9523_v21 = vmul.f32 %v11720_v54, %v9513_v51 }
0x2eac   :  { %v13948_v12 = vpop.eup %13947 }
0x2ead   :  { %v13950_v48 = vpop.eup %13949  ;;  %v9514_v47 = vmul.f32 %v13948_v12, %v9482_v1  ;;  %v9533_v42 = vadd.f32 %v11721_v5, %v9523_v21 }
0x2eae   :  { %v9515_v11 = vmul.f32 %v13950_v48, %v9483_v8 }
0x2eaf   :  { %v9524_v18 = vmul.f32 %v11720_v54, %v9514_v47 }
0x2eb0   :  { %v13952_v10 = vpop.eup %13951  ;;  %v9525_v61 = vmul.f32 %v11720_v54, %v9515_v11 }
0x2eb1   :  { %v9516_v55 = vmul.f32 %v13952_v10, %v9484_v56  ;;  %v9534_v35 = vadd.f32 %v11721_v5, %v9524_v18 }
0x2eb2   :  { %v9535_v31 = vadd.f32 %v11721_v5, %v9525_v61 }
0x2eb3   :  { %v9526_v37 = vmul.f32 %v11720_v54, %v9516_v55  ;;  %v9537_v62 = vpack.c.bf16 %v9534_v35, %v9533_v42  ;;  %v11727_v42 = vld [vmem:[#allocation16] ss:$0 sm:$0xff] }
0x2eb5   :  { %v9536_v41 = vadd.f32 %v11721_v5, %v9526_v37  ;;  %12955 = vmatprep.mubr.msk.bf16.mxu0 %vm4146_vm4, %v9537_v62 }
0x2eb7   :  { %v9538_v45 = vpack.c.bf16 %v9536_v41, %v9535_v31 }
0x2eb9   :  { %12956 = vmatmul.mubr.msk.bf16.vlgmr.msra.gmra.mxu0 %vm4146_vm4, %v9538_v45 }
0x2f79   :  { %v12957_v59 = vpop.f32.mrf.mxu0 }
0x2f7a   :  { %v9611_v20 = vadd.f32 %v12957_v59, %v11722_v16 }
0x2f7b   :  { %v9602_v50 = vpop.f32.mrf.mxu0 }
0x2f7c   :  { %v9619_v19 = vmul.f32 %v9611_v20, %v9611_v20  ;;  %v9603_v27 = vadd.f32 %v11722_v16, %v9602_v50 }
0x2f7d   :  { %v12958_v3 = vpop.f32.mrf.mxu0 }
0x2f7e   :  { %v9623_v57 = vmul.f32 %v9619_v19, %v9611_v20  ;;  %v9617_v25 = vmul.f32 %v9603_v27, %v9603_v27  ;;  %v9614_v1 = vadd.f32 %v12958_v3, %v11722_v16 }
0x2f7f   :  { %v9605_v8 = vpop.f32.mrf.mxu0 }
0x2f80   :  { %v9627_v40 = vmul.f32 0.044715, %v9623_v57  ;;  %v9621_v9 = vmul.f32 %v9617_v25, %v9603_v27  ;;  %v9620_v58 = vmul.f32 %v9614_v1, %v9614_v1  ;;  %v9606_v29 = vadd.f32 %v11722_v16, %v9605_v8 }
0x2f82   :  { %v9631_v7 = vadd.f32 %v9627_v40, %v9611_v20  ;;  %v9625_v56 = vmul.f32 0.044715, %v9621_v9  ;;  %v9624_v52 = vmul.f32 %v9620_v58, %v9614_v1  ;;  %v9618_v38 = vmul.f32 %v9606_v29, %v9606_v29 }
0x2f84   :  { %v9635_v17 = vmul.f32 0.7978846, %v9631_v7  ;;  %v9629_v53 = vadd.f32 %v9625_v56, %v9603_v27  ;;  %v9628_v22 = vmul.f32 0.044715, %v9624_v52  ;;  %v9622_v60 = vmul.f32 %v9618_v38, %v9606_v29 }
0x2f86   :  { %v9633_v36 = vmul.f32 0.7978846, %v9629_v53  ;;  %v9632_v39 = vadd.f32 %v9628_v22, %v9614_v1  ;;  %v9626_v30 = vmul.f32 0.044715, %v9622_v60  ;;  %13953 = vtanh.f32 %v9635_v17  ;;  %v13375_v22 = vld [vmem:[%s14981_s24 + $0x8] sm:$0xff]   ;;  %v13376_v60 = vld [vmem:[%s14981_s24] sm:$0xff]  }
0x2f87   :  { %12971 = vmatprep.subr.bf16.mxu0 %v13375_v22  ;;  %s18750_s24 = sld [smem:[#allocation94_spill]] }
0x2f88   :  { %13955 = vtanh.f32 %v9633_v36  ;;  %v9636_v6 = vmul.f32 0.7978846, %v9632_v39  ;;  %v9630_v63 = vadd.f32 %v9626_v30, %v9606_v29  ;;  %12972 = vmatpush3.bf16.msra.mxu0 %v13375_v22 }
0x2f89   :  { %12973 = vmatprep.subr.bf16.mxu0 %v13376_v60 }
0x2f8a   :  { %13957 = vtanh.f32 %v9636_v6  ;;  %v9634_v34 = vmul.f32 0.7978846, %v9630_v63 }
0x2f8c   :  { %13959 = vtanh.f32 %v9634_v34  ;;  %12974 = vmatpush3.bf16.msra.mxu0 %v13376_v60 }
0x2f8d   :  { %12979 = vmatprep.subr.bf16.mxu0 %v18714_v49  ;;  %v9908_v22 = vld [vmem:[%s18750_s24 + $0x8] sm:$0xff] }
0x2f93   :  { %v13954_v24 = vpop.eup %13953 }
0x2f94   :  { %v9643_v44 = vadd.f32 1.0, %v13954_v24 }
0x2f95   :  { %v13956_v43 = vpop.eup %13955 }
0x2f96   :  { %v9641_v26 = vadd.f32 1.0, %v13956_v43  ;;  %v9647_v48 = vmul.f32 0.5, %v9643_v44 }
0x2f97   :  { %v13958_v32 = vpop.eup %13957 }
0x2f98   :  { %v9644_v15 = vadd.f32 1.0, %v13958_v32  ;;  %v9645_v51 = vmul.f32 0.5, %v9641_v26  ;;  %v9651_v18 = vmul.f32 %v9647_v48, %v9611_v20 }
0x2f99   :  { %v13960_v23 = vpop.eup %13959 }
0x2f9a   :  { %v9648_v54 = vmul.f32 0.5, %v9644_v15  ;;  %v9642_v12 = vadd.f32 1.0, %v13960_v23  ;;  %v9649_v11 = vmul.f32 %v9645_v51, %v9603_v27 }
0x2f9c   :  { %v9646_v47 = vmul.f32 0.5, %v9642_v12  ;;  %v9652_v21 = vmul.f32 %v9648_v54, %v9614_v1  ;;  %v11734_v54 = vld [vmem:[#allocation31] ss:$0 sm:$0xff] }
0x2f9e   :  { %v9650_v5 = vmul.f32 %v9646_v47, %v9606_v29  ;;  %v9654_v55 = vpack.c.bf16 %v9652_v21, %v9651_v18 }
0x2fa0   :  { %v9653_v10 = vpack.c.bf16 %v9650_v5, %v9649_v11  ;;  %v11735_v5 = vld [vmem:[#allocation29] ss:$0 sm:$0xff] }
0x2fa2   :  { %12967 = vmatprep.mubr.msk.bf16.mxu1 %vm8016_vm5, %v9653_v10 }
0x2fa3   :  { %12968 = vmatmul.mubr.msk.bf16.vlgmr.msra.gmra.mxu1 %vm8016_vm5, %v9654_v55 }
0x2fa4   :  { %12987 = vmatprep.mubr.msk.bf16.mxu1 %vm14651_vm2, %v18714_v49 }
0x3063   :  { %v12969_v61 = vpop.f32.mrf.mxu1 }
0x3064   :  { %v9743_v37 = vadd.f32 %v12969_v61, %v11727_v42 }
0x3065   :  { %v9734_v35 = vpop.f32.mrf.mxu1 }
0x3066   :  { %v9735_v62 = vadd.f32 %v11727_v42, %v9734_v35  ;;  %v18316_v33 = vadd.f32 %v9743_v37, %v18275_v46 }
0x3067   :  { %v12970_v31 = vpop.f32.mrf.mxu1 }
0x3068   :  { %v18313_v41 = vadd.f32 %v9735_v62, %v18272_v14  ;;  %v9746_v2 = vadd.f32 %v12970_v31, %v11727_v42  ;;  %v9761_v20 = vsel %vm4146_vm4, %v18316_v33, 0.0 }
0x3069   :  { %v9737_v45 = vpop.f32.mrf.mxu1 }
0x306a   :  { %v9738_v28 = vadd.f32 %v11727_v42, %v9737_v45  ;;  %v9755_v0 = vsel %vm4146_vm4, %v18313_v41, 0.0  ;;  %v18324_v59 = vadd.f32 %v9746_v2, %v18283_v13 }
0x306b   :  { %9756 = vadd.xlane.f32.xlu0 %v9755_v0  ;;  %v11736_v0 = vld [vmem:[#allocation37] ss:$0 sm:$0xff] }
0x306c   :  { %v18321_v16 = vadd.f32 %v9738_v28, %v18280_v4  ;;  %v9764_v46 = vsel %vm4146_vm4, %v18324_v59, 0.0 }
0x306e   :  { %v9758_v14 = vsel %vm4146_vm4, %v18321_v16, 0.0 }
0x306f   :  { %9759 = vadd.xlane.f32.xlu1 %v9758_v14  ;;  %9762 = vadd.xlane.f32.xlu0 %v9761_v20 }
0x3073   :  { %9765 = vadd.xlane.f32.xlu1 %v9764_v46 }
0x30f4   :  { %v9757_v50 = vpop.xlane.xlu0 %9756 }
0x30f5   :  { %v9767_v19 = vmul.f32 0.03125, %v9757_v50 }
0x30f7   :  { %v9771_v4 = vsub.f32 %v18313_v41, %v9767_v19 }
0x30f8   :  { %v9760_v27 = vpop.xlane.xlu1 %9759  ;;  %v9763_v3 = vpop.xlane.xlu0 %9762 }
0x30f9   :  { %v9768_v13 = vmul.f32 0.03125, %v9760_v27  ;;  %v9769_v57 = vmul.f32 0.03125, %v9763_v3  ;;  %v9775_v25 = vmul.f32 %v9771_v4, %v9771_v4 }
0x30fb   :  { %v9772_v1 = vsub.f32 %v18321_v16, %v9768_v13  ;;  %v9773_v8 = vsub.f32 %v18316_v33, %v9769_v57  ;;  %v9779_v40 = vsel %vm4146_vm4, %v9775_v25, 0.0 }
0x30fc   :  { %v9766_v9 = vpop.xlane.xlu1 %9765  ;;  %9780 = vadd.xlane.f32.xlu0 %v9779_v40 }
0x30fd   :  { %v9770_v58 = vmul.f32 0.03125, %v9766_v9  ;;  %v9776_v29 = vmul.f32 %v9772_v1, %v9772_v1  ;;  %v9777_v7 = vmul.f32 %v9773_v8, %v9773_v8 }
0x30ff   :  { %v9774_v56 = vsub.f32 %v18324_v59, %v9770_v58  ;;  %v9782_v52 = vsel %vm4146_vm4, %v9776_v29, 0.0  ;;  %v9785_v38 = vsel %vm4146_vm4, %v9777_v7, 0.0 }
0x3100   :  { %9783 = vadd.xlane.f32.xlu1 %v9782_v52  ;;  %9786 = vadd.xlane.f32.xlu0 %v9785_v38  ;;  %v9907_v38 = vld [vmem:[%s18750_s24] sm:$0xff] }
0x3101   :  { %v9778_v17 = vmul.f32 %v9774_v56, %v9774_v56 }
0x3103   :  { %v9788_v53 = vsel %vm4146_vm4, %v9778_v17, 0.0 }
0x3104   :  { %9789 = vadd.xlane.f32.xlu1 %v9788_v53 }
0x3185   :  { %v9781_v36 = vpop.xlane.xlu0 %9780 }
0x3186   :  { %v9791_v39 = vmul.f32 0.03125, %v9781_v36 }
0x3188   :  { %v9795_v30 = vadd.f32 1e-05, %v9791_v39 }
0x3189   :  { %v9784_v6 = vpop.xlane.xlu1 %9783  ;;  %v9787_v63 = vpop.xlane.xlu0 %9786 }
0x318a   :  { %13961 = vrsqrt.f32 %v9795_v30  ;;  %v9792_v34 = vmul.f32 0.03125, %v9784_v6  ;;  %v9793_v24 = vmul.f32 0.03125, %v9787_v63 }
0x318c   :  { %v9796_v43 = vadd.f32 1e-05, %v9792_v34  ;;  %v9797_v26 = vadd.f32 1e-05, %v9793_v24 }
0x318d   :  { %v9790_v32 = vpop.xlane.xlu1 %9789 }
0x318e   :  { %13963 = vrsqrt.f32 %v9796_v43  ;;  %v9794_v44 = vmul.f32 0.03125, %v9790_v32 }
0x318f   :  { %13965 = vrsqrt.f32 %v9797_v26 }
0x3190   :  { %v9798_v15 = vadd.f32 1e-05, %v9794_v44 }
0x3192   :  { %13967 = vrsqrt.f32 %v9798_v15 }
0x3197   :  { %v13962_v23 = vpop.eup %13961 }
0x3198   :  { %v9803_v51 = vmul.f32 %v13962_v23, %v9771_v4 }
0x319a   :  { %v9813_v21 = vmul.f32 %v11734_v54, %v9803_v51 }
0x319b   :  { %v13964_v12 = vpop.eup %13963 }
0x319c   :  { %v13966_v48 = vpop.eup %13965  ;;  %v9804_v47 = vmul.f32 %v13964_v12, %v9772_v1  ;;  %v9823_v42 = vadd.f32 %v11735_v5, %v9813_v21 }
0x319d   :  { %v9805_v11 = vmul.f32 %v13966_v48, %v9773_v8 }
0x319e   :  { %v9814_v18 = vmul.f32 %v11734_v54, %v9804_v47 }
0x319f   :  { %v13968_v10 = vpop.eup %13967  ;;  %v9815_v61 = vmul.f32 %v11734_v54, %v9805_v11 }
0x31a0   :  { %v9806_v55 = vmul.f32 %v13968_v10, %v9774_v56  ;;  %v9824_v35 = vadd.f32 %v11735_v5, %v9814_v18 }
0x31a1   :  { %v9825_v31 = vadd.f32 %v11735_v5, %v9815_v61 }
0x31a2   :  { %v9816_v37 = vmul.f32 %v11734_v54, %v9806_v55  ;;  %v9827_v62 = vpack.c.bf16 %v9824_v35, %v9823_v42 }
0x31a4   :  { %v9826_v45 = vadd.f32 %v11735_v5, %v9816_v37  ;;  %12975 = vmatprep.mubr.msk.bf16.mxu0 %vm4146_vm4, %v9827_v62 }
0x31a6   :  { %v9828_v2 = vpack.c.bf16 %v9826_v45, %v9825_v31 }
0x31a8   :  { %12976 = vmatmul.mubr.msk.bf16.vlgmr.msra.gmra.mxu0 %vm4146_vm4, %v9828_v2 }
0x31a9   :  { %12981 = vmatprep.mubr.msk.bf16.mxu0 %vm14651_vm2, %v18714_v49 }
0x3268   :  { %v12977_v28 = vpop.f32.mrf.mxu0 }
0x3269   :  { %v9901_v20 = vadd.f32 %v12977_v28, %v11736_v0 }
0x326a   :  { %v9892_v14 = vpop.f32.mrf.mxu0 }
0x326b   :  { %v9893_v50 = vadd.f32 %v11736_v0, %v9892_v14  ;;  %v9917_v27 = vmul.f32 0.35355338, %v9901_v20 }
0x326c   :  { %v12978_v46 = vpop.f32.mrf.mxu0 }
0x326d   :  { %v9904_v19 = vadd.f32 %v12978_v46, %v11736_v0  ;;  %v9915_v25 = vmul.f32 0.35355338, %v9893_v50 }
0x326e   :  { %v9895_v4 = vpop.f32.mrf.mxu0 }
0x326f   :  { %v9918_v3 = vmul.f32 0.35355338, %v9904_v19  ;;  %v18347_v13 = vpack.c.bf16 %v9904_v19, %v9901_v20  ;;  %v9896_v57 = vadd.f32 %v11736_v0, %v9895_v4 }
0x3271   :  { %v18349_v1 = vpack.c.bf16 %v9918_v3, %v9917_v27  ;;  %v9916_v8 = vmul.f32 0.35355338, %v9896_v57  ;;  %v18351_v40 = vpack.c.bf16 %v9896_v57, %v9893_v50  ;;  %9974 = vrot.lane.b32.xlu1 %v18347_v13, %s14653_s25 }
0x3273   :  { %v18355_v9 = vpack.c.bf16 %v9916_v8, %v9915_v25  ;;  %9924 = vrot.lane.b32.xlu0 %v18351_v40, %s14653_s25  ;;  %s14667_s25 = smov [#allocation38]  }
0x32e3   :  { %v9975_v58 = vpop.permute.xlu1 %9974 }
0x32e4   :  { %v9980_v29 = vsel %vm1399_vm3, %v9975_v58, 0 }
0x32e5   :  { %12986 = vmatpush3.bf16.xpose.msra.mxu1 %v9980_v29  ;;  %v9925_v7 = vpop.permute.xlu0 %9924 }
0x32e6   :  { %v9930_v56 = vsel %vm1399_vm3, %v9925_v7, 0  ;;  %12997 = vmatprep.subr.bf16.mxu1 %v18714_v49 }
0x32e7   :  { %12980 = vmatpush3.bf16.xpose.msra.mxu0 %v9930_v56 }
0x32e8   :  { %12991 = vmatprep.subr.bf16.mxu0 %v18714_v49 }
0x32ec   :  { %12988 = vmatmul.mubr.msk.bf16.vlgmr.msra.gmra.mxu1 %vm1399_vm3, %v18349_v1 }
0x32ed   :  { %12999 = vmatprep.mubr.msk.bf16.mxu1 %vm14651_vm2, %v18714_v49 }
0x32ee   :  { %12982 = vmatmul.mubr.msk.bf16.vlgmr.msra.gmra.mxu0 %vm1399_vm3, %v18355_v9 }
0x32ef   :  { %12993 = vmatprep.mubr.msk.bf16.mxu0 %vm14651_vm2, %v18714_v49 }
0x33ac   :  { %v10016_v52 = vpop.f32.mrf.mxu1 }
0x33ad   :  { %v10017_v26 = vadd.f32 %v10016_v52, %v9907_v38 }
0x33ae   :  { %v9966_v17 = vpop.f32.mrf.mxu0  ;;  %v12989_v53 = vpop.f32.mrf.mxu1 }
0x33af   :  { %v9967_v60 = vadd.f32 %v9966_v17, %v9907_v38  ;;  %v10029_v15 = vsel %vm708_vm1, %v10017_v26, -inf }
0x33b0   :  { %v12983_v36 = vpop.f32.mrf.mxu0  ;;  %v10019_v39 = vpop.f32.mrf.mxu1 }
0x33b1   :  { %v10020_v30 = vadd.f32 %v10019_v39, %v9908_v22  ;;  %v10023_v6 = vsel %vm708_vm1, %v9967_v60, -inf }
0x33b2   :  { %v12990_v63 = vpop.f32.mrf.mxu1  ;;  %10024 = vmax.xlane.f32.xlu1 %v10023_v6  ;;  %v9969_v34 = vpop.f32.mrf.mxu0 }
0x33b3   :  { %v9970_v24 = vadd.f32 %v9969_v34, %v9908_v22  ;;  %v10032_v32 = vsel %vm708_vm1, %v10020_v30, -inf }
0x33b4   :  { %v12984_v43 = vpop.f32.mrf.mxu0 }
0x33b5   :  { %v10026_v44 = vsel %vm708_vm1, %v9970_v24, -inf }
0x33b6   :  { %10033 = vmax.xlane.f32.xlu1 %v10032_v32  ;;  %10027 = vmax.xlane.f32.xlu0 %v10026_v44  ;;  %v9909_v32 = vld [vmem:[%s18750_s24 + $0x10] sm:$0xff] }
0x33ba   :  { %10030 = vmax.xlane.f32.xlu0 %v10029_v15 }
0x33c7   :  { %10116 = vrot.lane.b32.xlu1 %v18347_v13, %s14661_s0 }
0x33cb   :  { %10166 = vrot.lane.b32.xlu1 %v18351_v40, %s14656_s2 }
0x343b   :  { %v10025_v23 = vpop.xlane.xlu1 %10024 }
0x343c   :  { %v10035_v47 = vsub.f32 %v9967_v60, %v10025_v23 }
0x343e   :  { %v10039_v55 = vmul.f32 1.442695, %v10035_v47  ;;  %v9910_v47 = vld [vmem:[%s18750_s24 + $0x18] sm:$0xff] }
0x343f   :  { %v10034_v51 = vpop.xlane.xlu1 %10033  ;;  %v10028_v54 = vpop.xlane.xlu0 %10027 }
0x3440   :  { %v10038_v12 = vsub.f32 %v10020_v30, %v10034_v51  ;;  %v10036_v48 = vsub.f32 %v9970_v24, %v10028_v54 }
0x3442   :  { %v10045_v21 = vmul.f32 1.442695, %v10038_v12  ;;  %v10041_v11 = vmul.f32 1.442695, %v10036_v48 }
0x3443   :  { %v10117_v5 = vpop.permute.xlu1 %10116  ;;  %v10031_v18 = vpop.xlane.xlu0 %10030 }
0x3444   :  { %13969 = vpow2.f32 %v10045_v21  ;;  %v10037_v10 = vsub.f32 %v10017_v26, %v10031_v18  ;;  %12998 = vmatpush3.bf16.msra.mxu1 %v10117_v5 }
0x3445   :  { %13009 = vmatprep.subr.bf16.mxu1 %v18714_v49  ;;  %13971 = vpow2.f32 %v10041_v11 }
0x3446   :  { %v10043_v61 = vmul.f32 1.442695, %v10037_v10 }
0x3447   :  { %v10167_v0 = vpop.permute.xlu1 %10166 }
0x3448   :  { %13973 = vpow2.f32 %v10043_v61  ;;  %v10172_v17 = vsel %vm1399_vm3, %v10167_v0, 0 }
0x3449   :  { %13975 = vpow2.f32 %v10039_v55 }
0x3451   :  { %v13970_v42 = vpop.eup %13969 }
0x3452   :  { %v10056_v35 = vsel %vm708_vm1, %v13970_v42, 0.0  ;;  %v13972_v37 = vpop.eup %13971 }
0x3453   :  { %10057 = vadd.xlane.f32.xlu1 %v10056_v35  ;;  %v10050_v31 = vsel %vm708_vm1, %v13972_v37, 0.0 }
0x3455   :  { %v13974_v62 = vpop.eup %13973 }
0x3456   :  { %v10053_v45 = vsel %vm708_vm1, %v13974_v62, 0.0  ;;  %v13976_v2 = vpop.eup %13975 }
0x3457   :  { %10051 = vadd.xlane.f32.xlu1 %v10050_v31  ;;  %10054 = vadd.xlane.f32.xlu0 %v10053_v45  ;;  %v10047_v28 = vsel %vm708_vm1, %v13976_v2, 0.0 }
0x345b   :  { %10048 = vadd.xlane.f32.xlu0 %v10047_v28 }
0x3468   :  { %10218 = vrot.lane.b32.xlu1 %v18347_v13, %s14656_s2 }
0x346c   :  { %10216 = vrot.lane.b32.xlu1 %v18349_v1, %s14655_s9 }
0x3471   :  { %10069 = vrot.lane.b32.xlu0 %v18351_v40, %s14661_s0 }
0x3475   :  { %10164 = vrot.lane.b32.xlu0 %v18355_v9, %s14655_s9 }
0x34dc   :  { %v10058_v14 = vpop.xlane.xlu1 %10057 }
0x34dd   :  { %13977 = vrcp.f32 %v10058_v14 }
0x34e0   :  { %v10052_v20 = vpop.xlane.xlu1 %10051  ;;  %v10055_v46 = vpop.xlane.xlu0 %10054 }
0x34e1   :  { %13979 = vrcp.f32 %v10055_v46 }
0x34e2   :  { %13981 = vrcp.f32 %v10052_v20 }
0x34e4   :  { %v10049_v50 = vpop.xlane.xlu0 %10048  ;;  %v10219_v8 = vpop.permute.xlu1 %10218 }
0x34e5   :  { %13983 = vrcp.f32 %v10049_v50  ;;  %v10224_v52 = vsel %vm1399_vm3, %v10219_v8, 0 }
0x34e8   :  { %v10070_v19 = vpop.permute.xlu0 %10069  ;;  %v10217_v53 = vpop.permute.xlu1 %10216 }
0x34e9   :  { %12992 = vmatpush3.bf16.msra.mxu0 %v10070_v19 }
0x34ea   :  { %13003 = vmatprep.subr.bf16.mxu0 %v18714_v49  ;;  %v13978_v4 = vpop.eup %13977 }
0x34eb   :  { %v10066_v57 = vmul.f32 %v13978_v4, %v13970_v42 }
0x34ec   :  { %v10165_v22 = vpop.permute.xlu0 %10164 }
0x34ee   :  { %v13980_v27 = vpop.eup %13979 }
0x34ef   :  { %v13982_v3 = vpop.eup %13981  ;;  %v10065_v25 = vmul.f32 %v13980_v27, %v13974_v62 }
0x34f0   :  { %v10064_v7 = vmul.f32 %v13982_v3, %v13972_v37 }
0x34f1   :  { %v10068_v29 = vpack.c.bf16 %v10066_v57, %v10065_v25 }
0x34f2   :  { %v13984_v58 = vpop.eup %13983 }
0x34f3   :  { %v10063_v56 = vmul.f32 %v13984_v58, %v13976_v2  ;;  %13000 = vmatmul.mubr.msk.bf16.vlgmr.msra.gmra.mxu1 %vm708_vm1, %v10068_v29 }
0x34f4   :  { %13010 = vmatpush3.bf16.xpose.msra.mxu1 %v10224_v52  ;;  %13011 = vmatprep.mubr.msk.bf16.mxu1 %vm14651_vm2, %v18714_v49 }
0x34f5   :  { %v10067_v38 = vpack.c.bf16 %v10064_v7, %v10063_v56  ;;  %13021 = vmatprep.subr.bf16.mxu1 %v18714_v49 }
0x34f7   :  { %12994 = vmatmul.mubr.msk.bf16.vlgmr.msra.gmra.mxu0 %vm708_vm1, %v10067_v38 }
0x34f8   :  { %13004 = vmatpush3.bf16.xpose.msra.mxu0 %v10172_v17  ;;  %13005 = vmatprep.mubr.msk.bf16.mxu0 %vm14651_vm2, %v18714_v49 }
0x34f9   :  { %13015 = vmatprep.subr.bf16.mxu0 %v18714_v49 }
0x34fb   :  { %13012 = vmatmul.mubr.msk.bf16.vlgmr.msra.gmra.mxu1 %vm1399_vm3, %v10217_v53 }
0x34fc   :  { %13023 = vmatprep.mubr.msk.bf16.mxu1 %vm14651_vm2, %v18714_v49 }
0x34ff   :  { %13006 = vmatmul.mubr.msk.bf16.vlgmr.msra.gmra.mxu0 %vm1399_vm3, %v10165_v22 }
0x3500   :  { %13017 = vmatprep.mubr.msk.bf16.mxu0 %vm14651_vm2, %v18714_v49 }
0x35b3   :  { %v18411_v60 = vpop.f32.mrf.mxu1 }
0x35b5   :  { %v13001_v36 = vpop.f32.mrf.mxu1 }
0x35b7   :  { %v18413_v39 = vpop.f32.mrf.mxu0  ;;  %v18415_v30 = vpop.f32.mrf.mxu1 }
0x35b9   :  { %v12995_v6 = vpop.f32.mrf.mxu0  ;;  %v13002_v63 = vpop.f32.mrf.mxu1 }
0x35bb   :  { %v18417_v34 = vpop.f32.mrf.mxu0  ;;  %v10260_v24 = vpop.f32.mrf.mxu1 }
0x35bc   :  { %v10261_v54 = vadd.f32 %v10260_v24, %v9909_v32 }
0x35bd   :  { %v12996_v43 = vpop.f32.mrf.mxu0  ;;  %v13013_v26 = vpop.f32.mrf.mxu1 }
0x35be   :  { %v10273_v10 = vsel %vm708_vm1, %v10261_v54, -inf }
0x35bf   :  { %v10208_v44 = vpop.f32.mrf.mxu0  ;;  %v10263_v23 = vpop.f32.mrf.mxu1 }
0x35c0   :  { %v10209_v15 = vadd.f32 %v10208_v44, %v9909_v32  ;;  %v10264_v18 = vadd.f32 %v10263_v23, %v9910_v47 }
0x35c1   :  { %v13007_v51 = vpop.f32.mrf.mxu0  ;;  %v13014_v12 = vpop.f32.mrf.mxu1 }
0x35c2   :  { %v10267_v48 = vsel %vm708_vm1, %v10209_v15, -inf  ;;  %v10276_v61 = vsel %vm708_vm1, %v10264_v18, -inf }
0x35c3   :  { %10268 = vmax.xlane.f32.xlu0 %v10267_v48  ;;  %v10211_v21 = vpop.f32.mrf.mxu0 }
0x35c4   :  { %v10212_v11 = vadd.f32 %v10211_v21, %v9910_v47 }
0x35c5   :  { %v13008_v5 = vpop.f32.mrf.mxu0 }
0x35c6   :  { %v10270_v55 = vsel %vm708_vm1, %v10212_v11, -inf }
0x35c7   :  { %10274 = vmax.xlane.f32.xlu0 %v10273_v10  ;;  %10271 = vmax.xlane.f32.xlu1 %v10270_v55 }
0x35cb   :  { %10277 = vmax.xlane.f32.xlu0 %v10276_v61 }
0x35d8   :  { %10360 = vrot.lane.b32.xlu1 %v18347_v13, %s14662_s8 }
0x35dc   :  { %10409 = vrot.lane.b32.xlu1 %v18351_v40, %s14663_s10 }
0x364c   :  { %v10269_v42 = vpop.xlane.xlu0 %10268 }
0x364d   :  { %v10279_v35 = vsub.f32 %v10209_v15, %v10269_v42 }
0x364f   :  { %v10283_v45 = vmul.f32 1.442695, %v10279_v35 }
0x3650   :  { %v10275_v37 = vpop.xlane.xlu0 %10274  ;;  %v10272_v62 = vpop.xlane.xlu1 %10271 }
0x3651   :  { %v10281_v31 = vsub.f32 %v10261_v54, %v10275_v37  ;;  %v10280_v28 = vsub.f32 %v10212_v11, %v10272_v62  ;;  %v9911_v62 = vld [vmem:[%s18750_s24 + $0x20] sm:$0xff] }
0x3653   :  { %v10287_v2 = vmul.f32 1.442695, %v10281_v31  ;;  %v10285_v46 = vmul.f32 1.442695, %v10280_v28 }
0x3654   :  { %v10278_v0 = vpop.xlane.xlu0 %10277  ;;  %v10361_v14 = vpop.permute.xlu1 %10360 }
0x3655   :  { %13985 = vpow2.f32 %v10287_v2  ;;  %v10282_v20 = vsub.f32 %v10264_v18, %v10278_v0  ;;  %13022 = vmatpush3.bf16.msra.mxu1 %v10361_v14 }
0x3656   :  { %13033 = vmatprep.subr.bf16.mxu1 %v18714_v49  ;;  %13987 = vpow2.f32 %v10283_v45 }
0x3657   :  { %v10289_v50 = vmul.f32 1.442695, %v10282_v20 }
0x3658   :  { %v10410_v29 = vpop.permute.xlu1 %10409 }
0x3659   :  { %13989 = vpow2.f32 %v10289_v50  ;;  %v10415_v51 = vsel %vm1399_vm3, %v10410_v29, 0 }
0x365a   :  { %13991 = vpow2.f32 %v10285_v46  ;;  %v9912_v46 = vld [vmem:[%s18750_s24 + $0x28] sm:$0xff] }
0x3662   :  { %v13986_v19 = vpop.eup %13985 }
0x3663   :  { %v10297_v4 = vsel %vm708_vm1, %v13986_v19, 0.0  ;;  %v13988_v27 = vpop.eup %13987 }
0x3664   :  { %10298 = vadd.xlane.f32.xlu0 %v10297_v4  ;;  %v10291_v57 = vsel %vm708_vm1, %v13988_v27, 0.0 }
0x3666   :  { %v13990_v3 = vpop.eup %13989 }
0x3667   :  { %v10300_v25 = vsel %vm708_vm1, %v13990_v3, 0.0  ;;  %v13992_v8 = vpop.eup %13991 }
0x3668   :  { %10292 = vadd.xlane.f32.xlu0 %v10291_v57  ;;  %10301 = vadd.xlane.f32.xlu1 %v10300_v25  ;;  %v10294_v58 = vsel %vm708_vm1, %v13992_v8, 0.0 }
0x366c   :  { %10295 = vadd.xlane.f32.xlu1 %v10294_v58 }
0x367d   :  { %10460 = vrot.lane.b32.xlu1 %v18347_v13, %s14663_s10 }
0x367e   :  { %10313 = vrot.lane.b32.xlu0 %v18351_v40, %s14662_s8 }
0x3681   :  { %10458 = vrot.lane.b32.xlu1 %v18349_v1, %s14652_s30 }
0x3682   :  { %10407 = vrot.lane.b32.xlu0 %v18355_v9, %s14652_s30  ;;  %s18751_s30 = sld [smem:[#allocation97_spill]] }
0x36ed   :  { %v10299_v7 = vpop.xlane.xlu0 %10298 }
0x36ee   :  { %13993 = vrcp.f32 %v10299_v7 }
0x36f1   :  { %v10293_v56 = vpop.xlane.xlu0 %10292  ;;  %v10302_v52 = vpop.xlane.xlu1 %10301 }
0x36f2   :  { %13995 = vrcp.f32 %v10302_v52 }
0x36f3   :  { %13997 = vrcp.f32 %v10293_v56 }
0x36f5   :  { %v10314_v38 = vpop.permute.xlu0 %10313  ;;  %v10296_v17 = vpop.xlane.xlu1 %10295 }
0x36f6   :  { %13999 = vrcp.f32 %v10296_v17  ;;  %13016 = vmatpush3.bf16.msra.mxu0 %v10314_v38 }
0x36f7   :  { %13027 = vmatprep.subr.bf16.mxu0 %v18714_v49 }
0x36f9   :  { %v10461_v24 = vpop.permute.xlu1 %10460  ;;  %v10408_v12 = vpop.permute.xlu0 %10407 }
0x36fa   :  { %v10466_v15 = vsel %vm1399_vm3, %v10461_v24, 0 }
0x36fb   :  { %v13994_v53 = vpop.eup %13993 }
0x36fc   :  { %v10309_v6 = vmul.f32 %v13994_v53, %v13986_v19 }
0x36fd   :  { %v10459_v54 = vpop.permute.xlu1 %10458 }
0x36ff   :  { %v13996_v22 = vpop.eup %13995 }
0x3700   :  { %v13998_v36 = vpop.eup %13997  ;;  %v10310_v63 = vmul.f32 %v13996_v22, %v13990_v3 }
0x3701   :  { %v10307_v32 = vmul.f32 %v13998_v36, %v13988_v27 }
0x3702   :  { %v10312_v26 = vpack.c.bf16 %v10310_v63, %v10309_v6 }
0x3703   :  { %v14000_v43 = vpop.eup %13999 }
0x3704   :  { %v10308_v44 = vmul.f32 %v14000_v43, %v13992_v8  ;;  %13024 = vmatmul.mubr.msk.bf16.vlgmr.msra.gmra.mxu1 %vm708_vm1, %v10312_v26 }
0x3705   :  { %13034 = vmatpush3.bf16.xpose.msra.mxu1 %v10466_v15  ;;  %13035 = vmatprep.mubr.msk.bf16.mxu1 %vm14651_vm2, %v18714_v49 }
0x3706   :  { %v10311_v23 = vpack.c.bf16 %v10308_v44, %v10307_v32  ;;  %13045 = vmatprep.subr.bf16.mxu1 %v18714_v49 }
0x3708   :  { %13018 = vmatmul.mubr.msk.bf16.vlgmr.msra.gmra.mxu0 %vm708_vm1, %v10311_v23 }
0x3709   :  { %13028 = vmatpush3.bf16.xpose.msra.mxu0 %v10415_v51  ;;  %13029 = vmatprep.mubr.msk.bf16.mxu0 %vm14651_vm2, %v18714_v49 }
0x370a   :  { %13039 = vmatprep.subr.bf16.mxu0 %v18714_v49 }
0x370c   :  { %13036 = vmatmul.mubr.msk.bf16.vlgmr.msra.gmra.mxu1 %vm1399_vm3, %v10459_v54 }
0x370d   :  { %13047 = vmatprep.mubr.msk.bf16.mxu1 %vm14651_vm2, %v18714_v49 }
0x3710   :  { %13030 = vmatmul.mubr.msk.bf16.vlgmr.msra.gmra.mxu0 %vm1399_vm3, %v10408_v12 }
0x3711   :  { %13041 = vmatprep.mubr.msk.bf16.mxu0 %vm14651_vm2, %v18714_v49 }
0x37c4   :  { %v18459_v48 = vpop.f32.mrf.mxu1 }
0x37c6   :  { %v13025_v47 = vpop.f32.mrf.mxu1 }
0x37c8   :  { %v18461_v21 = vpop.f32.mrf.mxu0  ;;  %v18463_v11 = vpop.f32.mrf.mxu1 }
0x37c9   :  { %v13323_v5 = vpack.i.bf16 %v18463_v11, %v18459_v48 }
0x37ca   :  { %v13019_v18 = vpop.f32.mrf.mxu0  ;;  %v13026_v10 = vpop.f32.mrf.mxu1 }
0x37cc   :  { %v18467_v55 = vpop.f32.mrf.mxu0  ;;  %v10502_v42 = vpop.f32.mrf.mxu1 }
0x37cd   :  { %v13318_v61 = vpack.i.bf16 %v18467_v55, %v18461_v21  ;;  %v10503_v0 = vadd.f32 %v10502_v42, %v9911_v62 }
0x37ce   :  { %v13020_v35 = vpop.f32.mrf.mxu0  ;;  %v13037_v37 = vpop.f32.mrf.mxu1 }
0x37cf   :  { %v10515_v3 = vsel %vm708_vm1, %v10503_v0, -inf }
0x37d0   :  { %v10451_v31 = vpop.f32.mrf.mxu0  ;;  %v10505_v2 = vpop.f32.mrf.mxu1 }
0x37d1   :  { %v10452_v45 = vadd.f32 %v10451_v31, %v9911_v62  ;;  %v10506_v27 = vadd.f32 %v10505_v2, %v9912_v46 }
0x37d2   :  { %v13031_v28 = vpop.f32.mrf.mxu0  ;;  %v13038_v14 = vpop.f32.mrf.mxu1 }
0x37d3   :  { %v10509_v20 = vsel %vm708_vm1, %v10452_v45, -inf  ;;  %v10518_v25 = vsel %vm708_vm1, %v10506_v27, -inf }
0x37d4   :  { %10510 = vmax.xlane.f32.xlu0 %v10509_v20  ;;  %v10454_v50 = vpop.f32.mrf.mxu0 }
0x37d5   :  { %v10455_v19 = vadd.f32 %v10454_v50, %v9912_v46 }
0x37d6   :  { %v13032_v4 = vpop.f32.mrf.mxu0 }
0x37d7   :  { %v10512_v57 = vsel %vm708_vm1, %v10455_v19, -inf }
0x37d8   :  { %10516 = vmax.xlane.f32.xlu0 %v10515_v3  ;;  %10513 = vmax.xlane.f32.xlu1 %v10512_v57 }
0x37dc   :  { %10519 = vmax.xlane.f32.xlu0 %v10518_v25 }
0x37e9   :  { %10602 = vrot.lane.b32.xlu1 %v18347_v13, %s14660_s27 }
0x37ed   :  { %10651 = vrot.lane.b32.xlu1 %v18351_v40, %s14664_s11 }
0x385d   :  { %v10511_v8 = vpop.xlane.xlu0 %10510 }
0x385e   :  { %v10521_v58 = vsub.f32 %v10452_v45, %v10511_v8 }
0x3860   :  { %v10525_v52 = vmul.f32 1.442695, %v10521_v58 }
0x3861   :  { %v10517_v29 = vpop.xlane.xlu0 %10516  ;;  %v10514_v7 = vpop.xlane.xlu1 %10513 }
0x3862   :  { %v10523_v56 = vsub.f32 %v10503_v0, %v10517_v29  ;;  %v10522_v17 = vsub.f32 %v10455_v19, %v10514_v7 }
0x3864   :  { %v10529_v38 = vmul.f32 1.442695, %v10523_v56  ;;  %v10527_v6 = vmul.f32 1.442695, %v10522_v17  ;;  %v9913_v17 = vld [vmem:[%s18750_s24 + $0x30] sm:$0xff] }
0x3865   :  { %v10520_v53 = vpop.xlane.xlu0 %10519  ;;  %v10603_v22 = vpop.permute.xlu1 %10602 }
0x3866   :  { %14001 = vpow2.f32 %v10529_v38  ;;  %v10524_v36 = vsub.f32 %v10506_v27, %v10520_v53  ;;  %13046 = vmatpush3.bf16.msra.mxu1 %v10603_v22 }
0x3867   :  { %13057 = vmatprep.subr.bf16.mxu1 %v18714_v49  ;;  %14003 = vpow2.f32 %v10525_v52 }
0x3868   :  { %v10531_v63 = vmul.f32 1.442695, %v10524_v36 }
0x3869   :  { %v10652_v54 = vpop.permute.xlu1 %10651 }
0x386a   :  { %14005 = vpow2.f32 %v10531_v63  ;;  %v10657_v46 = vsel %vm1399_vm3, %v10652_v54, 0 }
0x386b   :  { %14007 = vpow2.f32 %v10527_v6 }
0x3873   :  { %v14002_v24 = vpop.eup %14001 }
0x3874   :  { %v10539_v43 = vsel %vm708_vm1, %v14002_v24, 0.0  ;;  %v14004_v26 = vpop.eup %14003 }
0x3875   :  { %10540 = vadd.xlane.f32.xlu0 %v10539_v43  ;;  %v10533_v44 = vsel %vm708_vm1, %v14004_v26, 0.0  ;;  %v9914_v43 = vld [vmem:[%s18750_s24 + $0x38] sm:$0xff] }
0x3877   :  { %v14006_v32 = vpop.eup %14005 }
0x3878   :  { %v10542_v15 = vsel %vm708_vm1, %v14006_v32, 0.0  ;;  %v14008_v23 = vpop.eup %14007 }
0x3879   :  { %10534 = vadd.xlane.f32.xlu0 %v10533_v44  ;;  %10543 = vadd.xlane.f32.xlu1 %v10542_v15  ;;  %v10536_v51 = vsel %vm708_vm1, %v14008_v23, 0.0 }
0x387d   :  { %10537 = vadd.xlane.f32.xlu1 %v10536_v51 }
0x388e   :  { %10702 = vrot.lane.b32.xlu1 %v18347_v13, %s14664_s11 }
0x388f   :  { %10555 = vrot.lane.b32.xlu0 %v18351_v40, %s14660_s27 }
0x3892   :  { %10700 = vrot.lane.b32.xlu1 %v18349_v1, %s14654_s1 }
0x3893   :  { %10649 = vrot.lane.b32.xlu0 %v18355_v9, %s14654_s1  ;;  %s11432_s1 = sshll.u32 %s14667_s25, 4  ;;  %s11433_s1 = int_to_ptr.vmem [resolvable:$true] %s11432_s1 }
0x3894   :  { %s14517_s9 = scalar_lea.vmem %s11433_s1, 32  ;;  %p14522_p4 = scmp.lt.s32.totalorder %s11433_s1, %s11433_s1 }
0x3895   :  { %p14518_p3 = scmp.ne.s32.totalorder %s11433_s1, %s14517_s9  ;;  %p14523_p5 = scmp.lt.s32.totalorder %s14517_s9, %s14517_s9 }
0x3897   :  { %p14524_p6 = por %p14523_p5, %p14522_p4 }
0x3899   :  { %p14525_p7 = pnand %p14524_p6, %p14518_p3 }
0x38fe   :  { %v10541_v12 = vpop.xlane.xlu0 %10540 }
0x38ff   :  { %14009 = vrcp.f32 %v10541_v12 }
0x3902   :  { %v10535_v47 = vpop.xlane.xlu0 %10534  ;;  %v10544_v18 = vpop.xlane.xlu1 %10543 }
0x3903   :  { %14011 = vrcp.f32 %v10544_v18 }
0x3904   :  { %14013 = vrcp.f32 %v10535_v47 }
0x3906   :  { %v10556_v10 = vpop.permute.xlu0 %10555  ;;  %v10538_v42 = vpop.xlane.xlu1 %10537 }
0x3907   :  { %14015 = vrcp.f32 %v10538_v42  ;;  %13040 = vmatpush3.bf16.msra.mxu0 %v10556_v10 }
0x3908   :  { %13051 = vmatprep.subr.bf16.mxu0 %v18714_v49 }
0x390a   :  { %v10703_v45 = vpop.permute.xlu1 %10702  ;;  %v10650_v19 = vpop.permute.xlu0 %10649 }
0x390b   :  { %v10708_v14 = vsel %vm1399_vm3, %v10703_v45, 0 }
0x390c   :  { %v14010_v35 = vpop.eup %14009 }
0x390d   :  { %v10551_v1 = vmul.f32 %v14010_v35, %v14002_v24 }
0x390e   :  { %v10701_v50 = vpop.permute.xlu1 %10700 }
0x3910   :  { %v14012_v37 = vpop.eup %14011 }
0x3911   :  { %v14014_v62 = vpop.eup %14013  ;;  %v10552_v31 = vmul.f32 %v14012_v37, %v14006_v32 }
0x3912   :  { %v10549_v28 = vmul.f32 %v14014_v62, %v14004_v26 }
0x3913   :  { %v10554_v2 = vpack.c.bf16 %v10552_v31, %v10551_v1 }
0x3914   :  { %v14016_v9 = vpop.eup %14015 }
0x3915   :  { %v10550_v0 = vmul.f32 %v14016_v9, %v14008_v23  ;;  %13048 = vmatmul.mubr.msk.bf16.vlgmr.msra.gmra.mxu1 %vm708_vm1, %v10554_v2 }
0x3916   :  { %13058 = vmatpush3.bf16.xpose.msra.mxu1 %v10708_v14  ;;  %13059 = vmatprep.mubr.msk.bf16.mxu1 %vm14651_vm2, %v18714_v49 }
0x3917   :  { %v10553_v20 = vpack.c.bf16 %v10550_v0, %v10549_v28  ;;  %13069 = vmatprep.subr.bf16.mxu1 %v18714_v49 }
0x3919   :  { %13042 = vmatmul.mubr.msk.bf16.vlgmr.msra.gmra.mxu0 %vm708_vm1, %v10553_v20 }
0x391a   :  { %13052 = vmatpush3.bf16.xpose.msra.mxu0 %v10657_v46  ;;  %13053 = vmatprep.mubr.msk.bf16.mxu0 %vm14651_vm2, %v18714_v49 }
0x391b   :  { %13063 = vmatprep.subr.bf16.mxu0 %v18714_v49 }
0x391d   :  { %13060 = vmatmul.mubr.msk.bf16.vlgmr.msra.gmra.mxu1 %vm1399_vm3, %v10701_v50 }
0x391e   :  { %13071 = vmatprep.mubr.msk.bf16.mxu1 %vm14651_vm2, %v18714_v49 }
0x3921   :  { %13054 = vmatmul.mubr.msk.bf16.vlgmr.msra.gmra.mxu0 %vm1399_vm3, %v10650_v19 }
0x3922   :  { %13065 = vmatprep.mubr.msk.bf16.mxu0 %vm14651_vm2, %v18714_v49 }
0x39d5   :  { %v18511_v4 = vpop.f32.mrf.mxu1 }
0x39d7   :  { %v13049_v27 = vpop.f32.mrf.mxu1 }
0x39d9   :  { %v10595_v3 = vpop.f32.mrf.mxu0  ;;  %v10645_v57 = vpop.f32.mrf.mxu1 }
0x39da   :  { %v13333_v25 = vpack.i.bf16 %v10645_v57, %v18511_v4 }
0x39db   :  { %v13043_v8 = vpop.f32.mrf.mxu0  ;;  %v13050_v58 = vpop.f32.mrf.mxu1 }
0x39dd   :  { %v10598_v29 = vpop.f32.mrf.mxu0  ;;  %v10744_v56 = vpop.f32.mrf.mxu1 }
0x39de   :  { %v13328_v7 = vpack.i.bf16 %v10598_v29, %v10595_v3  ;;  %v10745_v6 = vadd.f32 %v10744_v56, %v9913_v17 }
0x39df   :  { %v13044_v52 = vpop.f32.mrf.mxu0  ;;  %v13061_v38 = vpop.f32.mrf.mxu1 }
0x39e0   :  { %v10757_v23 = vsel %vm708_vm1, %v10745_v6, -inf  ;;  %v13378_v52 = vld [vmem:[%s18751_s30] sm:$0xff]  }
0x39e1   :  { %v10693_v53 = vpop.f32.mrf.mxu0  ;;  %v10747_v36 = vpop.f32.mrf.mxu1 }
0x39e2   :  { %v10694_v22 = vadd.f32 %v10693_v53, %v9913_v17  ;;  %v10748_v15 = vadd.f32 %v10747_v36, %v9914_v43 }
0x39e3   :  { %v13055_v49 = vpop.f32.mrf.mxu0  ;;  %v13062_v63 = vpop.f32.mrf.mxu1 }
0x39e4   :  { %v10751_v24 = vsel %vm708_vm1, %v10694_v22, -inf  ;;  %v10760_v54 = vsel %vm708_vm1, %v10748_v15, -inf }
0x39e5   :  { %10752 = vmax.xlane.f32.xlu0 %v10751_v24  ;;  %v10696_v26 = vpop.f32.mrf.mxu0 }
0x39e6   :  { %v10697_v32 = vadd.f32 %v10696_v26, %v9914_v43 }
0x39e7   :  { %v13056_v44 = vpop.f32.mrf.mxu0 }
0x39e8   :  { %v10754_v51 = vsel %vm708_vm1, %v10697_v32, -inf }
0x39e9   :  { %10758 = vmax.xlane.f32.xlu0 %v10757_v23  ;;  %10755 = vmax.xlane.f32.xlu1 %v10754_v51 }
0x39ed   :  { %10761 = vmax.xlane.f32.xlu0 %v10760_v54 }
0x3a6e   :  { %v10753_v12 = vpop.xlane.xlu0 %10752 }
0x3a6f   :  { %v10763_v47 = vsub.f32 %v10694_v22, %v10753_v12 }
0x3a71   :  { %v10767_v35 = vmul.f32 1.442695, %v10763_v47 }
0x3a72   :  { %v10759_v18 = vpop.xlane.xlu0 %10758  ;;  %v10756_v10 = vpop.xlane.xlu1 %10755 }
0x3a73   :  { %v10765_v42 = vsub.f32 %v10745_v6, %v10759_v18  ;;  %v10764_v62 = vsub.f32 %v10697_v32, %v10756_v10 }
0x3a75   :  { %v10771_v37 = vmul.f32 1.442695, %v10765_v42  ;;  %v10769_v45 = vmul.f32 1.442695, %v10764_v62 }
0x3a76   :  { %v10762_v1 = vpop.xlane.xlu0 %10761 }
0x3a77   :  { %14017 = vpow2.f32 %v10771_v37  ;;  %v10766_v31 = vsub.f32 %v10748_v15, %v10762_v1 }
0x3a78   :  { %14019 = vpow2.f32 %v10767_v35 }
0x3a79   :  { %v10773_v9 = vmul.f32 1.442695, %v10766_v31 }
0x3a7b   :  { %14021 = vpow2.f32 %v10773_v9 }
0x3a7c   :  { %14023 = vpow2.f32 %v10769_v45 }
0x3a84   :  { %v14018_v2 = vpop.eup %14017 }
0x3a85   :  { %v10781_v28 = vsel %vm708_vm1, %v14018_v2, 0.0  ;;  %v14020_v0 = vpop.eup %14019 }
0x3a86   :  { %10782 = vadd.xlane.f32.xlu0 %v10781_v28  ;;  %v10775_v20 = vsel %vm708_vm1, %v14020_v0, 0.0 }
0x3a88   :  { %v14022_v14 = vpop.eup %14021 }
0x3a89   :  { %v10784_v46 = vsel %vm708_vm1, %v14022_v14, 0.0  ;;  %v14024_v50 = vpop.eup %14023 }
0x3a8a   :  { %10776 = vadd.xlane.f32.xlu0 %v10775_v20  ;;  %10785 = vadd.xlane.f32.xlu1 %v10784_v46  ;;  %v10778_v19 = vsel %vm708_vm1, %v14024_v50, 0.0 }
0x3a8e   :  { %10779 = vadd.xlane.f32.xlu1 %v10778_v19 }
0x3a9f   :  { %10844 = vrot.lane.b32.xlu1 %v18347_v13, %s14665_s29 }
0x3aa0   :  { %10797 = vrot.lane.b32.xlu0 %v18351_v40, %s14665_s29 }
0x3aa3   :  { %13319 = vrot.lane.b32.xlu1 %v13318_v61, %s14657_s7 }
0x3aa4   :  { %13329 = vrot.lane.b32.xlu0 %v13328_v7, %s14658_s26  ;;  %v13377_v7 = vld [vmem:[%s18751_s30 + $0x8] sm:$0xff]  }
0x3aa7   :  { %13324 = vrot.lane.b32.xlu1 %v13323_v5, %s14657_s7 }
0x3aab   :  { %13334 = vrot.lane.b32.xlu1 %v13333_v25, %s14658_s26 }
0x3b0f   :  { %v10783_v4 = vpop.xlane.xlu0 %10782 }
0x3b10   :  { %14025 = vrcp.f32 %v10783_v4 }
0x3b13   :  { %v10777_v13 = vpop.xlane.xlu0 %10776  ;;  %v10786_v27 = vpop.xlane.xlu1 %10785 }
0x3b14   :  { %14027 = vrcp.f32 %v10786_v27 }
0x3b15   :  { %14029 = vrcp.f32 %v10777_v13  ;;  %v11757_v13 = vld [vmem:[#allocation35] ss:$0 sm:$0xff] }
0x3b17   :  { %v10798_v40 = vpop.permute.xlu0 %10797  ;;  %v10780_v3 = vpop.xlane.xlu1 %10779 }
0x3b18   :  { %14031 = vrcp.f32 %v10780_v3  ;;  %13064 = vmatpush3.bf16.msra.mxu0 %v10798_v40 }
0x3b19   :  { %13075 = vmatprep.subr.bf16.mxu0 %v13377_v7 }
0x3b1b   :  { %v10845_v21 = vpop.permute.xlu1 %10844  ;;  %v13330_v23 = vpop.permute.xlu0 %13329 }
0x3b1c   :  { %13070 = vmatpush3.bf16.msra.mxu1 %v10845_v21  ;;  %v13332_v62 = vunpack.i.h.bf16 %v13330_v23  ;;  %v13331_v1 = vunpack.i.l.bf16 %v13330_v23  ;;  %v13379_v23 = vld [vmem:[%s14986_s17 + $0x8] sm:$0xff]  }
0x3b1d   :  { %v14026_v55 = vpop.eup %14025  ;;  %13083 = vmatprep.subr.bf16.mxu1 %v13379_v23 }
0x3b1e   :  { %v10793_v11 = vmul.f32 %v14026_v55, %v14018_v2 }
0x3b1f   :  { %v13320_v43 = vpop.permute.xlu1 %13319 }
0x3b20   :  { %v13322_v44 = vunpack.i.h.bf16 %v13320_v43  ;;  %v13321_v15 = vunpack.i.l.bf16 %v13320_v43 }
0x3b21   :  { %v14028_v61 = vpop.eup %14027 }
0x3b22   :  { %v14030_v48 = vpop.eup %14029  ;;  %v10794_v5 = vmul.f32 %v14028_v61, %v14022_v14  ;;  %v10940_v35 = vsel %vm1399_vm3, %v18417_v34, %v13322_v44  ;;  %v10939_v37 = vsel %vm1399_vm3, %v18413_v39, %v13321_v15 }
0x3b23   :  { %v10791_v8 = vmul.f32 %v14030_v48, %v14020_v0  ;;  %v13325_v26 = vpop.permute.xlu1 %13324  ;;  %v10943_v39 = vsel %vm708_vm1, %v10939_v37, %v13331_v1  ;;  %v10944_v46 = vsel %vm708_vm1, %v10940_v35, %v13332_v62 }
0x3b24   :  { %v10796_v25 = vpack.c.bf16 %v10794_v5, %v10793_v11  ;;  %v13327_v51 = vunpack.i.h.bf16 %v13325_v26  ;;  %v13326_v54 = vunpack.i.l.bf16 %v13325_v26 }
0x3b25   :  { %v14032_v57 = vpop.eup %14031 }
0x3b26   :  { %v10792_v58 = vmul.f32 %v14032_v57, %v14024_v50  ;;  %13072 = vmatmul.mubr.msk.bf16.vlgmr.msra.gmra.mxu1 %vm708_vm1, %v10796_v25  ;;  %v10942_v31 = vsel %vm1399_vm3, %v18415_v30, %v13327_v51  ;;  %v10941_v45 = vsel %vm1399_vm3, %v18411_v60, %v13326_v54  ;;  %v13380_v51 = vld [vmem:[%s14986_s17] sm:$0xff]   ;;  %s18752_s17 = sld [smem:[#allocation54_spill]] }
0x3b27   :  { %v13335_v32 = vpop.permute.xlu1 %13334  ;;  %13084 = vmatpush3.bf16.msra.mxu1 %v13379_v23 }
0x3b28   :  { %v10795_v29 = vpack.c.bf16 %v10792_v58, %v10791_v8  ;;  %v13337_v12 = vunpack.i.h.bf16 %v13335_v32  ;;  %v13336_v47 = vunpack.i.l.bf16 %v13335_v32  ;;  %13085 = vmatprep.subr.bf16.mxu1 %v13380_v51 }
0x3b2a   :  { %13066 = vmatmul.mubr.msk.bf16.vlgmr.msra.gmra.mxu0 %vm708_vm1, %v10795_v29  ;;  %v10945_v2 = vsel %vm708_vm1, %v10941_v45, %v13336_v47  ;;  %v10946_v28 = vsel %vm708_vm1, %v10942_v31, %v13337_v12 }
0x3b2b   :  { %13076 = vmatpush3.bf16.msra.mxu0 %v13377_v7  ;;  %13086 = vmatpush3.bf16.msra.mxu1 %v13380_v51 }
0x3b2c   :  { %13077 = vmatprep.subr.bf16.mxu0 %v13378_v52 }
0x3b2f   :  { %13078 = vmatpush3.bf16.msra.mxu0 %v13378_v52 }
0x3be6   :  { %v10884_v56 = vpop.f32.mrf.mxu1 }
0x3be8   :  { %v13073_v38 = vpop.f32.mrf.mxu1 }
0x3bea   :  { %v10837_v17 = vpop.f32.mrf.mxu0  ;;  %v10887_v53 = vpop.f32.mrf.mxu1 }
0x3beb   :  { %v13343_v22 = vpack.i.bf16 %v10887_v53, %v10884_v56 }
0x3bec   :  { %v13067_v36 = vpop.f32.mrf.mxu0  ;;  %v13074_v49 = vpop.f32.mrf.mxu1 }
0x3bed   :  { %13344 = vrot.lane.b32.xlu1 %v13343_v22, %s14666_s20 }
0x3bee   :  { %v10840_v6 = vpop.f32.mrf.mxu0 }
0x3bef   :  { %v13338_v63 = vpack.i.bf16 %v10840_v6, %v10837_v17 }
0x3bf0   :  { %v13068_v24 = vpop.f32.mrf.mxu0 }
0x3bf1   :  { %13339 = vrot.lane.b32.xlu0 %v13338_v63, %s14666_s20 }
0x3c5f   :  { %v13345_v18 = vpop.permute.xlu1 %13344 }
0x3c60   :  { %v13347_v10 = vunpack.i.h.bf16 %v13345_v18  ;;  %v13346_v42 = vunpack.i.l.bf16 %v13345_v18 }
0x3c62   :  { %v10949_v34 = vsel %vm9374_vm6, %v10945_v2, %v13346_v42  ;;  %v10950_v20 = vsel %vm9374_vm6, %v10946_v28, %v13347_v10  ;;  %v11762_v28 = vld [vmem:[#allocation34] ss:$0 sm:$0xff] }
0x3c63   :  { %v13340_v9 = vpop.permute.xlu0 %13339  ;;  %v10952_v19 = vpack.c.bf16 %v10950_v20, %v10949_v34 }
0x3c64   :  { %v13342_v0 = vunpack.i.h.bf16 %v13340_v9  ;;  %v13341_v14 = vunpack.i.l.bf16 %v13340_v9 }
0x3c66   :  { %v10948_v30 = vsel %vm9374_vm6, %v10944_v46, %v13342_v0  ;;  %v10947_v50 = vsel %vm9374_vm6, %v10943_v39, %v13341_v14  ;;  %v11763_v46 = vld [vmem:[#allocation32] ss:$0 sm:$0xff] }
0x3c67   :  { %v10951_v60 = vpack.c.bf16 %v10948_v30, %v10947_v50 }
0x3c69   :  { %13079 = vmatprep.mubr.msk.bf16.mxu0 %vm4146_vm4, %v10951_v60 }
0x3c6a   :  { %13080 = vmatmul.mubr.msk.bf16.vlgmr.msra.gmra.mxu0 %vm4146_vm4, %v10952_v19 }
0x3d2a   :  { %v13081_v4 = vpop.f32.mrf.mxu0 }
0x3d2b   :  { %v11025_v40 = vadd.f32 %v13081_v4, %v11757_v13 }
0x3d2c   :  { %v11016_v27 = vpop.f32.mrf.mxu0 }
0x3d2d   :  { %v11017_v3 = vadd.f32 %v11757_v13, %v11016_v27  ;;  %v18566_v48 = vadd.f32 %v11025_v40, %v18316_v33 }
0x3d2e   :  { %v13082_v21 = vpop.f32.mrf.mxu0 }
0x3d2f   :  { %v18563_v55 = vadd.f32 %v11017_v3, %v18313_v41  ;;  %v11028_v11 = vadd.f32 %v13082_v21, %v11757_v13  ;;  %v11043_v58 = vsel %vm4146_vm4, %v18566_v48, 0.0 }
0x3d30   :  { %v11019_v61 = vpop.f32.mrf.mxu0 }
0x3d31   :  { %v11020_v5 = vadd.f32 %v11757_v13, %v11019_v61  ;;  %v11037_v57 = vsel %vm4146_vm4, %v18563_v55, 0.0  ;;  %v18574_v8 = vadd.f32 %v11028_v11, %v18324_v59  ;;  %v13381_v11 = vld [vmem:[%s14991_s21 + $0x18] sm:$0xff]  }
0x3d32   :  { %11038 = vadd.xlane.f32.xlu0 %v11037_v57  ;;  %13091 = vmatprep.subr.bf16.mxu0 %v13381_v11  ;;  %v13383_v57 = vld [vmem:[%s14991_s21 + $0x8] sm:$0xff]  }
0x3d33   :  { %v18571_v25 = vadd.f32 %v11020_v5, %v18321_v16  ;;  %v11046_v33 = vsel %vm4146_vm4, %v18574_v8, 0.0  ;;  %13092 = vmatpush3.bf16.msra.mxu0 %v13381_v11  ;;  %v13382_v5 = vld [vmem:[%s14991_s21 + $0x10] sm:$0xff]  }
0x3d34   :  { %13093 = vmatprep.subr.bf16.mxu0 %v13382_v5 }
0x3d35   :  { %v11040_v41 = vsel %vm4146_vm4, %v18571_v25, 0.0 }
0x3d36   :  { %11041 = vadd.xlane.f32.xlu1 %v11040_v41  ;;  %11044 = vadd.xlane.f32.xlu0 %v11043_v58  ;;  %v13384_v41 = vld [vmem:[%s14991_s21] sm:$0xff]   ;;  %v11764_v58 = vld [vmem:[#allocation26] ss:$0 sm:$0xff]  ;;  %s18753_s21 = sld [smem:[#allocation53_spill]] }
0x3d37   :  { %13094 = vmatpush3.bf16.msra.mxu0 %v13382_v5 }
0x3d38   :  { %13095 = vmatprep.subr.bf16.mxu0 %v13383_v57 }
0x3d3a   :  { %11047 = vadd.xlane.f32.xlu0 %v11046_v33 }
0x3d3b   :  { %13096 = vmatpush3.bf16.msra.mxu0 %v13383_v57 }
0x3d3c   :  { %13097 = vmatprep.subr.bf16.mxu0 %v13384_v41 }
0x3d3f   :  { %13098 = vmatpush3.bf16.msra.mxu0 %v13384_v41 }
0x3dbb   :  { %v11039_v29 = vpop.xlane.xlu0 %11038 }
0x3dbc   :  { %v11049_v7 = vmul.f32 0.03125, %v11039_v29 }
0x3dbe   :  { %v11053_v16 = vsub.f32 %v18563_v55, %v11049_v7 }
0x3dbf   :  { %v11042_v56 = vpop.xlane.xlu1 %11041  ;;  %v11045_v52 = vpop.xlane.xlu0 %11044 }
0x3dc0   :  { %v11050_v59 = vmul.f32 0.03125, %v11042_v56  ;;  %v11051_v38 = vmul.f32 0.03125, %v11045_v52  ;;  %v11057_v17 = vmul.f32 %v11053_v16, %v11053_v16 }
0x3dc2   :  { %v11054_v53 = vsub.f32 %v18571_v25, %v11050_v59  ;;  %v11055_v22 = vsub.f32 %v18566_v48, %v11051_v38  ;;  %v11061_v36 = vsel %vm4146_vm4, %v11057_v17, 0.0 }
0x3dc3   :  { %11062 = vadd.xlane.f32.xlu0 %v11061_v36  ;;  %v11048_v49 = vpop.xlane.xlu0 %11047 }
0x3dc4   :  { %v11052_v6 = vmul.f32 0.03125, %v11048_v49  ;;  %v11058_v63 = vmul.f32 %v11054_v53, %v11054_v53  ;;  %v11059_v24 = vmul.f32 %v11055_v22, %v11055_v22 }
0x3dc6   :  { %v11056_v43 = vsub.f32 %v18574_v8, %v11052_v6  ;;  %v11064_v26 = vsel %vm4146_vm4, %v11058_v63, 0.0  ;;  %v11067_v32 = vsel %vm4146_vm4, %v11059_v24, 0.0 }
0x3dc7   :  { %11065 = vadd.xlane.f32.xlu1 %v11064_v26  ;;  %11068 = vadd.xlane.f32.xlu0 %v11067_v32 }
0x3dc8   :  { %v11060_v44 = vmul.f32 %v11056_v43, %v11056_v43 }
0x3dca   :  { %v11070_v15 = vsel %vm4146_vm4, %v11060_v44, 0.0 }
0x3dcb   :  { %11071 = vadd.xlane.f32.xlu1 %v11070_v15 }
0x3e4c   :  { %v11063_v54 = vpop.xlane.xlu0 %11062 }
0x3e4d   :  { %v11073_v12 = vmul.f32 0.03125, %v11063_v54 }
0x3e4f   :  { %v11077_v47 = vadd.f32 1e-05, %v11073_v12 }
0x3e50   :  { %v11066_v18 = vpop.xlane.xlu1 %11065  ;;  %v11069_v10 = vpop.xlane.xlu0 %11068 }
0x3e51   :  { %14033 = vrsqrt.f32 %v11077_v47  ;;  %v11074_v42 = vmul.f32 0.03125, %v11066_v18  ;;  %v11075_v35 = vmul.f32 0.03125, %v11069_v10 }
0x3e53   :  { %v11078_v37 = vadd.f32 1e-05, %v11074_v42  ;;  %v11079_v62 = vadd.f32 1e-05, %v11075_v35 }
0x3e54   :  { %v11072_v1 = vpop.xlane.xlu1 %11071 }
0x3e55   :  { %14035 = vrsqrt.f32 %v11078_v37  ;;  %v11076_v31 = vmul.f32 0.03125, %v11072_v1 }
0x3e56   :  { %14037 = vrsqrt.f32 %v11079_v62 }
0x3e57   :  { %v11080_v45 = vadd.f32 1e-05, %v11076_v31 }
0x3e59   :  { %14039 = vrsqrt.f32 %v11080_v45 }
0x3e5e   :  { %v14034_v9 = vpop.eup %14033 }
0x3e5f   :  { %v11085_v2 = vmul.f32 %v14034_v9, %v11053_v16 }
0x3e61   :  { %v11095_v20 = vmul.f32 %v11762_v28, %v11085_v2 }
0x3e62   :  { %v14036_v0 = vpop.eup %14035 }
0x3e63   :  { %v14038_v14 = vpop.eup %14037  ;;  %v11086_v34 = vmul.f32 %v14036_v0, %v11054_v53  ;;  %v11105_v4 = vadd.f32 %v11763_v46, %v11095_v20 }
0x3e64   :  { %v11087_v39 = vmul.f32 %v14038_v14, %v11055_v22 }
0x3e65   :  { %v11096_v30 = vmul.f32 %v11762_v28, %v11086_v34 }
0x3e66   :  { %v14040_v50 = vpop.eup %14039  ;;  %v11097_v19 = vmul.f32 %v11762_v28, %v11087_v39 }
0x3e67   :  { %v11088_v60 = vmul.f32 %v14040_v50, %v11056_v43  ;;  %v11106_v13 = vadd.f32 %v11763_v46, %v11096_v30 }
0x3e68   :  { %v11107_v3 = vadd.f32 %v11763_v46, %v11097_v19  ;;  %v11769_v19 = vld [vmem:[#allocation28] ss:$0 sm:$0xff] }
0x3e69   :  { %v11098_v27 = vmul.f32 %v11762_v28, %v11088_v60  ;;  %v11109_v40 = vpack.c.bf16 %v11106_v13, %v11105_v4 }
0x3e6b   :  { %v11108_v21 = vadd.f32 %v11763_v46, %v11098_v27  ;;  %13087 = vmatprep.mubr.msk.bf16.mxu1 %vm4146_vm4, %v11109_v40 }
0x3e6d   :  { %v11110_v61 = vpack.c.bf16 %v11108_v21, %v11107_v3 }
0x3e6f   :  { %13088 = vmatmul.mubr.msk.bf16.vlgmr.msra.gmra.mxu1 %vm4146_vm4, %v11110_v61 }
0x3f2f   :  { %v13089_v33 = vpop.f32.mrf.mxu1 }
0x3f30   :  { %v11183_v29 = vadd.f32 %v13089_v33, %v11764_v58 }
0x3f31   :  { %v11174_v7 = vpop.f32.mrf.mxu1 }
0x3f32   :  { %v11191_v16 = vmul.f32 %v11183_v29, %v11183_v29  ;;  %v11175_v56 = vadd.f32 %v11764_v58, %v11174_v7 }
0x3f33   :  { %v13090_v52 = vpop.f32.mrf.mxu1 }
0x3f34   :  { %v11195_v59 = vmul.f32 %v11191_v16, %v11183_v29  ;;  %v11189_v38 = vmul.f32 %v11175_v56, %v11175_v56  ;;  %v11186_v17 = vadd.f32 %v13090_v52, %v11764_v58 }
0x3f35   :  { %v11177_v53 = vpop.f32.mrf.mxu1 }
0x3f36   :  { %v11199_v22 = vmul.f32 0.044715, %v11195_v59  ;;  %v11193_v36 = vmul.f32 %v11189_v38, %v11175_v56  ;;  %v11192_v49 = vmul.f32 %v11186_v17, %v11186_v17  ;;  %v11178_v6 = vadd.f32 %v11764_v58, %v11177_v53 }
0x3f38   :  { %v11203_v63 = vadd.f32 %v11199_v22, %v11183_v29  ;;  %v11197_v24 = vmul.f32 0.044715, %v11193_v36  ;;  %v11196_v43 = vmul.f32 %v11192_v49, %v11186_v17  ;;  %v11190_v26 = vmul.f32 %v11178_v6, %v11178_v6 }
0x3f3a   :  { %v11207_v32 = vmul.f32 0.7978846, %v11203_v63  ;;  %v11201_v44 = vadd.f32 %v11197_v24, %v11175_v56  ;;  %v11200_v15 = vmul.f32 0.044715, %v11196_v43  ;;  %v11194_v23 = vmul.f32 %v11190_v26, %v11178_v6 }
0x3f3c   :  { %v11205_v51 = vmul.f32 0.7978846, %v11201_v44  ;;  %v11204_v54 = vadd.f32 %v11200_v15, %v11186_v17  ;;  %v11198_v12 = vmul.f32 0.044715, %v11194_v23  ;;  %14041 = vtanh.f32 %v11207_v32 }
0x3f3e   :  { %14043 = vtanh.f32 %v11205_v51  ;;  %v11208_v47 = vmul.f32 0.7978846, %v11204_v54  ;;  %v11202_v18 = vadd.f32 %v11198_v12, %v11178_v6 }
0x3f40   :  { %14045 = vtanh.f32 %v11208_v47  ;;  %v11206_v10 = vmul.f32 0.7978846, %v11202_v18 }
0x3f42   :  { %14047 = vtanh.f32 %v11206_v10 }
0x3f49   :  { %v14042_v42 = vpop.eup %14041 }
0x3f4a   :  { %v11215_v1 = vadd.f32 1.0, %v14042_v42 }
0x3f4b   :  { %v14044_v35 = vpop.eup %14043 }
0x3f4c   :  { %v11213_v37 = vadd.f32 1.0, %v14044_v35  ;;  %v11219_v0 = vmul.f32 0.5, %v11215_v1  ;;  %v11776_v1 = vld [vmem:[%s18752_s17] ss:$0 sm:$0xff] }
0x3f4d   :  { %v14046_v62 = vpop.eup %14045 }
0x3f4e   :  { %v11216_v31 = vadd.f32 1.0, %v14046_v62  ;;  %v11217_v9 = vmul.f32 0.5, %v11213_v37  ;;  %v11223_v46 = vmul.f32 %v11219_v0, %v11183_v29 }
0x3f4f   :  { %v14048_v45 = vpop.eup %14047 }
0x3f50   :  { %v11220_v2 = vmul.f32 0.5, %v11216_v31  ;;  %v11214_v28 = vadd.f32 1.0, %v14048_v45  ;;  %v11221_v20 = vmul.f32 %v11217_v9, %v11175_v56 }
0x3f52   :  { %v11218_v14 = vmul.f32 0.5, %v11214_v28  ;;  %v11224_v34 = vmul.f32 %v11220_v2, %v11186_v17  ;;  %v11777_v2 = vld [vmem:[%s18753_s21] ss:$0 sm:$0xff] }
0x3f54   :  { %v11222_v39 = vmul.f32 %v11218_v14, %v11178_v6  ;;  %v11226_v50 = vpack.c.bf16 %v11224_v34, %v11223_v46 }
0x3f56   :  { %v11225_v30 = vpack.c.bf16 %v11222_v39, %v11221_v20 }
0x3f58   :  { %13099 = vmatprep.mubr.msk.bf16.mxu0 %vm8016_vm5, %v11225_v30 }
0x3f59   :  { %13100 = vmatmul.mubr.msk.bf16.vlgmr.msra.gmra.mxu0 %vm8016_vm5, %v11226_v50 }
0x4019   :  { %v13101_v60 = vpop.f32.mrf.mxu0 }
0x401a   :  { %v11315_v13 = vadd.f32 %v13101_v60, %v11769_v19 }
0x401b   :  { %v11306_v4 = vpop.f32.mrf.mxu0 }
0x401c   :  { %v11307_v27 = vadd.f32 %v11769_v19, %v11306_v4  ;;  %v11323_v61 = vadd.f32 %v11315_v13, %v18566_v48 }
0x401d   :  { %v13102_v40 = vpop.f32.mrf.mxu0 }
0x401e   :  { %v11321_v3 = vadd.f32 %v11307_v27, %v18563_v55  ;;  %v11318_v11 = vadd.f32 %v13102_v40, %v11769_v19  ;;  %v11333_v29 = vsel %vm4146_vm4, %v11323_v61, 0.0 }
0x401f   :  { %v11309_v21 = vpop.f32.mrf.mxu0 }
0x4020   :  { %v11310_v5 = vadd.f32 %v11769_v19, %v11309_v21  ;;  %v11327_v57 = vsel %vm4146_vm4, %v11321_v3, 0.0  ;;  %v11324_v58 = vadd.f32 %v11318_v11, %v18574_v8 }
0x4021   :  { %11328 = vadd.xlane.f32.xlu0 %v11327_v57 }
0x4022   :  { %v11322_v41 = vadd.f32 %v11310_v5, %v18571_v25  ;;  %v11336_v55 = vsel %vm4146_vm4, %v11324_v58, 0.0 }
0x4024   :  { %v11330_v33 = vsel %vm4146_vm4, %v11322_v41, 0.0 }
0x4025   :  { %11331 = vadd.xlane.f32.xlu1 %v11330_v33  ;;  %11334 = vadd.xlane.f32.xlu0 %v11333_v29 }
0x4029   :  { %11337 = vadd.xlane.f32.xlu1 %v11336_v55 }
0x40aa   :  { %v11329_v7 = vpop.xlane.xlu0 %11328 }
0x40ab   :  { %v11339_v48 = vmul.f32 0.03125, %v11329_v7 }
0x40ad   :  { %v11343_v16 = vsub.f32 %v11321_v3, %v11339_v48 }
0x40ae   :  { %v11332_v56 = vpop.xlane.xlu1 %11331  ;;  %v11335_v52 = vpop.xlane.xlu0 %11334 }
0x40af   :  { %v11340_v59 = vmul.f32 0.03125, %v11332_v56  ;;  %v11341_v38 = vmul.f32 0.03125, %v11335_v52  ;;  %v11347_v17 = vmul.f32 %v11343_v16, %v11343_v16 }
0x40b1   :  { %v11344_v25 = vsub.f32 %v11322_v41, %v11340_v59  ;;  %v11345_v53 = vsub.f32 %v11323_v61, %v11341_v38  ;;  %v11351_v8 = vsel %vm4146_vm4, %v11347_v17, 0.0 }
0x40b2   :  { %v11338_v22 = vpop.xlane.xlu1 %11337  ;;  %11352 = vadd.xlane.f32.xlu0 %v11351_v8 }
0x40b3   :  { %v11342_v36 = vmul.f32 0.03125, %v11338_v22  ;;  %v11348_v49 = vmul.f32 %v11344_v25, %v11344_v25  ;;  %v11349_v6 = vmul.f32 %v11345_v53, %v11345_v53 }
0x40b5   :  { %v11346_v63 = vsub.f32 %v11324_v58, %v11342_v36  ;;  %v11354_v24 = vsel %vm4146_vm4, %v11348_v49, 0.0  ;;  %v11357_v43 = vsel %vm4146_vm4, %v11349_v6, 0.0 }
0x40b6   :  { %11355 = vadd.xlane.f32.xlu1 %v11354_v24  ;;  %11358 = vadd.xlane.f32.xlu0 %v11357_v43 }
0x40b7   :  { %v11350_v26 = vmul.f32 %v11346_v63, %v11346_v63 }
0x40b9   :  { %v11360_v32 = vsel %vm4146_vm4, %v11350_v26, 0.0 }
0x40ba   :  { %11361 = vadd.xlane.f32.xlu1 %v11360_v32 }
0x413b   :  { %v11353_v44 = vpop.xlane.xlu0 %11352 }
0x413c   :  { %v11363_v15 = vmul.f32 0.03125, %v11353_v44 }
0x413e   :  { %v11367_v23 = vadd.f32 1e-05, %v11363_v15 }
0x413f   :  { %v11356_v51 = vpop.xlane.xlu1 %11355  ;;  %v11359_v54 = vpop.xlane.xlu0 %11358 }
0x4140   :  { %14049 = vrsqrt.f32 %v11367_v23  ;;  %v11364_v12 = vmul.f32 0.03125, %v11356_v51  ;;  %v11365_v47 = vmul.f32 0.03125, %v11359_v54 }
0x4142   :  { %v11368_v18 = vadd.f32 1e-05, %v11364_v12  ;;  %v11369_v10 = vadd.f32 1e-05, %v11365_v47 }
0x4143   :  { %v11362_v42 = vpop.xlane.xlu1 %11361 }
0x4144   :  { %14051 = vrsqrt.f32 %v11368_v18  ;;  %v11366_v35 = vmul.f32 0.03125, %v11362_v42 }
0x4145   :  { %14053 = vrsqrt.f32 %v11369_v10 }
0x4146   :  { %v11370_v37 = vadd.f32 1e-05, %v11366_v35 }
0x4148   :  { %14055 = vrsqrt.f32 %v11370_v37 }
0x414d   :  { %v14050_v62 = vpop.eup %14049 }
0x414e   :  { %v11375_v31 = vmul.f32 %v14050_v62, %v11343_v16 }
0x4150   :  { %v11385_v45 = vmul.f32 %v11776_v1, %v11375_v31 }
0x4151   :  { %v14052_v9 = vpop.eup %14051 }
0x4152   :  { %v14054_v28 = vpop.eup %14053  ;;  %v11376_v0 = vmul.f32 %v14052_v9, %v11344_v25  ;;  %v11395_v20 = vadd.f32 %v11777_v2, %v11385_v45 }
0x4153   :  { %v11377_v14 = vmul.f32 %v14054_v28, %v11345_v53 }
0x4154   :  { %v11386_v34 = vmul.f32 %v11776_v1, %v11376_v0  ;;  %v11399_v4 = vsel %vm4146_vm4, %v11395_v20, 0.0 }
0x4155   :  { %v14056_v39 = vpop.eup %14055  ;;  %v11387_v46 = vmul.f32 %v11776_v1, %v11377_v14 }
0x4156   :  { %v11378_v30 = vmul.f32 %v14056_v39, %v11346_v63  ;;  %v11396_v50 = vadd.f32 %v11777_v2, %v11386_v34 }
0x4157   :  { %v11397_v19 = vadd.f32 %v11777_v2, %v11387_v46 }
0x4158   :  { %v11388_v60 = vmul.f32 %v11776_v1, %v11378_v30  ;;  %v11400_v13 = vsel %vm4146_vm4, %v11396_v50, 0.0 }
0x4159   :  { %v11401_v27 = vadd.f32 %v11400_v13, %v11399_v4  ;;  %v11408_v21 = vsel %vm4146_vm4, %v11397_v19, 0.0 }
0x415a   :  { %v11398_v40 = vadd.f32 %v11777_v2, %v11388_v60 }
0x415b   :  { %v11402_v3 = vrot.slane %v11401_v27, 4 }
0x415c   :  { %v11409_v61 = vsel %vm4146_vm4, %v11398_v40, 0.0 }
0x415d   :  { %v11403_v11 = vadd.f32 %v11402_v3, %v11401_v27  ;;  %v11410_v5 = vadd.f32 %v11409_v61, %v11408_v21 }
0x415f   :  { %v11404_v57 = vrot.slane %v11403_v11, 2  ;;  %v11411_v41 = vrot.slane %v11410_v5, 4 }
0x4161   :  { %v11405_v58 = vadd.f32 %v11404_v57, %v11403_v11  ;;  %v11412_v33 = vadd.f32 %v11411_v41, %v11410_v5 }
0x4163   :  { %v11406_v29 = vrot.slane %v11405_v58, 1  ;;  %v11413_v55 = vrot.slane %v11412_v33, 2 }
0x4165   :  { %v11414_v7 = vadd.f32 %v11413_v55, %v11412_v33  ;;  %v11407_v48 = vadd.f32 %v11406_v29, %v11405_v58 }
0x4167   :  { %v11415_v16 = vrot.slane %v11414_v7, 1  ;;  %v11417_v52 = vmul.f32 0.0625, %v11407_v48 }
0x4169   :  { %v11416_v56 = vadd.f32 %v11415_v16, %v11414_v7 }
0x416b   :  { %v11418_v59 = vmul.f32 0.0625, %v11416_v56 }
0x416d   :  { %v11422_v38 = vsel %vm11421_vm7, %v11418_v59, %v11417_v52 }
0x416e   :  { %11425 = vst.msk [vmem:[#allocation38] sm:$0x3] %vm11424_vm8, %v11422_v38 }
0x416f   :  { %14528 = shalt.err (!%p14525_p7)
}
0x4170   :  { %11435 = dma.vmem_to_hbm [thread:$0]  %s11433_s1, 32, %s14996_s12, [#allocation4]  }
0x4171   :  { %14561 = dma.done.wait [#allocation4], 32  }
0x4172   :  { %14562 = vsyncadd [#allocation4], 4294967264 }
0x4173   :  { %11439 = vsyncpa [#allocation3], 1 }
0x4174   :  { %11440 = vsyncpa [#allocation6], 1 }
0x4175   :  { %11441 = vsyncpa [#allocation9], 1 }
0x4176   :  { %11442 = vsyncpa [#allocation12], 1 }
0x4177   :  { %11443 = vsyncpa [#allocation15], 1 }
0x4178   :  { %11444 = vsyncpa [#allocation18], 1 }
0x4179   :  { %11445 = vsyncpa [#allocation21], 1 }
0x417a   :  { %11446 = vsyncpa [#allocation24], 1 }
0x417b   :  { %11447 = vsyncpa [#allocation27], 1 }
0x417c   :  { %11448 = vsyncpa [#allocation30], 1 }
0x417d   :  { %11449 = vsyncpa [#allocation33], 1 }
0x417e   :  { %11450 = vsyncpa [#allocation36], 1 }
0x417f   :  { %11451 = vsyncpa [#allocation4], 1 }

</bundles_post_ra>
